<compile_context>
chip_gen: v7x
topology: tpu7x:2x2x1
jax: 0.10.0
libtpu: 0.0.40
codegen_flags: <defaults>
</compile_context>

<pallas_src>
import jax
import jax.numpy as jnp
from jax.experimental import pallas as pl
from jax.experimental.pallas import tpu as pltpu

IN_F, H1, H2, OUT_F = 3072, 1200, 600, 10
# lane-padded sizes (multiples of 128)
H1P, H2P, OUTP = 1280, 640, 128


def _mlp_kernel(x_ref, w1_ref, b1_ref, w2_ref, b2_ref, w3_ref, b3_ref, o_ref):
    # All matmuls run on the MXU in bf16 with f32 accumulation; bias add + ReLU in f32.
    x = x_ref[...].astype(jnp.bfloat16)  # no-op if x is already bf16

    # layer 1: (TB,3072) @ (3072,1280) + (1,1280), ReLU
    h1 = jnp.dot(x, w1_ref[...], preferred_element_type=jnp.float32)
    h1 = jnp.maximum(h1 + b1_ref[...], 0.0)

    # layer 2: (TB,1280) @ (1280,640) + (1,640), ReLU
    h2 = jnp.dot(h1.astype(jnp.bfloat16), w2_ref[...],
                 preferred_element_type=jnp.float32)
    h2 = jnp.maximum(h2 + b2_ref[...], 0.0)

    # layer 3: (TB,640) @ (640,128) + (1,128)   (no activation; cols 10..127 are pad)
    o_ref[...] = jnp.dot(h2.astype(jnp.bfloat16), w3_ref[...],
                         preferred_element_type=jnp.float32) + b3_ref[...]


def _round_up(n, m):
    return ((n + m - 1) // m) * m


def _pad_to(a, shape):
    return jnp.pad(a, [(0, t - s) for s, t in zip(a.shape, shape)])


def prepare_params(w1, b1, w2, b2, w3, b3):
    """Zero-pad to lane multiples and cast weights to bf16 (biases stay f32).

    wK: (in, out) f32 (transposed vs. PyTorch, so y = x @ W + b); bK: (out,) f32.
    Padding is inert: padded W1 cols -> h1 pad lanes = ReLU(0+0) = 0; padded W2/W3
    rows are zero so pad lanes contribute nothing downstream.
    """
    w1p = _pad_to(w1, (IN_F, H1P)).astype(jnp.bfloat16)
    b1p = _pad_to(b1.reshape(1, -1), (1, H1P)).astype(jnp.float32)
    w2p = _pad_to(w2, (H1P, H2P)).astype(jnp.bfloat16)
    b2p = _pad_to(b2.reshape(1, -1), (1, H2P)).astype(jnp.float32)
    w3p = _pad_to(w3, (H2P, OUTP)).astype(jnp.bfloat16)
    b3p = _pad_to(b3.reshape(1, -1), (1, OUTP)).astype(jnp.float32)
    return w1p, b1p, w2p, b2p, w3p, b3p


def _default_tb():
    """Per-device batch-tile cap: big tiles on 128 MiB-VMEM chips, smaller on v7x."""
    try:
        kind = jax.devices()[0].device_kind.lower()
    except Exception:
        return 256
    if "v5" in kind or "v6" in kind:
        return 512      # 128 MiB VMEM: amortize per-step overhead aggressively
    return 256          # v7x (64 MiB VMEM / TC) and unknown chips: stay conservative


def _choose_batch_tiling(B, tb):
    """Balanced batch tiles.

    Minimizes zero-padding waste (B=136 -> two tiles of 72, not 128+pad-heavy 256)
    and, for large B, keeps the grid length >= 2 so the 'parallel' batch axis can
    shard across both TensorCores on v7x.
    """
    n_tiles = pl.cdiv(B, tb)
    if n_tiles == 1 and B > 128:
        n_tiles = 2
    TB = _round_up(pl.cdiv(B, n_tiles), 8)   # sublane multiple
    Bp = TB * n_tiles
    return TB, Bp, n_tiles


def _vmem_budget_bytes(tb, x_itemsize):
    # Weights/biases are requested single-buffered (Buffered(1)); budget them at 2x
    # anyway as headroom against compiler-internal copies/scratch.
    w_bytes = 2 * 2 * (IN_F * H1P + H1P * H2P + H2P * OUTP)   # bf16
    b_bytes = 2 * 4 * (H1P + H2P + OUTP)                      # f32
    # Double-buffered x / out tiles (x at its own dtype, out f32).
    io_bytes = 2 * (x_itemsize * tb * IN_F + 4 * tb * OUTP)
    # In-kernel temporaries: bf16 copy of x, f32 h1/h2 + their bf16 copies.
    act_bytes = tb * (2 * IN_F + 6 * H1P + 6 * H2P)
    return int((w_bytes + b_bytes + io_bytes + act_bytes) * 1.3) + (2 << 20)


def module_a_forward(x, params, *, tb=None):
    """x: (B, 3072) f32 or bf16; params from prepare_params() -> (B, 10) f32.

    Passing x as bf16 halves its HBM/DMA traffic (only worthwhile if the upstream
    producer already emits bf16; a standalone wrapper cast round-trips HBM).
    """
    w1p, b1p, w2p, b2p, w3p, b3p = params
    B = x.shape[0]
    if tb is None:
        tb = _default_tb()

    TB, Bp, n_tiles = _choose_batch_tiling(B, tb)
    xp = _pad_to(x, (Bp, IN_F))

    resident = dict(pipeline_mode=pl.Buffered(1))  # constant index_map -> 1 buffer

    out = pl.pallas_call(
        _mlp_kernel,
        out_shape=jax.ShapeDtypeStruct((Bp, OUTP), jnp.float32),
        grid_spec=pltpu.PrefetchScalarGridSpec(
            num_scalar_prefetch=0,
            grid=(n_tiles,),
            in_specs=[
                pl.BlockSpec((TB, IN_F), lambda i: (i, 0)),              # x: batch-tiled
                pl.BlockSpec((IN_F, H1P), lambda i: (0, 0), **resident),  # weights/biases:
                pl.BlockSpec((1, H1P), lambda i: (0, 0), **resident),     #   VMEM-resident,
                pl.BlockSpec((H1P, H2P), lambda i: (0, 0), **resident),   #   single-buffered
                pl.BlockSpec((1, H2P), lambda i: (0, 0), **resident),
                pl.BlockSpec((H2P, OUTP), lambda i: (0, 0), **resident),
                pl.BlockSpec((1, OUTP), lambda i: (0, 0), **resident),
            ],
            out_specs=pl.BlockSpec((TB, OUTP), lambda i: (i, 0)),
        ),
        compiler_params=pltpu.CompilerParams(
            dimension_semantics=("parallel",),
            vmem_limit_bytes=_vmem_budget_bytes(TB, x.dtype.itemsize),
        ),
    )(xp, w1p, b1p, w2p, b2p, w3p, b3p)

    return out[:B, :OUT_F]


def _init_linear(key, in_f, out_f):
    # Deterministic synthetic init (PyTorch-style uniform bound 1/sqrt(fan_in)).
    kw, kb = jax.random.split(key)
    bound = 1.0 / (in_f ** 0.5)
    w = jax.random.uniform(kw, (in_f, out_f), jnp.float32, -bound, bound)
    b = jax.random.uniform(kb, (out_f,), jnp.float32, -bound, bound)
    return w, b


if __name__ == "__main__":
    key = jax.random.PRNGKey(0)
    kx, k1, k2, k3 = jax.random.split(key, 4)

    B = 8
    x = jax.random.normal(kx, (B, IN_F), jnp.float32)
    w1, b1 = _init_linear(k1, IN_F, H1)
    w2, b2 = _init_linear(k2, H1, H2)
    w3, b3 = _init_linear(k3, H2, OUT_F)

    params = prepare_params(w1, b1, w2, b2, w3, b3)
    out = jax.block_until_ready(module_a_forward(x, params))
    assert out.shape == (B, OUT_F)

    # Reference 1: what the kernel computes (bf16 weights, f32 accumulation).
    w1b, w2b, w3b = (w.astype(jnp.bfloat16) for w in (w1, w2, w3))
    h = jnp.maximum(
        jnp.dot(x.astype(jnp.bfloat16), w1b, preferred_element_type=jnp.float32) + b1, 0.0)
    h = jnp.maximum(
        jnp.dot(h.astype(jnp.bfloat16), w2b, preferred_element_type=jnp.float32) + b2, 0.0)
    ref_bf16 = jnp.dot(h.astype(jnp.bfloat16), w3b, preferred_element_type=jnp.float32) + b3
    assert jnp.allclose(out, ref_bf16, atol=1e-3, rtol=1e-3)

    # Reference 2: original ModuleA semantics in pure f32 (loose tol for bf16 weights).
    ref_f32 = jnp.maximum(x @ w1 + b1, 0.0)
    ref_f32 = jnp.maximum(ref_f32 @ w2 + b2, 0.0)
    ref_f32 = ref_f32 @ w3 + b3
    assert jnp.allclose(out, ref_f32, atol=1e-1, rtol=1e-1)

    print("KERNEL_OK")
</pallas_src>

<mosaic_0001>
module attributes {stable_mosaic.version = 11 : i64} {
  func.func @_mlp_kernel(%arg0: i32, %arg1: memref<8x3072xf32, #tpu.memory_space<vmem>>, %arg2: memref<3072x1280xbf16, #tpu.memory_space<vmem>>, %arg3: memref<1x1280xf32, #tpu.memory_space<vmem>>, %arg4: memref<1280x640xbf16, #tpu.memory_space<vmem>>, %arg5: memref<1x640xf32, #tpu.memory_space<vmem>>, %arg6: memref<640x128xbf16, #tpu.memory_space<vmem>>, %arg7: memref<1x128xf32, #tpu.memory_space<vmem>>, %arg8: memref<8x128xf32, #tpu.memory_space<vmem>>) attributes {dimension_semantics = [#tpu.dimension_semantics<parallel>], iteration_bounds = array<i64: 1>, scalar_prefetch = 0 : i64, scratch_operands = 0 : i64, tpu.core_type = #tpu.core_type<tc>, window_params = [{transform_indices = @transform_0, window_bounds = array<i64: 8, 3072>}, {pipeline_mode = #tpu.pipeline_mode<synchronous>, transform_indices = @transform_1, window_bounds = array<i64: 3072, 1280>}, {pipeline_mode = #tpu.pipeline_mode<synchronous>, transform_indices = @transform_2, window_bounds = array<i64: 1, 1280>}, {pipeline_mode = #tpu.pipeline_mode<synchronous>, transform_indices = @transform_3, window_bounds = array<i64: 1280, 640>}, {pipeline_mode = #tpu.pipeline_mode<synchronous>, transform_indices = @transform_4, window_bounds = array<i64: 1, 640>}, {pipeline_mode = #tpu.pipeline_mode<synchronous>, transform_indices = @transform_5, window_bounds = array<i64: 640, 128>}, {pipeline_mode = #tpu.pipeline_mode<synchronous>, transform_indices = @transform_6, window_bounds = array<i64: 1, 128>}, {transform_indices = @transform_7, window_bounds = array<i64: 8, 128>}]} {
    %c0 = arith.constant 0 : index
    %c0_0 = arith.constant 0 : index
    %0 = vector.load %arg1[%c0, %c0_0] : memref<8x3072xf32, #tpu.memory_space<vmem>>, vector<8x3072xf32>
    %1 = arith.truncf %0 : vector<8x3072xf32> to vector<8x3072xbf16>
    %c0_1 = arith.constant 0 : index
    %c0_2 = arith.constant 0 : index
    %2 = vector.load %arg2[%c0_1, %c0_2] : memref<3072x1280xbf16, #tpu.memory_space<vmem>>, vector<3072x1280xbf16>
    %cst = arith.constant dense<0.000000e+00> : vector<8x1280xf32>
    %3 = tpu.matmul %1, %2, %cst {dimension_numbers = #tpu.dot_dimension_numbers<[1], [0], [0], [1], [0, 0, 1, 1], [], []>} : vector<8x3072xbf16>, vector<3072x1280xbf16>, vector<8x1280xf32> -> vector<8x1280xf32>
    %c0_3 = arith.constant 0 : index
    %c0_4 = arith.constant 0 : index
    %4 = vector.load %arg3[%c0_3, %c0_4] : memref<1x1280xf32, #tpu.memory_space<vmem>>, vector<1x1280xf32>
    %5 = vector.broadcast %4 : vector<1x1280xf32> to vector<8x1280xf32>
    %6 = arith.addf %3, %5 : vector<8x1280xf32>
    %cst_5 = arith.constant 0.000000e+00 : f32
    %7 = vector.broadcast %cst_5 : f32 to vector<8x1280xf32>
    %8 = arith.maximumf %6, %7 : vector<8x1280xf32>
    %9 = arith.truncf %8 : vector<8x1280xf32> to vector<8x1280xbf16>
    %c0_6 = arith.constant 0 : index
    %c0_7 = arith.constant 0 : index
    %10 = vector.load %arg4[%c0_6, %c0_7] : memref<1280x640xbf16, #tpu.memory_space<vmem>>, vector<1280x640xbf16>
    %cst_8 = arith.constant dense<0.000000e+00> : vector<8x640xf32>
    %11 = tpu.matmul %9, %10, %cst_8 {dimension_numbers = #tpu.dot_dimension_numbers<[1], [0], [0], [1], [0, 0, 1, 1], [], []>} : vector<8x1280xbf16>, vector<1280x640xbf16>, vector<8x640xf32> -> vector<8x640xf32>
    %c0_9 = arith.constant 0 : index
    %c0_10 = arith.constant 0 : index
    %12 = vector.load %arg5[%c0_9, %c0_10] : memref<1x640xf32, #tpu.memory_space<vmem>>, vector<1x640xf32>
    %13 = vector.broadcast %12 : vector<1x640xf32> to vector<8x640xf32>
    %14 = arith.addf %11, %13 : vector<8x640xf32>
    %cst_11 = arith.constant 0.000000e+00 : f32
    %15 = vector.broadcast %cst_11 : f32 to vector<8x640xf32>
    %16 = arith.maximumf %14, %15 : vector<8x640xf32>
    %17 = arith.truncf %16 : vector<8x640xf32> to vector<8x640xbf16>
    %c0_12 = arith.constant 0 : index
    %c0_13 = arith.constant 0 : index
    %18 = vector.load %arg6[%c0_12, %c0_13] : memref<640x128xbf16, #tpu.memory_space<vmem>>, vector<640x128xbf16>
    %cst_14 = arith.constant dense<0.000000e+00> : vector<8x128xf32>
    %19 = tpu.matmul %17, %18, %cst_14 {dimension_numbers = #tpu.dot_dimension_numbers<[1], [0], [0], [1], [0, 0, 1, 1], [], []>} : vector<8x640xbf16>, vector<640x128xbf16>, vector<8x128xf32> -> vector<8x128xf32>
    %c0_15 = arith.constant 0 : index
    %c0_16 = arith.constant 0 : index
    %20 = vector.load %arg7[%c0_15, %c0_16] : memref<1x128xf32, #tpu.memory_space<vmem>>, vector<1x128xf32>
    %21 = vector.broadcast %20 : vector<1x128xf32> to vector<8x128xf32>
    %22 = arith.addf %19, %21 : vector<8x128xf32>
    %c0_17 = arith.constant 0 : index
    %c0_18 = arith.constant 0 : index
    %23 = vector.load %arg8[%c0_17, %c0_18] : memref<8x128xf32, #tpu.memory_space<vmem>>, vector<8x128xf32>
    tpu.vector_store %arg8[%c0_17, %c0_18], %22 {strides = array<i32>} : memref<8x128xf32, #tpu.memory_space<vmem>>, vector<8x128xf32>,
    return
  }
  func.func @transform_0(%arg0: i32) -> (i32, i32) {
    %c0_i32 = arith.constant 0 : i32
    %c0_i32_0 = arith.constant 0 : i32
    return %arg0, %c0_i32 : i32, i32
  }
  func.func @transform_1(%arg0: i32) -> (i32, i32) {
    %c0_i32 = arith.constant 0 : i32
    %c0_i32_0 = arith.constant 0 : i32
    %c0_i32_1 = arith.constant 0 : i32
    return %c0_i32, %c0_i32_0 : i32, i32
  }
  func.func @transform_2(%arg0: i32) -> (i32, i32) {
    %c0_i32 = arith.constant 0 : i32
    %c0_i32_0 = arith.constant 0 : i32
    %c0_i32_1 = arith.constant 0 : i32
    return %c0_i32, %c0_i32_0 : i32, i32
  }
  func.func @transform_3(%arg0: i32) -> (i32, i32) {
    %c0_i32 = arith.constant 0 : i32
    %c0_i32_0 = arith.constant 0 : i32
    %c0_i32_1 = arith.constant 0 : i32
    return %c0_i32, %c0_i32_0 : i32, i32
  }
  func.func @transform_4(%arg0: i32) -> (i32, i32) {
    %c0_i32 = arith.constant 0 : i32
    %c0_i32_0 = arith.constant 0 : i32
    %c0_i32_1 = arith.constant 0 : i32
    return %c0_i32, %c0_i32_0 : i32, i32
  }
  func.func @transform_5(%arg0: i32) -> (i32, i32) {
    %c0_i32 = arith.constant 0 : i32
    %c0_i32_0 = arith.constant 0 : i32
    %c0_i32_1 = arith.constant 0 : i32
    return %c0_i32, %c0_i32_0 : i32, i32
  }
  func.func @transform_6(%arg0: i32) -> (i32, i32) {
    %c0_i32 = arith.constant 0 : i32
    %c0_i32_0 = arith.constant 0 : i32
    %c0_i32_1 = arith.constant 0 : i32
    return %c0_i32, %c0_i32_0 : i32, i32
  }
  func.func @transform_7(%arg0: i32) -> (i32, i32) {
    %c0_i32 = arith.constant 0 : i32
    %c0_i32_0 = arith.constant 0 : i32
    return %arg0, %c0_i32 : i32, i32
  }
}

</mosaic_0001>

<bundles_post_ra>
// kernel: tpu_custom_call.1
= control target key start
LH: loop header
LB: loop body
LE: loop exit
PB: predicated region body
PF: predicated region fallthrough
CT: control target
= control target key end

     0   :  { %12 = vsyncpa [#allocation3], 0  ;;  %s24825_s0 = inlined_call_operand.hbm [shape: f32[8,3072], index: 0, kind: input, shape index: {}]   ;;  %s24826_s1 = inlined_call_operand.hbm [shape: bf16[3072,1280], index: 1, kind: input, shape index: {}]   ;;  %s24827_s2 = inlined_call_operand.hbm [shape: f32[1,1280], index: 2, kind: input, shape index: {}]   ;;  %s24828_s3 = inlined_call_operand.hbm [shape: bf16[1280,640], index: 3, kind: input, shape index: {}]   ;;  %s24829_s4 = inlined_call_operand.hbm [shape: f32[1,640], index: 4, kind: input, shape index: {}]   ;;  %s24830_s5 = inlined_call_operand.hbm [shape: bf16[640,128], index: 5, kind: input, shape index: {}]   ;;  %s24831_s6 = inlined_call_operand.hbm [shape: f32[1,128], index: 6, kind: input, shape index: {}]   ;;  %s24832_s7 = inlined_call_operand.hbm [shape: f32[8,128], index: 7, kind: output, shape index: {}]  }
   0x1   :  { %13 = vsyncpa [#allocation6], 0 }
   0x2   :  { %14 = vsyncpa [#allocation9], 0 }
   0x3   :  { %15 = vsyncpa [#allocation12], 0 }
   0x4   :  { %16 = vsyncpa [#allocation4], 0  ;;  %s24383_s24 = smov [#allocation5]   ;;  %s24197_s28 = scalar_lea.hbm %s24826_s1, 245760 }
   0x5   :  { %s32_s25 = sshll.u32 %s24383_s24, 4  ;;  %p24198_p0 = scmp.ne.s32.totalorder %s24826_s1, %s24197_s28  ;;  %s33_s25 = int_to_ptr.vmem [resolvable:$true] %s32_s25 }
   0x6   :  { %p24201_p1 = scmp.lt.u32.totalorder %s24197_s28, %s24826_s1 }
   0x8   :  { %p24203_p2 = pnand %p24201_p1, %p24198_p0 }
   0xa   :  { %24206 = shalt.err (!%p24203_p2)
}
   0xb   :  { %s24207_s10 = scalar_lea.vmem %s33_s25, 245760  ;;  %p24212_p4 = scmp.lt.s32.totalorder %s33_s25, %s33_s25 }
   0xc   :  { %p24208_p3 = scmp.ne.s32.totalorder %s33_s25, %s24207_s10  ;;  %p24213_p5 = scmp.lt.s32.totalorder %s24207_s10, %s24207_s10 }
   0xe   :  { %p24214_p6 = por %p24213_p5, %p24212_p4 }
  0x10   :  { %p24215_p7 = pnand %p24214_p6, %p24208_p3 }
  0x12   :  { %24218 = shalt.err (!%p24215_p7)
}
  0x13   :  { %s24384_s11 = smov 640   ;;  %s24385_s12 = smov 40  }
  0x14   :  { %38 = dma.hbm_to_vmem [thread:$0]  %s24826_s1, 245760, %s33_s25, [#allocation6], %s24384_s11, %s24384_s11, %s24385_s12  }
  0x15   :  { %s24386_s15 = smov [#allocation8]   ;;  %s24219_s19 = scalar_lea.hbm %s24828_s3, 51200 }
  0x16   :  { %s54_s16 = sshll.u32 %s24386_s15, 4  ;;  %p24220_p8 = scmp.ne.s32.totalorder %s24828_s3, %s24219_s19  ;;  %s55_s16 = int_to_ptr.vmem [resolvable:$true] %s54_s16 }
  0x17   :  { %p24223_p9 = scmp.lt.u32.totalorder %s24219_s19, %s24828_s3 }
  0x19   :  { %p24225_p10 = pnand %p24223_p9, %p24220_p8 }
  0x1b   :  { %24228 = shalt.err (!%p24225_p10)
}
  0x1c   :  { %s24229_s24 = scalar_lea.vmem %s55_s16, 51200  ;;  %p24234_p12 = scmp.lt.s32.totalorder %s55_s16, %s55_s16 }
  0x1d   :  { %p24230_p11 = scmp.ne.s32.totalorder %s55_s16, %s24229_s24  ;;  %p24235_p13 = scmp.lt.s32.totalorder %s24229_s24, %s24229_s24 }
  0x1f   :  { %p24236_p0 = por %p24235_p13, %p24234_p12 }
  0x21   :  { %p24237_p1 = pnand %p24236_p0, %p24230_p11 }
  0x23   :  { %24240 = shalt.err (!%p24237_p1)
}
  0x24   :  { %s24387_s1 = smov 320   ;;  %s24388_s25 = smov 20  }
  0x25   :  { %60 = dma.hbm_to_vmem [thread:$0]  %s24828_s3, 51200, %s55_s16, [#allocation9], %s24387_s1, %s24387_s1, %s24388_s25  }
  0x26   :  { %s24389_s28 = smov [#allocation11]   ;;  %s24241_s9 = scalar_lea.hbm %s24830_s5, 5120 }
  0x27   :  { %s76_s29 = sshll.u32 %s24389_s28, 4  ;;  %p24242_p2 = scmp.ne.s32.totalorder %s24830_s5, %s24241_s9  ;;  %s77_s29 = int_to_ptr.vmem [resolvable:$true] %s76_s29 }
  0x28   :  { %p24245_p3 = scmp.lt.u32.totalorder %s24241_s9, %s24830_s5 }
  0x2a   :  { %p24247_p4 = pnand %p24245_p3, %p24242_p2 }
  0x2c   :  { %24250 = shalt.err (!%p24247_p4)
}
  0x2d   :  { %s24251_s14 = scalar_lea.vmem %s77_s29, 5120  ;;  %p24256_p6 = scmp.lt.s32.totalorder %s77_s29, %s77_s29 }
  0x2e   :  { %p24252_p5 = scmp.ne.s32.totalorder %s77_s29, %s24251_s14  ;;  %p24257_p7 = scmp.lt.s32.totalorder %s24251_s14, %s24251_s14 }
  0x30   :  { %p24258_p8 = por %p24257_p7, %p24256_p6 }
  0x32   :  { %p24259_p9 = pnand %p24258_p8, %p24252_p5 }
  0x34   :  { %24262 = shalt.err (!%p24259_p9)
}
  0x35   :  { %s24390_s3 = smov 64   ;;  %s24391_s15 = smov 4  }
  0x36   :  { %82 = dma.hbm_to_vmem [thread:$0]  %s24830_s5, 5120, %s77_s29, [#allocation12], %s24390_s3, %s24390_s3, %s24391_s15  }
  0x37   :  { %s24392_s18 = smov [#allocation2]   ;;  %s24393_s20 = smov [#allocation7]  }
  0x38   :  { %s23_s19 = sshll.u32 %s24392_s18, 4  ;;  %s45_s21 = sshll.u32 %s24393_s20, 4  ;;  %s24_s19 = int_to_ptr.vmem [resolvable:$true] %s23_s19  ;;  %s46_s21 = int_to_ptr.vmem [resolvable:$true] %s45_s21 }
  0x39   :  { %s24263_s24 = scalar_lea.hbm %s24825_s0, 3072 }
  0x3a   :  { %p24264_p10 = scmp.ne.s32.totalorder %s24825_s0, %s24263_s24  ;;  %p24267_p11 = scmp.lt.u32.totalorder %s24263_s24, %s24825_s0 }
  0x3c   :  { %p24269_p12 = pnand %p24267_p11, %p24264_p10 }
  0x3e   :  { %24272 = shalt.err (!%p24269_p12)
}
  0x3f   :  { %s24273_s5 = scalar_lea.vmem %s24_s19, 3072  ;;  %p24278_p0 = scmp.lt.s32.totalorder %s24_s19, %s24_s19 }
  0x40   :  { %p24274_p13 = scmp.ne.s32.totalorder %s24_s19, %s24273_s5  ;;  %p24279_p1 = scmp.lt.s32.totalorder %s24273_s5, %s24273_s5 }
  0x42   :  { %p24280_p2 = por %p24279_p1, %p24278_p0 }
  0x44   :  { %p24281_p3 = pnand %p24280_p2, %p24274_p13 }
  0x46   :  { %24284 = shalt.err (!%p24281_p3)
}
  0x47   :  { %26 = dma.hbm_to_vmem [thread:$0]  %s24825_s0, 3072, %s24_s19, [#allocation3]  }
  0x48   :  { %s24285_s9 = scalar_lea.hbm %s24827_s2, 160 }
  0x49   :  { %p24286_p4 = scmp.ne.s32.totalorder %s24827_s2, %s24285_s9  ;;  %p24289_p5 = scmp.lt.u32.totalorder %s24285_s9, %s24827_s2 }
  0x4b   :  { %p24291_p6 = pnand %p24289_p5, %p24286_p4 }
  0x4d   :  { %24294 = shalt.err (!%p24291_p6)
}
  0x4e   :  { %s24295_s14 = scalar_lea.vmem %s46_s21, 160  ;;  %p24300_p8 = scmp.lt.s32.totalorder %s46_s21, %s46_s21 }
  0x4f   :  { %p24296_p7 = scmp.ne.s32.totalorder %s46_s21, %s24295_s14  ;;  %p24301_p9 = scmp.lt.s32.totalorder %s24295_s14, %s24295_s14 }
  0x51   :  { %p24302_p10 = por %p24301_p9, %p24300_p8 }
  0x53   :  { %p24303_p11 = pnand %p24302_p10, %p24296_p7 }
  0x55   :  { %24306 = shalt.err (!%p24303_p11)
}
  0x56   :  { %48 = dma.hbm_to_vmem [thread:$0]  %s24827_s2, 160, %s46_s21, [#allocation6]  }
  0x57   :  { %s24394_s15 = smov [#allocation10]   ;;  %s24395_s17 = smov [#allocation13]  }
  0x58   :  { %s67_s16 = sshll.u32 %s24394_s15, 4  ;;  %s89_s18 = sshll.u32 %s24395_s17, 4  ;;  %s68_s16 = int_to_ptr.vmem [resolvable:$true] %s67_s16  ;;  %s90_s18 = int_to_ptr.vmem [resolvable:$true] %s89_s18 }
  0x59   :  { %s24307_s22 = scalar_lea.hbm %s24829_s4, 80 }
  0x5a   :  { %p24308_p12 = scmp.ne.s32.totalorder %s24829_s4, %s24307_s22  ;;  %p24311_p13 = scmp.lt.u32.totalorder %s24307_s22, %s24829_s4 }
  0x5c   :  { %p24313_p0 = pnand %p24311_p13, %p24308_p12 }
  0x5e   :  { %24316 = shalt.err (!%p24313_p0)
}
  0x5f   :  { %s24317_s2 = scalar_lea.vmem %s68_s16, 80  ;;  %s24321_s21 = scalar_lea.vmem %s68_s16, 96 }
  0x60   :  { %p24318_p1 = scmp.ne.s32.totalorder %s68_s16, %s24317_s2  ;;  %p24322_p2 = scmp.lt.s32.totalorder %s68_s16, %s68_s16 }
  0x61   :  { %p24323_p3 = scmp.lt.s32.totalorder %s24321_s21, %s24317_s2 }
  0x63   :  { %p24324_p4 = por %p24323_p3, %p24322_p2 }
  0x65   :  { %p24325_p5 = pnand %p24324_p4, %p24318_p1 }
  0x67   :  { %24328 = shalt.err (!%p24325_p5)
}
  0x68   :  { %70 = dma.hbm_to_vmem [thread:$0]  %s24829_s4, 80, %s68_s16, [#allocation9]  }
  0x69   :  { %s24329_s29 = scalar_lea.hbm %s24831_s6, 16 }
  0x6a   :  { %p24330_p6 = scmp.ne.s32.totalorder %s24831_s6, %s24329_s29  ;;  %p24333_p7 = scmp.lt.u32.totalorder %s24329_s29, %s24831_s6 }
  0x6c   :  { %p24335_p8 = pnand %p24333_p7, %p24330_p6 }
  0x6e   :  { %24338 = shalt.err (!%p24335_p8)
}
  0x6f   :  { %s24339_s11 = scalar_lea.vmem %s90_s18, 16  ;;  %s24343_s12 = scalar_lea.vmem %s90_s18, 32 }
  0x70   :  { %p24340_p9 = scmp.ne.s32.totalorder %s90_s18, %s24339_s11  ;;  %p24344_p10 = scmp.lt.s32.totalorder %s90_s18, %s90_s18 }
  0x71   :  { %p24345_p11 = scmp.lt.s32.totalorder %s24343_s12, %s24339_s11 }
  0x73   :  { %p24346_p12 = por %p24345_p11, %p24344_p10 }
  0x75   :  { %p24347_p13 = pnand %p24346_p12, %p24340_p9 }
  0x77   :  { %24350 = shalt.err (!%p24347_p13)
}
  0x78   :  { %92 = dma.hbm_to_vmem [thread:$0]  %s24831_s6, 16, %s90_s18, [#allocation12]  }
  0x79   :  { %24373 = dma.done.wait [#allocation3], 3072  }
  0x7a   :  { %24374 = vsyncadd [#allocation3], 4294964224 }
  0x7b   :  { %24375 = dma.done.wait [#allocation6], 245920  }
  0x7c   :  { %24376 = vsyncadd [#allocation6], 4294721376 }
  0x7d   :  { %24377 = dma.done.wait [#allocation9], 51280  }
  0x7e   :  { %24378 = vsyncadd [#allocation9], 4294916016 }
  0x7f   :  { %24379 = dma.done.wait [#allocation12], 5136  }
  0x80   :  { %24380 = vsyncadd [#allocation12], 4294962160  ;;  %v20716_v0 = vld [vmem:[#allocation5 + $0x4] ss:$40 sps:$4 sm:$0xff]   ;;  %v20720_v2 = vld [vmem:[#allocation5] ss:$40 sps:$4 sm:$0xff]  }
  0x81   :  { %v20718_v1 = vld [vmem:[#allocation5 + $0xc] ss:$40 sps:$4 sm:$0xff]   ;;  %11737 = vmatprep.subr.bf16.mxu0 %v20716_v0  ;;  %v20721_v3 = vld [vmem:[#allocation5 + $0x8] ss:$40 sps:$4 sm:$0xff]   ;;  %v20724_v5 = vld [vmem:[#allocation5 + $0x5c] ss:$40 sps:$4 sm:$0xff]  }
  0x82   :  { %12229 = vmatprep.subr.bf16.mxu1 %v20718_v1  ;;  %v20722_v4 = vld [vmem:[#allocation5 + $0x54] ss:$40 sps:$4 sm:$0xff]   ;;  %11738 = vmatpush1.bf16.msra.mxu0 %v20720_v2  ;;  %v20726_v6 = vld [vmem:[#allocation5 + $0x50] ss:$40 sps:$4 sm:$0xff]   ;;  %v20728_v8 = vld [vmem:[#allocation5 + $0xa4] ss:$40 sps:$4 sm:$0xff]  }
  0x83   :  { %12230 = vmatpush1.bf16.msra.mxu1 %v20721_v3  ;;  %11739 = vmatprep.subr.bf16.mxu0 %v20722_v4  ;;  %v20727_v7 = vld [vmem:[#allocation5 + $0x58] ss:$40 sps:$4 sm:$0xff]   ;;  %v20730_v9 = vld [vmem:[#allocation5 + $0xac] ss:$40 sps:$4 sm:$0xff]   ;;  %v20733_v11 = vld [vmem:[#allocation5 + $0xa8] ss:$40 sps:$4 sm:$0xff]  }
  0x84   :  { %12231 = vmatprep.subr.bf16.mxu1 %v20724_v5  ;;  %v20732_v10 = vld [vmem:[#allocation5 + $0xa0] ss:$40 sps:$4 sm:$0xff]   ;;  %v20734_v12 = vld [vmem:[#allocation5 + $0xf4] ss:$40 sps:$4 sm:$0xff]   ;;  %v20738_v14 = vld [vmem:[#allocation5 + $0xf0] ss:$40 sps:$4 sm:$0xff]  }
  0x85   :  { %v20736_v13 = vld [vmem:[#allocation5 + $0xfc] ss:$40 sps:$4 sm:$0xff]   ;;  %v20739_v15 = vld [vmem:[#allocation5 + $0xf8] ss:$40 sps:$4 sm:$0xff]   ;;  %v20742_v17 = vld [vmem:[#allocation5 + $0x14c] ss:$40 sps:$4 sm:$0xff]  }
  0x86   :  { %11740 = vmatpush1.bf16.msra.mxu0 %v20726_v6  ;;  %v20740_v16 = vld [vmem:[#allocation5 + $0x144] ss:$40 sps:$4 sm:$0xff]   ;;  %v20744_v18 = vld [vmem:[#allocation5 + $0x140] ss:$40 sps:$4 sm:$0xff]   ;;  %v20746_v20 = vld [vmem:[#allocation5 + $0x194] ss:$40 sps:$4 sm:$0xff]  }
  0x87   :  { %12232 = vmatpush1.bf16.msra.mxu1 %v20727_v7  ;;  %11741 = vmatprep.subr.bf16.mxu0 %v20728_v8  ;;  %v20745_v19 = vld [vmem:[#allocation5 + $0x148] ss:$40 sps:$4 sm:$0xff]   ;;  %v20748_v21 = vld [vmem:[#allocation5 + $0x19c] ss:$40 sps:$4 sm:$0xff]   ;;  %v20751_v23 = vld [vmem:[#allocation5 + $0x198] ss:$40 sps:$4 sm:$0xff]  }
  0x88   :  { %12233 = vmatprep.subr.bf16.mxu1 %v20730_v9  ;;  %v20750_v22 = vld [vmem:[#allocation5 + $0x190] ss:$40 sps:$4 sm:$0xff]   ;;  %v20752_v24 = vld [vmem:[#allocation5 + $0x1e4] ss:$40 sps:$4 sm:$0xff]   ;;  %v20756_v26 = vld [vmem:[#allocation5 + $0x1e0] ss:$40 sps:$4 sm:$0xff]  }
  0x89   :  { %v20754_v25 = vld [vmem:[#allocation5 + $0x1ec] ss:$40 sps:$4 sm:$0xff]   ;;  %v20757_v27 = vld [vmem:[#allocation5 + $0x1e8] ss:$40 sps:$4 sm:$0xff]   ;;  %v20760_v29 = vld [vmem:[#allocation5 + $0x23c] ss:$40 sps:$4 sm:$0xff]  }
  0x8a   :  { %11742 = vmatpush1.bf16.msra.mxu0 %v20732_v10  ;;  %v20758_v28 = vld [vmem:[#allocation5 + $0x234] ss:$40 sps:$4 sm:$0xff]   ;;  %v20762_v30 = vld [vmem:[#allocation5 + $0x230] ss:$40 sps:$4 sm:$0xff]   ;;  %v20764_v32 = vld [vmem:[#allocation5 + $0x284] ss:$40 sps:$4 sm:$0xff]  }
  0x8b   :  { %12234 = vmatpush1.bf16.msra.mxu1 %v20733_v11  ;;  %11743 = vmatprep.subr.bf16.mxu0 %v20734_v12  ;;  %v20763_v31 = vld [vmem:[#allocation5 + $0x238] ss:$40 sps:$4 sm:$0xff]   ;;  %v20766_v33 = vld [vmem:[#allocation5 + $0x28c] ss:$40 sps:$4 sm:$0xff]   ;;  %v20769_v35 = vld [vmem:[#allocation5 + $0x288] ss:$40 sps:$4 sm:$0xff]  }
  0x8c   :  { %12235 = vmatprep.subr.bf16.mxu1 %v20736_v13  ;;  %v20768_v34 = vld [vmem:[#allocation5 + $0x280] ss:$40 sps:$4 sm:$0xff]   ;;  %v20770_v36 = vld [vmem:[#allocation5 + $0x2d4] ss:$40 sps:$4 sm:$0xff]   ;;  %v20774_v38 = vld [vmem:[#allocation5 + $0x2d0] ss:$40 sps:$4 sm:$0xff]  }
  0x8d   :  { %v20772_v37 = vld [vmem:[#allocation5 + $0x2dc] ss:$40 sps:$4 sm:$0xff]   ;;  %v20775_v39 = vld [vmem:[#allocation5 + $0x2d8] ss:$40 sps:$4 sm:$0xff]   ;;  %v20778_v41 = vld [vmem:[#allocation5 + $0x32c] ss:$40 sps:$4 sm:$0xff]  }
  0x8e   :  { %11744 = vmatpush1.bf16.msra.mxu0 %v20738_v14  ;;  %v20776_v40 = vld [vmem:[#allocation5 + $0x324] ss:$40 sps:$4 sm:$0xff]   ;;  %v20780_v42 = vld [vmem:[#allocation5 + $0x320] ss:$40 sps:$4 sm:$0xff]   ;;  %v20782_v44 = vld [vmem:[#allocation5 + $0x374] ss:$40 sps:$4 sm:$0xff]  }
  0x8f   :  { %12236 = vmatpush1.bf16.msra.mxu1 %v20739_v15  ;;  %11745 = vmatprep.subr.bf16.mxu0 %v20740_v16  ;;  %v20781_v43 = vld [vmem:[#allocation5 + $0x328] ss:$40 sps:$4 sm:$0xff]   ;;  %v20784_v45 = vld [vmem:[#allocation5 + $0x37c] ss:$40 sps:$4 sm:$0xff]   ;;  %v20787_v49 = vld [vmem:[#allocation5 + $0x378] ss:$40 sps:$4 sm:$0xff]  }
  0x90   :  { %12237 = vmatprep.subr.bf16.mxu1 %v20742_v17  ;;  %v116_v46 = vld [vmem:[#allocation2 + $0x8] sm:$0xff]  ;;  %v20786_v47 = vld [vmem:[#allocation5 + $0x370] ss:$40 sps:$4 sm:$0xff]   ;;  %v20794_v54 = vld [vmem:[#allocation5 + $0x414] ss:$40 sps:$4 sm:$0xff]   ;;  %vm24397_vm0 = vmmov 0  }
  0x91   :  { %v24523_v48 = vpack.c.bf16 %v116_v46, %v116_v46  ;;  %v20788_v50 = vld [vmem:[#allocation5 + $0x3c4] ss:$40 sps:$4 sm:$0xff]   ;;  %v20792_v52 = vld [vmem:[#allocation5 + $0x3c0] ss:$40 sps:$4 sm:$0xff]   ;;  %v20798_v56 = vld [vmem:[#allocation5 + $0x410] ss:$40 sps:$4 sm:$0xff]  }
  0x92   :  { %11746 = vmatpush1.bf16.msra.mxu0 %v20744_v18  ;;  %v20790_v51 = vld [vmem:[#allocation5 + $0x3cc] ss:$40 sps:$4 sm:$0xff]   ;;  %v20793_v53 = vld [vmem:[#allocation5 + $0x3c8] ss:$40 sps:$4 sm:$0xff]   ;;  %v20796_v55 = vld [vmem:[#allocation5 + $0x41c] ss:$40 sps:$4 sm:$0xff]  }
  0x93   :  { %12238 = vmatpush1.bf16.msra.mxu1 %v20745_v19  ;;  %11747 = vmatprep.subr.bf16.mxu0 %v20746_v20  ;;  %v20799_v57 = vld [vmem:[#allocation5 + $0x418] ss:$40 sps:$4 sm:$0xff]   ;;  %v20800_v58 = vld [vmem:[#allocation5 + $0x464] ss:$40 sps:$4 sm:$0xff]   ;;  %v20805_v61 = vld [vmem:[#allocation5 + $0x468] ss:$40 sps:$4 sm:$0xff]  }
  0x94   :  { %12239 = vmatprep.subr.bf16.mxu1 %v20748_v21  ;;  %11769 = vmatprep.mubr.bf16.mxu0 %v24523_v48  ;;  %v20802_v59 = vld [vmem:[#allocation5 + $0x46c] ss:$40 sps:$4 sm:$0xff]   ;;  %v20804_v60 = vld [vmem:[#allocation5 + $0x460] ss:$40 sps:$4 sm:$0xff]   ;;  %v20808_v63 = vld [vmem:[#allocation5 + $0x4bc] ss:$40 sps:$4 sm:$0xff]  }
  0x95   :  { %12261 = vmatprep.mubr.bf16.mxu1 %v24523_v48  ;;  %v20806_v62 = vld [vmem:[#allocation5 + $0x4b4] ss:$40 sps:$4 sm:$0xff]   ;;  %v20810_v0 = vld [vmem:[#allocation5 + $0x4b0] ss:$40 sps:$4 sm:$0xff]   ;;  %v115_v2 = vld [vmem:[#allocation2] sm:$0xff]  ;;  %s24398_s6 = smov [#allocation14]  }
  0x96   :  { %11748 = vmatpush1.bf16.msra.mxu0 %v20750_v22  ;;  %v20811_v1 = vld [vmem:[#allocation5 + $0x4b8] ss:$40 sps:$4 sm:$0xff]   ;;  %v20814_v3 = vld [vmem:[#allocation5 + $0x504] ss:$40 sps:$4 sm:$0xff]   ;;  %v24527_v5 = vpack.c.bf16 %v115_v2, %v115_v2  ;;  %v20815_v7 = vld [vmem:[#allocation5 + $0x508] ss:$40 sps:$4 sm:$0xff]  }
  0x97   :  { %12240 = vmatpush1.bf16.msra.mxu1 %v20751_v23  ;;  %11749 = vmatprep.subr.bf16.mxu0 %v20752_v24  ;;  %v20817_v4 = vld [vmem:[#allocation5 + $0x50c] ss:$40 sps:$4 sm:$0xff]   ;;  %v20812_v6 = vld [vmem:[#allocation5 + $0x500] ss:$40 sps:$4 sm:$0xff]   ;;  %v20823_v9 = vld [vmem:[#allocation5 + $0x55c] ss:$40 sps:$4 sm:$0xff]  }
  0x98   :  { %12241 = vmatprep.subr.bf16.mxu1 %v20754_v25  ;;  %v20820_v8 = vld [vmem:[#allocation5 + $0x554] ss:$40 sps:$4 sm:$0xff]   ;;  %v20818_v10 = vld [vmem:[#allocation5 + $0x550] ss:$40 sps:$4 sm:$0xff]   ;;  %v20826_v12 = vld [vmem:[#allocation5 + $0x5a4] ss:$40 sps:$4 sm:$0xff]  }
  0x99   :  { %v20821_v11 = vld [vmem:[#allocation5 + $0x558] ss:$40 sps:$4 sm:$0xff]   ;;  %v20829_v13 = vld [vmem:[#allocation5 + $0x5ac] ss:$40 sps:$4 sm:$0xff]   ;;  %v20827_v15 = vld [vmem:[#allocation5 + $0x5a8] ss:$40 sps:$4 sm:$0xff]  }
  0x9a   :  { %11750 = vmatpush1.bf16.msra.mxu0 %v20756_v26  ;;  %v20824_v14 = vld [vmem:[#allocation5 + $0x5a0] ss:$40 sps:$4 sm:$0xff]   ;;  %v20832_v16 = vld [vmem:[#allocation5 + $0x5f4] ss:$40 sps:$4 sm:$0xff]   ;;  %v20830_v18 = vld [vmem:[#allocation5 + $0x5f0] ss:$40 sps:$4 sm:$0xff]  }
  0x9b   :  { %12242 = vmatpush1.bf16.msra.mxu1 %v20757_v27  ;;  %11751 = vmatprep.subr.bf16.mxu0 %v20758_v28  ;;  %v20835_v17 = vld [vmem:[#allocation5 + $0x5fc] ss:$40 sps:$4 sm:$0xff]   ;;  %v20833_v19 = vld [vmem:[#allocation5 + $0x5f8] ss:$40 sps:$4 sm:$0xff]   ;;  %v20841_v21 = vld [vmem:[#allocation5 + $0x64c] ss:$40 sps:$4 sm:$0xff]  }
  0x9c   :  { %12243 = vmatprep.subr.bf16.mxu1 %v20760_v29  ;;  %v20838_v20 = vld [vmem:[#allocation5 + $0x644] ss:$40 sps:$4 sm:$0xff]   ;;  %v20836_v22 = vld [vmem:[#allocation5 + $0x640] ss:$40 sps:$4 sm:$0xff]   ;;  %v20844_v24 = vld [vmem:[#allocation5 + $0x694] ss:$40 sps:$4 sm:$0xff]  }
  0x9d   :  { %v20839_v23 = vld [vmem:[#allocation5 + $0x648] ss:$40 sps:$4 sm:$0xff]   ;;  %v20847_v25 = vld [vmem:[#allocation5 + $0x69c] ss:$40 sps:$4 sm:$0xff]   ;;  %v20845_v27 = vld [vmem:[#allocation5 + $0x698] ss:$40 sps:$4 sm:$0xff]  }
  0x9e   :  { %11752 = vmatpush1.bf16.msra.mxu0 %v20762_v30  ;;  %v20842_v26 = vld [vmem:[#allocation5 + $0x690] ss:$40 sps:$4 sm:$0xff]   ;;  %v20850_v28 = vld [vmem:[#allocation5 + $0x6e4] ss:$40 sps:$4 sm:$0xff]   ;;  %s17878_s14 = sshll.u32 %s24398_s6, 4  ;;  %s17879_s14 = int_to_ptr.vmem [resolvable:$true] %s17878_s14 }
  0x9f   :  { %12244 = vmatpush1.bf16.msra.mxu1 %v20763_v31  ;;  %11753 = vmatprep.subr.bf16.mxu0 %v20764_v32  ;;  %v20853_v29 = vld [vmem:[#allocation5 + $0x6ec] ss:$40 sps:$4 sm:$0xff]   ;;  %v118_v30 = vld [vmem:[#allocation2 + $0x18] sm:$0xff]  ;;  %v20848_v31 = vld [vmem:[#allocation5 + $0x6e0] ss:$40 sps:$4 sm:$0xff]   ;;  %s24351_s0 = scalar_lea.vmem %s17879_s14, 128  ;;  %p24356_p1 = scmp.lt.s32.totalorder %s17879_s14, %s17879_s14 }
  0xa0   :  { %12245 = vmatprep.subr.bf16.mxu1 %v20766_v33  ;;  %v24531_v32 = vpack.c.bf16 %v118_v30, %v118_v30  ;;  %v20851_v33 = vld [vmem:[#allocation5 + $0x6e8] ss:$40 sps:$4 sm:$0xff]   ;;  %v20874_v46 = vld [vmem:[#allocation5 + $0x824] ss:$40 sps:$4 sm:$0xff]   ;;  %p24352_p0 = scmp.ne.s32.totalorder %s17879_s14, %s24351_s0  ;;  %p24357_p2 = scmp.lt.s32.totalorder %s24351_s0, %s24351_s0 }
  0xa1   :  { %v20899_v2 = vld [vmem:[#allocation5 + $0x968] ss:$40 sps:$4 sm:$0xff]  }
  0xa2   :  { %11754 = vmatpush1.bf16.msra.mxu0 %v20768_v34  ;;  %v20856_v34 = vld [vmem:[#allocation5 + $0x734] ss:$40 sps:$4 sm:$0xff]   ;;  %v20932_v30 = vld [vmem:[#allocation5 + $0xb40] ss:$40 sps:$4 sm:$0xff]   ;;  %p24358_p3 = por %p24357_p2, %p24356_p1 }
  0xa3   :  { %12246 = vmatpush1.bf16.msra.mxu1 %v20769_v35  ;;  %11755 = vmatprep.subr.bf16.mxu0 %v20770_v36  ;;  %v20859_v35 = vld [vmem:[#allocation5 + $0x73c] ss:$40 sps:$4 sm:$0xff]   ;;  %v20854_v36 = vld [vmem:[#allocation5 + $0x730] ss:$40 sps:$4 sm:$0xff]  }
  0xa4   :  { %12247 = vmatprep.subr.bf16.mxu1 %v20772_v37  ;;  %v20857_v37 = vld [vmem:[#allocation5 + $0x738] ss:$40 sps:$4 sm:$0xff]   ;;  %p24359_p4 = pnand %p24358_p3, %p24352_p0 }
  0xa6   :  { %11756 = vmatpush1.bf16.msra.mxu0 %v20774_v38  ;;  %v20862_v38 = vld [vmem:[#allocation5 + $0x784] ss:$40 sps:$4 sm:$0xff]  }
  0xa7   :  { %12248 = vmatpush1.bf16.msra.mxu1 %v20775_v39  ;;  %11757 = vmatprep.subr.bf16.mxu0 %v20776_v40  ;;  %v20865_v39 = vld [vmem:[#allocation5 + $0x78c] ss:$40 sps:$4 sm:$0xff]   ;;  %v20860_v40 = vld [vmem:[#allocation5 + $0x780] ss:$40 sps:$4 sm:$0xff]  }
  0xa8   :  { %12249 = vmatprep.subr.bf16.mxu1 %v20778_v41  ;;  %v20863_v41 = vld [vmem:[#allocation5 + $0x788] ss:$40 sps:$4 sm:$0xff]  }
  0xaa   :  { %11758 = vmatpush1.bf16.msra.mxu0 %v20780_v42  ;;  %v20868_v42 = vld [vmem:[#allocation5 + $0x7d4] ss:$40 sps:$4 sm:$0xff]  }
  0xab   :  { %12250 = vmatpush1.bf16.msra.mxu1 %v20781_v43  ;;  %11759 = vmatprep.subr.bf16.mxu0 %v20782_v44  ;;  %v20871_v43 = vld [vmem:[#allocation5 + $0x7dc] ss:$40 sps:$4 sm:$0xff]   ;;  %v20866_v44 = vld [vmem:[#allocation5 + $0x7d0] ss:$40 sps:$4 sm:$0xff]  }
  0xac   :  { %12251 = vmatprep.subr.bf16.mxu1 %v20784_v45  ;;  %v20869_v45 = vld [vmem:[#allocation5 + $0x7d8] ss:$40 sps:$4 sm:$0xff]  }
  0xae   :  { %11760 = vmatpush1.bf16.msra.mxu0 %v20786_v47  ;;  %v20877_v47 = vld [vmem:[#allocation5 + $0x82c] ss:$40 sps:$4 sm:$0xff]  }
  0xaf   :  { %12252 = vmatpush1.bf16.msra.mxu1 %v20787_v49  ;;  %11761 = vmatprep.subr.bf16.mxu0 %v20788_v50  ;;  %v20872_v49 = vld [vmem:[#allocation5 + $0x820] ss:$40 sps:$4 sm:$0xff]  }
  0xb0   :  { %12253 = vmatprep.subr.bf16.mxu1 %v20790_v51  ;;  %v20875_v50 = vld [vmem:[#allocation5 + $0x828] ss:$40 sps:$4 sm:$0xff]   ;;  %v20880_v51 = vld [vmem:[#allocation5 + $0x874] ss:$40 sps:$4 sm:$0xff]  }
  0xb2   :  { %11762 = vmatpush1.bf16.msra.mxu0 %v20792_v52  ;;  %v20883_v52 = vld [vmem:[#allocation5 + $0x87c] ss:$40 sps:$4 sm:$0xff]  }
  0xb3   :  { %12254 = vmatpush1.bf16.msra.mxu1 %v20793_v53  ;;  %11763 = vmatprep.subr.bf16.mxu0 %v20794_v54  ;;  %v20878_v53 = vld [vmem:[#allocation5 + $0x870] ss:$40 sps:$4 sm:$0xff]  }
  0xb4   :  { %12255 = vmatprep.subr.bf16.mxu1 %v20796_v55  ;;  %v20881_v54 = vld [vmem:[#allocation5 + $0x878] ss:$40 sps:$4 sm:$0xff]   ;;  %v20886_v55 = vld [vmem:[#allocation5 + $0x8c4] ss:$40 sps:$4 sm:$0xff]  }
  0xb6   :  { %11764 = vmatpush1.bf16.msra.mxu0 %v20798_v56  ;;  %v20889_v56 = vld [vmem:[#allocation5 + $0x8cc] ss:$40 sps:$4 sm:$0xff]  }
  0xb7   :  { %12256 = vmatpush1.bf16.msra.mxu1 %v20799_v57  ;;  %11765 = vmatprep.subr.bf16.mxu0 %v20800_v58  ;;  %v20884_v57 = vld [vmem:[#allocation5 + $0x8c0] ss:$40 sps:$4 sm:$0xff]  }
  0xb8   :  { %12257 = vmatprep.subr.bf16.mxu1 %v20802_v59  ;;  %v20887_v58 = vld [vmem:[#allocation5 + $0x8c8] ss:$40 sps:$4 sm:$0xff]   ;;  %v20892_v59 = vld [vmem:[#allocation5 + $0x914] ss:$40 sps:$4 sm:$0xff]  }
  0xba   :  { %11766 = vmatpush1.bf16.msra.mxu0 %v20804_v60  ;;  %v20895_v60 = vld [vmem:[#allocation5 + $0x91c] ss:$40 sps:$4 sm:$0xff]  }
  0xbb   :  { %12258 = vmatpush1.bf16.msra.mxu1 %v20805_v61  ;;  %11767 = vmatprep.subr.bf16.mxu0 %v20806_v62  ;;  %v20890_v61 = vld [vmem:[#allocation5 + $0x910] ss:$40 sps:$4 sm:$0xff]  }
  0xbc   :  { %12259 = vmatprep.subr.bf16.mxu1 %v20808_v63  ;;  %v20893_v62 = vld [vmem:[#allocation5 + $0x918] ss:$40 sps:$4 sm:$0xff]   ;;  %v20898_v63 = vld [vmem:[#allocation5 + $0x964] ss:$40 sps:$4 sm:$0xff]  }
  0xbe   :  { %11768 = vmatpush1.bf16.msra.mxu0 %v20810_v0  ;;  %v20901_v0 = vld [vmem:[#allocation5 + $0x96c] ss:$40 sps:$4 sm:$0xff]  }
  0xbf   :  { %12260 = vmatpush1.bf16.msra.mxu1 %v20811_v1  ;;  %11778 = vmatprep.subr.bf16.mxu0 %v20814_v3  ;;  %v20896_v1 = vld [vmem:[#allocation5 + $0x960] ss:$40 sps:$4 sm:$0xff]   ;;  %v20904_v3 = vld [vmem:[#allocation5 + $0x9b4] ss:$40 sps:$4 sm:$0xff]  }
  0xc0   :  { %12270 = vmatprep.subr.bf16.mxu1 %v20817_v4  ;;  %v20907_v4 = vld [vmem:[#allocation5 + $0x9bc] ss:$40 sps:$4 sm:$0xff]  }
  0xc1   :  { %11770 = vmatmul.mubr.bf16.vlgmr.msra.gmra.mrb[0].mxu0 %v24527_v5 }
  0xc2   :  { %12262 = vmatmul.mubr.bf16.vlgmr.msra.gmra.mrb[0].mxu1 %v24527_v5  ;;  %11779 = vmatpush1.bf16.msra.mxu0 %v20812_v6  ;;  %v20902_v6 = vld [vmem:[#allocation5 + $0x9b0] ss:$40 sps:$4 sm:$0xff]  }
  0xc3   :  { %12271 = vmatpush1.bf16.msra.mxu1 %v20815_v7  ;;  %11780 = vmatprep.subr.bf16.mxu0 %v20820_v8  ;;  %v20905_v7 = vld [vmem:[#allocation5 + $0x9b8] ss:$40 sps:$4 sm:$0xff]   ;;  %v20910_v8 = vld [vmem:[#allocation5 + $0xa04] ss:$40 sps:$4 sm:$0xff]  }
  0xc4   :  { %12272 = vmatprep.subr.bf16.mxu1 %v20823_v9  ;;  %11810 = vmatprep.mubr.bf16.mxu0 %v24531_v32  ;;  %v117_v9 = vld [vmem:[#allocation2 + $0x10] sm:$0xff] }
  0xc5   :  { %12302 = vmatprep.mubr.bf16.mxu1 %v24531_v32 }
  0xc6   :  { %11781 = vmatpush1.bf16.msra.mxu0 %v20818_v10  ;;  %v20913_v10 = vld [vmem:[#allocation5 + $0xa0c] ss:$40 sps:$4 sm:$0xff]  }
  0xc7   :  { %12273 = vmatpush1.bf16.msra.mxu1 %v20821_v11  ;;  %11782 = vmatprep.subr.bf16.mxu0 %v20826_v12  ;;  %v20908_v11 = vld [vmem:[#allocation5 + $0xa00] ss:$40 sps:$4 sm:$0xff]  }
  0xc8   :  { %12274 = vmatprep.subr.bf16.mxu1 %v20829_v13  ;;  %v20911_v12 = vld [vmem:[#allocation5 + $0xa08] ss:$40 sps:$4 sm:$0xff]   ;;  %v24535_v13 = vpack.c.bf16 %v117_v9, %v117_v9 }
  0xc9   :  { %v20992_v9 = vld [vmem:[#allocation5 + $0xe60] ss:$40 sps:$4 sm:$0xff]  }
  0xca   :  { %11783 = vmatpush1.bf16.msra.mxu0 %v20824_v14  ;;  %v20916_v14 = vld [vmem:[#allocation5 + $0xa54] ss:$40 sps:$4 sm:$0xff]  }
  0xcb   :  { %12275 = vmatpush1.bf16.msra.mxu1 %v20827_v15  ;;  %11784 = vmatprep.subr.bf16.mxu0 %v20832_v16  ;;  %v20919_v15 = vld [vmem:[#allocation5 + $0xa5c] ss:$40 sps:$4 sm:$0xff]   ;;  %v120_v16 = vld [vmem:[#allocation2 + $0x28] sm:$0xff] }
  0xcc   :  { %12276 = vmatprep.subr.bf16.mxu1 %v20835_v17  ;;  %v24537_v17 = vpack.c.bf16 %v120_v16, %v120_v16  ;;  %v21006_v16 = vld [vmem:[#allocation5 + $0xf04] ss:$40 sps:$4 sm:$0xff]  }
  0xce   :  { %11785 = vmatpush1.bf16.msra.mxu0 %v20830_v18  ;;  %v20914_v18 = vld [vmem:[#allocation5 + $0xa50] ss:$40 sps:$4 sm:$0xff]  }
  0xcf   :  { %12277 = vmatpush1.bf16.msra.mxu1 %v20833_v19  ;;  %11786 = vmatprep.subr.bf16.mxu0 %v20838_v20  ;;  %v20917_v19 = vld [vmem:[#allocation5 + $0xa58] ss:$40 sps:$4 sm:$0xff]   ;;  %v20922_v20 = vld [vmem:[#allocation5 + $0xaa4] ss:$40 sps:$4 sm:$0xff]  }
  0xd0   :  { %12278 = vmatprep.subr.bf16.mxu1 %v20841_v21  ;;  %v20925_v21 = vld [vmem:[#allocation5 + $0xaac] ss:$40 sps:$4 sm:$0xff]  }
  0xd2   :  { %11787 = vmatpush1.bf16.msra.mxu0 %v20836_v22  ;;  %v20920_v22 = vld [vmem:[#allocation5 + $0xaa0] ss:$40 sps:$4 sm:$0xff]  }
  0xd3   :  { %12279 = vmatpush1.bf16.msra.mxu1 %v20839_v23  ;;  %11788 = vmatprep.subr.bf16.mxu0 %v20844_v24  ;;  %v20923_v23 = vld [vmem:[#allocation5 + $0xaa8] ss:$40 sps:$4 sm:$0xff]   ;;  %v20928_v24 = vld [vmem:[#allocation5 + $0xaf4] ss:$40 sps:$4 sm:$0xff]  }
  0xd4   :  { %12280 = vmatprep.subr.bf16.mxu1 %v20847_v25  ;;  %v20931_v25 = vld [vmem:[#allocation5 + $0xafc] ss:$40 sps:$4 sm:$0xff]  }
  0xd6   :  { %11789 = vmatpush1.bf16.msra.mxu0 %v20842_v26  ;;  %v20926_v26 = vld [vmem:[#allocation5 + $0xaf0] ss:$40 sps:$4 sm:$0xff]  }
  0xd7   :  { %12281 = vmatpush1.bf16.msra.mxu1 %v20845_v27  ;;  %11790 = vmatprep.subr.bf16.mxu0 %v20850_v28  ;;  %v20929_v27 = vld [vmem:[#allocation5 + $0xaf8] ss:$40 sps:$4 sm:$0xff]   ;;  %v20934_v28 = vld [vmem:[#allocation5 + $0xb44] ss:$40 sps:$4 sm:$0xff]  }
  0xd8   :  { %12282 = vmatprep.subr.bf16.mxu1 %v20853_v29  ;;  %v20937_v29 = vld [vmem:[#allocation5 + $0xb4c] ss:$40 sps:$4 sm:$0xff]  }
  0xda   :  { %11791 = vmatpush1.bf16.msra.mxu0 %v20848_v31  ;;  %v20935_v31 = vld [vmem:[#allocation5 + $0xb48] ss:$40 sps:$4 sm:$0xff]  }
  0xdb   :  { %12283 = vmatpush1.bf16.msra.mxu1 %v20851_v33  ;;  %11792 = vmatprep.subr.bf16.mxu0 %v20856_v34  ;;  %v20940_v33 = vld [vmem:[#allocation5 + $0xb94] ss:$40 sps:$4 sm:$0xff]  }
  0xdc   :  { %12284 = vmatprep.subr.bf16.mxu1 %v20859_v35  ;;  %v20943_v34 = vld [vmem:[#allocation5 + $0xb9c] ss:$40 sps:$4 sm:$0xff]   ;;  %v20938_v35 = vld [vmem:[#allocation5 + $0xb90] ss:$40 sps:$4 sm:$0xff]  }
  0xde   :  { %11793 = vmatpush1.bf16.msra.mxu0 %v20854_v36  ;;  %v20941_v36 = vld [vmem:[#allocation5 + $0xb98] ss:$40 sps:$4 sm:$0xff]  }
  0xdf   :  { %12285 = vmatpush1.bf16.msra.mxu1 %v20857_v37  ;;  %11794 = vmatprep.subr.bf16.mxu0 %v20862_v38  ;;  %v20946_v37 = vld [vmem:[#allocation5 + $0xbe4] ss:$40 sps:$4 sm:$0xff]  }
  0xe0   :  { %12286 = vmatprep.subr.bf16.mxu1 %v20865_v39  ;;  %v20949_v38 = vld [vmem:[#allocation5 + $0xbec] ss:$40 sps:$4 sm:$0xff]   ;;  %v20944_v39 = vld [vmem:[#allocation5 + $0xbe0] ss:$40 sps:$4 sm:$0xff]  }
  0xe2   :  { %11795 = vmatpush1.bf16.msra.mxu0 %v20860_v40  ;;  %v20947_v40 = vld [vmem:[#allocation5 + $0xbe8] ss:$40 sps:$4 sm:$0xff]  }
  0xe3   :  { %12287 = vmatpush1.bf16.msra.mxu1 %v20863_v41  ;;  %11796 = vmatprep.subr.bf16.mxu0 %v20868_v42  ;;  %v20952_v41 = vld [vmem:[#allocation5 + $0xc34] ss:$40 sps:$4 sm:$0xff]  }
  0xe4   :  { %12288 = vmatprep.subr.bf16.mxu1 %v20871_v43  ;;  %v20955_v42 = vld [vmem:[#allocation5 + $0xc3c] ss:$40 sps:$4 sm:$0xff]   ;;  %v20950_v43 = vld [vmem:[#allocation5 + $0xc30] ss:$40 sps:$4 sm:$0xff]  }
  0xe6   :  { %11797 = vmatpush1.bf16.msra.mxu0 %v20866_v44  ;;  %v20953_v44 = vld [vmem:[#allocation5 + $0xc38] ss:$40 sps:$4 sm:$0xff]  }
  0xe7   :  { %12289 = vmatpush1.bf16.msra.mxu1 %v20869_v45  ;;  %11798 = vmatprep.subr.bf16.mxu0 %v20874_v46  ;;  %v20958_v45 = vld [vmem:[#allocation5 + $0xc84] ss:$40 sps:$4 sm:$0xff]  }
  0xe8   :  { %12290 = vmatprep.subr.bf16.mxu1 %v20877_v47  ;;  %v20961_v46 = vld [vmem:[#allocation5 + $0xc8c] ss:$40 sps:$4 sm:$0xff]   ;;  %v20956_v47 = vld [vmem:[#allocation5 + $0xc80] ss:$40 sps:$4 sm:$0xff]  }
  0xea   :  { %11799 = vmatpush1.bf16.msra.mxu0 %v20872_v49  ;;  %v20959_v49 = vld [vmem:[#allocation5 + $0xc88] ss:$40 sps:$4 sm:$0xff]  }
  0xeb   :  { %12291 = vmatpush1.bf16.msra.mxu1 %v20875_v50  ;;  %11800 = vmatprep.subr.bf16.mxu0 %v20880_v51  ;;  %v20964_v50 = vld [vmem:[#allocation5 + $0xcd4] ss:$40 sps:$4 sm:$0xff]  }
  0xec   :  { %12292 = vmatprep.subr.bf16.mxu1 %v20883_v52  ;;  %v20967_v51 = vld [vmem:[#allocation5 + $0xcdc] ss:$40 sps:$4 sm:$0xff]   ;;  %v20962_v52 = vld [vmem:[#allocation5 + $0xcd0] ss:$40 sps:$4 sm:$0xff]  }
  0xee   :  { %11801 = vmatpush1.bf16.msra.mxu0 %v20878_v53  ;;  %v20965_v53 = vld [vmem:[#allocation5 + $0xcd8] ss:$40 sps:$4 sm:$0xff]  }
  0xef   :  { %12293 = vmatpush1.bf16.msra.mxu1 %v20881_v54  ;;  %11802 = vmatprep.subr.bf16.mxu0 %v20886_v55  ;;  %v20970_v54 = vld [vmem:[#allocation5 + $0xd24] ss:$40 sps:$4 sm:$0xff]  }
  0xf0   :  { %12294 = vmatprep.subr.bf16.mxu1 %v20889_v56  ;;  %v20973_v55 = vld [vmem:[#allocation5 + $0xd2c] ss:$40 sps:$4 sm:$0xff]   ;;  %v20968_v56 = vld [vmem:[#allocation5 + $0xd20] ss:$40 sps:$4 sm:$0xff]  }
  0xf2   :  { %11803 = vmatpush1.bf16.msra.mxu0 %v20884_v57  ;;  %v20971_v57 = vld [vmem:[#allocation5 + $0xd28] ss:$40 sps:$4 sm:$0xff]  }
  0xf3   :  { %12295 = vmatpush1.bf16.msra.mxu1 %v20887_v58  ;;  %11804 = vmatprep.subr.bf16.mxu0 %v20892_v59  ;;  %v20976_v58 = vld [vmem:[#allocation5 + $0xd74] ss:$40 sps:$4 sm:$0xff]  }
  0xf4   :  { %12296 = vmatprep.subr.bf16.mxu1 %v20895_v60  ;;  %v20979_v59 = vld [vmem:[#allocation5 + $0xd7c] ss:$40 sps:$4 sm:$0xff]   ;;  %v20974_v60 = vld [vmem:[#allocation5 + $0xd70] ss:$40 sps:$4 sm:$0xff]  }
  0xf6   :  { %11805 = vmatpush1.bf16.msra.mxu0 %v20890_v61  ;;  %v20977_v61 = vld [vmem:[#allocation5 + $0xd78] ss:$40 sps:$4 sm:$0xff]  }
  0xf7   :  { %12297 = vmatpush1.bf16.msra.mxu1 %v20893_v62  ;;  %11806 = vmatprep.subr.bf16.mxu0 %v20898_v63  ;;  %v20982_v62 = vld [vmem:[#allocation5 + $0xdc4] ss:$40 sps:$4 sm:$0xff]  }
  0xf8   :  { %12298 = vmatprep.subr.bf16.mxu1 %v20901_v0  ;;  %v20985_v63 = vld [vmem:[#allocation5 + $0xdcc] ss:$40 sps:$4 sm:$0xff]   ;;  %v20980_v0 = vld [vmem:[#allocation5 + $0xdc0] ss:$40 sps:$4 sm:$0xff]  }
  0xfa   :  { %11807 = vmatpush1.bf16.msra.mxu0 %v20896_v1  ;;  %v20983_v1 = vld [vmem:[#allocation5 + $0xdc8] ss:$40 sps:$4 sm:$0xff]  }
  0xfb   :  { %12299 = vmatpush1.bf16.msra.mxu1 %v20899_v2  ;;  %11808 = vmatprep.subr.bf16.mxu0 %v20904_v3  ;;  %v20988_v2 = vld [vmem:[#allocation5 + $0xe14] ss:$40 sps:$4 sm:$0xff]  }
  0xfc   :  { %12300 = vmatprep.subr.bf16.mxu1 %v20907_v4  ;;  %v20991_v3 = vld [vmem:[#allocation5 + $0xe1c] ss:$40 sps:$4 sm:$0xff]   ;;  %v20986_v4 = vld [vmem:[#allocation5 + $0xe10] ss:$40 sps:$4 sm:$0xff]  }
  0xfe   :  { %11809 = vmatpush1.bf16.msra.mxu0 %v20902_v6  ;;  %v20989_v6 = vld [vmem:[#allocation5 + $0xe18] ss:$40 sps:$4 sm:$0xff]  }
  0xff   :  { %12301 = vmatpush1.bf16.msra.mxu1 %v20905_v7  ;;  %11819 = vmatprep.subr.bf16.mxu0 %v20910_v8  ;;  %v20994_v7 = vld [vmem:[#allocation5 + $0xe64] ss:$40 sps:$4 sm:$0xff]  }
 0x100   :  { %12311 = vmatprep.subr.bf16.mxu1 %v20913_v10  ;;  %v20997_v8 = vld [vmem:[#allocation5 + $0xe6c] ss:$40 sps:$4 sm:$0xff]   ;;  %v20995_v10 = vld [vmem:[#allocation5 + $0xe68] ss:$40 sps:$4 sm:$0xff]  }
 0x101   :  { %11811 = vmatmul.mubr.bf16.vlgmr.msra.gmra.mrb[0].mxu0 %v24535_v13 }
 0x102   :  { %12303 = vmatmul.mubr.bf16.vlgmr.msra.gmra.mrb[0].mxu1 %v24535_v13  ;;  %11820 = vmatpush1.bf16.msra.mxu0 %v20908_v11  ;;  %v21000_v11 = vld [vmem:[#allocation5 + $0xeb4] ss:$40 sps:$4 sm:$0xff]  }
 0x103   :  { %12312 = vmatpush1.bf16.msra.mxu1 %v20911_v12  ;;  %11821 = vmatprep.subr.bf16.mxu0 %v20916_v14  ;;  %v21003_v12 = vld [vmem:[#allocation5 + $0xebc] ss:$40 sps:$4 sm:$0xff]   ;;  %v20998_v14 = vld [vmem:[#allocation5 + $0xeb0] ss:$40 sps:$4 sm:$0xff]  }
 0x104   :  { %12313 = vmatprep.subr.bf16.mxu1 %v20919_v15  ;;  %11851 = vmatprep.mubr.bf16.mxu0 %v24537_v17  ;;  %v21001_v15 = vld [vmem:[#allocation5 + $0xeb8] ss:$40 sps:$4 sm:$0xff]  }
 0x105   :  { %12343 = vmatprep.mubr.bf16.mxu1 %v24537_v17 }
 0x106   :  { %11822 = vmatpush1.bf16.msra.mxu0 %v20914_v18  ;;  %v119_v18 = vld [vmem:[#allocation2 + $0x20] sm:$0xff] }
 0x107   :  { %12314 = vmatpush1.bf16.msra.mxu1 %v20917_v19  ;;  %11823 = vmatprep.subr.bf16.mxu0 %v20922_v20  ;;  %v21009_v19 = vld [vmem:[#allocation5 + $0xf0c] ss:$40 sps:$4 sm:$0xff]   ;;  %v21004_v20 = vld [vmem:[#allocation5 + $0xf00] ss:$40 sps:$4 sm:$0xff]  }
 0x108   :  { %12315 = vmatprep.subr.bf16.mxu1 %v20925_v21  ;;  %v21007_v21 = vld [vmem:[#allocation5 + $0xf08] ss:$40 sps:$4 sm:$0xff]  }
 0x10a   :  { %11824 = vmatpush1.bf16.msra.mxu0 %v20920_v22  ;;  %v24543_v22 = vpack.c.bf16 %v119_v18, %v119_v18  ;;  %v21090_v18 = vld [vmem:[#allocation5 + $0x1364] ss:$40 sps:$4 sm:$0xff]  }
 0x10b   :  { %12316 = vmatpush1.bf16.msra.mxu1 %v20923_v23  ;;  %11825 = vmatprep.subr.bf16.mxu0 %v20928_v24  ;;  %v122_v23 = vld [vmem:[#allocation2 + $0x38] sm:$0xff] }
 0x10c   :  { %12317 = vmatprep.subr.bf16.mxu1 %v20931_v25  ;;  %v21012_v24 = vld [vmem:[#allocation5 + $0xf54] ss:$40 sps:$4 sm:$0xff]  }
 0x10d   :  { %v21015_v25 = vld [vmem:[#allocation5 + $0xf5c] ss:$40 sps:$4 sm:$0xff]  }
 0x10e   :  { %11826 = vmatpush1.bf16.msra.mxu0 %v20926_v26  ;;  %v24545_v26 = vpack.c.bf16 %v122_v23, %v122_v23  ;;  %v21096_v23 = vld [vmem:[#allocation5 + $0x13b4] ss:$40 sps:$4 sm:$0xff]  }
 0x10f   :  { %12318 = vmatpush1.bf16.msra.mxu1 %v20929_v27  ;;  %11827 = vmatprep.subr.bf16.mxu0 %v20934_v28  ;;  %v21010_v27 = vld [vmem:[#allocation5 + $0xf50] ss:$40 sps:$4 sm:$0xff]  }
 0x110   :  { %12319 = vmatprep.subr.bf16.mxu1 %v20937_v29  ;;  %v21013_v28 = vld [vmem:[#allocation5 + $0xf58] ss:$40 sps:$4 sm:$0xff]   ;;  %v21018_v29 = vld [vmem:[#allocation5 + $0xfa4] ss:$40 sps:$4 sm:$0xff]  }
 0x112   :  { %11828 = vmatpush1.bf16.msra.mxu0 %v20932_v30  ;;  %v21021_v30 = vld [vmem:[#allocation5 + $0xfac] ss:$40 sps:$4 sm:$0xff]  }
 0x113   :  { %12320 = vmatpush1.bf16.msra.mxu1 %v20935_v31  ;;  %11829 = vmatprep.subr.bf16.mxu0 %v20940_v33  ;;  %v21016_v31 = vld [vmem:[#allocation5 + $0xfa0] ss:$40 sps:$4 sm:$0xff]  }
 0x114   :  { %12321 = vmatprep.subr.bf16.mxu1 %v20943_v34  ;;  %v21019_v33 = vld [vmem:[#allocation5 + $0xfa8] ss:$40 sps:$4 sm:$0xff]   ;;  %v21024_v34 = vld [vmem:[#allocation5 + $0xff4] ss:$40 sps:$4 sm:$0xff]  }
 0x116   :  { %11830 = vmatpush1.bf16.msra.mxu0 %v20938_v35  ;;  %v21027_v35 = vld [vmem:[#allocation5 + $0xffc] ss:$40 sps:$4 sm:$0xff]  }
 0x117   :  { %12322 = vmatpush1.bf16.msra.mxu1 %v20941_v36  ;;  %11831 = vmatprep.subr.bf16.mxu0 %v20946_v37  ;;  %v21022_v36 = vld [vmem:[#allocation5 + $0xff0] ss:$40 sps:$4 sm:$0xff]  }
 0x118   :  { %12323 = vmatprep.subr.bf16.mxu1 %v20949_v38  ;;  %v21025_v37 = vld [vmem:[#allocation5 + $0xff8] ss:$40 sps:$4 sm:$0xff]   ;;  %v21030_v38 = vld [vmem:[#allocation5 + $0x1044] ss:$40 sps:$4 sm:$0xff]  }
 0x11a   :  { %11832 = vmatpush1.bf16.msra.mxu0 %v20944_v39  ;;  %v21033_v39 = vld [vmem:[#allocation5 + $0x104c] ss:$40 sps:$4 sm:$0xff]  }
 0x11b   :  { %12324 = vmatpush1.bf16.msra.mxu1 %v20947_v40  ;;  %11833 = vmatprep.subr.bf16.mxu0 %v20952_v41  ;;  %v21028_v40 = vld [vmem:[#allocation5 + $0x1040] ss:$40 sps:$4 sm:$0xff]  }
 0x11c   :  { %12325 = vmatprep.subr.bf16.mxu1 %v20955_v42  ;;  %v21031_v41 = vld [vmem:[#allocation5 + $0x1048] ss:$40 sps:$4 sm:$0xff]   ;;  %v21036_v42 = vld [vmem:[#allocation5 + $0x1094] ss:$40 sps:$4 sm:$0xff]  }
 0x11e   :  { %11834 = vmatpush1.bf16.msra.mxu0 %v20950_v43  ;;  %v21039_v43 = vld [vmem:[#allocation5 + $0x109c] ss:$40 sps:$4 sm:$0xff]  }
 0x11f   :  { %12326 = vmatpush1.bf16.msra.mxu1 %v20953_v44  ;;  %11835 = vmatprep.subr.bf16.mxu0 %v20958_v45  ;;  %v21034_v44 = vld [vmem:[#allocation5 + $0x1090] ss:$40 sps:$4 sm:$0xff]  }
 0x120   :  { %12327 = vmatprep.subr.bf16.mxu1 %v20961_v46  ;;  %v21037_v45 = vld [vmem:[#allocation5 + $0x1098] ss:$40 sps:$4 sm:$0xff]   ;;  %v21042_v46 = vld [vmem:[#allocation5 + $0x10e4] ss:$40 sps:$4 sm:$0xff]  }
 0x122   :  { %11836 = vmatpush1.bf16.msra.mxu0 %v20956_v47  ;;  %v21045_v47 = vld [vmem:[#allocation5 + $0x10ec] ss:$40 sps:$4 sm:$0xff]  }
 0x123   :  { %12328 = vmatpush1.bf16.msra.mxu1 %v20959_v49  ;;  %11837 = vmatprep.subr.bf16.mxu0 %v20964_v50  ;;  %v21040_v49 = vld [vmem:[#allocation5 + $0x10e0] ss:$40 sps:$4 sm:$0xff]  }
 0x124   :  { %12329 = vmatprep.subr.bf16.mxu1 %v20967_v51  ;;  %v21043_v50 = vld [vmem:[#allocation5 + $0x10e8] ss:$40 sps:$4 sm:$0xff]   ;;  %v21048_v51 = vld [vmem:[#allocation5 + $0x1134] ss:$40 sps:$4 sm:$0xff]  }
 0x126   :  { %11838 = vmatpush1.bf16.msra.mxu0 %v20962_v52  ;;  %v21051_v52 = vld [vmem:[#allocation5 + $0x113c] ss:$40 sps:$4 sm:$0xff]  }
 0x127   :  { %12330 = vmatpush1.bf16.msra.mxu1 %v20965_v53  ;;  %11839 = vmatprep.subr.bf16.mxu0 %v20970_v54  ;;  %v21046_v53 = vld [vmem:[#allocation5 + $0x1130] ss:$40 sps:$4 sm:$0xff]  }
 0x128   :  { %12331 = vmatprep.subr.bf16.mxu1 %v20973_v55  ;;  %v21049_v54 = vld [vmem:[#allocation5 + $0x1138] ss:$40 sps:$4 sm:$0xff]   ;;  %v21054_v55 = vld [vmem:[#allocation5 + $0x1184] ss:$40 sps:$4 sm:$0xff]  }
 0x12a   :  { %11840 = vmatpush1.bf16.msra.mxu0 %v20968_v56  ;;  %v21057_v56 = vld [vmem:[#allocation5 + $0x118c] ss:$40 sps:$4 sm:$0xff]  }
 0x12b   :  { %12332 = vmatpush1.bf16.msra.mxu1 %v20971_v57  ;;  %11841 = vmatprep.subr.bf16.mxu0 %v20976_v58  ;;  %v21052_v57 = vld [vmem:[#allocation5 + $0x1180] ss:$40 sps:$4 sm:$0xff]  }
 0x12c   :  { %12333 = vmatprep.subr.bf16.mxu1 %v20979_v59  ;;  %v21055_v58 = vld [vmem:[#allocation5 + $0x1188] ss:$40 sps:$4 sm:$0xff]   ;;  %v21060_v59 = vld [vmem:[#allocation5 + $0x11d4] ss:$40 sps:$4 sm:$0xff]  }
 0x12e   :  { %11842 = vmatpush1.bf16.msra.mxu0 %v20974_v60  ;;  %v21063_v60 = vld [vmem:[#allocation5 + $0x11dc] ss:$40 sps:$4 sm:$0xff]  }
 0x12f   :  { %12334 = vmatpush1.bf16.msra.mxu1 %v20977_v61  ;;  %11843 = vmatprep.subr.bf16.mxu0 %v20982_v62  ;;  %v21058_v61 = vld [vmem:[#allocation5 + $0x11d0] ss:$40 sps:$4 sm:$0xff]  }
 0x130   :  { %12335 = vmatprep.subr.bf16.mxu1 %v20985_v63  ;;  %v21061_v62 = vld [vmem:[#allocation5 + $0x11d8] ss:$40 sps:$4 sm:$0xff]   ;;  %v21066_v63 = vld [vmem:[#allocation5 + $0x1224] ss:$40 sps:$4 sm:$0xff]  }
 0x132   :  { %11844 = vmatpush1.bf16.msra.mxu0 %v20980_v0  ;;  %v21069_v0 = vld [vmem:[#allocation5 + $0x122c] ss:$40 sps:$4 sm:$0xff]  }
 0x133   :  { %12336 = vmatpush1.bf16.msra.mxu1 %v20983_v1  ;;  %11845 = vmatprep.subr.bf16.mxu0 %v20988_v2  ;;  %v21064_v1 = vld [vmem:[#allocation5 + $0x1220] ss:$40 sps:$4 sm:$0xff]  }
 0x134   :  { %12337 = vmatprep.subr.bf16.mxu1 %v20991_v3  ;;  %v21067_v2 = vld [vmem:[#allocation5 + $0x1228] ss:$40 sps:$4 sm:$0xff]   ;;  %v21072_v3 = vld [vmem:[#allocation5 + $0x1274] ss:$40 sps:$4 sm:$0xff]  }
 0x136   :  { %11846 = vmatpush1.bf16.msra.mxu0 %v20986_v4  ;;  %v21075_v4 = vld [vmem:[#allocation5 + $0x127c] ss:$40 sps:$4 sm:$0xff]  }
 0x137   :  { %12338 = vmatpush1.bf16.msra.mxu1 %v20989_v6  ;;  %11847 = vmatprep.subr.bf16.mxu0 %v20994_v7  ;;  %v21070_v6 = vld [vmem:[#allocation5 + $0x1270] ss:$40 sps:$4 sm:$0xff]  }
 0x138   :  { %12339 = vmatprep.subr.bf16.mxu1 %v20997_v8  ;;  %v21073_v7 = vld [vmem:[#allocation5 + $0x1278] ss:$40 sps:$4 sm:$0xff]   ;;  %v21078_v8 = vld [vmem:[#allocation5 + $0x12c4] ss:$40 sps:$4 sm:$0xff]  }
 0x13a   :  { %11848 = vmatpush1.bf16.msra.mxu0 %v20992_v9  ;;  %v21081_v9 = vld [vmem:[#allocation5 + $0x12cc] ss:$40 sps:$4 sm:$0xff]  }
 0x13b   :  { %12340 = vmatpush1.bf16.msra.mxu1 %v20995_v10  ;;  %11849 = vmatprep.subr.bf16.mxu0 %v21000_v11  ;;  %v21076_v10 = vld [vmem:[#allocation5 + $0x12c0] ss:$40 sps:$4 sm:$0xff]  }
 0x13c   :  { %12341 = vmatprep.subr.bf16.mxu1 %v21003_v12  ;;  %v21079_v11 = vld [vmem:[#allocation5 + $0x12c8] ss:$40 sps:$4 sm:$0xff]   ;;  %v21084_v12 = vld [vmem:[#allocation5 + $0x1314] ss:$40 sps:$4 sm:$0xff]  }
 0x13e   :  { %11850 = vmatpush1.bf16.msra.mxu0 %v20998_v14  ;;  %v21087_v14 = vld [vmem:[#allocation5 + $0x131c] ss:$40 sps:$4 sm:$0xff]  }
 0x13f   :  { %12342 = vmatpush1.bf16.msra.mxu1 %v21001_v15  ;;  %11860 = vmatprep.subr.bf16.mxu0 %v21006_v16  ;;  %v21082_v15 = vld [vmem:[#allocation5 + $0x1310] ss:$40 sps:$4 sm:$0xff]  }
 0x140   :  { %12352 = vmatprep.subr.bf16.mxu1 %v21009_v19  ;;  %v21085_v16 = vld [vmem:[#allocation5 + $0x1318] ss:$40 sps:$4 sm:$0xff]   ;;  %v21093_v19 = vld [vmem:[#allocation5 + $0x136c] ss:$40 sps:$4 sm:$0xff]  }
 0x141   :  { %11852 = vmatmul.mubr.bf16.vlgmr.msra.gmra.mrb[0].mxu0 %v24543_v22 }
 0x142   :  { %12344 = vmatmul.mubr.bf16.vlgmr.msra.gmra.mrb[0].mxu1 %v24543_v22  ;;  %11861 = vmatpush1.bf16.msra.mxu0 %v21004_v20  ;;  %v21088_v20 = vld [vmem:[#allocation5 + $0x1360] ss:$40 sps:$4 sm:$0xff]  }
 0x143   :  { %12353 = vmatpush1.bf16.msra.mxu1 %v21007_v21  ;;  %11862 = vmatprep.subr.bf16.mxu0 %v21012_v24  ;;  %v21091_v21 = vld [vmem:[#allocation5 + $0x1368] ss:$40 sps:$4 sm:$0xff]   ;;  %v21099_v24 = vld [vmem:[#allocation5 + $0x13bc] ss:$40 sps:$4 sm:$0xff]  }
 0x144   :  { %12354 = vmatprep.subr.bf16.mxu1 %v21015_v25  ;;  %11892 = vmatprep.mubr.bf16.mxu0 %v24545_v26  ;;  %v21094_v25 = vld [vmem:[#allocation5 + $0x13b0] ss:$40 sps:$4 sm:$0xff]  }
 0x145   :  { %12384 = vmatprep.mubr.bf16.mxu1 %v24545_v26 }
 0x146   :  { %11863 = vmatpush1.bf16.msra.mxu0 %v21010_v27  ;;  %v21097_v27 = vld [vmem:[#allocation5 + $0x13b8] ss:$40 sps:$4 sm:$0xff]  }
 0x147   :  { %12355 = vmatpush1.bf16.msra.mxu1 %v21013_v28  ;;  %11864 = vmatprep.subr.bf16.mxu0 %v21018_v29  ;;  %v121_v28 = vld [vmem:[#allocation2 + $0x30] sm:$0xff]  ;;  %v21102_v29 = vld [vmem:[#allocation5 + $0x1404] ss:$40 sps:$4 sm:$0xff]  }
 0x148   :  { %12356 = vmatprep.subr.bf16.mxu1 %v21021_v30  ;;  %v21105_v30 = vld [vmem:[#allocation5 + $0x140c] ss:$40 sps:$4 sm:$0xff]  }
 0x14a   :  { %11865 = vmatpush1.bf16.msra.mxu0 %v21016_v31  ;;  %v24551_v31 = vpack.c.bf16 %v121_v28, %v121_v28  ;;  %v21183_v28 = vld [vmem:[#allocation5 + $0x181c] ss:$40 sps:$4 sm:$0xff]  }
 0x14b   :  { %12357 = vmatpush1.bf16.msra.mxu1 %v21019_v33  ;;  %11866 = vmatprep.subr.bf16.mxu0 %v21024_v34  ;;  %v124_v33 = vld [vmem:[#allocation2 + $0x48] sm:$0xff] }
 0x14c   :  { %12358 = vmatprep.subr.bf16.mxu1 %v21027_v35  ;;  %v21100_v34 = vld [vmem:[#allocation5 + $0x1400] ss:$40 sps:$4 sm:$0xff]  }
 0x14d   :  { %v21103_v35 = vld [vmem:[#allocation5 + $0x1408] ss:$40 sps:$4 sm:$0xff]  }
 0x14e   :  { %11867 = vmatpush1.bf16.msra.mxu0 %v21022_v36  ;;  %v21108_v36 = vld [vmem:[#allocation5 + $0x1454] ss:$40 sps:$4 sm:$0xff]  }
 0x14f   :  { %12359 = vmatpush1.bf16.msra.mxu1 %v21025_v37  ;;  %11868 = vmatprep.subr.bf16.mxu0 %v21030_v38  ;;  %v21111_v37 = vld [vmem:[#allocation5 + $0x145c] ss:$40 sps:$4 sm:$0xff]   ;;  %v24553_v38 = vpack.c.bf16 %v124_v33, %v124_v33 }
 0x150   :  { %12360 = vmatprep.subr.bf16.mxu1 %v21033_v39  ;;  %v21106_v39 = vld [vmem:[#allocation5 + $0x1450] ss:$40 sps:$4 sm:$0xff]   ;;  %v21186_v33 = vld [vmem:[#allocation5 + $0x1864] ss:$40 sps:$4 sm:$0xff]  }
 0x152   :  { %11869 = vmatpush1.bf16.msra.mxu0 %v21028_v40  ;;  %v21109_v40 = vld [vmem:[#allocation5 + $0x1458] ss:$40 sps:$4 sm:$0xff]  }
 0x153   :  { %12361 = vmatpush1.bf16.msra.mxu1 %v21031_v41  ;;  %11870 = vmatprep.subr.bf16.mxu0 %v21036_v42  ;;  %v21114_v41 = vld [vmem:[#allocation5 + $0x14a4] ss:$40 sps:$4 sm:$0xff]  }
 0x154   :  { %12362 = vmatprep.subr.bf16.mxu1 %v21039_v43  ;;  %v21117_v42 = vld [vmem:[#allocation5 + $0x14ac] ss:$40 sps:$4 sm:$0xff]   ;;  %v21112_v43 = vld [vmem:[#allocation5 + $0x14a0] ss:$40 sps:$4 sm:$0xff]  }
 0x156   :  { %11871 = vmatpush1.bf16.msra.mxu0 %v21034_v44  ;;  %v21115_v44 = vld [vmem:[#allocation5 + $0x14a8] ss:$40 sps:$4 sm:$0xff]  }
 0x157   :  { %12363 = vmatpush1.bf16.msra.mxu1 %v21037_v45  ;;  %11872 = vmatprep.subr.bf16.mxu0 %v21042_v46  ;;  %v21120_v45 = vld [vmem:[#allocation5 + $0x14f4] ss:$40 sps:$4 sm:$0xff]  }
 0x158   :  { %12364 = vmatprep.subr.bf16.mxu1 %v21045_v47  ;;  %v21123_v46 = vld [vmem:[#allocation5 + $0x14fc] ss:$40 sps:$4 sm:$0xff]   ;;  %v21118_v47 = vld [vmem:[#allocation5 + $0x14f0] ss:$40 sps:$4 sm:$0xff]  }
 0x15a   :  { %11873 = vmatpush1.bf16.msra.mxu0 %v21040_v49  ;;  %v21121_v49 = vld [vmem:[#allocation5 + $0x14f8] ss:$40 sps:$4 sm:$0xff]  }
 0x15b   :  { %12365 = vmatpush1.bf16.msra.mxu1 %v21043_v50  ;;  %11874 = vmatprep.subr.bf16.mxu0 %v21048_v51  ;;  %v21126_v50 = vld [vmem:[#allocation5 + $0x1544] ss:$40 sps:$4 sm:$0xff]  }
 0x15c   :  { %12366 = vmatprep.subr.bf16.mxu1 %v21051_v52  ;;  %v21129_v51 = vld [vmem:[#allocation5 + $0x154c] ss:$40 sps:$4 sm:$0xff]   ;;  %v21124_v52 = vld [vmem:[#allocation5 + $0x1540] ss:$40 sps:$4 sm:$0xff]  }
 0x15e   :  { %11875 = vmatpush1.bf16.msra.mxu0 %v21046_v53  ;;  %v21127_v53 = vld [vmem:[#allocation5 + $0x1548] ss:$40 sps:$4 sm:$0xff]  }
 0x15f   :  { %12367 = vmatpush1.bf16.msra.mxu1 %v21049_v54  ;;  %11876 = vmatprep.subr.bf16.mxu0 %v21054_v55  ;;  %v21132_v54 = vld [vmem:[#allocation5 + $0x1594] ss:$40 sps:$4 sm:$0xff]  }
 0x160   :  { %12368 = vmatprep.subr.bf16.mxu1 %v21057_v56  ;;  %v21135_v55 = vld [vmem:[#allocation5 + $0x159c] ss:$40 sps:$4 sm:$0xff]   ;;  %v21130_v56 = vld [vmem:[#allocation5 + $0x1590] ss:$40 sps:$4 sm:$0xff]  }
 0x162   :  { %11877 = vmatpush1.bf16.msra.mxu0 %v21052_v57  ;;  %v21133_v57 = vld [vmem:[#allocation5 + $0x1598] ss:$40 sps:$4 sm:$0xff]  }
 0x163   :  { %12369 = vmatpush1.bf16.msra.mxu1 %v21055_v58  ;;  %11878 = vmatprep.subr.bf16.mxu0 %v21060_v59  ;;  %v21138_v58 = vld [vmem:[#allocation5 + $0x15e4] ss:$40 sps:$4 sm:$0xff]  }
 0x164   :  { %12370 = vmatprep.subr.bf16.mxu1 %v21063_v60  ;;  %v21141_v59 = vld [vmem:[#allocation5 + $0x15ec] ss:$40 sps:$4 sm:$0xff]   ;;  %v21136_v60 = vld [vmem:[#allocation5 + $0x15e0] ss:$40 sps:$4 sm:$0xff]  }
 0x166   :  { %11879 = vmatpush1.bf16.msra.mxu0 %v21058_v61  ;;  %v21139_v61 = vld [vmem:[#allocation5 + $0x15e8] ss:$40 sps:$4 sm:$0xff]  }
 0x167   :  { %12371 = vmatpush1.bf16.msra.mxu1 %v21061_v62  ;;  %11880 = vmatprep.subr.bf16.mxu0 %v21066_v63  ;;  %v21144_v62 = vld [vmem:[#allocation5 + $0x1634] ss:$40 sps:$4 sm:$0xff]  }
 0x168   :  { %12372 = vmatprep.subr.bf16.mxu1 %v21069_v0  ;;  %v21147_v63 = vld [vmem:[#allocation5 + $0x163c] ss:$40 sps:$4 sm:$0xff]   ;;  %v21142_v0 = vld [vmem:[#allocation5 + $0x1630] ss:$40 sps:$4 sm:$0xff]  }
 0x16a   :  { %11881 = vmatpush1.bf16.msra.mxu0 %v21064_v1  ;;  %v21145_v1 = vld [vmem:[#allocation5 + $0x1638] ss:$40 sps:$4 sm:$0xff]  }
 0x16b   :  { %12373 = vmatpush1.bf16.msra.mxu1 %v21067_v2  ;;  %11882 = vmatprep.subr.bf16.mxu0 %v21072_v3  ;;  %v21150_v2 = vld [vmem:[#allocation5 + $0x1684] ss:$40 sps:$4 sm:$0xff]  }
 0x16c   :  { %12374 = vmatprep.subr.bf16.mxu1 %v21075_v4  ;;  %v21153_v3 = vld [vmem:[#allocation5 + $0x168c] ss:$40 sps:$4 sm:$0xff]   ;;  %v21148_v4 = vld [vmem:[#allocation5 + $0x1680] ss:$40 sps:$4 sm:$0xff]  }
 0x16e   :  { %11883 = vmatpush1.bf16.msra.mxu0 %v21070_v6  ;;  %v21151_v6 = vld [vmem:[#allocation5 + $0x1688] ss:$40 sps:$4 sm:$0xff]  }
 0x16f   :  { %12375 = vmatpush1.bf16.msra.mxu1 %v21073_v7  ;;  %11884 = vmatprep.subr.bf16.mxu0 %v21078_v8  ;;  %v21156_v7 = vld [vmem:[#allocation5 + $0x16d4] ss:$40 sps:$4 sm:$0xff]  }
 0x170   :  { %12376 = vmatprep.subr.bf16.mxu1 %v21081_v9  ;;  %v21159_v8 = vld [vmem:[#allocation5 + $0x16dc] ss:$40 sps:$4 sm:$0xff]   ;;  %v21154_v9 = vld [vmem:[#allocation5 + $0x16d0] ss:$40 sps:$4 sm:$0xff]  }
 0x172   :  { %11885 = vmatpush1.bf16.msra.mxu0 %v21076_v10  ;;  %v21157_v10 = vld [vmem:[#allocation5 + $0x16d8] ss:$40 sps:$4 sm:$0xff]  }
 0x173   :  { %12377 = vmatpush1.bf16.msra.mxu1 %v21079_v11  ;;  %11886 = vmatprep.subr.bf16.mxu0 %v21084_v12  ;;  %v21162_v11 = vld [vmem:[#allocation5 + $0x1724] ss:$40 sps:$4 sm:$0xff]  }
 0x174   :  { %12378 = vmatprep.subr.bf16.mxu1 %v21087_v14  ;;  %v21165_v12 = vld [vmem:[#allocation5 + $0x172c] ss:$40 sps:$4 sm:$0xff]   ;;  %v21160_v14 = vld [vmem:[#allocation5 + $0x1720] ss:$40 sps:$4 sm:$0xff]  }
 0x176   :  { %11887 = vmatpush1.bf16.msra.mxu0 %v21082_v15  ;;  %v21163_v15 = vld [vmem:[#allocation5 + $0x1728] ss:$40 sps:$4 sm:$0xff]  }
 0x177   :  { %12379 = vmatpush1.bf16.msra.mxu1 %v21085_v16  ;;  %11888 = vmatprep.subr.bf16.mxu0 %v21090_v18  ;;  %v21168_v16 = vld [vmem:[#allocation5 + $0x1774] ss:$40 sps:$4 sm:$0xff]  }
 0x178   :  { %12380 = vmatprep.subr.bf16.mxu1 %v21093_v19  ;;  %v21171_v18 = vld [vmem:[#allocation5 + $0x177c] ss:$40 sps:$4 sm:$0xff]   ;;  %v21166_v19 = vld [vmem:[#allocation5 + $0x1770] ss:$40 sps:$4 sm:$0xff]  }
 0x17a   :  { %11889 = vmatpush1.bf16.msra.mxu0 %v21088_v20  ;;  %v21169_v20 = vld [vmem:[#allocation5 + $0x1778] ss:$40 sps:$4 sm:$0xff]  }
 0x17b   :  { %12381 = vmatpush1.bf16.msra.mxu1 %v21091_v21  ;;  %11890 = vmatprep.subr.bf16.mxu0 %v21096_v23  ;;  %v21174_v21 = vld [vmem:[#allocation5 + $0x17c4] ss:$40 sps:$4 sm:$0xff]  }
 0x17c   :  { %12382 = vmatprep.subr.bf16.mxu1 %v21099_v24  ;;  %v21177_v23 = vld [vmem:[#allocation5 + $0x17cc] ss:$40 sps:$4 sm:$0xff]   ;;  %v21172_v24 = vld [vmem:[#allocation5 + $0x17c0] ss:$40 sps:$4 sm:$0xff]  }
 0x17e   :  { %11891 = vmatpush1.bf16.msra.mxu0 %v21094_v25  ;;  %v21175_v25 = vld [vmem:[#allocation5 + $0x17c8] ss:$40 sps:$4 sm:$0xff]  }
 0x17f   :  { %12383 = vmatpush1.bf16.msra.mxu1 %v21097_v27  ;;  %11901 = vmatprep.subr.bf16.mxu0 %v21102_v29  ;;  %v21180_v27 = vld [vmem:[#allocation5 + $0x1814] ss:$40 sps:$4 sm:$0xff]   ;;  %v21178_v29 = vld [vmem:[#allocation5 + $0x1810] ss:$40 sps:$4 sm:$0xff]  }
 0x180   :  { %12393 = vmatprep.subr.bf16.mxu1 %v21105_v30  ;;  %v21181_v30 = vld [vmem:[#allocation5 + $0x1818] ss:$40 sps:$4 sm:$0xff]  }
 0x181   :  { %11893 = vmatmul.mubr.bf16.vlgmr.msra.gmra.mrb[0].mxu0 %v24551_v31 }
 0x182   :  { %12385 = vmatmul.mubr.bf16.vlgmr.msra.gmra.mrb[0].mxu1 %v24551_v31  ;;  %11902 = vmatpush1.bf16.msra.mxu0 %v21100_v34  ;;  %v21189_v34 = vld [vmem:[#allocation5 + $0x186c] ss:$40 sps:$4 sm:$0xff]  }
 0x183   :  { %12394 = vmatpush1.bf16.msra.mxu1 %v21103_v35  ;;  %11903 = vmatprep.subr.bf16.mxu0 %v21108_v36  ;;  %v21184_v35 = vld [vmem:[#allocation5 + $0x1860] ss:$40 sps:$4 sm:$0xff]  }
 0x184   :  { %12395 = vmatprep.subr.bf16.mxu1 %v21111_v37  ;;  %11933 = vmatprep.mubr.bf16.mxu0 %v24553_v38  ;;  %v21187_v36 = vld [vmem:[#allocation5 + $0x1868] ss:$40 sps:$4 sm:$0xff]   ;;  %v21192_v37 = vld [vmem:[#allocation5 + $0x18b4] ss:$40 sps:$4 sm:$0xff]  }
 0x185   :  { %12425 = vmatprep.mubr.bf16.mxu1 %v24553_v38 }
 0x186   :  { %11904 = vmatpush1.bf16.msra.mxu0 %v21106_v39  ;;  %v21195_v39 = vld [vmem:[#allocation5 + $0x18bc] ss:$40 sps:$4 sm:$0xff]  }
 0x187   :  { %12396 = vmatpush1.bf16.msra.mxu1 %v21109_v40  ;;  %11905 = vmatprep.subr.bf16.mxu0 %v21114_v41  ;;  %v21190_v40 = vld [vmem:[#allocation5 + $0x18b0] ss:$40 sps:$4 sm:$0xff]  }
 0x188   :  { %12397 = vmatprep.subr.bf16.mxu1 %v21117_v42  ;;  %v21193_v41 = vld [vmem:[#allocation5 + $0x18b8] ss:$40 sps:$4 sm:$0xff]   ;;  %v21198_v42 = vld [vmem:[#allocation5 + $0x1904] ss:$40 sps:$4 sm:$0xff]  }
 0x18a   :  { %11906 = vmatpush1.bf16.msra.mxu0 %v21112_v43  ;;  %v123_v43 = vld [vmem:[#allocation2 + $0x40] sm:$0xff] }
 0x18b   :  { %12398 = vmatpush1.bf16.msra.mxu1 %v21115_v44  ;;  %11907 = vmatprep.subr.bf16.mxu0 %v21120_v45  ;;  %v21201_v44 = vld [vmem:[#allocation5 + $0x190c] ss:$40 sps:$4 sm:$0xff]   ;;  %v126_v45 = vld [vmem:[#allocation2 + $0x58] sm:$0xff] }
 0x18c   :  { %12399 = vmatprep.subr.bf16.mxu1 %v21123_v46  ;;  %v24559_v46 = vpack.c.bf16 %v123_v43, %v123_v43  ;;  %v21276_v43 = vld [vmem:[#allocation5 + $0x1d14] ss:$40 sps:$4 sm:$0xff]  }
 0x18e   :  { %11908 = vmatpush1.bf16.msra.mxu0 %v21118_v47  ;;  %v21196_v47 = vld [vmem:[#allocation5 + $0x1900] ss:$40 sps:$4 sm:$0xff]  }
 0x18f   :  { %12400 = vmatpush1.bf16.msra.mxu1 %v21121_v49  ;;  %11909 = vmatprep.subr.bf16.mxu0 %v21126_v50  ;;  %v21199_v49 = vld [vmem:[#allocation5 + $0x1908] ss:$40 sps:$4 sm:$0xff]   ;;  %v21204_v50 = vld [vmem:[#allocation5 + $0x1954] ss:$40 sps:$4 sm:$0xff]  }
 0x190   :  { %12401 = vmatprep.subr.bf16.mxu1 %v21129_v51  ;;  %v21207_v51 = vld [vmem:[#allocation5 + $0x195c] ss:$40 sps:$4 sm:$0xff]  }
 0x192   :  { %11910 = vmatpush1.bf16.msra.mxu0 %v21124_v52  ;;  %v24561_v52 = vpack.c.bf16 %v126_v45, %v126_v45  ;;  %v21274_v45 = vld [vmem:[#allocation5 + $0x1d10] ss:$40 sps:$4 sm:$0xff]  }
 0x193   :  { %12402 = vmatpush1.bf16.msra.mxu1 %v21127_v53  ;;  %11911 = vmatprep.subr.bf16.mxu0 %v21132_v54  ;;  %v21202_v53 = vld [vmem:[#allocation5 + $0x1950] ss:$40 sps:$4 sm:$0xff]  }
 0x194   :  { %12403 = vmatprep.subr.bf16.mxu1 %v21135_v55  ;;  %v21205_v54 = vld [vmem:[#allocation5 + $0x1958] ss:$40 sps:$4 sm:$0xff]   ;;  %v21210_v55 = vld [vmem:[#allocation5 + $0x19a4] ss:$40 sps:$4 sm:$0xff]  }
 0x196   :  { %11912 = vmatpush1.bf16.msra.mxu0 %v21130_v56  ;;  %v21213_v56 = vld [vmem:[#allocation5 + $0x19ac] ss:$40 sps:$4 sm:$0xff]  }
 0x197   :  { %12404 = vmatpush1.bf16.msra.mxu1 %v21133_v57  ;;  %11913 = vmatprep.subr.bf16.mxu0 %v21138_v58  ;;  %v21208_v57 = vld [vmem:[#allocation5 + $0x19a0] ss:$40 sps:$4 sm:$0xff]  }
 0x198   :  { %12405 = vmatprep.subr.bf16.mxu1 %v21141_v59  ;;  %v21211_v58 = vld [vmem:[#allocation5 + $0x19a8] ss:$40 sps:$4 sm:$0xff]   ;;  %v21216_v59 = vld [vmem:[#allocation5 + $0x19f4] ss:$40 sps:$4 sm:$0xff]  }
 0x19a   :  { %11914 = vmatpush1.bf16.msra.mxu0 %v21136_v60  ;;  %v21219_v60 = vld [vmem:[#allocation5 + $0x19fc] ss:$40 sps:$4 sm:$0xff]  }
 0x19b   :  { %12406 = vmatpush1.bf16.msra.mxu1 %v21139_v61  ;;  %11915 = vmatprep.subr.bf16.mxu0 %v21144_v62  ;;  %v21214_v61 = vld [vmem:[#allocation5 + $0x19f0] ss:$40 sps:$4 sm:$0xff]  }
 0x19c   :  { %12407 = vmatprep.subr.bf16.mxu1 %v21147_v63  ;;  %v21217_v62 = vld [vmem:[#allocation5 + $0x19f8] ss:$40 sps:$4 sm:$0xff]   ;;  %v21222_v63 = vld [vmem:[#allocation5 + $0x1a44] ss:$40 sps:$4 sm:$0xff]  }
 0x19e   :  { %11916 = vmatpush1.bf16.msra.mxu0 %v21142_v0  ;;  %v21225_v0 = vld [vmem:[#allocation5 + $0x1a4c] ss:$40 sps:$4 sm:$0xff]  }
 0x19f   :  { %12408 = vmatpush1.bf16.msra.mxu1 %v21145_v1  ;;  %11917 = vmatprep.subr.bf16.mxu0 %v21150_v2  ;;  %v21220_v1 = vld [vmem:[#allocation5 + $0x1a40] ss:$40 sps:$4 sm:$0xff]  }
 0x1a0   :  { %12409 = vmatprep.subr.bf16.mxu1 %v21153_v3  ;;  %v21223_v2 = vld [vmem:[#allocation5 + $0x1a48] ss:$40 sps:$4 sm:$0xff]   ;;  %v21228_v3 = vld [vmem:[#allocation5 + $0x1a94] ss:$40 sps:$4 sm:$0xff]  }
 0x1a2   :  { %11918 = vmatpush1.bf16.msra.mxu0 %v21148_v4  ;;  %v21231_v4 = vld [vmem:[#allocation5 + $0x1a9c] ss:$40 sps:$4 sm:$0xff]  }
 0x1a3   :  { %12410 = vmatpush1.bf16.msra.mxu1 %v21151_v6  ;;  %11919 = vmatprep.subr.bf16.mxu0 %v21156_v7  ;;  %v21226_v6 = vld [vmem:[#allocation5 + $0x1a90] ss:$40 sps:$4 sm:$0xff]  }
 0x1a4   :  { %12411 = vmatprep.subr.bf16.mxu1 %v21159_v8  ;;  %v21229_v7 = vld [vmem:[#allocation5 + $0x1a98] ss:$40 sps:$4 sm:$0xff]   ;;  %v21234_v8 = vld [vmem:[#allocation5 + $0x1ae4] ss:$40 sps:$4 sm:$0xff]  }
 0x1a6   :  { %11920 = vmatpush1.bf16.msra.mxu0 %v21154_v9  ;;  %v21237_v9 = vld [vmem:[#allocation5 + $0x1aec] ss:$40 sps:$4 sm:$0xff]  }
 0x1a7   :  { %12412 = vmatpush1.bf16.msra.mxu1 %v21157_v10  ;;  %11921 = vmatprep.subr.bf16.mxu0 %v21162_v11  ;;  %v21232_v10 = vld [vmem:[#allocation5 + $0x1ae0] ss:$40 sps:$4 sm:$0xff]  }
 0x1a8   :  { %12413 = vmatprep.subr.bf16.mxu1 %v21165_v12  ;;  %v21235_v11 = vld [vmem:[#allocation5 + $0x1ae8] ss:$40 sps:$4 sm:$0xff]   ;;  %v21240_v12 = vld [vmem:[#allocation5 + $0x1b34] ss:$40 sps:$4 sm:$0xff]  }
 0x1aa   :  { %11922 = vmatpush1.bf16.msra.mxu0 %v21160_v14  ;;  %v21243_v14 = vld [vmem:[#allocation5 + $0x1b3c] ss:$40 sps:$4 sm:$0xff]  }
 0x1ab   :  { %12414 = vmatpush1.bf16.msra.mxu1 %v21163_v15  ;;  %11923 = vmatprep.subr.bf16.mxu0 %v21168_v16  ;;  %v21238_v15 = vld [vmem:[#allocation5 + $0x1b30] ss:$40 sps:$4 sm:$0xff]  }
 0x1ac   :  { %12415 = vmatprep.subr.bf16.mxu1 %v21171_v18  ;;  %v21241_v16 = vld [vmem:[#allocation5 + $0x1b38] ss:$40 sps:$4 sm:$0xff]   ;;  %v21246_v18 = vld [vmem:[#allocation5 + $0x1b84] ss:$40 sps:$4 sm:$0xff]  }
 0x1ae   :  { %11924 = vmatpush1.bf16.msra.mxu0 %v21166_v19  ;;  %v21249_v19 = vld [vmem:[#allocation5 + $0x1b8c] ss:$40 sps:$4 sm:$0xff]  }
 0x1af   :  { %12416 = vmatpush1.bf16.msra.mxu1 %v21169_v20  ;;  %11925 = vmatprep.subr.bf16.mxu0 %v21174_v21  ;;  %v21244_v20 = vld [vmem:[#allocation5 + $0x1b80] ss:$40 sps:$4 sm:$0xff]  }
 0x1b0   :  { %12417 = vmatprep.subr.bf16.mxu1 %v21177_v23  ;;  %v21247_v21 = vld [vmem:[#allocation5 + $0x1b88] ss:$40 sps:$4 sm:$0xff]   ;;  %v21252_v23 = vld [vmem:[#allocation5 + $0x1bd4] ss:$40 sps:$4 sm:$0xff]  }
 0x1b2   :  { %11926 = vmatpush1.bf16.msra.mxu0 %v21172_v24  ;;  %v21255_v24 = vld [vmem:[#allocation5 + $0x1bdc] ss:$40 sps:$4 sm:$0xff]  }
 0x1b3   :  { %12418 = vmatpush1.bf16.msra.mxu1 %v21175_v25  ;;  %11927 = vmatprep.subr.bf16.mxu0 %v21180_v27  ;;  %v21250_v25 = vld [vmem:[#allocation5 + $0x1bd0] ss:$40 sps:$4 sm:$0xff]  }
 0x1b4   :  { %12419 = vmatprep.subr.bf16.mxu1 %v21183_v28  ;;  %v21253_v27 = vld [vmem:[#allocation5 + $0x1bd8] ss:$40 sps:$4 sm:$0xff]   ;;  %v21258_v28 = vld [vmem:[#allocation5 + $0x1c24] ss:$40 sps:$4 sm:$0xff]  }
 0x1b6   :  { %11928 = vmatpush1.bf16.msra.mxu0 %v21178_v29  ;;  %v21261_v29 = vld [vmem:[#allocation5 + $0x1c2c] ss:$40 sps:$4 sm:$0xff]  }
 0x1b7   :  { %12420 = vmatpush1.bf16.msra.mxu1 %v21181_v30  ;;  %11929 = vmatprep.subr.bf16.mxu0 %v21186_v33  ;;  %v21256_v30 = vld [vmem:[#allocation5 + $0x1c20] ss:$40 sps:$4 sm:$0xff]  }
 0x1b8   :  { %12421 = vmatprep.subr.bf16.mxu1 %v21189_v34  ;;  %v21259_v33 = vld [vmem:[#allocation5 + $0x1c28] ss:$40 sps:$4 sm:$0xff]   ;;  %v21264_v34 = vld [vmem:[#allocation5 + $0x1c74] ss:$40 sps:$4 sm:$0xff]  }
 0x1ba   :  { %11930 = vmatpush1.bf16.msra.mxu0 %v21184_v35  ;;  %v21267_v35 = vld [vmem:[#allocation5 + $0x1c7c] ss:$40 sps:$4 sm:$0xff]  }
 0x1bb   :  { %12422 = vmatpush1.bf16.msra.mxu1 %v21187_v36  ;;  %11931 = vmatprep.subr.bf16.mxu0 %v21192_v37  ;;  %v21262_v36 = vld [vmem:[#allocation5 + $0x1c70] ss:$40 sps:$4 sm:$0xff]  }
 0x1bc   :  { %12423 = vmatprep.subr.bf16.mxu1 %v21195_v39  ;;  %v21265_v37 = vld [vmem:[#allocation5 + $0x1c78] ss:$40 sps:$4 sm:$0xff]   ;;  %v21270_v39 = vld [vmem:[#allocation5 + $0x1cc4] ss:$40 sps:$4 sm:$0xff]  }
 0x1be   :  { %11932 = vmatpush1.bf16.msra.mxu0 %v21190_v40  ;;  %v21273_v40 = vld [vmem:[#allocation5 + $0x1ccc] ss:$40 sps:$4 sm:$0xff]  }
 0x1bf   :  { %12424 = vmatpush1.bf16.msra.mxu1 %v21193_v41  ;;  %11942 = vmatprep.subr.bf16.mxu0 %v21198_v42  ;;  %v21268_v41 = vld [vmem:[#allocation5 + $0x1cc0] ss:$40 sps:$4 sm:$0xff]  }
 0x1c0   :  { %12434 = vmatprep.subr.bf16.mxu1 %v21201_v44  ;;  %v21271_v42 = vld [vmem:[#allocation5 + $0x1cc8] ss:$40 sps:$4 sm:$0xff]   ;;  %v21279_v44 = vld [vmem:[#allocation5 + $0x1d1c] ss:$40 sps:$4 sm:$0xff]  }
 0x1c1   :  { %11934 = vmatmul.mubr.bf16.vlgmr.msra.gmra.mrb[0].mxu0 %v24559_v46 }
 0x1c2   :  { %12426 = vmatmul.mubr.bf16.vlgmr.msra.gmra.mrb[0].mxu1 %v24559_v46  ;;  %11943 = vmatpush1.bf16.msra.mxu0 %v21196_v47  ;;  %v21277_v47 = vld [vmem:[#allocation5 + $0x1d18] ss:$40 sps:$4 sm:$0xff]  }
 0x1c3   :  { %12435 = vmatpush1.bf16.msra.mxu1 %v21199_v49  ;;  %11944 = vmatprep.subr.bf16.mxu0 %v21204_v50  ;;  %v21282_v49 = vld [vmem:[#allocation5 + $0x1d64] ss:$40 sps:$4 sm:$0xff]  }
 0x1c4   :  { %12436 = vmatprep.subr.bf16.mxu1 %v21207_v51  ;;  %11974 = vmatprep.mubr.bf16.mxu0 %v24561_v52  ;;  %v21285_v50 = vld [vmem:[#allocation5 + $0x1d6c] ss:$40 sps:$4 sm:$0xff]   ;;  %v21280_v51 = vld [vmem:[#allocation5 + $0x1d60] ss:$40 sps:$4 sm:$0xff]  }
 0x1c5   :  { %12466 = vmatprep.mubr.bf16.mxu1 %v24561_v52 }
 0x1c6   :  { %11945 = vmatpush1.bf16.msra.mxu0 %v21202_v53  ;;  %v21283_v53 = vld [vmem:[#allocation5 + $0x1d68] ss:$40 sps:$4 sm:$0xff]  }
 0x1c7   :  { %12437 = vmatpush1.bf16.msra.mxu1 %v21205_v54  ;;  %11946 = vmatprep.subr.bf16.mxu0 %v21210_v55  ;;  %v21288_v54 = vld [vmem:[#allocation5 + $0x1db4] ss:$40 sps:$4 sm:$0xff]  }
 0x1c8   :  { %12438 = vmatprep.subr.bf16.mxu1 %v21213_v56  ;;  %v21291_v55 = vld [vmem:[#allocation5 + $0x1dbc] ss:$40 sps:$4 sm:$0xff]   ;;  %v21286_v56 = vld [vmem:[#allocation5 + $0x1db0] ss:$40 sps:$4 sm:$0xff]  }
 0x1ca   :  { %11947 = vmatpush1.bf16.msra.mxu0 %v21208_v57  ;;  %v21289_v57 = vld [vmem:[#allocation5 + $0x1db8] ss:$40 sps:$4 sm:$0xff]  }
 0x1cb   :  { %12439 = vmatpush1.bf16.msra.mxu1 %v21211_v58  ;;  %11948 = vmatprep.subr.bf16.mxu0 %v21216_v59  ;;  %v21294_v58 = vld [vmem:[#allocation5 + $0x1e04] ss:$40 sps:$4 sm:$0xff]   ;;  %v125_v59 = vld [vmem:[#allocation2 + $0x50] sm:$0xff] }
 0x1cc   :  { %12440 = vmatprep.subr.bf16.mxu1 %v21219_v60  ;;  %v21297_v60 = vld [vmem:[#allocation5 + $0x1e0c] ss:$40 sps:$4 sm:$0xff]  }
 0x1ce   :  { %11949 = vmatpush1.bf16.msra.mxu0 %v21214_v61  ;;  %v128_v61 = vld [vmem:[#allocation2 + $0x68] sm:$0xff] }
 0x1cf   :  { %12441 = vmatpush1.bf16.msra.mxu1 %v21217_v62  ;;  %11950 = vmatprep.subr.bf16.mxu0 %v21222_v63  ;;  %v24567_v62 = vpack.c.bf16 %v125_v59, %v125_v59  ;;  %v21292_v63 = vld [vmem:[#allocation5 + $0x1e00] ss:$40 sps:$4 sm:$0xff]  }
 0x1d0   :  { %12442 = vmatprep.subr.bf16.mxu1 %v21225_v0  ;;  %v21295_v0 = vld [vmem:[#allocation5 + $0x1e08] ss:$40 sps:$4 sm:$0xff]  }
 0x1d1   :  { %v21364_v59 = vld [vmem:[#allocation5 + $0x21c0] ss:$40 sps:$4 sm:$0xff]  }
 0x1d2   :  { %11951 = vmatpush1.bf16.msra.mxu0 %v21220_v1  ;;  %v21300_v1 = vld [vmem:[#allocation5 + $0x1e54] ss:$40 sps:$4 sm:$0xff]  }
 0x1d3   :  { %12443 = vmatpush1.bf16.msra.mxu1 %v21223_v2  ;;  %11952 = vmatprep.subr.bf16.mxu0 %v21228_v3  ;;  %v21303_v2 = vld [vmem:[#allocation5 + $0x1e5c] ss:$40 sps:$4 sm:$0xff]   ;;  %v24569_v3 = vpack.c.bf16 %v128_v61, %v128_v61 }
 0x1d4   :  { %12444 = vmatprep.subr.bf16.mxu1 %v21231_v4  ;;  %v21298_v4 = vld [vmem:[#allocation5 + $0x1e50] ss:$40 sps:$4 sm:$0xff]   ;;  %v21372_v61 = vld [vmem:[#allocation5 + $0x2214] ss:$40 sps:$4 sm:$0xff]  }
 0x1d6   :  { %11953 = vmatpush1.bf16.msra.mxu0 %v21226_v6  ;;  %v21301_v6 = vld [vmem:[#allocation5 + $0x1e58] ss:$40 sps:$4 sm:$0xff]  }
 0x1d7   :  { %12445 = vmatpush1.bf16.msra.mxu1 %v21229_v7  ;;  %11954 = vmatprep.subr.bf16.mxu0 %v21234_v8  ;;  %v21306_v7 = vld [vmem:[#allocation5 + $0x1ea4] ss:$40 sps:$4 sm:$0xff]  }
 0x1d8   :  { %12446 = vmatprep.subr.bf16.mxu1 %v21237_v9  ;;  %v21309_v8 = vld [vmem:[#allocation5 + $0x1eac] ss:$40 sps:$4 sm:$0xff]   ;;  %v21304_v9 = vld [vmem:[#allocation5 + $0x1ea0] ss:$40 sps:$4 sm:$0xff]  }
 0x1da   :  { %11955 = vmatpush1.bf16.msra.mxu0 %v21232_v10  ;;  %v21307_v10 = vld [vmem:[#allocation5 + $0x1ea8] ss:$40 sps:$4 sm:$0xff]  }
 0x1db   :  { %12447 = vmatpush1.bf16.msra.mxu1 %v21235_v11  ;;  %11956 = vmatprep.subr.bf16.mxu0 %v21240_v12  ;;  %v21312_v11 = vld [vmem:[#allocation5 + $0x1ef4] ss:$40 sps:$4 sm:$0xff]  }
 0x1dc   :  { %12448 = vmatprep.subr.bf16.mxu1 %v21243_v14  ;;  %v21315_v12 = vld [vmem:[#allocation5 + $0x1efc] ss:$40 sps:$4 sm:$0xff]   ;;  %v21310_v14 = vld [vmem:[#allocation5 + $0x1ef0] ss:$40 sps:$4 sm:$0xff]  }
 0x1de   :  { %11957 = vmatpush1.bf16.msra.mxu0 %v21238_v15  ;;  %v21313_v15 = vld [vmem:[#allocation5 + $0x1ef8] ss:$40 sps:$4 sm:$0xff]  }
 0x1df   :  { %12449 = vmatpush1.bf16.msra.mxu1 %v21241_v16  ;;  %11958 = vmatprep.subr.bf16.mxu0 %v21246_v18  ;;  %v21318_v16 = vld [vmem:[#allocation5 + $0x1f44] ss:$40 sps:$4 sm:$0xff]  }
 0x1e0   :  { %12450 = vmatprep.subr.bf16.mxu1 %v21249_v19  ;;  %v21321_v18 = vld [vmem:[#allocation5 + $0x1f4c] ss:$40 sps:$4 sm:$0xff]   ;;  %v21316_v19 = vld [vmem:[#allocation5 + $0x1f40] ss:$40 sps:$4 sm:$0xff]  }
 0x1e2   :  { %11959 = vmatpush1.bf16.msra.mxu0 %v21244_v20  ;;  %v21319_v20 = vld [vmem:[#allocation5 + $0x1f48] ss:$40 sps:$4 sm:$0xff]  }
 0x1e3   :  { %12451 = vmatpush1.bf16.msra.mxu1 %v21247_v21  ;;  %11960 = vmatprep.subr.bf16.mxu0 %v21252_v23  ;;  %v21324_v21 = vld [vmem:[#allocation5 + $0x1f94] ss:$40 sps:$4 sm:$0xff]  }
 0x1e4   :  { %12452 = vmatprep.subr.bf16.mxu1 %v21255_v24  ;;  %v21327_v23 = vld [vmem:[#allocation5 + $0x1f9c] ss:$40 sps:$4 sm:$0xff]   ;;  %v21322_v24 = vld [vmem:[#allocation5 + $0x1f90] ss:$40 sps:$4 sm:$0xff]  }
 0x1e6   :  { %11961 = vmatpush1.bf16.msra.mxu0 %v21250_v25  ;;  %v21325_v25 = vld [vmem:[#allocation5 + $0x1f98] ss:$40 sps:$4 sm:$0xff]  }
 0x1e7   :  { %12453 = vmatpush1.bf16.msra.mxu1 %v21253_v27  ;;  %11962 = vmatprep.subr.bf16.mxu0 %v21258_v28  ;;  %v21330_v27 = vld [vmem:[#allocation5 + $0x1fe4] ss:$40 sps:$4 sm:$0xff]  }
 0x1e8   :  { %12454 = vmatprep.subr.bf16.mxu1 %v21261_v29  ;;  %v21333_v28 = vld [vmem:[#allocation5 + $0x1fec] ss:$40 sps:$4 sm:$0xff]   ;;  %v21328_v29 = vld [vmem:[#allocation5 + $0x1fe0] ss:$40 sps:$4 sm:$0xff]  }
 0x1ea   :  { %11963 = vmatpush1.bf16.msra.mxu0 %v21256_v30  ;;  %v21331_v30 = vld [vmem:[#allocation5 + $0x1fe8] ss:$40 sps:$4 sm:$0xff]  }
 0x1eb   :  { %12455 = vmatpush1.bf16.msra.mxu1 %v21259_v33  ;;  %11964 = vmatprep.subr.bf16.mxu0 %v21264_v34  ;;  %v21336_v33 = vld [vmem:[#allocation5 + $0x2034] ss:$40 sps:$4 sm:$0xff]  }
 0x1ec   :  { %12456 = vmatprep.subr.bf16.mxu1 %v21267_v35  ;;  %v21339_v34 = vld [vmem:[#allocation5 + $0x203c] ss:$40 sps:$4 sm:$0xff]   ;;  %v21334_v35 = vld [vmem:[#allocation5 + $0x2030] ss:$40 sps:$4 sm:$0xff]  }
 0x1ee   :  { %11965 = vmatpush1.bf16.msra.mxu0 %v21262_v36  ;;  %v21337_v36 = vld [vmem:[#allocation5 + $0x2038] ss:$40 sps:$4 sm:$0xff]  }
 0x1ef   :  { %12457 = vmatpush1.bf16.msra.mxu1 %v21265_v37  ;;  %11966 = vmatprep.subr.bf16.mxu0 %v21270_v39  ;;  %v21342_v37 = vld [vmem:[#allocation5 + $0x2084] ss:$40 sps:$4 sm:$0xff]  }
 0x1f0   :  { %12458 = vmatprep.subr.bf16.mxu1 %v21273_v40  ;;  %v21345_v39 = vld [vmem:[#allocation5 + $0x208c] ss:$40 sps:$4 sm:$0xff]   ;;  %v21340_v40 = vld [vmem:[#allocation5 + $0x2080] ss:$40 sps:$4 sm:$0xff]  }
 0x1f2   :  { %11967 = vmatpush1.bf16.msra.mxu0 %v21268_v41  ;;  %v21343_v41 = vld [vmem:[#allocation5 + $0x2088] ss:$40 sps:$4 sm:$0xff]  }
 0x1f3   :  { %12459 = vmatpush1.bf16.msra.mxu1 %v21271_v42  ;;  %11968 = vmatprep.subr.bf16.mxu0 %v21276_v43  ;;  %v21348_v42 = vld [vmem:[#allocation5 + $0x20d4] ss:$40 sps:$4 sm:$0xff]  }
 0x1f4   :  { %12460 = vmatprep.subr.bf16.mxu1 %v21279_v44  ;;  %v21351_v43 = vld [vmem:[#allocation5 + $0x20dc] ss:$40 sps:$4 sm:$0xff]   ;;  %v21346_v44 = vld [vmem:[#allocation5 + $0x20d0] ss:$40 sps:$4 sm:$0xff]  }
 0x1f6   :  { %11969 = vmatpush1.bf16.msra.mxu0 %v21274_v45  ;;  %v21349_v45 = vld [vmem:[#allocation5 + $0x20d8] ss:$40 sps:$4 sm:$0xff]  }
 0x1f7   :  { %12461 = vmatpush1.bf16.msra.mxu1 %v21277_v47  ;;  %11970 = vmatprep.subr.bf16.mxu0 %v21282_v49  ;;  %v21354_v47 = vld [vmem:[#allocation5 + $0x2124] ss:$40 sps:$4 sm:$0xff]  }
 0x1f8   :  { %12462 = vmatprep.subr.bf16.mxu1 %v21285_v50  ;;  %v21357_v49 = vld [vmem:[#allocation5 + $0x212c] ss:$40 sps:$4 sm:$0xff]   ;;  %v21352_v50 = vld [vmem:[#allocation5 + $0x2120] ss:$40 sps:$4 sm:$0xff]  }
 0x1fa   :  { %11971 = vmatpush1.bf16.msra.mxu0 %v21280_v51  ;;  %v21355_v51 = vld [vmem:[#allocation5 + $0x2128] ss:$40 sps:$4 sm:$0xff]  }
 0x1fb   :  { %12463 = vmatpush1.bf16.msra.mxu1 %v21283_v53  ;;  %11972 = vmatprep.subr.bf16.mxu0 %v21288_v54  ;;  %v21360_v53 = vld [vmem:[#allocation5 + $0x2174] ss:$40 sps:$4 sm:$0xff]  }
 0x1fc   :  { %12464 = vmatprep.subr.bf16.mxu1 %v21291_v55  ;;  %v21363_v54 = vld [vmem:[#allocation5 + $0x217c] ss:$40 sps:$4 sm:$0xff]   ;;  %v21358_v55 = vld [vmem:[#allocation5 + $0x2170] ss:$40 sps:$4 sm:$0xff]  }
 0x1fe   :  { %11973 = vmatpush1.bf16.msra.mxu0 %v21286_v56  ;;  %v21361_v56 = vld [vmem:[#allocation5 + $0x2178] ss:$40 sps:$4 sm:$0xff]  }
 0x1ff   :  { %12465 = vmatpush1.bf16.msra.mxu1 %v21289_v57  ;;  %11983 = vmatprep.subr.bf16.mxu0 %v21294_v58  ;;  %v21366_v57 = vld [vmem:[#allocation5 + $0x21c4] ss:$40 sps:$4 sm:$0xff]  }
 0x200   :  { %12475 = vmatprep.subr.bf16.mxu1 %v21297_v60  ;;  %v21369_v58 = vld [vmem:[#allocation5 + $0x21cc] ss:$40 sps:$4 sm:$0xff]   ;;  %v21367_v60 = vld [vmem:[#allocation5 + $0x21c8] ss:$40 sps:$4 sm:$0xff]  }
 0x201   :  { %11975 = vmatmul.mubr.bf16.vlgmr.msra.gmra.mrb[0].mxu0 %v24567_v62 }
 0x202   :  { %12467 = vmatmul.mubr.bf16.vlgmr.msra.gmra.mrb[0].mxu1 %v24567_v62  ;;  %11984 = vmatpush1.bf16.msra.mxu0 %v21292_v63  ;;  %v21375_v63 = vld [vmem:[#allocation5 + $0x221c] ss:$40 sps:$4 sm:$0xff]  }
 0x203   :  { %12476 = vmatpush1.bf16.msra.mxu1 %v21295_v0  ;;  %11985 = vmatprep.subr.bf16.mxu0 %v21300_v1  ;;  %v21370_v0 = vld [vmem:[#allocation5 + $0x2210] ss:$40 sps:$4 sm:$0xff]  }
 0x204   :  { %12477 = vmatprep.subr.bf16.mxu1 %v21303_v2  ;;  %12015 = vmatprep.mubr.bf16.mxu0 %v24569_v3  ;;  %v21373_v1 = vld [vmem:[#allocation5 + $0x2218] ss:$40 sps:$4 sm:$0xff]   ;;  %v21378_v2 = vld [vmem:[#allocation5 + $0x2264] ss:$40 sps:$4 sm:$0xff]  }
 0x205   :  { %12507 = vmatprep.mubr.bf16.mxu1 %v24569_v3 }
 0x206   :  { %11986 = vmatpush1.bf16.msra.mxu0 %v21298_v4  ;;  %v21381_v4 = vld [vmem:[#allocation5 + $0x226c] ss:$40 sps:$4 sm:$0xff]  }
 0x207   :  { %12478 = vmatpush1.bf16.msra.mxu1 %v21301_v6  ;;  %11987 = vmatprep.subr.bf16.mxu0 %v21306_v7  ;;  %v21376_v6 = vld [vmem:[#allocation5 + $0x2260] ss:$40 sps:$4 sm:$0xff]  }
 0x208   :  { %12479 = vmatprep.subr.bf16.mxu1 %v21309_v8  ;;  %v21379_v7 = vld [vmem:[#allocation5 + $0x2268] ss:$40 sps:$4 sm:$0xff]   ;;  %v21384_v8 = vld [vmem:[#allocation5 + $0x22b4] ss:$40 sps:$4 sm:$0xff]  }
 0x20a   :  { %11988 = vmatpush1.bf16.msra.mxu0 %v21304_v9  ;;  %v21387_v9 = vld [vmem:[#allocation5 + $0x22bc] ss:$40 sps:$4 sm:$0xff]  }
 0x20b   :  { %12480 = vmatpush1.bf16.msra.mxu1 %v21307_v10  ;;  %11989 = vmatprep.subr.bf16.mxu0 %v21312_v11  ;;  %v21382_v10 = vld [vmem:[#allocation5 + $0x22b0] ss:$40 sps:$4 sm:$0xff]  }
 0x20c   :  { %12481 = vmatprep.subr.bf16.mxu1 %v21315_v12  ;;  %v21385_v11 = vld [vmem:[#allocation5 + $0x22b8] ss:$40 sps:$4 sm:$0xff]   ;;  %v21390_v12 = vld [vmem:[#allocation5 + $0x2304] ss:$40 sps:$4 sm:$0xff]  }
 0x20e   :  { %11990 = vmatpush1.bf16.msra.mxu0 %v21310_v14  ;;  %v127_v14 = vld [vmem:[#allocation2 + $0x60] sm:$0xff] }
 0x20f   :  { %12482 = vmatpush1.bf16.msra.mxu1 %v21313_v15  ;;  %11991 = vmatprep.subr.bf16.mxu0 %v21318_v16  ;;  %v21393_v15 = vld [vmem:[#allocation5 + $0x230c] ss:$40 sps:$4 sm:$0xff]   ;;  %v130_v16 = vld [vmem:[#allocation2 + $0x78] sm:$0xff] }
 0x210   :  { %12483 = vmatprep.subr.bf16.mxu1 %v21321_v18  ;;  %v24575_v18 = vpack.c.bf16 %v127_v14, %v127_v14  ;;  %v21462_v14 = vld [vmem:[#allocation5 + $0x26c4] ss:$40 sps:$4 sm:$0xff]  }
 0x212   :  { %11992 = vmatpush1.bf16.msra.mxu0 %v21316_v19  ;;  %v21388_v19 = vld [vmem:[#allocation5 + $0x2300] ss:$40 sps:$4 sm:$0xff]  }
 0x213   :  { %12484 = vmatpush1.bf16.msra.mxu1 %v21319_v20  ;;  %11993 = vmatprep.subr.bf16.mxu0 %v21324_v21  ;;  %v21391_v20 = vld [vmem:[#allocation5 + $0x2308] ss:$40 sps:$4 sm:$0xff]   ;;  %v21396_v21 = vld [vmem:[#allocation5 + $0x2354] ss:$40 sps:$4 sm:$0xff]  }
 0x214   :  { %12485 = vmatprep.subr.bf16.mxu1 %v21327_v23  ;;  %v21399_v23 = vld [vmem:[#allocation5 + $0x235c] ss:$40 sps:$4 sm:$0xff]  }
 0x216   :  { %11994 = vmatpush1.bf16.msra.mxu0 %v21322_v24  ;;  %v24577_v24 = vpack.c.bf16 %v130_v16, %v130_v16  ;;  %v21460_v16 = vld [vmem:[#allocation5 + $0x26c0] ss:$40 sps:$4 sm:$0xff]  }
 0x217   :  { %12486 = vmatpush1.bf16.msra.mxu1 %v21325_v25  ;;  %11995 = vmatprep.subr.bf16.mxu0 %v21330_v27  ;;  %v21394_v25 = vld [vmem:[#allocation5 + $0x2350] ss:$40 sps:$4 sm:$0xff]  }
 0x218   :  { %12487 = vmatprep.subr.bf16.mxu1 %v21333_v28  ;;  %v21397_v27 = vld [vmem:[#allocation5 + $0x2358] ss:$40 sps:$4 sm:$0xff]   ;;  %v21402_v28 = vld [vmem:[#allocation5 + $0x23a4] ss:$40 sps:$4 sm:$0xff]  }
 0x21a   :  { %11996 = vmatpush1.bf16.msra.mxu0 %v21328_v29  ;;  %v21405_v29 = vld [vmem:[#allocation5 + $0x23ac] ss:$40 sps:$4 sm:$0xff]  }
 0x21b   :  { %12488 = vmatpush1.bf16.msra.mxu1 %v21331_v30  ;;  %11997 = vmatprep.subr.bf16.mxu0 %v21336_v33  ;;  %v21400_v30 = vld [vmem:[#allocation5 + $0x23a0] ss:$40 sps:$4 sm:$0xff]  }
 0x21c   :  { %12489 = vmatprep.subr.bf16.mxu1 %v21339_v34  ;;  %v21403_v33 = vld [vmem:[#allocation5 + $0x23a8] ss:$40 sps:$4 sm:$0xff]   ;;  %v21408_v34 = vld [vmem:[#allocation5 + $0x23f4] ss:$40 sps:$4 sm:$0xff]  }
 0x21e   :  { %11998 = vmatpush1.bf16.msra.mxu0 %v21334_v35  ;;  %v21411_v35 = vld [vmem:[#allocation5 + $0x23fc] ss:$40 sps:$4 sm:$0xff]  }
 0x21f   :  { %12490 = vmatpush1.bf16.msra.mxu1 %v21337_v36  ;;  %11999 = vmatprep.subr.bf16.mxu0 %v21342_v37  ;;  %v21406_v36 = vld [vmem:[#allocation5 + $0x23f0] ss:$40 sps:$4 sm:$0xff]  }
 0x220   :  { %12491 = vmatprep.subr.bf16.mxu1 %v21345_v39  ;;  %v21409_v37 = vld [vmem:[#allocation5 + $0x23f8] ss:$40 sps:$4 sm:$0xff]   ;;  %v21414_v39 = vld [vmem:[#allocation5 + $0x2444] ss:$40 sps:$4 sm:$0xff]  }
 0x222   :  { %12000 = vmatpush1.bf16.msra.mxu0 %v21340_v40  ;;  %v21417_v40 = vld [vmem:[#allocation5 + $0x244c] ss:$40 sps:$4 sm:$0xff]  }
 0x223   :  { %12492 = vmatpush1.bf16.msra.mxu1 %v21343_v41  ;;  %12001 = vmatprep.subr.bf16.mxu0 %v21348_v42  ;;  %v21412_v41 = vld [vmem:[#allocation5 + $0x2440] ss:$40 sps:$4 sm:$0xff]  }
 0x224   :  { %12493 = vmatprep.subr.bf16.mxu1 %v21351_v43  ;;  %v21415_v42 = vld [vmem:[#allocation5 + $0x2448] ss:$40 sps:$4 sm:$0xff]   ;;  %v21420_v43 = vld [vmem:[#allocation5 + $0x2494] ss:$40 sps:$4 sm:$0xff]  }
 0x226   :  { %12002 = vmatpush1.bf16.msra.mxu0 %v21346_v44  ;;  %v21423_v44 = vld [vmem:[#allocation5 + $0x249c] ss:$40 sps:$4 sm:$0xff]  }
 0x227   :  { %12494 = vmatpush1.bf16.msra.mxu1 %v21349_v45  ;;  %12003 = vmatprep.subr.bf16.mxu0 %v21354_v47  ;;  %v21418_v45 = vld [vmem:[#allocation5 + $0x2490] ss:$40 sps:$4 sm:$0xff]  }
 0x228   :  { %12495 = vmatprep.subr.bf16.mxu1 %v21357_v49  ;;  %v21421_v47 = vld [vmem:[#allocation5 + $0x2498] ss:$40 sps:$4 sm:$0xff]   ;;  %v21426_v49 = vld [vmem:[#allocation5 + $0x24e4] ss:$40 sps:$4 sm:$0xff]  }
 0x22a   :  { %12004 = vmatpush1.bf16.msra.mxu0 %v21352_v50  ;;  %v21429_v50 = vld [vmem:[#allocation5 + $0x24ec] ss:$40 sps:$4 sm:$0xff]  }
 0x22b   :  { %12496 = vmatpush1.bf16.msra.mxu1 %v21355_v51  ;;  %12005 = vmatprep.subr.bf16.mxu0 %v21360_v53  ;;  %v21424_v51 = vld [vmem:[#allocation5 + $0x24e0] ss:$40 sps:$4 sm:$0xff]  }
 0x22c   :  { %12497 = vmatprep.subr.bf16.mxu1 %v21363_v54  ;;  %v21427_v53 = vld [vmem:[#allocation5 + $0x24e8] ss:$40 sps:$4 sm:$0xff]   ;;  %v21432_v54 = vld [vmem:[#allocation5 + $0x2534] ss:$40 sps:$4 sm:$0xff]  }
 0x22e   :  { %12006 = vmatpush1.bf16.msra.mxu0 %v21358_v55  ;;  %v21435_v55 = vld [vmem:[#allocation5 + $0x253c] ss:$40 sps:$4 sm:$0xff]  }
 0x22f   :  { %12498 = vmatpush1.bf16.msra.mxu1 %v21361_v56  ;;  %12007 = vmatprep.subr.bf16.mxu0 %v21366_v57  ;;  %v21430_v56 = vld [vmem:[#allocation5 + $0x2530] ss:$40 sps:$4 sm:$0xff]  }
 0x230   :  { %12499 = vmatprep.subr.bf16.mxu1 %v21369_v58  ;;  %v21433_v57 = vld [vmem:[#allocation5 + $0x2538] ss:$40 sps:$4 sm:$0xff]   ;;  %v21438_v58 = vld [vmem:[#allocation5 + $0x2584] ss:$40 sps:$4 sm:$0xff]  }
 0x232   :  { %12008 = vmatpush1.bf16.msra.mxu0 %v21364_v59  ;;  %v21441_v59 = vld [vmem:[#allocation5 + $0x258c] ss:$40 sps:$4 sm:$0xff]  }
 0x233   :  { %12500 = vmatpush1.bf16.msra.mxu1 %v21367_v60  ;;  %12009 = vmatprep.subr.bf16.mxu0 %v21372_v61  ;;  %v21436_v60 = vld [vmem:[#allocation5 + $0x2580] ss:$40 sps:$4 sm:$0xff]  }
 0x234   :  { %12501 = vmatprep.subr.bf16.mxu1 %v21375_v63  ;;  %v21439_v61 = vld [vmem:[#allocation5 + $0x2588] ss:$40 sps:$4 sm:$0xff]   ;;  %v21444_v63 = vld [vmem:[#allocation5 + $0x25d4] ss:$40 sps:$4 sm:$0xff]  }
 0x236   :  { %12010 = vmatpush1.bf16.msra.mxu0 %v21370_v0  ;;  %v21447_v0 = vld [vmem:[#allocation5 + $0x25dc] ss:$40 sps:$4 sm:$0xff]  }
 0x237   :  { %12502 = vmatpush1.bf16.msra.mxu1 %v21373_v1  ;;  %12011 = vmatprep.subr.bf16.mxu0 %v21378_v2  ;;  %v21442_v1 = vld [vmem:[#allocation5 + $0x25d0] ss:$40 sps:$4 sm:$0xff]  }
 0x238   :  { %12503 = vmatprep.subr.bf16.mxu1 %v21381_v4  ;;  %v21445_v2 = vld [vmem:[#allocation5 + $0x25d8] ss:$40 sps:$4 sm:$0xff]   ;;  %v21450_v4 = vld [vmem:[#allocation5 + $0x2624] ss:$40 sps:$4 sm:$0xff]  }
 0x23a   :  { %12012 = vmatpush1.bf16.msra.mxu0 %v21376_v6  ;;  %v21453_v6 = vld [vmem:[#allocation5 + $0x262c] ss:$40 sps:$4 sm:$0xff]  }
 0x23b   :  { %12504 = vmatpush1.bf16.msra.mxu1 %v21379_v7  ;;  %12013 = vmatprep.subr.bf16.mxu0 %v21384_v8  ;;  %v21448_v7 = vld [vmem:[#allocation5 + $0x2620] ss:$40 sps:$4 sm:$0xff]  }
 0x23c   :  { %12505 = vmatprep.subr.bf16.mxu1 %v21387_v9  ;;  %v21451_v8 = vld [vmem:[#allocation5 + $0x2628] ss:$40 sps:$4 sm:$0xff]   ;;  %v21456_v9 = vld [vmem:[#allocation5 + $0x2674] ss:$40 sps:$4 sm:$0xff]  }
 0x23e   :  { %12014 = vmatpush1.bf16.msra.mxu0 %v21382_v10  ;;  %v21459_v10 = vld [vmem:[#allocation5 + $0x267c] ss:$40 sps:$4 sm:$0xff]  }
 0x23f   :  { %12506 = vmatpush1.bf16.msra.mxu1 %v21385_v11  ;;  %12024 = vmatprep.subr.bf16.mxu0 %v21390_v12  ;;  %v21454_v11 = vld [vmem:[#allocation5 + $0x2670] ss:$40 sps:$4 sm:$0xff]  }
 0x240   :  { %12516 = vmatprep.subr.bf16.mxu1 %v21393_v15  ;;  %v21457_v12 = vld [vmem:[#allocation5 + $0x2678] ss:$40 sps:$4 sm:$0xff]   ;;  %v21465_v15 = vld [vmem:[#allocation5 + $0x26cc] ss:$40 sps:$4 sm:$0xff]  }
 0x241   :  { %12016 = vmatmul.mubr.bf16.vlgmr.msra.gmra.mrb[0].mxu0 %v24575_v18 }
 0x242   :  { %12508 = vmatmul.mubr.bf16.vlgmr.msra.gmra.mrb[0].mxu1 %v24575_v18  ;;  %12025 = vmatpush1.bf16.msra.mxu0 %v21388_v19  ;;  %v21463_v19 = vld [vmem:[#allocation5 + $0x26c8] ss:$40 sps:$4 sm:$0xff]  }
 0x243   :  { %12517 = vmatpush1.bf16.msra.mxu1 %v21391_v20  ;;  %12026 = vmatprep.subr.bf16.mxu0 %v21396_v21  ;;  %v21468_v20 = vld [vmem:[#allocation5 + $0x2714] ss:$40 sps:$4 sm:$0xff]  }
 0x244   :  { %12518 = vmatprep.subr.bf16.mxu1 %v21399_v23  ;;  %12056 = vmatprep.mubr.bf16.mxu0 %v24577_v24  ;;  %v21471_v21 = vld [vmem:[#allocation5 + $0x271c] ss:$40 sps:$4 sm:$0xff]   ;;  %v21466_v23 = vld [vmem:[#allocation5 + $0x2710] ss:$40 sps:$4 sm:$0xff]  }
 0x245   :  { %12548 = vmatprep.mubr.bf16.mxu1 %v24577_v24 }
 0x246   :  { %12027 = vmatpush1.bf16.msra.mxu0 %v21394_v25  ;;  %v21469_v25 = vld [vmem:[#allocation5 + $0x2718] ss:$40 sps:$4 sm:$0xff]  }
 0x247   :  { %12519 = vmatpush1.bf16.msra.mxu1 %v21397_v27  ;;  %12028 = vmatprep.subr.bf16.mxu0 %v21402_v28  ;;  %v21474_v27 = vld [vmem:[#allocation5 + $0x2764] ss:$40 sps:$4 sm:$0xff]  }
 0x248   :  { %12520 = vmatprep.subr.bf16.mxu1 %v21405_v29  ;;  %v21477_v28 = vld [vmem:[#allocation5 + $0x276c] ss:$40 sps:$4 sm:$0xff]   ;;  %v21472_v29 = vld [vmem:[#allocation5 + $0x2760] ss:$40 sps:$4 sm:$0xff]  }
 0x24a   :  { %12029 = vmatpush1.bf16.msra.mxu0 %v21400_v30  ;;  %v21475_v30 = vld [vmem:[#allocation5 + $0x2768] ss:$40 sps:$4 sm:$0xff]  }
 0x24b   :  { %12521 = vmatpush1.bf16.msra.mxu1 %v21403_v33  ;;  %12030 = vmatprep.subr.bf16.mxu0 %v21408_v34  ;;  %v21480_v33 = vld [vmem:[#allocation5 + $0x27b4] ss:$40 sps:$4 sm:$0xff]  }
 0x24c   :  { %12522 = vmatprep.subr.bf16.mxu1 %v21411_v35  ;;  %v21483_v34 = vld [vmem:[#allocation5 + $0x27bc] ss:$40 sps:$4 sm:$0xff]   ;;  %v21478_v35 = vld [vmem:[#allocation5 + $0x27b0] ss:$40 sps:$4 sm:$0xff]  }
 0x24e   :  { %12031 = vmatpush1.bf16.msra.mxu0 %v21406_v36  ;;  %v21481_v36 = vld [vmem:[#allocation5 + $0x27b8] ss:$40 sps:$4 sm:$0xff]  }
 0x24f   :  { %12523 = vmatpush1.bf16.msra.mxu1 %v21409_v37  ;;  %12032 = vmatprep.subr.bf16.mxu0 %v21414_v39  ;;  %v21486_v37 = vld [vmem:[#allocation5 + $0x2804] ss:$40 sps:$4 sm:$0xff]   ;;  %v129_v39 = vld [vmem:[#allocation2 + $0x70] sm:$0xff] }
 0x250   :  { %12524 = vmatprep.subr.bf16.mxu1 %v21417_v40  ;;  %v21489_v40 = vld [vmem:[#allocation5 + $0x280c] ss:$40 sps:$4 sm:$0xff]  }
 0x252   :  { %12033 = vmatpush1.bf16.msra.mxu0 %v21412_v41  ;;  %v132_v41 = vld [vmem:[#allocation2 + $0x88] sm:$0xff] }
 0x253   :  { %12525 = vmatpush1.bf16.msra.mxu1 %v21415_v42  ;;  %12034 = vmatprep.subr.bf16.mxu0 %v21420_v43  ;;  %v24583_v42 = vpack.c.bf16 %v129_v39, %v129_v39  ;;  %v21484_v43 = vld [vmem:[#allocation5 + $0x2800] ss:$40 sps:$4 sm:$0xff]   ;;  %v21550_v39 = vld [vmem:[#allocation5 + $0x2b70] ss:$40 sps:$4 sm:$0xff]  }
 0x254   :  { %12526 = vmatprep.subr.bf16.mxu1 %v21423_v44  ;;  %v21487_v44 = vld [vmem:[#allocation5 + $0x2808] ss:$40 sps:$4 sm:$0xff]  }
 0x256   :  { %12035 = vmatpush1.bf16.msra.mxu0 %v21418_v45  ;;  %v21492_v45 = vld [vmem:[#allocation5 + $0x2854] ss:$40 sps:$4 sm:$0xff]  }
 0x257   :  { %12527 = vmatpush1.bf16.msra.mxu1 %v21421_v47  ;;  %12036 = vmatprep.subr.bf16.mxu0 %v21426_v49  ;;  %v21495_v47 = vld [vmem:[#allocation5 + $0x285c] ss:$40 sps:$4 sm:$0xff]   ;;  %v24585_v49 = vpack.c.bf16 %v132_v41, %v132_v41 }
 0x258   :  { %12528 = vmatprep.subr.bf16.mxu1 %v21429_v50  ;;  %v21490_v50 = vld [vmem:[#allocation5 + $0x2850] ss:$40 sps:$4 sm:$0xff]   ;;  %v21558_v41 = vld [vmem:[#allocation5 + $0x2bc4] ss:$40 sps:$4 sm:$0xff]  }
 0x25a   :  { %12037 = vmatpush1.bf16.msra.mxu0 %v21424_v51  ;;  %v21493_v51 = vld [vmem:[#allocation5 + $0x2858] ss:$40 sps:$4 sm:$0xff]  }
 0x25b   :  { %12529 = vmatpush1.bf16.msra.mxu1 %v21427_v53  ;;  %12038 = vmatprep.subr.bf16.mxu0 %v21432_v54  ;;  %v21498_v53 = vld [vmem:[#allocation5 + $0x28a4] ss:$40 sps:$4 sm:$0xff]  }
 0x25c   :  { %12530 = vmatprep.subr.bf16.mxu1 %v21435_v55  ;;  %v21501_v54 = vld [vmem:[#allocation5 + $0x28ac] ss:$40 sps:$4 sm:$0xff]   ;;  %v21496_v55 = vld [vmem:[#allocation5 + $0x28a0] ss:$40 sps:$4 sm:$0xff]  }
 0x25e   :  { %12039 = vmatpush1.bf16.msra.mxu0 %v21430_v56  ;;  %v21499_v56 = vld [vmem:[#allocation5 + $0x28a8] ss:$40 sps:$4 sm:$0xff]  }
 0x25f   :  { %12531 = vmatpush1.bf16.msra.mxu1 %v21433_v57  ;;  %12040 = vmatprep.subr.bf16.mxu0 %v21438_v58  ;;  %v21504_v57 = vld [vmem:[#allocation5 + $0x28f4] ss:$40 sps:$4 sm:$0xff]  }
 0x260   :  { %12532 = vmatprep.subr.bf16.mxu1 %v21441_v59  ;;  %v21507_v58 = vld [vmem:[#allocation5 + $0x28fc] ss:$40 sps:$4 sm:$0xff]   ;;  %v21502_v59 = vld [vmem:[#allocation5 + $0x28f0] ss:$40 sps:$4 sm:$0xff]  }
 0x262   :  { %12041 = vmatpush1.bf16.msra.mxu0 %v21436_v60  ;;  %v21505_v60 = vld [vmem:[#allocation5 + $0x28f8] ss:$40 sps:$4 sm:$0xff]  }
 0x263   :  { %12533 = vmatpush1.bf16.msra.mxu1 %v21439_v61  ;;  %12042 = vmatprep.subr.bf16.mxu0 %v21444_v63  ;;  %v21510_v61 = vld [vmem:[#allocation5 + $0x2944] ss:$40 sps:$4 sm:$0xff]  }
 0x264   :  { %12534 = vmatprep.subr.bf16.mxu1 %v21447_v0  ;;  %v21513_v63 = vld [vmem:[#allocation5 + $0x294c] ss:$40 sps:$4 sm:$0xff]   ;;  %v21508_v0 = vld [vmem:[#allocation5 + $0x2940] ss:$40 sps:$4 sm:$0xff]  }
 0x266   :  { %12043 = vmatpush1.bf16.msra.mxu0 %v21442_v1  ;;  %v21511_v1 = vld [vmem:[#allocation5 + $0x2948] ss:$40 sps:$4 sm:$0xff]  }
 0x267   :  { %12535 = vmatpush1.bf16.msra.mxu1 %v21445_v2  ;;  %12044 = vmatprep.subr.bf16.mxu0 %v21450_v4  ;;  %v21516_v2 = vld [vmem:[#allocation5 + $0x2994] ss:$40 sps:$4 sm:$0xff]  }
 0x268   :  { %12536 = vmatprep.subr.bf16.mxu1 %v21453_v6  ;;  %v21519_v4 = vld [vmem:[#allocation5 + $0x299c] ss:$40 sps:$4 sm:$0xff]   ;;  %v21514_v6 = vld [vmem:[#allocation5 + $0x2990] ss:$40 sps:$4 sm:$0xff]  }
 0x26a   :  { %12045 = vmatpush1.bf16.msra.mxu0 %v21448_v7  ;;  %v21517_v7 = vld [vmem:[#allocation5 + $0x2998] ss:$40 sps:$4 sm:$0xff]  }
 0x26b   :  { %12537 = vmatpush1.bf16.msra.mxu1 %v21451_v8  ;;  %12046 = vmatprep.subr.bf16.mxu0 %v21456_v9  ;;  %v21522_v8 = vld [vmem:[#allocation5 + $0x29e4] ss:$40 sps:$4 sm:$0xff]  }
 0x26c   :  { %12538 = vmatprep.subr.bf16.mxu1 %v21459_v10  ;;  %v21525_v9 = vld [vmem:[#allocation5 + $0x29ec] ss:$40 sps:$4 sm:$0xff]   ;;  %v21520_v10 = vld [vmem:[#allocation5 + $0x29e0] ss:$40 sps:$4 sm:$0xff]  }
 0x26e   :  { %12047 = vmatpush1.bf16.msra.mxu0 %v21454_v11  ;;  %v21523_v11 = vld [vmem:[#allocation5 + $0x29e8] ss:$40 sps:$4 sm:$0xff]  }
 0x26f   :  { %12539 = vmatpush1.bf16.msra.mxu1 %v21457_v12  ;;  %12048 = vmatprep.subr.bf16.mxu0 %v21462_v14  ;;  %v21528_v12 = vld [vmem:[#allocation5 + $0x2a34] ss:$40 sps:$4 sm:$0xff]  }
 0x270   :  { %12540 = vmatprep.subr.bf16.mxu1 %v21465_v15  ;;  %v21531_v14 = vld [vmem:[#allocation5 + $0x2a3c] ss:$40 sps:$4 sm:$0xff]   ;;  %v21526_v15 = vld [vmem:[#allocation5 + $0x2a30] ss:$40 sps:$4 sm:$0xff]  }
 0x272   :  { %12049 = vmatpush1.bf16.msra.mxu0 %v21460_v16  ;;  %v21529_v16 = vld [vmem:[#allocation5 + $0x2a38] ss:$40 sps:$4 sm:$0xff]  }
 0x273   :  { %12541 = vmatpush1.bf16.msra.mxu1 %v21463_v19  ;;  %12050 = vmatprep.subr.bf16.mxu0 %v21468_v20  ;;  %v21534_v19 = vld [vmem:[#allocation5 + $0x2a84] ss:$40 sps:$4 sm:$0xff]  }
 0x274   :  { %12542 = vmatprep.subr.bf16.mxu1 %v21471_v21  ;;  %v21537_v20 = vld [vmem:[#allocation5 + $0x2a8c] ss:$40 sps:$4 sm:$0xff]   ;;  %v21532_v21 = vld [vmem:[#allocation5 + $0x2a80] ss:$40 sps:$4 sm:$0xff]  }
 0x276   :  { %12051 = vmatpush1.bf16.msra.mxu0 %v21466_v23  ;;  %v21535_v23 = vld [vmem:[#allocation5 + $0x2a88] ss:$40 sps:$4 sm:$0xff]  }
 0x277   :  { %12543 = vmatpush1.bf16.msra.mxu1 %v21469_v25  ;;  %12052 = vmatprep.subr.bf16.mxu0 %v21474_v27  ;;  %v21540_v25 = vld [vmem:[#allocation5 + $0x2ad4] ss:$40 sps:$4 sm:$0xff]  }
 0x278   :  { %12544 = vmatprep.subr.bf16.mxu1 %v21477_v28  ;;  %v21543_v27 = vld [vmem:[#allocation5 + $0x2adc] ss:$40 sps:$4 sm:$0xff]   ;;  %v21538_v28 = vld [vmem:[#allocation5 + $0x2ad0] ss:$40 sps:$4 sm:$0xff]  }
 0x27a   :  { %12053 = vmatpush1.bf16.msra.mxu0 %v21472_v29  ;;  %v21541_v29 = vld [vmem:[#allocation5 + $0x2ad8] ss:$40 sps:$4 sm:$0xff]  }
 0x27b   :  { %12545 = vmatpush1.bf16.msra.mxu1 %v21475_v30  ;;  %12054 = vmatprep.subr.bf16.mxu0 %v21480_v33  ;;  %v21546_v30 = vld [vmem:[#allocation5 + $0x2b24] ss:$40 sps:$4 sm:$0xff]  }
 0x27c   :  { %12546 = vmatprep.subr.bf16.mxu1 %v21483_v34  ;;  %v21549_v33 = vld [vmem:[#allocation5 + $0x2b2c] ss:$40 sps:$4 sm:$0xff]   ;;  %v21544_v34 = vld [vmem:[#allocation5 + $0x2b20] ss:$40 sps:$4 sm:$0xff]  }
 0x27e   :  { %12055 = vmatpush1.bf16.msra.mxu0 %v21478_v35  ;;  %v21547_v35 = vld [vmem:[#allocation5 + $0x2b28] ss:$40 sps:$4 sm:$0xff]  }
 0x27f   :  { %12547 = vmatpush1.bf16.msra.mxu1 %v21481_v36  ;;  %12065 = vmatprep.subr.bf16.mxu0 %v21486_v37  ;;  %v21552_v36 = vld [vmem:[#allocation5 + $0x2b74] ss:$40 sps:$4 sm:$0xff]  }
 0x280   :  { %12557 = vmatprep.subr.bf16.mxu1 %v21489_v40  ;;  %v21555_v37 = vld [vmem:[#allocation5 + $0x2b7c] ss:$40 sps:$4 sm:$0xff]   ;;  %v21553_v40 = vld [vmem:[#allocation5 + $0x2b78] ss:$40 sps:$4 sm:$0xff]  }
 0x281   :  { %12057 = vmatmul.mubr.bf16.vlgmr.msra.gmra.mrb[0].mxu0 %v24583_v42 }
 0x282   :  { %12549 = vmatmul.mubr.bf16.vlgmr.msra.gmra.mrb[0].mxu1 %v24583_v42  ;;  %12066 = vmatpush1.bf16.msra.mxu0 %v21484_v43  ;;  %v21561_v43 = vld [vmem:[#allocation5 + $0x2bcc] ss:$40 sps:$4 sm:$0xff]  }
 0x283   :  { %12558 = vmatpush1.bf16.msra.mxu1 %v21487_v44  ;;  %12067 = vmatprep.subr.bf16.mxu0 %v21492_v45  ;;  %v21556_v44 = vld [vmem:[#allocation5 + $0x2bc0] ss:$40 sps:$4 sm:$0xff]  }
 0x284   :  { %12559 = vmatprep.subr.bf16.mxu1 %v21495_v47  ;;  %12097 = vmatprep.mubr.bf16.mxu0 %v24585_v49  ;;  %v21559_v45 = vld [vmem:[#allocation5 + $0x2bc8] ss:$40 sps:$4 sm:$0xff]   ;;  %v21564_v47 = vld [vmem:[#allocation5 + $0x2c14] ss:$40 sps:$4 sm:$0xff]  }
 0x285   :  { %12589 = vmatprep.mubr.bf16.mxu1 %v24585_v49 }
 0x286   :  { %12068 = vmatpush1.bf16.msra.mxu0 %v21490_v50  ;;  %v21567_v50 = vld [vmem:[#allocation5 + $0x2c1c] ss:$40 sps:$4 sm:$0xff]  }
 0x287   :  { %12560 = vmatpush1.bf16.msra.mxu1 %v21493_v51  ;;  %12069 = vmatprep.subr.bf16.mxu0 %v21498_v53  ;;  %v21562_v51 = vld [vmem:[#allocation5 + $0x2c10] ss:$40 sps:$4 sm:$0xff]  }
 0x288   :  { %12561 = vmatprep.subr.bf16.mxu1 %v21501_v54  ;;  %v21565_v53 = vld [vmem:[#allocation5 + $0x2c18] ss:$40 sps:$4 sm:$0xff]   ;;  %v21570_v54 = vld [vmem:[#allocation5 + $0x2c64] ss:$40 sps:$4 sm:$0xff]  }
 0x28a   :  { %12070 = vmatpush1.bf16.msra.mxu0 %v21496_v55  ;;  %v21573_v55 = vld [vmem:[#allocation5 + $0x2c6c] ss:$40 sps:$4 sm:$0xff]  }
 0x28b   :  { %12562 = vmatpush1.bf16.msra.mxu1 %v21499_v56  ;;  %12071 = vmatprep.subr.bf16.mxu0 %v21504_v57  ;;  %v21568_v56 = vld [vmem:[#allocation5 + $0x2c60] ss:$40 sps:$4 sm:$0xff]  }
 0x28c   :  { %12563 = vmatprep.subr.bf16.mxu1 %v21507_v58  ;;  %v21571_v57 = vld [vmem:[#allocation5 + $0x2c68] ss:$40 sps:$4 sm:$0xff]   ;;  %v21576_v58 = vld [vmem:[#allocation5 + $0x2cb4] ss:$40 sps:$4 sm:$0xff]  }
 0x28e   :  { %12072 = vmatpush1.bf16.msra.mxu0 %v21502_v59  ;;  %v21579_v59 = vld [vmem:[#allocation5 + $0x2cbc] ss:$40 sps:$4 sm:$0xff]  }
 0x28f   :  { %12564 = vmatpush1.bf16.msra.mxu1 %v21505_v60  ;;  %12073 = vmatprep.subr.bf16.mxu0 %v21510_v61  ;;  %v21574_v60 = vld [vmem:[#allocation5 + $0x2cb0] ss:$40 sps:$4 sm:$0xff]  }
 0x290   :  { %12565 = vmatprep.subr.bf16.mxu1 %v21513_v63  ;;  %v21577_v61 = vld [vmem:[#allocation5 + $0x2cb8] ss:$40 sps:$4 sm:$0xff]   ;;  %v21582_v63 = vld [vmem:[#allocation5 + $0x2d04] ss:$40 sps:$4 sm:$0xff]  }
 0x292   :  { %12074 = vmatpush1.bf16.msra.mxu0 %v21508_v0  ;;  %v131_v0 = vld [vmem:[#allocation2 + $0x80] sm:$0xff] }
 0x293   :  { %12566 = vmatpush1.bf16.msra.mxu1 %v21511_v1  ;;  %12075 = vmatprep.subr.bf16.mxu0 %v21516_v2  ;;  %v21585_v1 = vld [vmem:[#allocation5 + $0x2d0c] ss:$40 sps:$4 sm:$0xff]   ;;  %v134_v2 = vld [vmem:[#allocation2 + $0x98] sm:$0xff] }
 0x294   :  { %12567 = vmatprep.subr.bf16.mxu1 %v21519_v4  ;;  %v24591_v4 = vpack.c.bf16 %v131_v0, %v131_v0  ;;  %v21648_v0 = vld [vmem:[#allocation5 + $0x3074] ss:$40 sps:$4 sm:$0xff]  }
 0x296   :  { %12076 = vmatpush1.bf16.msra.mxu0 %v21514_v6  ;;  %v21580_v6 = vld [vmem:[#allocation5 + $0x2d00] ss:$40 sps:$4 sm:$0xff]  }
 0x297   :  { %12568 = vmatpush1.bf16.msra.mxu1 %v21517_v7  ;;  %12077 = vmatprep.subr.bf16.mxu0 %v21522_v8  ;;  %v21583_v7 = vld [vmem:[#allocation5 + $0x2d08] ss:$40 sps:$4 sm:$0xff]   ;;  %v21588_v8 = vld [vmem:[#allocation5 + $0x2d54] ss:$40 sps:$4 sm:$0xff]  }
 0x298   :  { %12569 = vmatprep.subr.bf16.mxu1 %v21525_v9  ;;  %v21591_v9 = vld [vmem:[#allocation5 + $0x2d5c] ss:$40 sps:$4 sm:$0xff]  }
 0x29a   :  { %12078 = vmatpush1.bf16.msra.mxu0 %v21520_v10  ;;  %v24593_v10 = vpack.c.bf16 %v134_v2, %v134_v2  ;;  %v21646_v2 = vld [vmem:[#allocation5 + $0x3070] ss:$40 sps:$4 sm:$0xff]  }
 0x29b   :  { %12570 = vmatpush1.bf16.msra.mxu1 %v21523_v11  ;;  %12079 = vmatprep.subr.bf16.mxu0 %v21528_v12  ;;  %v21586_v11 = vld [vmem:[#allocation5 + $0x2d50] ss:$40 sps:$4 sm:$0xff]  }
 0x29c   :  { %12571 = vmatprep.subr.bf16.mxu1 %v21531_v14  ;;  %v21589_v12 = vld [vmem:[#allocation5 + $0x2d58] ss:$40 sps:$4 sm:$0xff]   ;;  %v21594_v14 = vld [vmem:[#allocation5 + $0x2da4] ss:$40 sps:$4 sm:$0xff]  }
 0x29e   :  { %12080 = vmatpush1.bf16.msra.mxu0 %v21526_v15  ;;  %v21597_v15 = vld [vmem:[#allocation5 + $0x2dac] ss:$40 sps:$4 sm:$0xff]  }
 0x29f   :  { %12572 = vmatpush1.bf16.msra.mxu1 %v21529_v16  ;;  %12081 = vmatprep.subr.bf16.mxu0 %v21534_v19  ;;  %v21592_v16 = vld [vmem:[#allocation5 + $0x2da0] ss:$40 sps:$4 sm:$0xff]  }
 0x2a0   :  { %12573 = vmatprep.subr.bf16.mxu1 %v21537_v20  ;;  %v21595_v19 = vld [vmem:[#allocation5 + $0x2da8] ss:$40 sps:$4 sm:$0xff]   ;;  %v21600_v20 = vld [vmem:[#allocation5 + $0x2df4] ss:$40 sps:$4 sm:$0xff]  }
 0x2a2   :  { %12082 = vmatpush1.bf16.msra.mxu0 %v21532_v21  ;;  %v21603_v21 = vld [vmem:[#allocation5 + $0x2dfc] ss:$40 sps:$4 sm:$0xff]  }
 0x2a3   :  { %12574 = vmatpush1.bf16.msra.mxu1 %v21535_v23  ;;  %12083 = vmatprep.subr.bf16.mxu0 %v21540_v25  ;;  %v21598_v23 = vld [vmem:[#allocation5 + $0x2df0] ss:$40 sps:$4 sm:$0xff]  }
 0x2a4   :  { %12575 = vmatprep.subr.bf16.mxu1 %v21543_v27  ;;  %v21601_v25 = vld [vmem:[#allocation5 + $0x2df8] ss:$40 sps:$4 sm:$0xff]   ;;  %v21606_v27 = vld [vmem:[#allocation5 + $0x2e44] ss:$40 sps:$4 sm:$0xff]  }
 0x2a6   :  { %12084 = vmatpush1.bf16.msra.mxu0 %v21538_v28  ;;  %v21609_v28 = vld [vmem:[#allocation5 + $0x2e4c] ss:$40 sps:$4 sm:$0xff]  }
 0x2a7   :  { %12576 = vmatpush1.bf16.msra.mxu1 %v21541_v29  ;;  %12085 = vmatprep.subr.bf16.mxu0 %v21546_v30  ;;  %v21604_v29 = vld [vmem:[#allocation5 + $0x2e40] ss:$40 sps:$4 sm:$0xff]  }
 0x2a8   :  { %12577 = vmatprep.subr.bf16.mxu1 %v21549_v33  ;;  %v21607_v30 = vld [vmem:[#allocation5 + $0x2e48] ss:$40 sps:$4 sm:$0xff]   ;;  %v21612_v33 = vld [vmem:[#allocation5 + $0x2e94] ss:$40 sps:$4 sm:$0xff]  }
 0x2aa   :  { %12086 = vmatpush1.bf16.msra.mxu0 %v21544_v34  ;;  %v21615_v34 = vld [vmem:[#allocation5 + $0x2e9c] ss:$40 sps:$4 sm:$0xff]  }
 0x2ab   :  { %12578 = vmatpush1.bf16.msra.mxu1 %v21547_v35  ;;  %12087 = vmatprep.subr.bf16.mxu0 %v21552_v36  ;;  %v21610_v35 = vld [vmem:[#allocation5 + $0x2e90] ss:$40 sps:$4 sm:$0xff]  }
 0x2ac   :  { %12579 = vmatprep.subr.bf16.mxu1 %v21555_v37  ;;  %v21613_v36 = vld [vmem:[#allocation5 + $0x2e98] ss:$40 sps:$4 sm:$0xff]   ;;  %v21618_v37 = vld [vmem:[#allocation5 + $0x2ee4] ss:$40 sps:$4 sm:$0xff]  }
 0x2ae   :  { %12088 = vmatpush1.bf16.msra.mxu0 %v21550_v39  ;;  %v21621_v39 = vld [vmem:[#allocation5 + $0x2eec] ss:$40 sps:$4 sm:$0xff]  }
 0x2af   :  { %12580 = vmatpush1.bf16.msra.mxu1 %v21553_v40  ;;  %12089 = vmatprep.subr.bf16.mxu0 %v21558_v41  ;;  %v21616_v40 = vld [vmem:[#allocation5 + $0x2ee0] ss:$40 sps:$4 sm:$0xff]  }
 0x2b0   :  { %12581 = vmatprep.subr.bf16.mxu1 %v21561_v43  ;;  %v21619_v41 = vld [vmem:[#allocation5 + $0x2ee8] ss:$40 sps:$4 sm:$0xff]   ;;  %v21624_v43 = vld [vmem:[#allocation5 + $0x2f34] ss:$40 sps:$4 sm:$0xff]  }
 0x2b2   :  { %12090 = vmatpush1.bf16.msra.mxu0 %v21556_v44  ;;  %v21627_v44 = vld [vmem:[#allocation5 + $0x2f3c] ss:$40 sps:$4 sm:$0xff]  }
 0x2b3   :  { %12582 = vmatpush1.bf16.msra.mxu1 %v21559_v45  ;;  %12091 = vmatprep.subr.bf16.mxu0 %v21564_v47  ;;  %v21622_v45 = vld [vmem:[#allocation5 + $0x2f30] ss:$40 sps:$4 sm:$0xff]  }
 0x2b4   :  { %12583 = vmatprep.subr.bf16.mxu1 %v21567_v50  ;;  %v21625_v47 = vld [vmem:[#allocation5 + $0x2f38] ss:$40 sps:$4 sm:$0xff]   ;;  %v21630_v50 = vld [vmem:[#allocation5 + $0x2f84] ss:$40 sps:$4 sm:$0xff]  }
 0x2b6   :  { %12092 = vmatpush1.bf16.msra.mxu0 %v21562_v51  ;;  %v21633_v51 = vld [vmem:[#allocation5 + $0x2f8c] ss:$40 sps:$4 sm:$0xff]  }
 0x2b7   :  { %12584 = vmatpush1.bf16.msra.mxu1 %v21565_v53  ;;  %12093 = vmatprep.subr.bf16.mxu0 %v21570_v54  ;;  %v21628_v53 = vld [vmem:[#allocation5 + $0x2f80] ss:$40 sps:$4 sm:$0xff]  }
 0x2b8   :  { %12585 = vmatprep.subr.bf16.mxu1 %v21573_v55  ;;  %v21631_v54 = vld [vmem:[#allocation5 + $0x2f88] ss:$40 sps:$4 sm:$0xff]   ;;  %v21636_v55 = vld [vmem:[#allocation5 + $0x2fd4] ss:$40 sps:$4 sm:$0xff]  }
 0x2ba   :  { %12094 = vmatpush1.bf16.msra.mxu0 %v21568_v56  ;;  %v21639_v56 = vld [vmem:[#allocation5 + $0x2fdc] ss:$40 sps:$4 sm:$0xff]  }
 0x2bb   :  { %12586 = vmatpush1.bf16.msra.mxu1 %v21571_v57  ;;  %12095 = vmatprep.subr.bf16.mxu0 %v21576_v58  ;;  %v21634_v57 = vld [vmem:[#allocation5 + $0x2fd0] ss:$40 sps:$4 sm:$0xff]  }
 0x2bc   :  { %12587 = vmatprep.subr.bf16.mxu1 %v21579_v59  ;;  %v21637_v58 = vld [vmem:[#allocation5 + $0x2fd8] ss:$40 sps:$4 sm:$0xff]   ;;  %v21642_v59 = vld [vmem:[#allocation5 + $0x3024] ss:$40 sps:$4 sm:$0xff]  }
 0x2be   :  { %12096 = vmatpush1.bf16.msra.mxu0 %v21574_v60  ;;  %v21645_v60 = vld [vmem:[#allocation5 + $0x302c] ss:$40 sps:$4 sm:$0xff]  }
 0x2bf   :  { %12588 = vmatpush1.bf16.msra.mxu1 %v21577_v61  ;;  %12106 = vmatprep.subr.bf16.mxu0 %v21582_v63  ;;  %v21640_v61 = vld [vmem:[#allocation5 + $0x3020] ss:$40 sps:$4 sm:$0xff]  }
 0x2c0   :  { %12598 = vmatprep.subr.bf16.mxu1 %v21585_v1  ;;  %v21643_v63 = vld [vmem:[#allocation5 + $0x3028] ss:$40 sps:$4 sm:$0xff]   ;;  %v21651_v1 = vld [vmem:[#allocation5 + $0x307c] ss:$40 sps:$4 sm:$0xff]  }
 0x2c1   :  { %12098 = vmatmul.mubr.bf16.vlgmr.msra.gmra.mrb[0].mxu0 %v24591_v4 }
 0x2c2   :  { %12590 = vmatmul.mubr.bf16.vlgmr.msra.gmra.mrb[0].mxu1 %v24591_v4  ;;  %12107 = vmatpush1.bf16.msra.mxu0 %v21580_v6  ;;  %v21649_v6 = vld [vmem:[#allocation5 + $0x3078] ss:$40 sps:$4 sm:$0xff]  }
 0x2c3   :  { %12599 = vmatpush1.bf16.msra.mxu1 %v21583_v7  ;;  %12108 = vmatprep.subr.bf16.mxu0 %v21588_v8  ;;  %v21654_v7 = vld [vmem:[#allocation5 + $0x30c4] ss:$40 sps:$4 sm:$0xff]  }
 0x2c4   :  { %12600 = vmatprep.subr.bf16.mxu1 %v21591_v9  ;;  %12138 = vmatprep.mubr.bf16.mxu0 %v24593_v10  ;;  %v21657_v8 = vld [vmem:[#allocation5 + $0x30cc] ss:$40 sps:$4 sm:$0xff]   ;;  %v21652_v9 = vld [vmem:[#allocation5 + $0x30c0] ss:$40 sps:$4 sm:$0xff]  }
 0x2c5   :  { %12630 = vmatprep.mubr.bf16.mxu1 %v24593_v10 }
 0x2c6   :  { %12109 = vmatpush1.bf16.msra.mxu0 %v21586_v11  ;;  %v21655_v11 = vld [vmem:[#allocation5 + $0x30c8] ss:$40 sps:$4 sm:$0xff]  }
 0x2c7   :  { %12601 = vmatpush1.bf16.msra.mxu1 %v21589_v12  ;;  %12110 = vmatprep.subr.bf16.mxu0 %v21594_v14  ;;  %v21660_v12 = vld [vmem:[#allocation5 + $0x3114] ss:$40 sps:$4 sm:$0xff]  }
 0x2c8   :  { %12602 = vmatprep.subr.bf16.mxu1 %v21597_v15  ;;  %v21663_v14 = vld [vmem:[#allocation5 + $0x311c] ss:$40 sps:$4 sm:$0xff]   ;;  %v21658_v15 = vld [vmem:[#allocation5 + $0x3110] ss:$40 sps:$4 sm:$0xff]  }
 0x2ca   :  { %12111 = vmatpush1.bf16.msra.mxu0 %v21592_v16  ;;  %v21661_v16 = vld [vmem:[#allocation5 + $0x3118] ss:$40 sps:$4 sm:$0xff]  }
 0x2cb   :  { %12603 = vmatpush1.bf16.msra.mxu1 %v21595_v19  ;;  %12112 = vmatprep.subr.bf16.mxu0 %v21600_v20  ;;  %v21666_v19 = vld [vmem:[#allocation5 + $0x3164] ss:$40 sps:$4 sm:$0xff]  }
 0x2cc   :  { %12604 = vmatprep.subr.bf16.mxu1 %v21603_v21  ;;  %v21669_v20 = vld [vmem:[#allocation5 + $0x316c] ss:$40 sps:$4 sm:$0xff]   ;;  %v21664_v21 = vld [vmem:[#allocation5 + $0x3160] ss:$40 sps:$4 sm:$0xff]  }
 0x2ce   :  { %12113 = vmatpush1.bf16.msra.mxu0 %v21598_v23  ;;  %v21667_v23 = vld [vmem:[#allocation5 + $0x3168] ss:$40 sps:$4 sm:$0xff]  }
 0x2cf   :  { %12605 = vmatpush1.bf16.msra.mxu1 %v21601_v25  ;;  %12114 = vmatprep.subr.bf16.mxu0 %v21606_v27  ;;  %v21672_v25 = vld [vmem:[#allocation5 + $0x31b4] ss:$40 sps:$4 sm:$0xff]  }
 0x2d0   :  { %12606 = vmatprep.subr.bf16.mxu1 %v21609_v28  ;;  %v21675_v27 = vld [vmem:[#allocation5 + $0x31bc] ss:$40 sps:$4 sm:$0xff]   ;;  %v21670_v28 = vld [vmem:[#allocation5 + $0x31b0] ss:$40 sps:$4 sm:$0xff]  }
 0x2d2   :  { %12115 = vmatpush1.bf16.msra.mxu0 %v21604_v29  ;;  %v21673_v29 = vld [vmem:[#allocation5 + $0x31b8] ss:$40 sps:$4 sm:$0xff]  }
 0x2d3   :  { %12607 = vmatpush1.bf16.msra.mxu1 %v21607_v30  ;;  %12116 = vmatprep.subr.bf16.mxu0 %v21612_v33  ;;  %v133_v30 = vld [vmem:[#allocation2 + $0x90] sm:$0xff]  ;;  %v21678_v33 = vld [vmem:[#allocation5 + $0x3204] ss:$40 sps:$4 sm:$0xff]  }
 0x2d4   :  { %12608 = vmatprep.subr.bf16.mxu1 %v21615_v34  ;;  %v21681_v34 = vld [vmem:[#allocation5 + $0x320c] ss:$40 sps:$4 sm:$0xff]  }
 0x2d6   :  { %12117 = vmatpush1.bf16.msra.mxu0 %v21610_v35  ;;  %v21676_v35 = vld [vmem:[#allocation5 + $0x3200] ss:$40 sps:$4 sm:$0xff]  }
 0x2d7   :  { %12609 = vmatpush1.bf16.msra.mxu1 %v21613_v36  ;;  %12118 = vmatprep.subr.bf16.mxu0 %v21618_v37  ;;  %v24599_v36 = vpack.c.bf16 %v133_v30, %v133_v30  ;;  %v136_v37 = vld [vmem:[#allocation2 + $0xa8] sm:$0xff] }
 0x2d8   :  { %12610 = vmatprep.subr.bf16.mxu1 %v21621_v39  ;;  %v21679_v39 = vld [vmem:[#allocation5 + $0x3208] ss:$40 sps:$4 sm:$0xff]   ;;  %v21741_v30 = vld [vmem:[#allocation5 + $0x352c] ss:$40 sps:$4 sm:$0xff]  }
 0x2da   :  { %12119 = vmatpush1.bf16.msra.mxu0 %v21616_v40  ;;  %v21684_v40 = vld [vmem:[#allocation5 + $0x3254] ss:$40 sps:$4 sm:$0xff]  }
 0x2db   :  { %12611 = vmatpush1.bf16.msra.mxu1 %v21619_v41  ;;  %12120 = vmatprep.subr.bf16.mxu0 %v21624_v43  ;;  %v21687_v41 = vld [vmem:[#allocation5 + $0x325c] ss:$40 sps:$4 sm:$0xff]   ;;  %v24601_v43 = vpack.c.bf16 %v136_v37, %v136_v37 }
 0x2dc   :  { %12612 = vmatprep.subr.bf16.mxu1 %v21627_v44  ;;  %v21682_v44 = vld [vmem:[#allocation5 + $0x3250] ss:$40 sps:$4 sm:$0xff]   ;;  %v21747_v37 = vld [vmem:[#allocation5 + $0x357c] ss:$40 sps:$4 sm:$0xff]  }
 0x2de   :  { %12121 = vmatpush1.bf16.msra.mxu0 %v21622_v45  ;;  %v21685_v45 = vld [vmem:[#allocation5 + $0x3258] ss:$40 sps:$4 sm:$0xff]  }
 0x2df   :  { %12613 = vmatpush1.bf16.msra.mxu1 %v21625_v47  ;;  %12122 = vmatprep.subr.bf16.mxu0 %v21630_v50  ;;  %v21690_v47 = vld [vmem:[#allocation5 + $0x32a4] ss:$40 sps:$4 sm:$0xff]  }
 0x2e0   :  { %12614 = vmatprep.subr.bf16.mxu1 %v21633_v51  ;;  %v21693_v50 = vld [vmem:[#allocation5 + $0x32ac] ss:$40 sps:$4 sm:$0xff]   ;;  %v21688_v51 = vld [vmem:[#allocation5 + $0x32a0] ss:$40 sps:$4 sm:$0xff]  }
 0x2e2   :  { %12123 = vmatpush1.bf16.msra.mxu0 %v21628_v53  ;;  %v21691_v53 = vld [vmem:[#allocation5 + $0x32a8] ss:$40 sps:$4 sm:$0xff]  }
 0x2e3   :  { %12615 = vmatpush1.bf16.msra.mxu1 %v21631_v54  ;;  %12124 = vmatprep.subr.bf16.mxu0 %v21636_v55  ;;  %v21696_v54 = vld [vmem:[#allocation5 + $0x32f4] ss:$40 sps:$4 sm:$0xff]  }
 0x2e4   :  { %12616 = vmatprep.subr.bf16.mxu1 %v21639_v56  ;;  %v21699_v55 = vld [vmem:[#allocation5 + $0x32fc] ss:$40 sps:$4 sm:$0xff]   ;;  %v21694_v56 = vld [vmem:[#allocation5 + $0x32f0] ss:$40 sps:$4 sm:$0xff]  }
 0x2e6   :  { %12125 = vmatpush1.bf16.msra.mxu0 %v21634_v57  ;;  %v21697_v57 = vld [vmem:[#allocation5 + $0x32f8] ss:$40 sps:$4 sm:$0xff]  }
 0x2e7   :  { %12617 = vmatpush1.bf16.msra.mxu1 %v21637_v58  ;;  %12126 = vmatprep.subr.bf16.mxu0 %v21642_v59  ;;  %v21702_v58 = vld [vmem:[#allocation5 + $0x3344] ss:$40 sps:$4 sm:$0xff]  }
 0x2e8   :  { %12618 = vmatprep.subr.bf16.mxu1 %v21645_v60  ;;  %v21705_v59 = vld [vmem:[#allocation5 + $0x334c] ss:$40 sps:$4 sm:$0xff]   ;;  %v21700_v60 = vld [vmem:[#allocation5 + $0x3340] ss:$40 sps:$4 sm:$0xff]  }
 0x2ea   :  { %12127 = vmatpush1.bf16.msra.mxu0 %v21640_v61  ;;  %v21703_v61 = vld [vmem:[#allocation5 + $0x3348] ss:$40 sps:$4 sm:$0xff]  }
 0x2eb   :  { %12619 = vmatpush1.bf16.msra.mxu1 %v21643_v63  ;;  %12128 = vmatprep.subr.bf16.mxu0 %v21648_v0  ;;  %v21708_v63 = vld [vmem:[#allocation5 + $0x3394] ss:$40 sps:$4 sm:$0xff]  }
 0x2ec   :  { %12620 = vmatprep.subr.bf16.mxu1 %v21651_v1  ;;  %v21711_v0 = vld [vmem:[#allocation5 + $0x339c] ss:$40 sps:$4 sm:$0xff]   ;;  %v21706_v1 = vld [vmem:[#allocation5 + $0x3390] ss:$40 sps:$4 sm:$0xff]  }
 0x2ee   :  { %12129 = vmatpush1.bf16.msra.mxu0 %v21646_v2  ;;  %v21709_v2 = vld [vmem:[#allocation5 + $0x3398] ss:$40 sps:$4 sm:$0xff]  }
 0x2ef   :  { %12621 = vmatpush1.bf16.msra.mxu1 %v21649_v6  ;;  %12130 = vmatprep.subr.bf16.mxu0 %v21654_v7  ;;  %v21714_v6 = vld [vmem:[#allocation5 + $0x33e4] ss:$40 sps:$4 sm:$0xff]  }
 0x2f0   :  { %12622 = vmatprep.subr.bf16.mxu1 %v21657_v8  ;;  %v21717_v7 = vld [vmem:[#allocation5 + $0x33ec] ss:$40 sps:$4 sm:$0xff]   ;;  %v21712_v8 = vld [vmem:[#allocation5 + $0x33e0] ss:$40 sps:$4 sm:$0xff]  }
 0x2f2   :  { %12131 = vmatpush1.bf16.msra.mxu0 %v21652_v9  ;;  %v21715_v9 = vld [vmem:[#allocation5 + $0x33e8] ss:$40 sps:$4 sm:$0xff]  }
 0x2f3   :  { %12623 = vmatpush1.bf16.msra.mxu1 %v21655_v11  ;;  %12132 = vmatprep.subr.bf16.mxu0 %v21660_v12  ;;  %v21720_v11 = vld [vmem:[#allocation5 + $0x3434] ss:$40 sps:$4 sm:$0xff]  }
 0x2f4   :  { %12624 = vmatprep.subr.bf16.mxu1 %v21663_v14  ;;  %v21723_v12 = vld [vmem:[#allocation5 + $0x343c] ss:$40 sps:$4 sm:$0xff]   ;;  %v21718_v14 = vld [vmem:[#allocation5 + $0x3430] ss:$40 sps:$4 sm:$0xff]  }
 0x2f6   :  { %12133 = vmatpush1.bf16.msra.mxu0 %v21658_v15  ;;  %v21721_v15 = vld [vmem:[#allocation5 + $0x3438] ss:$40 sps:$4 sm:$0xff]  }
 0x2f7   :  { %12625 = vmatpush1.bf16.msra.mxu1 %v21661_v16  ;;  %12134 = vmatprep.subr.bf16.mxu0 %v21666_v19  ;;  %v21726_v16 = vld [vmem:[#allocation5 + $0x3484] ss:$40 sps:$4 sm:$0xff]  }
 0x2f8   :  { %12626 = vmatprep.subr.bf16.mxu1 %v21669_v20  ;;  %v21729_v19 = vld [vmem:[#allocation5 + $0x348c] ss:$40 sps:$4 sm:$0xff]   ;;  %v21724_v20 = vld [vmem:[#allocation5 + $0x3480] ss:$40 sps:$4 sm:$0xff]  }
 0x2fa   :  { %12135 = vmatpush1.bf16.msra.mxu0 %v21664_v21  ;;  %v21727_v21 = vld [vmem:[#allocation5 + $0x3488] ss:$40 sps:$4 sm:$0xff]  }
 0x2fb   :  { %12627 = vmatpush1.bf16.msra.mxu1 %v21667_v23  ;;  %12136 = vmatprep.subr.bf16.mxu0 %v21672_v25  ;;  %v21732_v23 = vld [vmem:[#allocation5 + $0x34d4] ss:$40 sps:$4 sm:$0xff]  }
 0x2fc   :  { %12628 = vmatprep.subr.bf16.mxu1 %v21675_v27  ;;  %v21735_v25 = vld [vmem:[#allocation5 + $0x34dc] ss:$40 sps:$4 sm:$0xff]   ;;  %v21730_v27 = vld [vmem:[#allocation5 + $0x34d0] ss:$40 sps:$4 sm:$0xff]  }
 0x2fe   :  { %12137 = vmatpush1.bf16.msra.mxu0 %v21670_v28  ;;  %v21733_v28 = vld [vmem:[#allocation5 + $0x34d8] ss:$40 sps:$4 sm:$0xff]  }
 0x2ff   :  { %12629 = vmatpush1.bf16.msra.mxu1 %v21673_v29  ;;  %12147 = vmatprep.subr.bf16.mxu0 %v21678_v33  ;;  %v21738_v29 = vld [vmem:[#allocation5 + $0x3524] ss:$40 sps:$4 sm:$0xff]   ;;  %v21736_v33 = vld [vmem:[#allocation5 + $0x3520] ss:$40 sps:$4 sm:$0xff]  }
 0x300   :  { %12639 = vmatprep.subr.bf16.mxu1 %v21681_v34  ;;  %v21739_v34 = vld [vmem:[#allocation5 + $0x3528] ss:$40 sps:$4 sm:$0xff]  }
 0x301   :  { %12139 = vmatmul.mubr.bf16.vlgmr.msra.gmra.mrb[0].mxu0 %v24599_v36 }
 0x302   :  { %12631 = vmatmul.mubr.bf16.vlgmr.msra.gmra.mrb[0].mxu1 %v24599_v36  ;;  %12148 = vmatpush1.bf16.msra.mxu0 %v21676_v35  ;;  %v21744_v35 = vld [vmem:[#allocation5 + $0x3574] ss:$40 sps:$4 sm:$0xff]  }
 0x303   :  { %12640 = vmatpush1.bf16.msra.mxu1 %v21679_v39  ;;  %12149 = vmatprep.subr.bf16.mxu0 %v21684_v40  ;;  %v21742_v39 = vld [vmem:[#allocation5 + $0x3570] ss:$40 sps:$4 sm:$0xff]  }
 0x304   :  { %12641 = vmatprep.subr.bf16.mxu1 %v21687_v41  ;;  %12179 = vmatprep.mubr.bf16.mxu0 %v24601_v43  ;;  %v21745_v40 = vld [vmem:[#allocation5 + $0x3578] ss:$40 sps:$4 sm:$0xff]   ;;  %v21750_v41 = vld [vmem:[#allocation5 + $0x35c4] ss:$40 sps:$4 sm:$0xff]  }
 0x305   :  { %12671 = vmatprep.mubr.bf16.mxu1 %v24601_v43 }
 0x306   :  { %12150 = vmatpush1.bf16.msra.mxu0 %v21682_v44  ;;  %v21753_v44 = vld [vmem:[#allocation5 + $0x35cc] ss:$40 sps:$4 sm:$0xff]  }
 0x307   :  { %12642 = vmatpush1.bf16.msra.mxu1 %v21685_v45  ;;  %12151 = vmatprep.subr.bf16.mxu0 %v21690_v47  ;;  %v21748_v45 = vld [vmem:[#allocation5 + $0x35c0] ss:$40 sps:$4 sm:$0xff]  }
 0x308   :  { %12643 = vmatprep.subr.bf16.mxu1 %v21693_v50  ;;  %v21751_v47 = vld [vmem:[#allocation5 + $0x35c8] ss:$40 sps:$4 sm:$0xff]   ;;  %v21756_v50 = vld [vmem:[#allocation5 + $0x3614] ss:$40 sps:$4 sm:$0xff]  }
 0x30a   :  { %12152 = vmatpush1.bf16.msra.mxu0 %v21688_v51  ;;  %v21759_v51 = vld [vmem:[#allocation5 + $0x361c] ss:$40 sps:$4 sm:$0xff]  }
 0x30b   :  { %12644 = vmatpush1.bf16.msra.mxu1 %v21691_v53  ;;  %12153 = vmatprep.subr.bf16.mxu0 %v21696_v54  ;;  %v21754_v53 = vld [vmem:[#allocation5 + $0x3610] ss:$40 sps:$4 sm:$0xff]  }
 0x30c   :  { %12645 = vmatprep.subr.bf16.mxu1 %v21699_v55  ;;  %v21757_v54 = vld [vmem:[#allocation5 + $0x3618] ss:$40 sps:$4 sm:$0xff]   ;;  %v21762_v55 = vld [vmem:[#allocation5 + $0x3664] ss:$40 sps:$4 sm:$0xff]  }
 0x30e   :  { %12154 = vmatpush1.bf16.msra.mxu0 %v21694_v56  ;;  %v21765_v56 = vld [vmem:[#allocation5 + $0x366c] ss:$40 sps:$4 sm:$0xff]  }
 0x30f   :  { %12646 = vmatpush1.bf16.msra.mxu1 %v21697_v57  ;;  %12155 = vmatprep.subr.bf16.mxu0 %v21702_v58  ;;  %v21760_v57 = vld [vmem:[#allocation5 + $0x3660] ss:$40 sps:$4 sm:$0xff]  }
 0x310   :  { %12647 = vmatprep.subr.bf16.mxu1 %v21705_v59  ;;  %v21763_v58 = vld [vmem:[#allocation5 + $0x3668] ss:$40 sps:$4 sm:$0xff]   ;;  %v21768_v59 = vld [vmem:[#allocation5 + $0x36b4] ss:$40 sps:$4 sm:$0xff]  }
 0x312   :  { %12156 = vmatpush1.bf16.msra.mxu0 %v21700_v60  ;;  %v21771_v60 = vld [vmem:[#allocation5 + $0x36bc] ss:$40 sps:$4 sm:$0xff]  }
 0x313   :  { %12648 = vmatpush1.bf16.msra.mxu1 %v21703_v61  ;;  %12157 = vmatprep.subr.bf16.mxu0 %v21708_v63  ;;  %v21766_v61 = vld [vmem:[#allocation5 + $0x36b0] ss:$40 sps:$4 sm:$0xff]  }
 0x314   :  { %12649 = vmatprep.subr.bf16.mxu1 %v21711_v0  ;;  %v21769_v63 = vld [vmem:[#allocation5 + $0x36b8] ss:$40 sps:$4 sm:$0xff]   ;;  %v21774_v0 = vld [vmem:[#allocation5 + $0x3704] ss:$40 sps:$4 sm:$0xff]  }
 0x316   :  { %12158 = vmatpush1.bf16.msra.mxu0 %v21706_v1  ;;  %v135_v1 = vld [vmem:[#allocation2 + $0xa0] sm:$0xff] }
 0x317   :  { %12650 = vmatpush1.bf16.msra.mxu1 %v21709_v2  ;;  %12159 = vmatprep.subr.bf16.mxu0 %v21714_v6  ;;  %v21777_v2 = vld [vmem:[#allocation5 + $0x370c] ss:$40 sps:$4 sm:$0xff]   ;;  %v138_v6 = vld [vmem:[#allocation2 + $0xb8] sm:$0xff] }
 0x318   :  { %12651 = vmatprep.subr.bf16.mxu1 %v21717_v7  ;;  %v24607_v7 = vpack.c.bf16 %v135_v1, %v135_v1  ;;  %v21834_v1 = vld [vmem:[#allocation5 + $0x3a24] ss:$40 sps:$4 sm:$0xff]  }
 0x31a   :  { %12160 = vmatpush1.bf16.msra.mxu0 %v21712_v8  ;;  %v21772_v8 = vld [vmem:[#allocation5 + $0x3700] ss:$40 sps:$4 sm:$0xff]  }
 0x31b   :  { %12652 = vmatpush1.bf16.msra.mxu1 %v21715_v9  ;;  %12161 = vmatprep.subr.bf16.mxu0 %v21720_v11  ;;  %v21775_v9 = vld [vmem:[#allocation5 + $0x3708] ss:$40 sps:$4 sm:$0xff]   ;;  %v21780_v11 = vld [vmem:[#allocation5 + $0x3754] ss:$40 sps:$4 sm:$0xff]  }
 0x31c   :  { %12653 = vmatprep.subr.bf16.mxu1 %v21723_v12  ;;  %v21783_v12 = vld [vmem:[#allocation5 + $0x375c] ss:$40 sps:$4 sm:$0xff]  }
 0x31e   :  { %12162 = vmatpush1.bf16.msra.mxu0 %v21718_v14  ;;  %v24609_v14 = vpack.c.bf16 %v138_v6, %v138_v6  ;;  %v21832_v6 = vld [vmem:[#allocation5 + $0x3a20] ss:$40 sps:$4 sm:$0xff]  }
 0x31f   :  { %12654 = vmatpush1.bf16.msra.mxu1 %v21721_v15  ;;  %12163 = vmatprep.subr.bf16.mxu0 %v21726_v16  ;;  %v21778_v15 = vld [vmem:[#allocation5 + $0x3750] ss:$40 sps:$4 sm:$0xff]  }
 0x320   :  { %12655 = vmatprep.subr.bf16.mxu1 %v21729_v19  ;;  %v21781_v16 = vld [vmem:[#allocation5 + $0x3758] ss:$40 sps:$4 sm:$0xff]   ;;  %v21786_v19 = vld [vmem:[#allocation5 + $0x37a4] ss:$40 sps:$4 sm:$0xff]  }
 0x322   :  { %12164 = vmatpush1.bf16.msra.mxu0 %v21724_v20  ;;  %v21789_v20 = vld [vmem:[#allocation5 + $0x37ac] ss:$40 sps:$4 sm:$0xff]  }
 0x323   :  { %12656 = vmatpush1.bf16.msra.mxu1 %v21727_v21  ;;  %12165 = vmatprep.subr.bf16.mxu0 %v21732_v23  ;;  %v21784_v21 = vld [vmem:[#allocation5 + $0x37a0] ss:$40 sps:$4 sm:$0xff]  }
 0x324   :  { %12657 = vmatprep.subr.bf16.mxu1 %v21735_v25  ;;  %v21787_v23 = vld [vmem:[#allocation5 + $0x37a8] ss:$40 sps:$4 sm:$0xff]   ;;  %v21792_v25 = vld [vmem:[#allocation5 + $0x37f4] ss:$40 sps:$4 sm:$0xff]  }
 0x326   :  { %12166 = vmatpush1.bf16.msra.mxu0 %v21730_v27  ;;  %v21795_v27 = vld [vmem:[#allocation5 + $0x37fc] ss:$40 sps:$4 sm:$0xff]  }
 0x327   :  { %12658 = vmatpush1.bf16.msra.mxu1 %v21733_v28  ;;  %12167 = vmatprep.subr.bf16.mxu0 %v21738_v29  ;;  %v21790_v28 = vld [vmem:[#allocation5 + $0x37f0] ss:$40 sps:$4 sm:$0xff]  }
 0x328   :  { %12659 = vmatprep.subr.bf16.mxu1 %v21741_v30  ;;  %v21793_v29 = vld [vmem:[#allocation5 + $0x37f8] ss:$40 sps:$4 sm:$0xff]   ;;  %v21798_v30 = vld [vmem:[#allocation5 + $0x3844] ss:$40 sps:$4 sm:$0xff]  }
 0x32a   :  { %12168 = vmatpush1.bf16.msra.mxu0 %v21736_v33  ;;  %v21801_v33 = vld [vmem:[#allocation5 + $0x384c] ss:$40 sps:$4 sm:$0xff]  }
 0x32b   :  { %12660 = vmatpush1.bf16.msra.mxu1 %v21739_v34  ;;  %12169 = vmatprep.subr.bf16.mxu0 %v21744_v35  ;;  %v21796_v34 = vld [vmem:[#allocation5 + $0x3840] ss:$40 sps:$4 sm:$0xff]  }
 0x32c   :  { %12661 = vmatprep.subr.bf16.mxu1 %v21747_v37  ;;  %v21799_v35 = vld [vmem:[#allocation5 + $0x3848] ss:$40 sps:$4 sm:$0xff]   ;;  %v21804_v37 = vld [vmem:[#allocation5 + $0x3894] ss:$40 sps:$4 sm:$0xff]  }
 0x32e   :  { %12170 = vmatpush1.bf16.msra.mxu0 %v21742_v39  ;;  %v21807_v39 = vld [vmem:[#allocation5 + $0x389c] ss:$40 sps:$4 sm:$0xff]  }
 0x32f   :  { %12662 = vmatpush1.bf16.msra.mxu1 %v21745_v40  ;;  %12171 = vmatprep.subr.bf16.mxu0 %v21750_v41  ;;  %v21802_v40 = vld [vmem:[#allocation5 + $0x3890] ss:$40 sps:$4 sm:$0xff]  }
 0x330   :  { %12663 = vmatprep.subr.bf16.mxu1 %v21753_v44  ;;  %v21805_v41 = vld [vmem:[#allocation5 + $0x3898] ss:$40 sps:$4 sm:$0xff]   ;;  %v21810_v44 = vld [vmem:[#allocation5 + $0x38e4] ss:$40 sps:$4 sm:$0xff]  }
 0x332   :  { %12172 = vmatpush1.bf16.msra.mxu0 %v21748_v45  ;;  %v21813_v45 = vld [vmem:[#allocation5 + $0x38ec] ss:$40 sps:$4 sm:$0xff]  }
 0x333   :  { %12664 = vmatpush1.bf16.msra.mxu1 %v21751_v47  ;;  %12173 = vmatprep.subr.bf16.mxu0 %v21756_v50  ;;  %v21808_v47 = vld [vmem:[#allocation5 + $0x38e0] ss:$40 sps:$4 sm:$0xff]  }
 0x334   :  { %12665 = vmatprep.subr.bf16.mxu1 %v21759_v51  ;;  %v21811_v50 = vld [vmem:[#allocation5 + $0x38e8] ss:$40 sps:$4 sm:$0xff]   ;;  %v21816_v51 = vld [vmem:[#allocation5 + $0x3934] ss:$40 sps:$4 sm:$0xff]  }
 0x336   :  { %12174 = vmatpush1.bf16.msra.mxu0 %v21754_v53  ;;  %v21819_v53 = vld [vmem:[#allocation5 + $0x393c] ss:$40 sps:$4 sm:$0xff]  }
 0x337   :  { %12666 = vmatpush1.bf16.msra.mxu1 %v21757_v54  ;;  %12175 = vmatprep.subr.bf16.mxu0 %v21762_v55  ;;  %v21814_v54 = vld [vmem:[#allocation5 + $0x3930] ss:$40 sps:$4 sm:$0xff]  }
 0x338   :  { %12667 = vmatprep.subr.bf16.mxu1 %v21765_v56  ;;  %v21817_v55 = vld [vmem:[#allocation5 + $0x3938] ss:$40 sps:$4 sm:$0xff]   ;;  %v21822_v56 = vld [vmem:[#allocation5 + $0x3984] ss:$40 sps:$4 sm:$0xff]  }
 0x33a   :  { %12176 = vmatpush1.bf16.msra.mxu0 %v21760_v57  ;;  %v21825_v57 = vld [vmem:[#allocation5 + $0x398c] ss:$40 sps:$4 sm:$0xff]  }
 0x33b   :  { %12668 = vmatpush1.bf16.msra.mxu1 %v21763_v58  ;;  %12177 = vmatprep.subr.bf16.mxu0 %v21768_v59  ;;  %v21820_v58 = vld [vmem:[#allocation5 + $0x3980] ss:$40 sps:$4 sm:$0xff]  }
 0x33c   :  { %12669 = vmatprep.subr.bf16.mxu1 %v21771_v60  ;;  %v21823_v59 = vld [vmem:[#allocation5 + $0x3988] ss:$40 sps:$4 sm:$0xff]   ;;  %v21828_v60 = vld [vmem:[#allocation5 + $0x39d4] ss:$40 sps:$4 sm:$0xff]  }
 0x33e   :  { %12178 = vmatpush1.bf16.msra.mxu0 %v21766_v61  ;;  %v21831_v61 = vld [vmem:[#allocation5 + $0x39dc] ss:$40 sps:$4 sm:$0xff]  }
 0x33f   :  { %12670 = vmatpush1.bf16.msra.mxu1 %v21769_v63  ;;  %12188 = vmatprep.subr.bf16.mxu0 %v21774_v0  ;;  %v21826_v63 = vld [vmem:[#allocation5 + $0x39d0] ss:$40 sps:$4 sm:$0xff]  }
 0x340   :  { %12680 = vmatprep.subr.bf16.mxu1 %v21777_v2  ;;  %v21829_v0 = vld [vmem:[#allocation5 + $0x39d8] ss:$40 sps:$4 sm:$0xff]   ;;  %v21837_v2 = vld [vmem:[#allocation5 + $0x3a2c] ss:$40 sps:$4 sm:$0xff]  }
 0x341   :  { %12180 = vmatmul.mubr.bf16.vlgmr.msra.gmra.mrb[0].mxu0 %v24607_v7 }
 0x342   :  { %12672 = vmatmul.mubr.bf16.vlgmr.msra.gmra.mrb[0].mxu1 %v24607_v7  ;;  %12189 = vmatpush1.bf16.msra.mxu0 %v21772_v8  ;;  %v21835_v8 = vld [vmem:[#allocation5 + $0x3a28] ss:$40 sps:$4 sm:$0xff]  }
 0x343   :  { %12681 = vmatpush1.bf16.msra.mxu1 %v21775_v9  ;;  %12190 = vmatprep.subr.bf16.mxu0 %v21780_v11  ;;  %v21840_v9 = vld [vmem:[#allocation5 + $0x3a74] ss:$40 sps:$4 sm:$0xff]  }
 0x344   :  { %12682 = vmatprep.subr.bf16.mxu1 %v21783_v12  ;;  %12220 = vmatprep.mubr.bf16.mxu0 %v24609_v14  ;;  %v21843_v11 = vld [vmem:[#allocation5 + $0x3a7c] ss:$40 sps:$4 sm:$0xff]   ;;  %v21838_v12 = vld [vmem:[#allocation5 + $0x3a70] ss:$40 sps:$4 sm:$0xff]  }
 0x345   :  { %12712 = vmatprep.mubr.bf16.mxu1 %v24609_v14 }
 0x346   :  { %12191 = vmatpush1.bf16.msra.mxu0 %v21778_v15  ;;  %v21841_v15 = vld [vmem:[#allocation5 + $0x3a78] ss:$40 sps:$4 sm:$0xff]  }
 0x347   :  { %12683 = vmatpush1.bf16.msra.mxu1 %v21781_v16  ;;  %12192 = vmatprep.subr.bf16.mxu0 %v21786_v19  ;;  %v21846_v16 = vld [vmem:[#allocation5 + $0x3ac4] ss:$40 sps:$4 sm:$0xff]  }
 0x348   :  { %12684 = vmatprep.subr.bf16.mxu1 %v21789_v20  ;;  %v21849_v19 = vld [vmem:[#allocation5 + $0x3acc] ss:$40 sps:$4 sm:$0xff]   ;;  %v21844_v20 = vld [vmem:[#allocation5 + $0x3ac0] ss:$40 sps:$4 sm:$0xff]  }
 0x34a   :  { %12193 = vmatpush1.bf16.msra.mxu0 %v21784_v21  ;;  %v21847_v21 = vld [vmem:[#allocation5 + $0x3ac8] ss:$40 sps:$4 sm:$0xff]  }
 0x34b   :  { %12685 = vmatpush1.bf16.msra.mxu1 %v21787_v23  ;;  %12194 = vmatprep.subr.bf16.mxu0 %v21792_v25  ;;  %v21852_v23 = vld [vmem:[#allocation5 + $0x3b14] ss:$40 sps:$4 sm:$0xff]  }
 0x34c   :  { %12686 = vmatprep.subr.bf16.mxu1 %v21795_v27  ;;  %v21855_v25 = vld [vmem:[#allocation5 + $0x3b1c] ss:$40 sps:$4 sm:$0xff]   ;;  %v21850_v27 = vld [vmem:[#allocation5 + $0x3b10] ss:$40 sps:$4 sm:$0xff]  }
 0x34e   :  { %12195 = vmatpush1.bf16.msra.mxu0 %v21790_v28  ;;  %v21853_v28 = vld [vmem:[#allocation5 + $0x3b18] ss:$40 sps:$4 sm:$0xff]  }
 0x34f   :  { %12687 = vmatpush1.bf16.msra.mxu1 %v21793_v29  ;;  %12196 = vmatprep.subr.bf16.mxu0 %v21798_v30  ;;  %v21858_v29 = vld [vmem:[#allocation5 + $0x3b64] ss:$40 sps:$4 sm:$0xff]  }
 0x350   :  { %12688 = vmatprep.subr.bf16.mxu1 %v21801_v33  ;;  %v21861_v30 = vld [vmem:[#allocation5 + $0x3b6c] ss:$40 sps:$4 sm:$0xff]   ;;  %v21856_v33 = vld [vmem:[#allocation5 + $0x3b60] ss:$40 sps:$4 sm:$0xff]  }
 0x352   :  { %12197 = vmatpush1.bf16.msra.mxu0 %v21796_v34  ;;  %v21859_v34 = vld [vmem:[#allocation5 + $0x3b68] ss:$40 sps:$4 sm:$0xff]  }
 0x353   :  { %12689 = vmatpush1.bf16.msra.mxu1 %v21799_v35  ;;  %12198 = vmatprep.subr.bf16.mxu0 %v21804_v37  ;;  %v21864_v35 = vld [vmem:[#allocation5 + $0x3bb4] ss:$40 sps:$4 sm:$0xff]  }
 0x354   :  { %12690 = vmatprep.subr.bf16.mxu1 %v21807_v39  ;;  %v21867_v37 = vld [vmem:[#allocation5 + $0x3bbc] ss:$40 sps:$4 sm:$0xff]   ;;  %v21862_v39 = vld [vmem:[#allocation5 + $0x3bb0] ss:$40 sps:$4 sm:$0xff]  }
 0x356   :  { %12199 = vmatpush1.bf16.msra.mxu0 %v21802_v40  ;;  %v21865_v40 = vld [vmem:[#allocation5 + $0x3bb8] ss:$40 sps:$4 sm:$0xff]  }
 0x357   :  { %12691 = vmatpush1.bf16.msra.mxu1 %v21805_v41  ;;  %12200 = vmatprep.subr.bf16.mxu0 %v21810_v44  ;;  %v137_v41 = vld [vmem:[#allocation2 + $0xb0] sm:$0xff] }
 0x358   :  { %12692 = vmatprep.subr.bf16.mxu1 %v21813_v45  ;;  %v21870_v44 = vld [vmem:[#allocation5 + $0x14] ss:$40 sps:$4 sm:$0xff]  }
 0x359   :  { %v21873_v45 = vld [vmem:[#allocation5 + $0x1c] ss:$40 sps:$4 sm:$0xff]  }
 0x35a   :  { %12201 = vmatpush1.bf16.msra.mxu0 %v21808_v47  ;;  %v24615_v47 = vpack.c.bf16 %v137_v41, %v137_v41  ;;  %v21925_v41 = vld [vmem:[#allocation5 + $0x2e8] ss:$40 sps:$4 sm:$0xff]  }
 0x35b   :  { %12693 = vmatpush1.bf16.msra.mxu1 %v21811_v50  ;;  %12202 = vmatprep.subr.bf16.mxu0 %v21816_v51  ;;  %v21868_v50 = vld [vmem:[#allocation5 + $0x10] ss:$40 sps:$4 sm:$0xff]  }
 0x35c   :  { %12694 = vmatprep.subr.bf16.mxu1 %v21819_v53  ;;  %v21871_v51 = vld [vmem:[#allocation5 + $0x18] ss:$40 sps:$4 sm:$0xff]   ;;  %v21876_v53 = vld [vmem:[#allocation5 + $0x64] ss:$40 sps:$4 sm:$0xff]  }
 0x35e   :  { %12203 = vmatpush1.bf16.msra.mxu0 %v21814_v54  ;;  %v21879_v54 = vld [vmem:[#allocation5 + $0x6c] ss:$40 sps:$4 sm:$0xff]  }
 0x35f   :  { %12695 = vmatpush1.bf16.msra.mxu1 %v21817_v55  ;;  %12204 = vmatprep.subr.bf16.mxu0 %v21822_v56  ;;  %v21874_v55 = vld [vmem:[#allocation5 + $0x60] ss:$40 sps:$4 sm:$0xff]  }
 0x360   :  { %12696 = vmatprep.subr.bf16.mxu1 %v21825_v57  ;;  %v21877_v56 = vld [vmem:[#allocation5 + $0x68] ss:$40 sps:$4 sm:$0xff]   ;;  %v21882_v57 = vld [vmem:[#allocation5 + $0xb4] ss:$40 sps:$4 sm:$0xff]  }
 0x362   :  { %12205 = vmatpush1.bf16.msra.mxu0 %v21820_v58  ;;  %v21885_v58 = vld [vmem:[#allocation5 + $0xbc] ss:$40 sps:$4 sm:$0xff]  }
 0x363   :  { %12697 = vmatpush1.bf16.msra.mxu1 %v21823_v59  ;;  %12206 = vmatprep.subr.bf16.mxu0 %v21828_v60  ;;  %v21880_v59 = vld [vmem:[#allocation5 + $0xb0] ss:$40 sps:$4 sm:$0xff]  }
 0x364   :  { %12698 = vmatprep.subr.bf16.mxu1 %v21831_v61  ;;  %v21883_v60 = vld [vmem:[#allocation5 + $0xb8] ss:$40 sps:$4 sm:$0xff]   ;;  %v21888_v61 = vld [vmem:[#allocation5 + $0x104] ss:$40 sps:$4 sm:$0xff]  }
 0x366   :  { %12207 = vmatpush1.bf16.msra.mxu0 %v21826_v63  ;;  %v21891_v63 = vld [vmem:[#allocation5 + $0x10c] ss:$40 sps:$4 sm:$0xff]  }
 0x367   :  { %12699 = vmatpush1.bf16.msra.mxu1 %v21829_v0  ;;  %12208 = vmatprep.subr.bf16.mxu0 %v21834_v1  ;;  %v21886_v0 = vld [vmem:[#allocation5 + $0x100] ss:$40 sps:$4 sm:$0xff]  }
 0x368   :  { %12700 = vmatprep.subr.bf16.mxu1 %v21837_v2  ;;  %v21889_v1 = vld [vmem:[#allocation5 + $0x108] ss:$40 sps:$4 sm:$0xff]   ;;  %v21894_v2 = vld [vmem:[#allocation5 + $0x154] ss:$40 sps:$4 sm:$0xff]  }
 0x36a   :  { %12209 = vmatpush1.bf16.msra.mxu0 %v21832_v6  ;;  %v21897_v6 = vld [vmem:[#allocation5 + $0x15c] ss:$40 sps:$4 sm:$0xff]  }
 0x36b   :  { %12701 = vmatpush1.bf16.msra.mxu1 %v21835_v8  ;;  %12210 = vmatprep.subr.bf16.mxu0 %v21840_v9  ;;  %v21892_v8 = vld [vmem:[#allocation5 + $0x150] ss:$40 sps:$4 sm:$0xff]  }
 0x36c   :  { %12702 = vmatprep.subr.bf16.mxu1 %v21843_v11  ;;  %v21895_v9 = vld [vmem:[#allocation5 + $0x158] ss:$40 sps:$4 sm:$0xff]   ;;  %v21900_v11 = vld [vmem:[#allocation5 + $0x1a4] ss:$40 sps:$4 sm:$0xff]  }
 0x36e   :  { %12211 = vmatpush1.bf16.msra.mxu0 %v21838_v12  ;;  %v21903_v12 = vld [vmem:[#allocation5 + $0x1ac] ss:$40 sps:$4 sm:$0xff]  }
 0x36f   :  { %12703 = vmatpush1.bf16.msra.mxu1 %v21841_v15  ;;  %12212 = vmatprep.subr.bf16.mxu0 %v21846_v16  ;;  %v21898_v15 = vld [vmem:[#allocation5 + $0x1a0] ss:$40 sps:$4 sm:$0xff]  }
 0x370   :  { %12704 = vmatprep.subr.bf16.mxu1 %v21849_v19  ;;  %v21901_v16 = vld [vmem:[#allocation5 + $0x1a8] ss:$40 sps:$4 sm:$0xff]   ;;  %v21906_v19 = vld [vmem:[#allocation5 + $0x1f4] ss:$40 sps:$4 sm:$0xff]  }
 0x372   :  { %12213 = vmatpush1.bf16.msra.mxu0 %v21844_v20  ;;  %v21909_v20 = vld [vmem:[#allocation5 + $0x1fc] ss:$40 sps:$4 sm:$0xff]  }
 0x373   :  { %12705 = vmatpush1.bf16.msra.mxu1 %v21847_v21  ;;  %12214 = vmatprep.subr.bf16.mxu0 %v21852_v23  ;;  %v21904_v21 = vld [vmem:[#allocation5 + $0x1f0] ss:$40 sps:$4 sm:$0xff]  }
 0x374   :  { %12706 = vmatprep.subr.bf16.mxu1 %v21855_v25  ;;  %v21907_v23 = vld [vmem:[#allocation5 + $0x1f8] ss:$40 sps:$4 sm:$0xff]   ;;  %v21912_v25 = vld [vmem:[#allocation5 + $0x244] ss:$40 sps:$4 sm:$0xff]  }
 0x376   :  { %12215 = vmatpush1.bf16.msra.mxu0 %v21850_v27  ;;  %v21915_v27 = vld [vmem:[#allocation5 + $0x24c] ss:$40 sps:$4 sm:$0xff]  }
 0x377   :  { %12707 = vmatpush1.bf16.msra.mxu1 %v21853_v28  ;;  %12216 = vmatprep.subr.bf16.mxu0 %v21858_v29  ;;  %v21910_v28 = vld [vmem:[#allocation5 + $0x240] ss:$40 sps:$4 sm:$0xff]  }
 0x378   :  { %12708 = vmatprep.subr.bf16.mxu1 %v21861_v30  ;;  %v21913_v29 = vld [vmem:[#allocation5 + $0x248] ss:$40 sps:$4 sm:$0xff]   ;;  %v21918_v30 = vld [vmem:[#allocation5 + $0x294] ss:$40 sps:$4 sm:$0xff]  }
 0x37a   :  { %12217 = vmatpush1.bf16.msra.mxu0 %v21856_v33  ;;  %v21921_v33 = vld [vmem:[#allocation5 + $0x29c] ss:$40 sps:$4 sm:$0xff]  }
 0x37b   :  { %12709 = vmatpush1.bf16.msra.mxu1 %v21859_v34  ;;  %12218 = vmatprep.subr.bf16.mxu0 %v21864_v35  ;;  %v21916_v34 = vld [vmem:[#allocation5 + $0x290] ss:$40 sps:$4 sm:$0xff]  }
 0x37c   :  { %12710 = vmatprep.subr.bf16.mxu1 %v21867_v37  ;;  %v21919_v35 = vld [vmem:[#allocation5 + $0x298] ss:$40 sps:$4 sm:$0xff]   ;;  %v21924_v37 = vld [vmem:[#allocation5 + $0x2e4] ss:$40 sps:$4 sm:$0xff]  }
 0x37e   :  { %12219 = vmatpush1.bf16.msra.mxu0 %v21862_v39  ;;  %v21927_v39 = vld [vmem:[#allocation5 + $0x2ec] ss:$40 sps:$4 sm:$0xff]  }
 0x37f   :  { %12711 = vmatpush1.bf16.msra.mxu1 %v21865_v40  ;;  %12721 = vmatprep.subr.bf16.mxu0 %v21870_v44  ;;  %v21922_v40 = vld [vmem:[#allocation5 + $0x2e0] ss:$40 sps:$4 sm:$0xff]   ;;  %v21930_v44 = vld [vmem:[#allocation5 + $0x334] ss:$40 sps:$4 sm:$0xff]  }
 0x380   :  { %13213 = vmatprep.subr.bf16.mxu1 %v21873_v45  ;;  %v21933_v45 = vld [vmem:[#allocation5 + $0x33c] ss:$40 sps:$4 sm:$0xff]  }
 0x381   :  { %12221 = vmatmul.mubr.bf16.vlgmr.msra.gmra.mrb[0].mxu0 %v24615_v47 }
 0x382   :  { %12713 = vmatmul.mubr.bf16.vlgmr.msra.gmra.mrb[0].mxu1 %v24615_v47  ;;  %12722 = vmatpush1.bf16.msra.mxu0 %v21868_v50  ;;  %v21928_v50 = vld [vmem:[#allocation5 + $0x330] ss:$40 sps:$4 sm:$0xff]  }
 0x383   :  { %13214 = vmatpush1.bf16.msra.mxu1 %v21871_v51  ;;  %12723 = vmatprep.subr.bf16.mxu0 %v21876_v53  ;;  %v21931_v51 = vld [vmem:[#allocation5 + $0x338] ss:$40 sps:$4 sm:$0xff]   ;;  %v21936_v53 = vld [vmem:[#allocation5 + $0x384] ss:$40 sps:$4 sm:$0xff]  }
 0x384   :  { %13215 = vmatprep.subr.bf16.mxu1 %v21879_v54  ;;  %12753 = vmatprep.mubr.bf16.mxu0 %v24523_v48  ;;  %v21939_v54 = vld [vmem:[#allocation5 + $0x38c] ss:$40 sps:$4 sm:$0xff]  }
 0x385   :  { %13245 = vmatprep.mubr.bf16.mxu1 %v24523_v48 }
 0x386   :  { %12724 = vmatpush1.bf16.msra.mxu0 %v21874_v55  ;;  %v21934_v55 = vld [vmem:[#allocation5 + $0x380] ss:$40 sps:$4 sm:$0xff]  }
 0x387   :  { %13216 = vmatpush1.bf16.msra.mxu1 %v21877_v56  ;;  %12725 = vmatprep.subr.bf16.mxu0 %v21882_v57  ;;  %v21937_v56 = vld [vmem:[#allocation5 + $0x388] ss:$40 sps:$4 sm:$0xff]   ;;  %v21942_v57 = vld [vmem:[#allocation5 + $0x3d4] ss:$40 sps:$4 sm:$0xff]  }
 0x388   :  { %13217 = vmatprep.subr.bf16.mxu1 %v21885_v58  ;;  %v21945_v58 = vld [vmem:[#allocation5 + $0x3dc] ss:$40 sps:$4 sm:$0xff]  }
 0x38a   :  { %12726 = vmatpush1.bf16.msra.mxu0 %v21880_v59  ;;  %v21940_v59 = vld [vmem:[#allocation5 + $0x3d0] ss:$40 sps:$4 sm:$0xff]  }
 0x38b   :  { %13218 = vmatpush1.bf16.msra.mxu1 %v21883_v60  ;;  %12727 = vmatprep.subr.bf16.mxu0 %v21888_v61  ;;  %v21943_v60 = vld [vmem:[#allocation5 + $0x3d8] ss:$40 sps:$4 sm:$0xff]   ;;  %v21948_v61 = vld [vmem:[#allocation5 + $0x424] ss:$40 sps:$4 sm:$0xff]  }
 0x38c   :  { %13219 = vmatprep.subr.bf16.mxu1 %v21891_v63  ;;  %v21951_v63 = vld [vmem:[#allocation5 + $0x42c] ss:$40 sps:$4 sm:$0xff]  }
 0x38e   :  { %12728 = vmatpush1.bf16.msra.mxu0 %v21886_v0  ;;  %v21946_v0 = vld [vmem:[#allocation5 + $0x420] ss:$40 sps:$4 sm:$0xff]  }
 0x38f   :  { %13220 = vmatpush1.bf16.msra.mxu1 %v21889_v1  ;;  %12729 = vmatprep.subr.bf16.mxu0 %v21894_v2  ;;  %v21949_v1 = vld [vmem:[#allocation5 + $0x428] ss:$40 sps:$4 sm:$0xff]   ;;  %v21954_v2 = vld [vmem:[#allocation5 + $0x474] ss:$40 sps:$4 sm:$0xff]  }
 0x390   :  { %13221 = vmatprep.subr.bf16.mxu1 %v21897_v6  ;;  %v21957_v6 = vld [vmem:[#allocation5 + $0x47c] ss:$40 sps:$4 sm:$0xff]  }
 0x392   :  { %12730 = vmatpush1.bf16.msra.mxu0 %v21892_v8  ;;  %v21952_v8 = vld [vmem:[#allocation5 + $0x470] ss:$40 sps:$4 sm:$0xff]  }
 0x393   :  { %13222 = vmatpush1.bf16.msra.mxu1 %v21895_v9  ;;  %12731 = vmatprep.subr.bf16.mxu0 %v21900_v11  ;;  %v21955_v9 = vld [vmem:[#allocation5 + $0x478] ss:$40 sps:$4 sm:$0xff]   ;;  %v21960_v11 = vld [vmem:[#allocation5 + $0x4c4] ss:$40 sps:$4 sm:$0xff]  }
 0x394   :  { %13223 = vmatprep.subr.bf16.mxu1 %v21903_v12  ;;  %v21963_v12 = vld [vmem:[#allocation5 + $0x4cc] ss:$40 sps:$4 sm:$0xff]  }
 0x396   :  { %12732 = vmatpush1.bf16.msra.mxu0 %v21898_v15  ;;  %v21958_v15 = vld [vmem:[#allocation5 + $0x4c0] ss:$40 sps:$4 sm:$0xff]  }
 0x397   :  { %13224 = vmatpush1.bf16.msra.mxu1 %v21901_v16  ;;  %12733 = vmatprep.subr.bf16.mxu0 %v21906_v19  ;;  %v21961_v16 = vld [vmem:[#allocation5 + $0x4c8] ss:$40 sps:$4 sm:$0xff]   ;;  %v21966_v19 = vld [vmem:[#allocation5 + $0x514] ss:$40 sps:$4 sm:$0xff]  }
 0x398   :  { %13225 = vmatprep.subr.bf16.mxu1 %v21909_v20  ;;  %v21969_v20 = vld [vmem:[#allocation5 + $0x51c] ss:$40 sps:$4 sm:$0xff]  }
 0x39a   :  { %12734 = vmatpush1.bf16.msra.mxu0 %v21904_v21  ;;  %v21964_v21 = vld [vmem:[#allocation5 + $0x510] ss:$40 sps:$4 sm:$0xff]  }
 0x39b   :  { %13226 = vmatpush1.bf16.msra.mxu1 %v21907_v23  ;;  %12735 = vmatprep.subr.bf16.mxu0 %v21912_v25  ;;  %v21967_v23 = vld [vmem:[#allocation5 + $0x518] ss:$40 sps:$4 sm:$0xff]   ;;  %v21972_v25 = vld [vmem:[#allocation5 + $0x564] ss:$40 sps:$4 sm:$0xff]  }
 0x39c   :  { %13227 = vmatprep.subr.bf16.mxu1 %v21915_v27  ;;  %v21975_v27 = vld [vmem:[#allocation5 + $0x56c] ss:$40 sps:$4 sm:$0xff]  }
 0x39e   :  { %12736 = vmatpush1.bf16.msra.mxu0 %v21910_v28  ;;  %v21970_v28 = vld [vmem:[#allocation5 + $0x560] ss:$40 sps:$4 sm:$0xff]  }
 0x39f   :  { %13228 = vmatpush1.bf16.msra.mxu1 %v21913_v29  ;;  %12737 = vmatprep.subr.bf16.mxu0 %v21918_v30  ;;  %v21973_v29 = vld [vmem:[#allocation5 + $0x568] ss:$40 sps:$4 sm:$0xff]   ;;  %v21978_v30 = vld [vmem:[#allocation5 + $0x5b4] ss:$40 sps:$4 sm:$0xff]  }
 0x3a0   :  { %13229 = vmatprep.subr.bf16.mxu1 %v21921_v33  ;;  %v21981_v33 = vld [vmem:[#allocation5 + $0x5bc] ss:$40 sps:$4 sm:$0xff]  }
 0x3a2   :  { %12738 = vmatpush1.bf16.msra.mxu0 %v21916_v34  ;;  %v21976_v34 = vld [vmem:[#allocation5 + $0x5b0] ss:$40 sps:$4 sm:$0xff]  }
 0x3a3   :  { %13230 = vmatpush1.bf16.msra.mxu1 %v21919_v35  ;;  %12739 = vmatprep.subr.bf16.mxu0 %v21924_v37  ;;  %v21979_v35 = vld [vmem:[#allocation5 + $0x5b8] ss:$40 sps:$4 sm:$0xff]   ;;  %v21984_v37 = vld [vmem:[#allocation5 + $0x604] ss:$40 sps:$4 sm:$0xff]  }
 0x3a4   :  { %13231 = vmatprep.subr.bf16.mxu1 %v21927_v39  ;;  %v21987_v39 = vld [vmem:[#allocation5 + $0x60c] ss:$40 sps:$4 sm:$0xff]  }
 0x3a6   :  { %12740 = vmatpush1.bf16.msra.mxu0 %v21922_v40  ;;  %v21982_v40 = vld [vmem:[#allocation5 + $0x600] ss:$40 sps:$4 sm:$0xff]  }
 0x3a7   :  { %13232 = vmatpush1.bf16.msra.mxu1 %v21925_v41  ;;  %12741 = vmatprep.subr.bf16.mxu0 %v21930_v44  ;;  %v21985_v41 = vld [vmem:[#allocation5 + $0x608] ss:$40 sps:$4 sm:$0xff]   ;;  %v21990_v44 = vld [vmem:[#allocation5 + $0x654] ss:$40 sps:$4 sm:$0xff]  }
 0x3a8   :  { %13233 = vmatprep.subr.bf16.mxu1 %v21933_v45  ;;  %v21993_v45 = vld [vmem:[#allocation5 + $0x65c] ss:$40 sps:$4 sm:$0xff]  }
 0x3aa   :  { %12742 = vmatpush1.bf16.msra.mxu0 %v21928_v50  ;;  %v21988_v50 = vld [vmem:[#allocation5 + $0x650] ss:$40 sps:$4 sm:$0xff]  }
 0x3ab   :  { %13234 = vmatpush1.bf16.msra.mxu1 %v21931_v51  ;;  %12743 = vmatprep.subr.bf16.mxu0 %v21936_v53  ;;  %v21991_v51 = vld [vmem:[#allocation5 + $0x658] ss:$40 sps:$4 sm:$0xff]   ;;  %v21996_v53 = vld [vmem:[#allocation5 + $0x6a4] ss:$40 sps:$4 sm:$0xff]  }
 0x3ac   :  { %13235 = vmatprep.subr.bf16.mxu1 %v21939_v54  ;;  %v21999_v54 = vld [vmem:[#allocation5 + $0x6ac] ss:$40 sps:$4 sm:$0xff]  }
 0x3ae   :  { %12744 = vmatpush1.bf16.msra.mxu0 %v21934_v55  ;;  %v21994_v55 = vld [vmem:[#allocation5 + $0x6a0] ss:$40 sps:$4 sm:$0xff]  }
 0x3af   :  { %13236 = vmatpush1.bf16.msra.mxu1 %v21937_v56  ;;  %12745 = vmatprep.subr.bf16.mxu0 %v21942_v57  ;;  %v21997_v56 = vld [vmem:[#allocation5 + $0x6a8] ss:$40 sps:$4 sm:$0xff]   ;;  %v22002_v57 = vld [vmem:[#allocation5 + $0x6f4] ss:$40 sps:$4 sm:$0xff]  }
 0x3b0   :  { %13237 = vmatprep.subr.bf16.mxu1 %v21945_v58  ;;  %v22005_v58 = vld [vmem:[#allocation5 + $0x6fc] ss:$40 sps:$4 sm:$0xff]  }
 0x3b2   :  { %12746 = vmatpush1.bf16.msra.mxu0 %v21940_v59  ;;  %v22000_v59 = vld [vmem:[#allocation5 + $0x6f0] ss:$40 sps:$4 sm:$0xff]  }
 0x3b3   :  { %13238 = vmatpush1.bf16.msra.mxu1 %v21943_v60  ;;  %12747 = vmatprep.subr.bf16.mxu0 %v21948_v61  ;;  %v22003_v60 = vld [vmem:[#allocation5 + $0x6f8] ss:$40 sps:$4 sm:$0xff]   ;;  %v22008_v61 = vld [vmem:[#allocation5 + $0x744] ss:$40 sps:$4 sm:$0xff]  }
 0x3b4   :  { %13239 = vmatprep.subr.bf16.mxu1 %v21951_v63  ;;  %v22011_v63 = vld [vmem:[#allocation5 + $0x74c] ss:$40 sps:$4 sm:$0xff]  }
 0x3b6   :  { %12748 = vmatpush1.bf16.msra.mxu0 %v21946_v0  ;;  %v22006_v0 = vld [vmem:[#allocation5 + $0x740] ss:$40 sps:$4 sm:$0xff]  }
 0x3b7   :  { %13240 = vmatpush1.bf16.msra.mxu1 %v21949_v1  ;;  %12749 = vmatprep.subr.bf16.mxu0 %v21954_v2  ;;  %v22009_v1 = vld [vmem:[#allocation5 + $0x748] ss:$40 sps:$4 sm:$0xff]   ;;  %v22014_v2 = vld [vmem:[#allocation5 + $0x794] ss:$40 sps:$4 sm:$0xff]  }
 0x3b8   :  { %13241 = vmatprep.subr.bf16.mxu1 %v21957_v6  ;;  %v22017_v6 = vld [vmem:[#allocation5 + $0x79c] ss:$40 sps:$4 sm:$0xff]  }
 0x3ba   :  { %12750 = vmatpush1.bf16.msra.mxu0 %v21952_v8  ;;  %v22012_v8 = vld [vmem:[#allocation5 + $0x790] ss:$40 sps:$4 sm:$0xff]  }
 0x3bb   :  { %13242 = vmatpush1.bf16.msra.mxu1 %v21955_v9  ;;  %12751 = vmatprep.subr.bf16.mxu0 %v21960_v11  ;;  %v22015_v9 = vld [vmem:[#allocation5 + $0x798] ss:$40 sps:$4 sm:$0xff]   ;;  %v22020_v11 = vld [vmem:[#allocation5 + $0x7e4] ss:$40 sps:$4 sm:$0xff]  }
 0x3bc   :  { %13243 = vmatprep.subr.bf16.mxu1 %v21963_v12  ;;  %v22023_v12 = vld [vmem:[#allocation5 + $0x7ec] ss:$40 sps:$4 sm:$0xff]  }
 0x3be   :  { %12752 = vmatpush1.bf16.msra.mxu0 %v21958_v15  ;;  %v22018_v15 = vld [vmem:[#allocation5 + $0x7e0] ss:$40 sps:$4 sm:$0xff]  }
 0x3bf   :  { %13244 = vmatpush1.bf16.msra.mxu1 %v21961_v16  ;;  %12762 = vmatprep.subr.bf16.mxu0 %v21966_v19  ;;  %v22021_v16 = vld [vmem:[#allocation5 + $0x7e8] ss:$40 sps:$4 sm:$0xff]   ;;  %v22026_v19 = vld [vmem:[#allocation5 + $0x834] ss:$40 sps:$4 sm:$0xff]  }
 0x3c0   :  { %13254 = vmatprep.subr.bf16.mxu1 %v21969_v20  ;;  %v22029_v20 = vld [vmem:[#allocation5 + $0x83c] ss:$40 sps:$4 sm:$0xff]  }
 0x3c1   :  { %12754 = vmatmul.mubr.bf16.vlgmr.msra.gmra.mrb[4].mxu0 %v24527_v5 }
 0x3c2   :  { %13246 = vmatmul.mubr.bf16.vlgmr.msra.gmra.mrb[4].mxu1 %v24527_v5  ;;  %12763 = vmatpush1.bf16.msra.mxu0 %v21964_v21  ;;  %v22024_v21 = vld [vmem:[#allocation5 + $0x830] ss:$40 sps:$4 sm:$0xff]  }
 0x3c3   :  { %13255 = vmatpush1.bf16.msra.mxu1 %v21967_v23  ;;  %12764 = vmatprep.subr.bf16.mxu0 %v21972_v25  ;;  %v22027_v23 = vld [vmem:[#allocation5 + $0x838] ss:$40 sps:$4 sm:$0xff]   ;;  %v22032_v25 = vld [vmem:[#allocation5 + $0x884] ss:$40 sps:$4 sm:$0xff]  }
 0x3c4   :  { %13256 = vmatprep.subr.bf16.mxu1 %v21975_v27  ;;  %12794 = vmatprep.mubr.bf16.mxu0 %v24531_v32  ;;  %v22035_v27 = vld [vmem:[#allocation5 + $0x88c] ss:$40 sps:$4 sm:$0xff]  }
 0x3c5   :  { %13286 = vmatprep.mubr.bf16.mxu1 %v24531_v32 }
 0x3c6   :  { %12765 = vmatpush1.bf16.msra.mxu0 %v21970_v28  ;;  %v22030_v28 = vld [vmem:[#allocation5 + $0x880] ss:$40 sps:$4 sm:$0xff]  }
 0x3c7   :  { %13257 = vmatpush1.bf16.msra.mxu1 %v21973_v29  ;;  %12766 = vmatprep.subr.bf16.mxu0 %v21978_v30  ;;  %v22033_v29 = vld [vmem:[#allocation5 + $0x888] ss:$40 sps:$4 sm:$0xff]   ;;  %v22038_v30 = vld [vmem:[#allocation5 + $0x8d4] ss:$40 sps:$4 sm:$0xff]  }
 0x3c8   :  { %13258 = vmatprep.subr.bf16.mxu1 %v21981_v33  ;;  %v22041_v33 = vld [vmem:[#allocation5 + $0x8dc] ss:$40 sps:$4 sm:$0xff]  }
 0x3ca   :  { %12767 = vmatpush1.bf16.msra.mxu0 %v21976_v34  ;;  %v22036_v34 = vld [vmem:[#allocation5 + $0x8d0] ss:$40 sps:$4 sm:$0xff]  }
 0x3cb   :  { %13259 = vmatpush1.bf16.msra.mxu1 %v21979_v35  ;;  %12768 = vmatprep.subr.bf16.mxu0 %v21984_v37  ;;  %v22039_v35 = vld [vmem:[#allocation5 + $0x8d8] ss:$40 sps:$4 sm:$0xff]   ;;  %v22044_v37 = vld [vmem:[#allocation5 + $0x924] ss:$40 sps:$4 sm:$0xff]  }
 0x3cc   :  { %13260 = vmatprep.subr.bf16.mxu1 %v21987_v39  ;;  %v22047_v39 = vld [vmem:[#allocation5 + $0x92c] ss:$40 sps:$4 sm:$0xff]  }
 0x3ce   :  { %12769 = vmatpush1.bf16.msra.mxu0 %v21982_v40  ;;  %v22042_v40 = vld [vmem:[#allocation5 + $0x920] ss:$40 sps:$4 sm:$0xff]  }
 0x3cf   :  { %13261 = vmatpush1.bf16.msra.mxu1 %v21985_v41  ;;  %12770 = vmatprep.subr.bf16.mxu0 %v21990_v44  ;;  %v22045_v41 = vld [vmem:[#allocation5 + $0x928] ss:$40 sps:$4 sm:$0xff]   ;;  %v22050_v44 = vld [vmem:[#allocation5 + $0x974] ss:$40 sps:$4 sm:$0xff]  }
 0x3d0   :  { %13262 = vmatprep.subr.bf16.mxu1 %v21993_v45  ;;  %v22053_v45 = vld [vmem:[#allocation5 + $0x97c] ss:$40 sps:$4 sm:$0xff]  }
 0x3d2   :  { %12771 = vmatpush1.bf16.msra.mxu0 %v21988_v50  ;;  %v22048_v50 = vld [vmem:[#allocation5 + $0x970] ss:$40 sps:$4 sm:$0xff]  }
 0x3d3   :  { %13263 = vmatpush1.bf16.msra.mxu1 %v21991_v51  ;;  %12772 = vmatprep.subr.bf16.mxu0 %v21996_v53  ;;  %v22051_v51 = vld [vmem:[#allocation5 + $0x978] ss:$40 sps:$4 sm:$0xff]   ;;  %v22056_v53 = vld [vmem:[#allocation5 + $0x9c4] ss:$40 sps:$4 sm:$0xff]  }
 0x3d4   :  { %13264 = vmatprep.subr.bf16.mxu1 %v21999_v54  ;;  %v22059_v54 = vld [vmem:[#allocation5 + $0x9cc] ss:$40 sps:$4 sm:$0xff]  }
 0x3d6   :  { %12773 = vmatpush1.bf16.msra.mxu0 %v21994_v55  ;;  %v22054_v55 = vld [vmem:[#allocation5 + $0x9c0] ss:$40 sps:$4 sm:$0xff]  }
 0x3d7   :  { %13265 = vmatpush1.bf16.msra.mxu1 %v21997_v56  ;;  %12774 = vmatprep.subr.bf16.mxu0 %v22002_v57  ;;  %v22057_v56 = vld [vmem:[#allocation5 + $0x9c8] ss:$40 sps:$4 sm:$0xff]   ;;  %v22062_v57 = vld [vmem:[#allocation5 + $0xa14] ss:$40 sps:$4 sm:$0xff]  }
 0x3d8   :  { %13266 = vmatprep.subr.bf16.mxu1 %v22005_v58  ;;  %v22065_v58 = vld [vmem:[#allocation5 + $0xa1c] ss:$40 sps:$4 sm:$0xff]  }
 0x3da   :  { %12775 = vmatpush1.bf16.msra.mxu0 %v22000_v59  ;;  %v22060_v59 = vld [vmem:[#allocation5 + $0xa10] ss:$40 sps:$4 sm:$0xff]  }
 0x3db   :  { %13267 = vmatpush1.bf16.msra.mxu1 %v22003_v60  ;;  %12776 = vmatprep.subr.bf16.mxu0 %v22008_v61  ;;  %v22063_v60 = vld [vmem:[#allocation5 + $0xa18] ss:$40 sps:$4 sm:$0xff]   ;;  %v22068_v61 = vld [vmem:[#allocation5 + $0xa64] ss:$40 sps:$4 sm:$0xff]  }
 0x3dc   :  { %13268 = vmatprep.subr.bf16.mxu1 %v22011_v63  ;;  %v22071_v63 = vld [vmem:[#allocation5 + $0xa6c] ss:$40 sps:$4 sm:$0xff]  }
 0x3de   :  { %12777 = vmatpush1.bf16.msra.mxu0 %v22006_v0  ;;  %v22066_v0 = vld [vmem:[#allocation5 + $0xa60] ss:$40 sps:$4 sm:$0xff]  }
 0x3df   :  { %13269 = vmatpush1.bf16.msra.mxu1 %v22009_v1  ;;  %12778 = vmatprep.subr.bf16.mxu0 %v22014_v2  ;;  %v22069_v1 = vld [vmem:[#allocation5 + $0xa68] ss:$40 sps:$4 sm:$0xff]   ;;  %v22074_v2 = vld [vmem:[#allocation5 + $0xab4] ss:$40 sps:$4 sm:$0xff]  }
 0x3e0   :  { %13270 = vmatprep.subr.bf16.mxu1 %v22017_v6  ;;  %v22077_v6 = vld [vmem:[#allocation5 + $0xabc] ss:$40 sps:$4 sm:$0xff]  }
 0x3e2   :  { %12779 = vmatpush1.bf16.msra.mxu0 %v22012_v8  ;;  %v22072_v8 = vld [vmem:[#allocation5 + $0xab0] ss:$40 sps:$4 sm:$0xff]  }
 0x3e3   :  { %13271 = vmatpush1.bf16.msra.mxu1 %v22015_v9  ;;  %12780 = vmatprep.subr.bf16.mxu0 %v22020_v11  ;;  %v22075_v9 = vld [vmem:[#allocation5 + $0xab8] ss:$40 sps:$4 sm:$0xff]   ;;  %v22080_v11 = vld [vmem:[#allocation5 + $0xb04] ss:$40 sps:$4 sm:$0xff]  }
 0x3e4   :  { %13272 = vmatprep.subr.bf16.mxu1 %v22023_v12  ;;  %v22083_v12 = vld [vmem:[#allocation5 + $0xb0c] ss:$40 sps:$4 sm:$0xff]  }
 0x3e6   :  { %12781 = vmatpush1.bf16.msra.mxu0 %v22018_v15  ;;  %v22078_v15 = vld [vmem:[#allocation5 + $0xb00] ss:$40 sps:$4 sm:$0xff]  }
 0x3e7   :  { %13273 = vmatpush1.bf16.msra.mxu1 %v22021_v16  ;;  %12782 = vmatprep.subr.bf16.mxu0 %v22026_v19  ;;  %v22081_v16 = vld [vmem:[#allocation5 + $0xb08] ss:$40 sps:$4 sm:$0xff]   ;;  %v22086_v19 = vld [vmem:[#allocation5 + $0xb54] ss:$40 sps:$4 sm:$0xff]  }
 0x3e8   :  { %13274 = vmatprep.subr.bf16.mxu1 %v22029_v20  ;;  %v22089_v20 = vld [vmem:[#allocation5 + $0xb5c] ss:$40 sps:$4 sm:$0xff]  }
 0x3ea   :  { %12783 = vmatpush1.bf16.msra.mxu0 %v22024_v21  ;;  %v22084_v21 = vld [vmem:[#allocation5 + $0xb50] ss:$40 sps:$4 sm:$0xff]  }
 0x3eb   :  { %13275 = vmatpush1.bf16.msra.mxu1 %v22027_v23  ;;  %12784 = vmatprep.subr.bf16.mxu0 %v22032_v25  ;;  %v22087_v23 = vld [vmem:[#allocation5 + $0xb58] ss:$40 sps:$4 sm:$0xff]   ;;  %v22092_v25 = vld [vmem:[#allocation5 + $0xba4] ss:$40 sps:$4 sm:$0xff]  }
 0x3ec   :  { %13276 = vmatprep.subr.bf16.mxu1 %v22035_v27  ;;  %v22095_v27 = vld [vmem:[#allocation5 + $0xbac] ss:$40 sps:$4 sm:$0xff]  }
 0x3ee   :  { %12785 = vmatpush1.bf16.msra.mxu0 %v22030_v28  ;;  %v22090_v28 = vld [vmem:[#allocation5 + $0xba0] ss:$40 sps:$4 sm:$0xff]  }
 0x3ef   :  { %13277 = vmatpush1.bf16.msra.mxu1 %v22033_v29  ;;  %12786 = vmatprep.subr.bf16.mxu0 %v22038_v30  ;;  %v22093_v29 = vld [vmem:[#allocation5 + $0xba8] ss:$40 sps:$4 sm:$0xff]   ;;  %v22098_v30 = vld [vmem:[#allocation5 + $0xbf4] ss:$40 sps:$4 sm:$0xff]  }
 0x3f0   :  { %13278 = vmatprep.subr.bf16.mxu1 %v22041_v33  ;;  %v22101_v33 = vld [vmem:[#allocation5 + $0xbfc] ss:$40 sps:$4 sm:$0xff]  }
 0x3f2   :  { %12787 = vmatpush1.bf16.msra.mxu0 %v22036_v34  ;;  %v22096_v34 = vld [vmem:[#allocation5 + $0xbf0] ss:$40 sps:$4 sm:$0xff]  }
 0x3f3   :  { %13279 = vmatpush1.bf16.msra.mxu1 %v22039_v35  ;;  %12788 = vmatprep.subr.bf16.mxu0 %v22044_v37  ;;  %v22099_v35 = vld [vmem:[#allocation5 + $0xbf8] ss:$40 sps:$4 sm:$0xff]   ;;  %v22104_v37 = vld [vmem:[#allocation5 + $0xc44] ss:$40 sps:$4 sm:$0xff]  }
 0x3f4   :  { %13280 = vmatprep.subr.bf16.mxu1 %v22047_v39  ;;  %v22107_v39 = vld [vmem:[#allocation5 + $0xc4c] ss:$40 sps:$4 sm:$0xff]  }
 0x3f6   :  { %12789 = vmatpush1.bf16.msra.mxu0 %v22042_v40  ;;  %v22102_v40 = vld [vmem:[#allocation5 + $0xc40] ss:$40 sps:$4 sm:$0xff]  }
 0x3f7   :  { %13281 = vmatpush1.bf16.msra.mxu1 %v22045_v41  ;;  %12790 = vmatprep.subr.bf16.mxu0 %v22050_v44  ;;  %v22105_v41 = vld [vmem:[#allocation5 + $0xc48] ss:$40 sps:$4 sm:$0xff]   ;;  %v22110_v44 = vld [vmem:[#allocation5 + $0xc94] ss:$40 sps:$4 sm:$0xff]  }
 0x3f8   :  { %13282 = vmatprep.subr.bf16.mxu1 %v22053_v45  ;;  %v22113_v45 = vld [vmem:[#allocation5 + $0xc9c] ss:$40 sps:$4 sm:$0xff]  }
 0x3fa   :  { %12791 = vmatpush1.bf16.msra.mxu0 %v22048_v50  ;;  %v22108_v50 = vld [vmem:[#allocation5 + $0xc90] ss:$40 sps:$4 sm:$0xff]  }
 0x3fb   :  { %13283 = vmatpush1.bf16.msra.mxu1 %v22051_v51  ;;  %12792 = vmatprep.subr.bf16.mxu0 %v22056_v53  ;;  %v22111_v51 = vld [vmem:[#allocation5 + $0xc98] ss:$40 sps:$4 sm:$0xff]   ;;  %v22116_v53 = vld [vmem:[#allocation5 + $0xce4] ss:$40 sps:$4 sm:$0xff]  }
 0x3fc   :  { %13284 = vmatprep.subr.bf16.mxu1 %v22059_v54  ;;  %v22119_v54 = vld [vmem:[#allocation5 + $0xcec] ss:$40 sps:$4 sm:$0xff]  }
 0x3fe   :  { %12793 = vmatpush1.bf16.msra.mxu0 %v22054_v55  ;;  %v22114_v55 = vld [vmem:[#allocation5 + $0xce0] ss:$40 sps:$4 sm:$0xff]  }
 0x3ff   :  { %13285 = vmatpush1.bf16.msra.mxu1 %v22057_v56  ;;  %12803 = vmatprep.subr.bf16.mxu0 %v22062_v57  ;;  %v22117_v56 = vld [vmem:[#allocation5 + $0xce8] ss:$40 sps:$4 sm:$0xff]   ;;  %v22122_v57 = vld [vmem:[#allocation5 + $0xd34] ss:$40 sps:$4 sm:$0xff]  }
 0x400   :  { %13295 = vmatprep.subr.bf16.mxu1 %v22065_v58  ;;  %v22125_v58 = vld [vmem:[#allocation5 + $0xd3c] ss:$40 sps:$4 sm:$0xff]  }
 0x401   :  { %12795 = vmatmul.mubr.bf16.vlgmr.msra.gmra.mrb[4].mxu0 %v24535_v13 }
 0x402   :  { %13287 = vmatmul.mubr.bf16.vlgmr.msra.gmra.mrb[4].mxu1 %v24535_v13  ;;  %12804 = vmatpush1.bf16.msra.mxu0 %v22060_v59  ;;  %v22120_v59 = vld [vmem:[#allocation5 + $0xd30] ss:$40 sps:$4 sm:$0xff]  }
 0x403   :  { %13296 = vmatpush1.bf16.msra.mxu1 %v22063_v60  ;;  %12805 = vmatprep.subr.bf16.mxu0 %v22068_v61  ;;  %v22123_v60 = vld [vmem:[#allocation5 + $0xd38] ss:$40 sps:$4 sm:$0xff]   ;;  %v22128_v61 = vld [vmem:[#allocation5 + $0xd84] ss:$40 sps:$4 sm:$0xff]  }
 0x404   :  { %13297 = vmatprep.subr.bf16.mxu1 %v22071_v63  ;;  %12835 = vmatprep.mubr.bf16.mxu0 %v24537_v17  ;;  %v22131_v63 = vld [vmem:[#allocation5 + $0xd8c] ss:$40 sps:$4 sm:$0xff]  }
 0x405   :  { %13327 = vmatprep.mubr.bf16.mxu1 %v24537_v17 }
 0x406   :  { %12806 = vmatpush1.bf16.msra.mxu0 %v22066_v0  ;;  %v22126_v0 = vld [vmem:[#allocation5 + $0xd80] ss:$40 sps:$4 sm:$0xff]  }
 0x407   :  { %13298 = vmatpush1.bf16.msra.mxu1 %v22069_v1  ;;  %12807 = vmatprep.subr.bf16.mxu0 %v22074_v2  ;;  %v22129_v1 = vld [vmem:[#allocation5 + $0xd88] ss:$40 sps:$4 sm:$0xff]   ;;  %v22134_v2 = vld [vmem:[#allocation5 + $0xdd4] ss:$40 sps:$4 sm:$0xff]  }
 0x408   :  { %13299 = vmatprep.subr.bf16.mxu1 %v22077_v6  ;;  %v22137_v6 = vld [vmem:[#allocation5 + $0xddc] ss:$40 sps:$4 sm:$0xff]  }
 0x40a   :  { %12808 = vmatpush1.bf16.msra.mxu0 %v22072_v8  ;;  %v22132_v8 = vld [vmem:[#allocation5 + $0xdd0] ss:$40 sps:$4 sm:$0xff]  }
 0x40b   :  { %13300 = vmatpush1.bf16.msra.mxu1 %v22075_v9  ;;  %12809 = vmatprep.subr.bf16.mxu0 %v22080_v11  ;;  %v22135_v9 = vld [vmem:[#allocation5 + $0xdd8] ss:$40 sps:$4 sm:$0xff]   ;;  %v22140_v11 = vld [vmem:[#allocation5 + $0xe24] ss:$40 sps:$4 sm:$0xff]  }
 0x40c   :  { %13301 = vmatprep.subr.bf16.mxu1 %v22083_v12  ;;  %v22143_v12 = vld [vmem:[#allocation5 + $0xe2c] ss:$40 sps:$4 sm:$0xff]  }
 0x40e   :  { %12810 = vmatpush1.bf16.msra.mxu0 %v22078_v15  ;;  %v22138_v15 = vld [vmem:[#allocation5 + $0xe20] ss:$40 sps:$4 sm:$0xff]  }
 0x40f   :  { %13302 = vmatpush1.bf16.msra.mxu1 %v22081_v16  ;;  %12811 = vmatprep.subr.bf16.mxu0 %v22086_v19  ;;  %v22141_v16 = vld [vmem:[#allocation5 + $0xe28] ss:$40 sps:$4 sm:$0xff]   ;;  %v22146_v19 = vld [vmem:[#allocation5 + $0xe74] ss:$40 sps:$4 sm:$0xff]  }
 0x410   :  { %13303 = vmatprep.subr.bf16.mxu1 %v22089_v20  ;;  %v22149_v20 = vld [vmem:[#allocation5 + $0xe7c] ss:$40 sps:$4 sm:$0xff]  }
 0x412   :  { %12812 = vmatpush1.bf16.msra.mxu0 %v22084_v21  ;;  %v22144_v21 = vld [vmem:[#allocation5 + $0xe70] ss:$40 sps:$4 sm:$0xff]  }
 0x413   :  { %13304 = vmatpush1.bf16.msra.mxu1 %v22087_v23  ;;  %12813 = vmatprep.subr.bf16.mxu0 %v22092_v25  ;;  %v22147_v23 = vld [vmem:[#allocation5 + $0xe78] ss:$40 sps:$4 sm:$0xff]   ;;  %v22152_v25 = vld [vmem:[#allocation5 + $0xec4] ss:$40 sps:$4 sm:$0xff]  }
 0x414   :  { %13305 = vmatprep.subr.bf16.mxu1 %v22095_v27  ;;  %v22155_v27 = vld [vmem:[#allocation5 + $0xecc] ss:$40 sps:$4 sm:$0xff]  }
 0x416   :  { %12814 = vmatpush1.bf16.msra.mxu0 %v22090_v28  ;;  %v22150_v28 = vld [vmem:[#allocation5 + $0xec0] ss:$40 sps:$4 sm:$0xff]  }
 0x417   :  { %13306 = vmatpush1.bf16.msra.mxu1 %v22093_v29  ;;  %12815 = vmatprep.subr.bf16.mxu0 %v22098_v30  ;;  %v22153_v29 = vld [vmem:[#allocation5 + $0xec8] ss:$40 sps:$4 sm:$0xff]   ;;  %v22158_v30 = vld [vmem:[#allocation5 + $0xf14] ss:$40 sps:$4 sm:$0xff]  }
 0x418   :  { %13307 = vmatprep.subr.bf16.mxu1 %v22101_v33  ;;  %v22161_v33 = vld [vmem:[#allocation5 + $0xf1c] ss:$40 sps:$4 sm:$0xff]  }
 0x41a   :  { %12816 = vmatpush1.bf16.msra.mxu0 %v22096_v34  ;;  %v22156_v34 = vld [vmem:[#allocation5 + $0xf10] ss:$40 sps:$4 sm:$0xff]  }
 0x41b   :  { %13308 = vmatpush1.bf16.msra.mxu1 %v22099_v35  ;;  %12817 = vmatprep.subr.bf16.mxu0 %v22104_v37  ;;  %v22159_v35 = vld [vmem:[#allocation5 + $0xf18] ss:$40 sps:$4 sm:$0xff]   ;;  %v22164_v37 = vld [vmem:[#allocation5 + $0xf64] ss:$40 sps:$4 sm:$0xff]  }
 0x41c   :  { %13309 = vmatprep.subr.bf16.mxu1 %v22107_v39  ;;  %v22167_v39 = vld [vmem:[#allocation5 + $0xf6c] ss:$40 sps:$4 sm:$0xff]  }
 0x41e   :  { %12818 = vmatpush1.bf16.msra.mxu0 %v22102_v40  ;;  %v22162_v40 = vld [vmem:[#allocation5 + $0xf60] ss:$40 sps:$4 sm:$0xff]  }
 0x41f   :  { %13310 = vmatpush1.bf16.msra.mxu1 %v22105_v41  ;;  %12819 = vmatprep.subr.bf16.mxu0 %v22110_v44  ;;  %v22165_v41 = vld [vmem:[#allocation5 + $0xf68] ss:$40 sps:$4 sm:$0xff]   ;;  %v22170_v44 = vld [vmem:[#allocation5 + $0xfb4] ss:$40 sps:$4 sm:$0xff]  }
 0x420   :  { %13311 = vmatprep.subr.bf16.mxu1 %v22113_v45  ;;  %v22173_v45 = vld [vmem:[#allocation5 + $0xfbc] ss:$40 sps:$4 sm:$0xff]  }
 0x422   :  { %12820 = vmatpush1.bf16.msra.mxu0 %v22108_v50  ;;  %v22168_v50 = vld [vmem:[#allocation5 + $0xfb0] ss:$40 sps:$4 sm:$0xff]  }
 0x423   :  { %13312 = vmatpush1.bf16.msra.mxu1 %v22111_v51  ;;  %12821 = vmatprep.subr.bf16.mxu0 %v22116_v53  ;;  %v22171_v51 = vld [vmem:[#allocation5 + $0xfb8] ss:$40 sps:$4 sm:$0xff]   ;;  %v22176_v53 = vld [vmem:[#allocation5 + $0x1004] ss:$40 sps:$4 sm:$0xff]  }
 0x424   :  { %13313 = vmatprep.subr.bf16.mxu1 %v22119_v54  ;;  %v22179_v54 = vld [vmem:[#allocation5 + $0x100c] ss:$40 sps:$4 sm:$0xff]  }
 0x426   :  { %12822 = vmatpush1.bf16.msra.mxu0 %v22114_v55  ;;  %v22174_v55 = vld [vmem:[#allocation5 + $0x1000] ss:$40 sps:$4 sm:$0xff]  }
 0x427   :  { %13314 = vmatpush1.bf16.msra.mxu1 %v22117_v56  ;;  %12823 = vmatprep.subr.bf16.mxu0 %v22122_v57  ;;  %v22177_v56 = vld [vmem:[#allocation5 + $0x1008] ss:$40 sps:$4 sm:$0xff]   ;;  %v22182_v57 = vld [vmem:[#allocation5 + $0x1054] ss:$40 sps:$4 sm:$0xff]  }
 0x428   :  { %13315 = vmatprep.subr.bf16.mxu1 %v22125_v58  ;;  %v22185_v58 = vld [vmem:[#allocation5 + $0x105c] ss:$40 sps:$4 sm:$0xff]  }
 0x42a   :  { %12824 = vmatpush1.bf16.msra.mxu0 %v22120_v59  ;;  %v22180_v59 = vld [vmem:[#allocation5 + $0x1050] ss:$40 sps:$4 sm:$0xff]  }
 0x42b   :  { %13316 = vmatpush1.bf16.msra.mxu1 %v22123_v60  ;;  %12825 = vmatprep.subr.bf16.mxu0 %v22128_v61  ;;  %v22183_v60 = vld [vmem:[#allocation5 + $0x1058] ss:$40 sps:$4 sm:$0xff]   ;;  %v22188_v61 = vld [vmem:[#allocation5 + $0x10a4] ss:$40 sps:$4 sm:$0xff]  }
 0x42c   :  { %13317 = vmatprep.subr.bf16.mxu1 %v22131_v63  ;;  %v22191_v63 = vld [vmem:[#allocation5 + $0x10ac] ss:$40 sps:$4 sm:$0xff]  }
 0x42e   :  { %12826 = vmatpush1.bf16.msra.mxu0 %v22126_v0  ;;  %v22186_v0 = vld [vmem:[#allocation5 + $0x10a0] ss:$40 sps:$4 sm:$0xff]  }
 0x42f   :  { %13318 = vmatpush1.bf16.msra.mxu1 %v22129_v1  ;;  %12827 = vmatprep.subr.bf16.mxu0 %v22134_v2  ;;  %v22189_v1 = vld [vmem:[#allocation5 + $0x10a8] ss:$40 sps:$4 sm:$0xff]   ;;  %v22194_v2 = vld [vmem:[#allocation5 + $0x10f4] ss:$40 sps:$4 sm:$0xff]  }
 0x430   :  { %13319 = vmatprep.subr.bf16.mxu1 %v22137_v6  ;;  %v22197_v6 = vld [vmem:[#allocation5 + $0x10fc] ss:$40 sps:$4 sm:$0xff]  }
 0x432   :  { %12828 = vmatpush1.bf16.msra.mxu0 %v22132_v8 }
 0x433   :  { %13320 = vmatpush1.bf16.msra.mxu1 %v22135_v9  ;;  %12829 = vmatprep.subr.bf16.mxu0 %v22140_v11 }
 0x434   :  { %13321 = vmatprep.subr.bf16.mxu1 %v22143_v12 }
 0x436   :  { %12830 = vmatpush1.bf16.msra.mxu0 %v22138_v15 }
 0x437   :  { %13322 = vmatpush1.bf16.msra.mxu1 %v22141_v16  ;;  %12831 = vmatprep.subr.bf16.mxu0 %v22146_v19  ;;  %v22192_v19 = vld [vmem:[#allocation5 + $0x10f0] ss:$40 sps:$4 sm:$0xff]  }
 0x438   :  { %13323 = vmatprep.subr.bf16.mxu1 %v22149_v20  ;;  %v22195_v20 = vld [vmem:[#allocation5 + $0x10f8] ss:$40 sps:$4 sm:$0xff]  }
 0x43a   :  { %12832 = vmatpush1.bf16.msra.mxu0 %v22144_v21 }
 0x43b   :  { %13324 = vmatpush1.bf16.msra.mxu1 %v22147_v23  ;;  %12833 = vmatprep.subr.bf16.mxu0 %v22152_v25  ;;  %v22200_v25 = vld [vmem:[#allocation5 + $0x1144] ss:$40 sps:$4 sm:$0xff]  }
 0x43c   :  { %13325 = vmatprep.subr.bf16.mxu1 %v22155_v27  ;;  %v22203_v27 = vld [vmem:[#allocation5 + $0x114c] ss:$40 sps:$4 sm:$0xff]  }
 0x43e   :  { %12834 = vmatpush1.bf16.msra.mxu0 %v22150_v28  ;;  %v22198_v28 = vld [vmem:[#allocation5 + $0x1140] ss:$40 sps:$4 sm:$0xff]  }
 0x43f   :  { %13326 = vmatpush1.bf16.msra.mxu1 %v22153_v29  ;;  %12844 = vmatprep.subr.bf16.mxu0 %v22158_v30  ;;  %v22201_v29 = vld [vmem:[#allocation5 + $0x1148] ss:$40 sps:$4 sm:$0xff]   ;;  %v22206_v30 = vld [vmem:[#allocation5 + $0x1194] ss:$40 sps:$4 sm:$0xff]  }
 0x440   :  { %13336 = vmatprep.subr.bf16.mxu1 %v22161_v33  ;;  %v22209_v33 = vld [vmem:[#allocation5 + $0x119c] ss:$40 sps:$4 sm:$0xff]  }
 0x441   :  { %12836 = vmatmul.mubr.bf16.vlgmr.msra.gmra.mrb[4].mxu0 %v24543_v22 }
 0x442   :  { %13328 = vmatmul.mubr.bf16.vlgmr.msra.gmra.mrb[4].mxu1 %v24543_v22  ;;  %12845 = vmatpush1.bf16.msra.mxu0 %v22156_v34  ;;  %v22204_v34 = vld [vmem:[#allocation5 + $0x1190] ss:$40 sps:$4 sm:$0xff]  }
 0x443   :  { %13337 = vmatpush1.bf16.msra.mxu1 %v22159_v35  ;;  %12846 = vmatprep.subr.bf16.mxu0 %v22164_v37  ;;  %v22207_v35 = vld [vmem:[#allocation5 + $0x1198] ss:$40 sps:$4 sm:$0xff]   ;;  %v22212_v37 = vld [vmem:[#allocation5 + $0x11e4] ss:$40 sps:$4 sm:$0xff]  }
 0x444   :  { %13338 = vmatprep.subr.bf16.mxu1 %v22167_v39  ;;  %12876 = vmatprep.mubr.bf16.mxu0 %v24545_v26  ;;  %v22215_v39 = vld [vmem:[#allocation5 + $0x11ec] ss:$40 sps:$4 sm:$0xff]  }
 0x445   :  { %13368 = vmatprep.mubr.bf16.mxu1 %v24545_v26 }
 0x446   :  { %12847 = vmatpush1.bf16.msra.mxu0 %v22162_v40  ;;  %v22210_v40 = vld [vmem:[#allocation5 + $0x11e0] ss:$40 sps:$4 sm:$0xff]  }
 0x447   :  { %13339 = vmatpush1.bf16.msra.mxu1 %v22165_v41  ;;  %12848 = vmatprep.subr.bf16.mxu0 %v22170_v44  ;;  %v22213_v41 = vld [vmem:[#allocation5 + $0x11e8] ss:$40 sps:$4 sm:$0xff]   ;;  %v22218_v44 = vld [vmem:[#allocation5 + $0x1234] ss:$40 sps:$4 sm:$0xff]  }
 0x448   :  { %13340 = vmatprep.subr.bf16.mxu1 %v22173_v45  ;;  %v22221_v45 = vld [vmem:[#allocation5 + $0x123c] ss:$40 sps:$4 sm:$0xff]  }
 0x44a   :  { %12849 = vmatpush1.bf16.msra.mxu0 %v22168_v50  ;;  %v22216_v50 = vld [vmem:[#allocation5 + $0x1230] ss:$40 sps:$4 sm:$0xff]  }
 0x44b   :  { %13341 = vmatpush1.bf16.msra.mxu1 %v22171_v51  ;;  %12850 = vmatprep.subr.bf16.mxu0 %v22176_v53  ;;  %v22219_v51 = vld [vmem:[#allocation5 + $0x1238] ss:$40 sps:$4 sm:$0xff]   ;;  %v22224_v53 = vld [vmem:[#allocation5 + $0x1284] ss:$40 sps:$4 sm:$0xff]  }
 0x44c   :  { %13342 = vmatprep.subr.bf16.mxu1 %v22179_v54  ;;  %v22227_v54 = vld [vmem:[#allocation5 + $0x128c] ss:$40 sps:$4 sm:$0xff]  }
 0x44e   :  { %12851 = vmatpush1.bf16.msra.mxu0 %v22174_v55  ;;  %v22222_v55 = vld [vmem:[#allocation5 + $0x1280] ss:$40 sps:$4 sm:$0xff]  }
 0x44f   :  { %13343 = vmatpush1.bf16.msra.mxu1 %v22177_v56  ;;  %12852 = vmatprep.subr.bf16.mxu0 %v22182_v57  ;;  %v22225_v56 = vld [vmem:[#allocation5 + $0x1288] ss:$40 sps:$4 sm:$0xff]   ;;  %v22230_v57 = vld [vmem:[#allocation5 + $0x12d4] ss:$40 sps:$4 sm:$0xff]  }
 0x450   :  { %13344 = vmatprep.subr.bf16.mxu1 %v22185_v58  ;;  %v22233_v58 = vld [vmem:[#allocation5 + $0x12dc] ss:$40 sps:$4 sm:$0xff]  }
 0x452   :  { %12853 = vmatpush1.bf16.msra.mxu0 %v22180_v59  ;;  %v22228_v59 = vld [vmem:[#allocation5 + $0x12d0] ss:$40 sps:$4 sm:$0xff]  }
 0x453   :  { %13345 = vmatpush1.bf16.msra.mxu1 %v22183_v60  ;;  %12854 = vmatprep.subr.bf16.mxu0 %v22188_v61  ;;  %v22231_v60 = vld [vmem:[#allocation5 + $0x12d8] ss:$40 sps:$4 sm:$0xff]   ;;  %v22236_v61 = vld [vmem:[#allocation5 + $0x1324] ss:$40 sps:$4 sm:$0xff]  }
 0x454   :  { %13346 = vmatprep.subr.bf16.mxu1 %v22191_v63  ;;  %v24633_v8 = vpop.f32.mrb[0].mxu0  ;;  %v22239_v63 = vld [vmem:[#allocation5 + $0x132c] ss:$40 sps:$4 sm:$0xff]  }
 0x455   :  { %v24635_v9 = vpop.f32.mrb[0].mxu1  ;;  %v24637_v11 = vpop.f32.mrb[1].mxu0 }
 0x456   :  { %v24639_v12 = vpop.f32.mrb[1].mxu1  ;;  %v12226_v15 = vpop.f32.mrb[2].mxu0  ;;  %12855 = vmatpush1.bf16.msra.mxu0 %v22186_v0  ;;  %v22234_v0 = vld [vmem:[#allocation5 + $0x1320] ss:$40 sps:$4 sm:$0xff]  }
 0x457   :  { %v12718_v16 = vpop.f32.mrb[2].mxu1  ;;  %13347 = vmatpush1.bf16.msra.mxu1 %v22189_v1  ;;  %v12227_v21 = vpop.f32.mrb[3].mxu0  ;;  %12856 = vmatprep.subr.bf16.mxu0 %v22194_v2  ;;  %v22237_v1 = vld [vmem:[#allocation5 + $0x1328] ss:$40 sps:$4 sm:$0xff]   ;;  %v22242_v2 = vld [vmem:[#allocation5 + $0x1374] ss:$40 sps:$4 sm:$0xff]  }
 0x458   :  { %v12719_v23 = vpop.f32.mrb[3].mxu1  ;;  %13348 = vmatprep.subr.bf16.mxu1 %v22197_v6  ;;  %v22245_v6 = vld [vmem:[#allocation5 + $0x137c] ss:$40 sps:$4 sm:$0xff]   ;;  %v22240_v15 = vld [vmem:[#allocation5 + $0x1370] ss:$40 sps:$4 sm:$0xff]  }
 0x459   :  { %v22243_v16 = vld [vmem:[#allocation5 + $0x1378] ss:$40 sps:$4 sm:$0xff]   ;;  %v22249_v23 = vld [vmem:[#allocation5 + $0x13c8] ss:$40 sps:$4 sm:$0xff]  }
 0x45a   :  { %12857 = vmatpush1.bf16.msra.mxu0 %v22192_v19  ;;  %v22248_v19 = vld [vmem:[#allocation5 + $0x13c4] ss:$40 sps:$4 sm:$0xff]   ;;  %v22246_v21 = vld [vmem:[#allocation5 + $0x13c0] ss:$40 sps:$4 sm:$0xff]  }
 0x45b   :  { %13349 = vmatpush1.bf16.msra.mxu1 %v22195_v20  ;;  %12858 = vmatprep.subr.bf16.mxu0 %v22200_v25  ;;  %v22251_v20 = vld [vmem:[#allocation5 + $0x13cc] ss:$40 sps:$4 sm:$0xff]  }
 0x45c   :  { %13350 = vmatprep.subr.bf16.mxu1 %v22203_v27  ;;  %v22254_v25 = vld [vmem:[#allocation5 + $0x1414] ss:$40 sps:$4 sm:$0xff]  }
 0x45d   :  { %v22257_v27 = vld [vmem:[#allocation5 + $0x141c] ss:$40 sps:$4 sm:$0xff]  }
 0x45e   :  { %12859 = vmatpush1.bf16.msra.mxu0 %v22198_v28  ;;  %v22252_v28 = vld [vmem:[#allocation5 + $0x1410] ss:$40 sps:$4 sm:$0xff]  }
 0x45f   :  { %13351 = vmatpush1.bf16.msra.mxu1 %v22201_v29  ;;  %12860 = vmatprep.subr.bf16.mxu0 %v22206_v30  ;;  %v22255_v29 = vld [vmem:[#allocation5 + $0x1418] ss:$40 sps:$4 sm:$0xff]   ;;  %v22260_v30 = vld [vmem:[#allocation5 + $0x1464] ss:$40 sps:$4 sm:$0xff]  }
 0x460   :  { %13352 = vmatprep.subr.bf16.mxu1 %v22209_v33  ;;  %v22263_v33 = vld [vmem:[#allocation5 + $0x146c] ss:$40 sps:$4 sm:$0xff]  }
 0x462   :  { %12861 = vmatpush1.bf16.msra.mxu0 %v22204_v34  ;;  %v22258_v34 = vld [vmem:[#allocation5 + $0x1460] ss:$40 sps:$4 sm:$0xff]  }
 0x463   :  { %13353 = vmatpush1.bf16.msra.mxu1 %v22207_v35  ;;  %12862 = vmatprep.subr.bf16.mxu0 %v22212_v37  ;;  %v22261_v35 = vld [vmem:[#allocation5 + $0x1468] ss:$40 sps:$4 sm:$0xff]   ;;  %v22266_v37 = vld [vmem:[#allocation5 + $0x14b4] ss:$40 sps:$4 sm:$0xff]  }
 0x464   :  { %13354 = vmatprep.subr.bf16.mxu1 %v22215_v39  ;;  %v22269_v39 = vld [vmem:[#allocation5 + $0x14bc] ss:$40 sps:$4 sm:$0xff]  }
 0x466   :  { %12863 = vmatpush1.bf16.msra.mxu0 %v22210_v40  ;;  %v22264_v40 = vld [vmem:[#allocation5 + $0x14b0] ss:$40 sps:$4 sm:$0xff]  }
 0x467   :  { %13355 = vmatpush1.bf16.msra.mxu1 %v22213_v41  ;;  %12864 = vmatprep.subr.bf16.mxu0 %v22218_v44  ;;  %v22267_v41 = vld [vmem:[#allocation5 + $0x14b8] ss:$40 sps:$4 sm:$0xff]   ;;  %v22272_v44 = vld [vmem:[#allocation5 + $0x1504] ss:$40 sps:$4 sm:$0xff]  }
 0x468   :  { %13356 = vmatprep.subr.bf16.mxu1 %v22221_v45  ;;  %v22275_v45 = vld [vmem:[#allocation5 + $0x150c] ss:$40 sps:$4 sm:$0xff]  }
 0x46a   :  { %12865 = vmatpush1.bf16.msra.mxu0 %v22216_v50  ;;  %v22270_v50 = vld [vmem:[#allocation5 + $0x1500] ss:$40 sps:$4 sm:$0xff]  }
 0x46b   :  { %13357 = vmatpush1.bf16.msra.mxu1 %v22219_v51  ;;  %12866 = vmatprep.subr.bf16.mxu0 %v22224_v53  ;;  %v22273_v51 = vld [vmem:[#allocation5 + $0x1508] ss:$40 sps:$4 sm:$0xff]   ;;  %v22278_v53 = vld [vmem:[#allocation5 + $0x1554] ss:$40 sps:$4 sm:$0xff]  }
 0x46c   :  { %13358 = vmatprep.subr.bf16.mxu1 %v22227_v54  ;;  %v22281_v54 = vld [vmem:[#allocation5 + $0x155c] ss:$40 sps:$4 sm:$0xff]  }
 0x46e   :  { %12867 = vmatpush1.bf16.msra.mxu0 %v22222_v55  ;;  %v22276_v55 = vld [vmem:[#allocation5 + $0x1550] ss:$40 sps:$4 sm:$0xff]  }
 0x46f   :  { %13359 = vmatpush1.bf16.msra.mxu1 %v22225_v56  ;;  %12868 = vmatprep.subr.bf16.mxu0 %v22230_v57  ;;  %v22279_v56 = vld [vmem:[#allocation5 + $0x1558] ss:$40 sps:$4 sm:$0xff]   ;;  %v22284_v57 = vld [vmem:[#allocation5 + $0x15a4] ss:$40 sps:$4 sm:$0xff]  }
 0x470   :  { %13360 = vmatprep.subr.bf16.mxu1 %v22233_v58  ;;  %v22287_v58 = vld [vmem:[#allocation5 + $0x15ac] ss:$40 sps:$4 sm:$0xff]  }
 0x472   :  { %12869 = vmatpush1.bf16.msra.mxu0 %v22228_v59  ;;  %v22282_v59 = vld [vmem:[#allocation5 + $0x15a0] ss:$40 sps:$4 sm:$0xff]  }
 0x473   :  { %13361 = vmatpush1.bf16.msra.mxu1 %v22231_v60  ;;  %12870 = vmatprep.subr.bf16.mxu0 %v22236_v61  ;;  %v22285_v60 = vld [vmem:[#allocation5 + $0x15a8] ss:$40 sps:$4 sm:$0xff]   ;;  %v22290_v61 = vld [vmem:[#allocation5 + $0x15f4] ss:$40 sps:$4 sm:$0xff]  }
 0x474   :  { %13362 = vmatprep.subr.bf16.mxu1 %v22239_v63  ;;  %v22293_v63 = vld [vmem:[#allocation5 + $0x15fc] ss:$40 sps:$4 sm:$0xff]  }
 0x476   :  { %12871 = vmatpush1.bf16.msra.mxu0 %v22234_v0  ;;  %v22288_v0 = vld [vmem:[#allocation5 + $0x15f0] ss:$40 sps:$4 sm:$0xff]  }
 0x477   :  { %13363 = vmatpush1.bf16.msra.mxu1 %v22237_v1  ;;  %12872 = vmatprep.subr.bf16.mxu0 %v22242_v2  ;;  %v22291_v1 = vld [vmem:[#allocation5 + $0x15f8] ss:$40 sps:$4 sm:$0xff]   ;;  %v22296_v2 = vld [vmem:[#allocation5 + $0x1644] ss:$40 sps:$4 sm:$0xff]  }
 0x478   :  { %13364 = vmatprep.subr.bf16.mxu1 %v22245_v6  ;;  %v22299_v6 = vld [vmem:[#allocation5 + $0x164c] ss:$40 sps:$4 sm:$0xff]  }
 0x47a   :  { %12873 = vmatpush1.bf16.msra.mxu0 %v22240_v15  ;;  %v22294_v15 = vld [vmem:[#allocation5 + $0x1640] ss:$40 sps:$4 sm:$0xff]  }
 0x47b   :  { %13365 = vmatpush1.bf16.msra.mxu1 %v22243_v16  ;;  %12874 = vmatprep.subr.bf16.mxu0 %v22248_v19  ;;  %v22297_v16 = vld [vmem:[#allocation5 + $0x1648] ss:$40 sps:$4 sm:$0xff]   ;;  %v22302_v19 = vld [vmem:[#allocation5 + $0x1694] ss:$40 sps:$4 sm:$0xff]  }
 0x47c   :  { %13366 = vmatprep.subr.bf16.mxu1 %v22251_v20  ;;  %v22305_v20 = vld [vmem:[#allocation5 + $0x169c] ss:$40 sps:$4 sm:$0xff]  }
 0x47e   :  { %12875 = vmatpush1.bf16.msra.mxu0 %v22246_v21  ;;  %v22300_v21 = vld [vmem:[#allocation5 + $0x1690] ss:$40 sps:$4 sm:$0xff]  }
 0x47f   :  { %13367 = vmatpush1.bf16.msra.mxu1 %v22249_v23  ;;  %12885 = vmatprep.subr.bf16.mxu0 %v22254_v25  ;;  %v22303_v23 = vld [vmem:[#allocation5 + $0x1698] ss:$40 sps:$4 sm:$0xff]   ;;  %v22308_v25 = vld [vmem:[#allocation5 + $0x16e4] ss:$40 sps:$4 sm:$0xff]  }
 0x480   :  { %13377 = vmatprep.subr.bf16.mxu1 %v22257_v27  ;;  %v22311_v27 = vld [vmem:[#allocation5 + $0x16ec] ss:$40 sps:$4 sm:$0xff]  }
 0x481   :  { %12877 = vmatmul.mubr.bf16.vlgmr.msra.gmra.mrb[4].mxu0 %v24551_v31 }
 0x482   :  { %13369 = vmatmul.mubr.bf16.vlgmr.msra.gmra.mrb[4].mxu1 %v24551_v31  ;;  %12886 = vmatpush1.bf16.msra.mxu0 %v22252_v28  ;;  %v22306_v28 = vld [vmem:[#allocation5 + $0x16e0] ss:$40 sps:$4 sm:$0xff]  }
 0x483   :  { %13378 = vmatpush1.bf16.msra.mxu1 %v22255_v29  ;;  %12887 = vmatprep.subr.bf16.mxu0 %v22260_v30  ;;  %v22309_v29 = vld [vmem:[#allocation5 + $0x16e8] ss:$40 sps:$4 sm:$0xff]   ;;  %v22314_v30 = vld [vmem:[#allocation5 + $0x1734] ss:$40 sps:$4 sm:$0xff]  }
 0x484   :  { %13379 = vmatprep.subr.bf16.mxu1 %v22263_v33  ;;  %12917 = vmatprep.mubr.bf16.mxu0 %v24553_v38  ;;  %v22317_v33 = vld [vmem:[#allocation5 + $0x173c] ss:$40 sps:$4 sm:$0xff]  }
 0x485   :  { %13409 = vmatprep.mubr.bf16.mxu1 %v24553_v38 }
 0x486   :  { %12888 = vmatpush1.bf16.msra.mxu0 %v22258_v34  ;;  %v22312_v34 = vld [vmem:[#allocation5 + $0x1730] ss:$40 sps:$4 sm:$0xff]  }
 0x487   :  { %13380 = vmatpush1.bf16.msra.mxu1 %v22261_v35  ;;  %12889 = vmatprep.subr.bf16.mxu0 %v22266_v37  ;;  %v22315_v35 = vld [vmem:[#allocation5 + $0x1738] ss:$40 sps:$4 sm:$0xff]   ;;  %v22320_v37 = vld [vmem:[#allocation5 + $0x1784] ss:$40 sps:$4 sm:$0xff]  }
 0x488   :  { %13381 = vmatprep.subr.bf16.mxu1 %v22269_v39  ;;  %v22323_v39 = vld [vmem:[#allocation5 + $0x178c] ss:$40 sps:$4 sm:$0xff]  }
 0x48a   :  { %12890 = vmatpush1.bf16.msra.mxu0 %v22264_v40  ;;  %v22318_v40 = vld [vmem:[#allocation5 + $0x1780] ss:$40 sps:$4 sm:$0xff]  }
 0x48b   :  { %13382 = vmatpush1.bf16.msra.mxu1 %v22267_v41  ;;  %12891 = vmatprep.subr.bf16.mxu0 %v22272_v44  ;;  %v22321_v41 = vld [vmem:[#allocation5 + $0x1788] ss:$40 sps:$4 sm:$0xff]   ;;  %v22326_v44 = vld [vmem:[#allocation5 + $0x17d4] ss:$40 sps:$4 sm:$0xff]  }
 0x48c   :  { %13383 = vmatprep.subr.bf16.mxu1 %v22275_v45  ;;  %v22329_v45 = vld [vmem:[#allocation5 + $0x17dc] ss:$40 sps:$4 sm:$0xff]  }
 0x48e   :  { %12892 = vmatpush1.bf16.msra.mxu0 %v22270_v50  ;;  %v22324_v50 = vld [vmem:[#allocation5 + $0x17d0] ss:$40 sps:$4 sm:$0xff]  }
 0x48f   :  { %13384 = vmatpush1.bf16.msra.mxu1 %v22273_v51  ;;  %12893 = vmatprep.subr.bf16.mxu0 %v22278_v53  ;;  %v22327_v51 = vld [vmem:[#allocation5 + $0x17d8] ss:$40 sps:$4 sm:$0xff]   ;;  %v22332_v53 = vld [vmem:[#allocation5 + $0x1824] ss:$40 sps:$4 sm:$0xff]  }
 0x490   :  { %13385 = vmatprep.subr.bf16.mxu1 %v22281_v54  ;;  %v22335_v54 = vld [vmem:[#allocation5 + $0x182c] ss:$40 sps:$4 sm:$0xff]  }
 0x492   :  { %12894 = vmatpush1.bf16.msra.mxu0 %v22276_v55  ;;  %v22330_v55 = vld [vmem:[#allocation5 + $0x1820] ss:$40 sps:$4 sm:$0xff]  }
 0x493   :  { %13386 = vmatpush1.bf16.msra.mxu1 %v22279_v56  ;;  %12895 = vmatprep.subr.bf16.mxu0 %v22284_v57  ;;  %v22333_v56 = vld [vmem:[#allocation5 + $0x1828] ss:$40 sps:$4 sm:$0xff]   ;;  %v22338_v57 = vld [vmem:[#allocation5 + $0x1874] ss:$40 sps:$4 sm:$0xff]  }
 0x494   :  { %13387 = vmatprep.subr.bf16.mxu1 %v22287_v58  ;;  %v22341_v58 = vld [vmem:[#allocation5 + $0x187c] ss:$40 sps:$4 sm:$0xff]  }
 0x496   :  { %12896 = vmatpush1.bf16.msra.mxu0 %v22282_v59  ;;  %v22336_v59 = vld [vmem:[#allocation5 + $0x1870] ss:$40 sps:$4 sm:$0xff]  }
 0x497   :  { %13388 = vmatpush1.bf16.msra.mxu1 %v22285_v60  ;;  %12897 = vmatprep.subr.bf16.mxu0 %v22290_v61  ;;  %v22339_v60 = vld [vmem:[#allocation5 + $0x1878] ss:$40 sps:$4 sm:$0xff]   ;;  %v22344_v61 = vld [vmem:[#allocation5 + $0x18c4] ss:$40 sps:$4 sm:$0xff]  }
 0x498   :  { %13389 = vmatprep.subr.bf16.mxu1 %v22293_v63  ;;  %v22347_v63 = vld [vmem:[#allocation5 + $0x18cc] ss:$40 sps:$4 sm:$0xff]  }
 0x49a   :  { %12898 = vmatpush1.bf16.msra.mxu0 %v22288_v0  ;;  %v22342_v0 = vld [vmem:[#allocation5 + $0x18c0] ss:$40 sps:$4 sm:$0xff]  }
 0x49b   :  { %13390 = vmatpush1.bf16.msra.mxu1 %v22291_v1  ;;  %12899 = vmatprep.subr.bf16.mxu0 %v22296_v2  ;;  %v22345_v1 = vld [vmem:[#allocation5 + $0x18c8] ss:$40 sps:$4 sm:$0xff]   ;;  %v22350_v2 = vld [vmem:[#allocation5 + $0x1914] ss:$40 sps:$4 sm:$0xff]  }
 0x49c   :  { %13391 = vmatprep.subr.bf16.mxu1 %v22299_v6  ;;  %v22353_v6 = vld [vmem:[#allocation5 + $0x191c] ss:$40 sps:$4 sm:$0xff]  }
 0x49e   :  { %12900 = vmatpush1.bf16.msra.mxu0 %v22294_v15  ;;  %v22348_v15 = vld [vmem:[#allocation5 + $0x1910] ss:$40 sps:$4 sm:$0xff]  }
 0x49f   :  { %13392 = vmatpush1.bf16.msra.mxu1 %v22297_v16  ;;  %12901 = vmatprep.subr.bf16.mxu0 %v22302_v19  ;;  %v22351_v16 = vld [vmem:[#allocation5 + $0x1918] ss:$40 sps:$4 sm:$0xff]   ;;  %v22356_v19 = vld [vmem:[#allocation5 + $0x1964] ss:$40 sps:$4 sm:$0xff]  }
 0x4a0   :  { %13393 = vmatprep.subr.bf16.mxu1 %v22305_v20  ;;  %v22359_v20 = vld [vmem:[#allocation5 + $0x196c] ss:$40 sps:$4 sm:$0xff]  }
 0x4a2   :  { %12902 = vmatpush1.bf16.msra.mxu0 %v22300_v21  ;;  %v22354_v21 = vld [vmem:[#allocation5 + $0x1960] ss:$40 sps:$4 sm:$0xff]  }
 0x4a3   :  { %13394 = vmatpush1.bf16.msra.mxu1 %v22303_v23  ;;  %12903 = vmatprep.subr.bf16.mxu0 %v22308_v25  ;;  %v22357_v23 = vld [vmem:[#allocation5 + $0x1968] ss:$40 sps:$4 sm:$0xff]   ;;  %v22362_v25 = vld [vmem:[#allocation5 + $0x19b4] ss:$40 sps:$4 sm:$0xff]  }
 0x4a4   :  { %13395 = vmatprep.subr.bf16.mxu1 %v22311_v27  ;;  %v22365_v27 = vld [vmem:[#allocation5 + $0x19bc] ss:$40 sps:$4 sm:$0xff]  }
 0x4a6   :  { %12904 = vmatpush1.bf16.msra.mxu0 %v22306_v28  ;;  %v22360_v28 = vld [vmem:[#allocation5 + $0x19b0] ss:$40 sps:$4 sm:$0xff]  }
 0x4a7   :  { %13396 = vmatpush1.bf16.msra.mxu1 %v22309_v29  ;;  %12905 = vmatprep.subr.bf16.mxu0 %v22314_v30  ;;  %v22363_v29 = vld [vmem:[#allocation5 + $0x19b8] ss:$40 sps:$4 sm:$0xff]   ;;  %v22368_v30 = vld [vmem:[#allocation5 + $0x1a04] ss:$40 sps:$4 sm:$0xff]  }
 0x4a8   :  { %13397 = vmatprep.subr.bf16.mxu1 %v22317_v33  ;;  %v22371_v33 = vld [vmem:[#allocation5 + $0x1a0c] ss:$40 sps:$4 sm:$0xff]  }
 0x4aa   :  { %12906 = vmatpush1.bf16.msra.mxu0 %v22312_v34  ;;  %v22366_v34 = vld [vmem:[#allocation5 + $0x1a00] ss:$40 sps:$4 sm:$0xff]  }
 0x4ab   :  { %13398 = vmatpush1.bf16.msra.mxu1 %v22315_v35  ;;  %12907 = vmatprep.subr.bf16.mxu0 %v22320_v37  ;;  %v22369_v35 = vld [vmem:[#allocation5 + $0x1a08] ss:$40 sps:$4 sm:$0xff]   ;;  %v22374_v37 = vld [vmem:[#allocation5 + $0x1a54] ss:$40 sps:$4 sm:$0xff]  }
 0x4ac   :  { %13399 = vmatprep.subr.bf16.mxu1 %v22323_v39  ;;  %v22377_v39 = vld [vmem:[#allocation5 + $0x1a5c] ss:$40 sps:$4 sm:$0xff]  }
 0x4ae   :  { %12908 = vmatpush1.bf16.msra.mxu0 %v22318_v40  ;;  %v22372_v40 = vld [vmem:[#allocation5 + $0x1a50] ss:$40 sps:$4 sm:$0xff]  }
 0x4af   :  { %13400 = vmatpush1.bf16.msra.mxu1 %v22321_v41  ;;  %12909 = vmatprep.subr.bf16.mxu0 %v22326_v44  ;;  %v22375_v41 = vld [vmem:[#allocation5 + $0x1a58] ss:$40 sps:$4 sm:$0xff]   ;;  %v22380_v44 = vld [vmem:[#allocation5 + $0x1aa4] ss:$40 sps:$4 sm:$0xff]  }
 0x4b0   :  { %13401 = vmatprep.subr.bf16.mxu1 %v22329_v45  ;;  %v22383_v45 = vld [vmem:[#allocation5 + $0x1aac] ss:$40 sps:$4 sm:$0xff]  }
 0x4b2   :  { %12910 = vmatpush1.bf16.msra.mxu0 %v22324_v50  ;;  %v22378_v50 = vld [vmem:[#allocation5 + $0x1aa0] ss:$40 sps:$4 sm:$0xff]  }
 0x4b3   :  { %13402 = vmatpush1.bf16.msra.mxu1 %v22327_v51  ;;  %12911 = vmatprep.subr.bf16.mxu0 %v22332_v53  ;;  %v22381_v51 = vld [vmem:[#allocation5 + $0x1aa8] ss:$40 sps:$4 sm:$0xff]   ;;  %v22386_v53 = vld [vmem:[#allocation5 + $0x1af4] ss:$40 sps:$4 sm:$0xff]  }
 0x4b4   :  { %13403 = vmatprep.subr.bf16.mxu1 %v22335_v54  ;;  %v22389_v54 = vld [vmem:[#allocation5 + $0x1afc] ss:$40 sps:$4 sm:$0xff]  }
 0x4b6   :  { %12912 = vmatpush1.bf16.msra.mxu0 %v22330_v55  ;;  %v22384_v55 = vld [vmem:[#allocation5 + $0x1af0] ss:$40 sps:$4 sm:$0xff]  }
 0x4b7   :  { %13404 = vmatpush1.bf16.msra.mxu1 %v22333_v56  ;;  %12913 = vmatprep.subr.bf16.mxu0 %v22338_v57  ;;  %v22387_v56 = vld [vmem:[#allocation5 + $0x1af8] ss:$40 sps:$4 sm:$0xff]   ;;  %v22392_v57 = vld [vmem:[#allocation5 + $0x1b44] ss:$40 sps:$4 sm:$0xff]  }
 0x4b8   :  { %13405 = vmatprep.subr.bf16.mxu1 %v22341_v58  ;;  %v22395_v58 = vld [vmem:[#allocation5 + $0x1b4c] ss:$40 sps:$4 sm:$0xff]  }
 0x4ba   :  { %12914 = vmatpush1.bf16.msra.mxu0 %v22336_v59  ;;  %v22390_v59 = vld [vmem:[#allocation5 + $0x1b40] ss:$40 sps:$4 sm:$0xff]  }
 0x4bb   :  { %13406 = vmatpush1.bf16.msra.mxu1 %v22339_v60  ;;  %12915 = vmatprep.subr.bf16.mxu0 %v22344_v61  ;;  %v22393_v60 = vld [vmem:[#allocation5 + $0x1b48] ss:$40 sps:$4 sm:$0xff]   ;;  %v22398_v61 = vld [vmem:[#allocation5 + $0x1b94] ss:$40 sps:$4 sm:$0xff]  }
 0x4bc   :  { %13407 = vmatprep.subr.bf16.mxu1 %v22347_v63  ;;  %v22401_v63 = vld [vmem:[#allocation5 + $0x1b9c] ss:$40 sps:$4 sm:$0xff]  }
 0x4be   :  { %12916 = vmatpush1.bf16.msra.mxu0 %v22342_v0  ;;  %v22396_v0 = vld [vmem:[#allocation5 + $0x1b90] ss:$40 sps:$4 sm:$0xff]  }
 0x4bf   :  { %13408 = vmatpush1.bf16.msra.mxu1 %v22345_v1  ;;  %12926 = vmatprep.subr.bf16.mxu0 %v22350_v2  ;;  %v22399_v1 = vld [vmem:[#allocation5 + $0x1b98] ss:$40 sps:$4 sm:$0xff]   ;;  %v22404_v2 = vld [vmem:[#allocation5 + $0x1be4] ss:$40 sps:$4 sm:$0xff]  }
 0x4c0   :  { %13418 = vmatprep.subr.bf16.mxu1 %v22353_v6  ;;  %v22407_v6 = vld [vmem:[#allocation5 + $0x1bec] ss:$40 sps:$4 sm:$0xff]  }
 0x4c1   :  { %12918 = vmatmul.mubr.bf16.vlgmr.msra.gmra.mrb[4].mxu0 %v24559_v46 }
 0x4c2   :  { %13410 = vmatmul.mubr.bf16.vlgmr.msra.gmra.mrb[4].mxu1 %v24559_v46  ;;  %12927 = vmatpush1.bf16.msra.mxu0 %v22348_v15  ;;  %v22402_v15 = vld [vmem:[#allocation5 + $0x1be0] ss:$40 sps:$4 sm:$0xff]  }
 0x4c3   :  { %13419 = vmatpush1.bf16.msra.mxu1 %v22351_v16  ;;  %12928 = vmatprep.subr.bf16.mxu0 %v22356_v19  ;;  %v22405_v16 = vld [vmem:[#allocation5 + $0x1be8] ss:$40 sps:$4 sm:$0xff]   ;;  %v22410_v19 = vld [vmem:[#allocation5 + $0x1c34] ss:$40 sps:$4 sm:$0xff]  }
 0x4c4   :  { %13420 = vmatprep.subr.bf16.mxu1 %v22359_v20  ;;  %12958 = vmatprep.mubr.bf16.mxu0 %v24561_v52  ;;  %v22413_v20 = vld [vmem:[#allocation5 + $0x1c3c] ss:$40 sps:$4 sm:$0xff]  }
 0x4c5   :  { %13450 = vmatprep.mubr.bf16.mxu1 %v24561_v52 }
 0x4c6   :  { %12929 = vmatpush1.bf16.msra.mxu0 %v22354_v21  ;;  %v22408_v21 = vld [vmem:[#allocation5 + $0x1c30] ss:$40 sps:$4 sm:$0xff]  }
 0x4c7   :  { %13421 = vmatpush1.bf16.msra.mxu1 %v22357_v23  ;;  %12930 = vmatprep.subr.bf16.mxu0 %v22362_v25  ;;  %v22411_v23 = vld [vmem:[#allocation5 + $0x1c38] ss:$40 sps:$4 sm:$0xff]   ;;  %v22416_v25 = vld [vmem:[#allocation5 + $0x1c84] ss:$40 sps:$4 sm:$0xff]  }
 0x4c8   :  { %13422 = vmatprep.subr.bf16.mxu1 %v22365_v27  ;;  %v22419_v27 = vld [vmem:[#allocation5 + $0x1c8c] ss:$40 sps:$4 sm:$0xff]  }
 0x4ca   :  { %12931 = vmatpush1.bf16.msra.mxu0 %v22360_v28  ;;  %v22414_v28 = vld [vmem:[#allocation5 + $0x1c80] ss:$40 sps:$4 sm:$0xff]  }
 0x4cb   :  { %13423 = vmatpush1.bf16.msra.mxu1 %v22363_v29  ;;  %12932 = vmatprep.subr.bf16.mxu0 %v22368_v30  ;;  %v22417_v29 = vld [vmem:[#allocation5 + $0x1c88] ss:$40 sps:$4 sm:$0xff]   ;;  %v22422_v30 = vld [vmem:[#allocation5 + $0x1cd4] ss:$40 sps:$4 sm:$0xff]  }
 0x4cc   :  { %13424 = vmatprep.subr.bf16.mxu1 %v22371_v33  ;;  %v22425_v33 = vld [vmem:[#allocation5 + $0x1cdc] ss:$40 sps:$4 sm:$0xff]  }
 0x4ce   :  { %12933 = vmatpush1.bf16.msra.mxu0 %v22366_v34  ;;  %v22420_v34 = vld [vmem:[#allocation5 + $0x1cd0] ss:$40 sps:$4 sm:$0xff]  }
 0x4cf   :  { %13425 = vmatpush1.bf16.msra.mxu1 %v22369_v35  ;;  %12934 = vmatprep.subr.bf16.mxu0 %v22374_v37  ;;  %v22423_v35 = vld [vmem:[#allocation5 + $0x1cd8] ss:$40 sps:$4 sm:$0xff]   ;;  %v22428_v37 = vld [vmem:[#allocation5 + $0x1d24] ss:$40 sps:$4 sm:$0xff]  }
 0x4d0   :  { %13426 = vmatprep.subr.bf16.mxu1 %v22377_v39  ;;  %v22431_v39 = vld [vmem:[#allocation5 + $0x1d2c] ss:$40 sps:$4 sm:$0xff]  }
 0x4d2   :  { %12935 = vmatpush1.bf16.msra.mxu0 %v22372_v40  ;;  %v22426_v40 = vld [vmem:[#allocation5 + $0x1d20] ss:$40 sps:$4 sm:$0xff]  }
 0x4d3   :  { %13427 = vmatpush1.bf16.msra.mxu1 %v22375_v41  ;;  %12936 = vmatprep.subr.bf16.mxu0 %v22380_v44  ;;  %v22429_v41 = vld [vmem:[#allocation5 + $0x1d28] ss:$40 sps:$4 sm:$0xff]   ;;  %v22434_v44 = vld [vmem:[#allocation5 + $0x1d74] ss:$40 sps:$4 sm:$0xff]  }
 0x4d4   :  { %13428 = vmatprep.subr.bf16.mxu1 %v22383_v45  ;;  %v22437_v45 = vld [vmem:[#allocation5 + $0x1d7c] ss:$40 sps:$4 sm:$0xff]  }
 0x4d6   :  { %12937 = vmatpush1.bf16.msra.mxu0 %v22378_v50  ;;  %v22432_v50 = vld [vmem:[#allocation5 + $0x1d70] ss:$40 sps:$4 sm:$0xff]  }
 0x4d7   :  { %13429 = vmatpush1.bf16.msra.mxu1 %v22381_v51  ;;  %12938 = vmatprep.subr.bf16.mxu0 %v22386_v53  ;;  %v22435_v51 = vld [vmem:[#allocation5 + $0x1d78] ss:$40 sps:$4 sm:$0xff]   ;;  %v22440_v53 = vld [vmem:[#allocation5 + $0x1dc4] ss:$40 sps:$4 sm:$0xff]  }
 0x4d8   :  { %13430 = vmatprep.subr.bf16.mxu1 %v22389_v54  ;;  %v22443_v54 = vld [vmem:[#allocation5 + $0x1dcc] ss:$40 sps:$4 sm:$0xff]  }
 0x4da   :  { %12939 = vmatpush1.bf16.msra.mxu0 %v22384_v55  ;;  %v22438_v55 = vld [vmem:[#allocation5 + $0x1dc0] ss:$40 sps:$4 sm:$0xff]  }
 0x4db   :  { %13431 = vmatpush1.bf16.msra.mxu1 %v22387_v56  ;;  %12940 = vmatprep.subr.bf16.mxu0 %v22392_v57  ;;  %v22441_v56 = vld [vmem:[#allocation5 + $0x1dc8] ss:$40 sps:$4 sm:$0xff]   ;;  %v22446_v57 = vld [vmem:[#allocation5 + $0x1e14] ss:$40 sps:$4 sm:$0xff]  }
 0x4dc   :  { %13432 = vmatprep.subr.bf16.mxu1 %v22395_v58  ;;  %v22449_v58 = vld [vmem:[#allocation5 + $0x1e1c] ss:$40 sps:$4 sm:$0xff]  }
 0x4de   :  { %12941 = vmatpush1.bf16.msra.mxu0 %v22390_v59  ;;  %v22444_v59 = vld [vmem:[#allocation5 + $0x1e10] ss:$40 sps:$4 sm:$0xff]  }
 0x4df   :  { %13433 = vmatpush1.bf16.msra.mxu1 %v22393_v60  ;;  %12942 = vmatprep.subr.bf16.mxu0 %v22398_v61  ;;  %v22447_v60 = vld [vmem:[#allocation5 + $0x1e18] ss:$40 sps:$4 sm:$0xff]   ;;  %v22452_v61 = vld [vmem:[#allocation5 + $0x1e64] ss:$40 sps:$4 sm:$0xff]  }
 0x4e0   :  { %13434 = vmatprep.subr.bf16.mxu1 %v22401_v63  ;;  %v22455_v63 = vld [vmem:[#allocation5 + $0x1e6c] ss:$40 sps:$4 sm:$0xff]  }
 0x4e2   :  { %12943 = vmatpush1.bf16.msra.mxu0 %v22396_v0  ;;  %v22450_v0 = vld [vmem:[#allocation5 + $0x1e60] ss:$40 sps:$4 sm:$0xff]  }
 0x4e3   :  { %13435 = vmatpush1.bf16.msra.mxu1 %v22399_v1  ;;  %12944 = vmatprep.subr.bf16.mxu0 %v22404_v2  ;;  %v22453_v1 = vld [vmem:[#allocation5 + $0x1e68] ss:$40 sps:$4 sm:$0xff]   ;;  %v22458_v2 = vld [vmem:[#allocation5 + $0x1eb4] ss:$40 sps:$4 sm:$0xff]  }
 0x4e4   :  { %13436 = vmatprep.subr.bf16.mxu1 %v22407_v6  ;;  %v22461_v6 = vld [vmem:[#allocation5 + $0x1ebc] ss:$40 sps:$4 sm:$0xff]  }
 0x4e6   :  { %12945 = vmatpush1.bf16.msra.mxu0 %v22402_v15  ;;  %v22456_v15 = vld [vmem:[#allocation5 + $0x1eb0] ss:$40 sps:$4 sm:$0xff]  }
 0x4e7   :  { %13437 = vmatpush1.bf16.msra.mxu1 %v22405_v16  ;;  %12946 = vmatprep.subr.bf16.mxu0 %v22410_v19  ;;  %v22459_v16 = vld [vmem:[#allocation5 + $0x1eb8] ss:$40 sps:$4 sm:$0xff]   ;;  %v22464_v19 = vld [vmem:[#allocation5 + $0x1f04] ss:$40 sps:$4 sm:$0xff]  }
 0x4e8   :  { %13438 = vmatprep.subr.bf16.mxu1 %v22413_v20  ;;  %v22467_v20 = vld [vmem:[#allocation5 + $0x1f0c] ss:$40 sps:$4 sm:$0xff]  }
 0x4ea   :  { %12947 = vmatpush1.bf16.msra.mxu0 %v22408_v21  ;;  %v22462_v21 = vld [vmem:[#allocation5 + $0x1f00] ss:$40 sps:$4 sm:$0xff]  }
 0x4eb   :  { %13439 = vmatpush1.bf16.msra.mxu1 %v22411_v23  ;;  %12948 = vmatprep.subr.bf16.mxu0 %v22416_v25  ;;  %v22465_v23 = vld [vmem:[#allocation5 + $0x1f08] ss:$40 sps:$4 sm:$0xff]   ;;  %v22470_v25 = vld [vmem:[#allocation5 + $0x1f54] ss:$40 sps:$4 sm:$0xff]  }
 0x4ec   :  { %13440 = vmatprep.subr.bf16.mxu1 %v22419_v27  ;;  %v22473_v27 = vld [vmem:[#allocation5 + $0x1f5c] ss:$40 sps:$4 sm:$0xff]  }
 0x4ee   :  { %12949 = vmatpush1.bf16.msra.mxu0 %v22414_v28  ;;  %v22468_v28 = vld [vmem:[#allocation5 + $0x1f50] ss:$40 sps:$4 sm:$0xff]  }
 0x4ef   :  { %13441 = vmatpush1.bf16.msra.mxu1 %v22417_v29  ;;  %12950 = vmatprep.subr.bf16.mxu0 %v22422_v30  ;;  %v22471_v29 = vld [vmem:[#allocation5 + $0x1f58] ss:$40 sps:$4 sm:$0xff]   ;;  %v22476_v30 = vld [vmem:[#allocation5 + $0x1fa4] ss:$40 sps:$4 sm:$0xff]  }
 0x4f0   :  { %13442 = vmatprep.subr.bf16.mxu1 %v22425_v33  ;;  %v22479_v33 = vld [vmem:[#allocation5 + $0x1fac] ss:$40 sps:$4 sm:$0xff]  }
 0x4f2   :  { %12951 = vmatpush1.bf16.msra.mxu0 %v22420_v34  ;;  %v22474_v34 = vld [vmem:[#allocation5 + $0x1fa0] ss:$40 sps:$4 sm:$0xff]  }
 0x4f3   :  { %13443 = vmatpush1.bf16.msra.mxu1 %v22423_v35  ;;  %12952 = vmatprep.subr.bf16.mxu0 %v22428_v37  ;;  %v22477_v35 = vld [vmem:[#allocation5 + $0x1fa8] ss:$40 sps:$4 sm:$0xff]   ;;  %v22482_v37 = vld [vmem:[#allocation5 + $0x1ff4] ss:$40 sps:$4 sm:$0xff]  }
 0x4f4   :  { %13444 = vmatprep.subr.bf16.mxu1 %v22431_v39  ;;  %v22485_v39 = vld [vmem:[#allocation5 + $0x1ffc] ss:$40 sps:$4 sm:$0xff]  }
 0x4f6   :  { %12953 = vmatpush1.bf16.msra.mxu0 %v22426_v40  ;;  %v22480_v40 = vld [vmem:[#allocation5 + $0x1ff0] ss:$40 sps:$4 sm:$0xff]  }
 0x4f7   :  { %13445 = vmatpush1.bf16.msra.mxu1 %v22429_v41  ;;  %12954 = vmatprep.subr.bf16.mxu0 %v22434_v44  ;;  %v22483_v41 = vld [vmem:[#allocation5 + $0x1ff8] ss:$40 sps:$4 sm:$0xff]   ;;  %v22488_v44 = vld [vmem:[#allocation5 + $0x2044] ss:$40 sps:$4 sm:$0xff]  }
 0x4f8   :  { %13446 = vmatprep.subr.bf16.mxu1 %v22437_v45  ;;  %v22491_v45 = vld [vmem:[#allocation5 + $0x204c] ss:$40 sps:$4 sm:$0xff]  }
 0x4fa   :  { %12955 = vmatpush1.bf16.msra.mxu0 %v22432_v50  ;;  %v22486_v50 = vld [vmem:[#allocation5 + $0x2040] ss:$40 sps:$4 sm:$0xff]  }
 0x4fb   :  { %13447 = vmatpush1.bf16.msra.mxu1 %v22435_v51  ;;  %12956 = vmatprep.subr.bf16.mxu0 %v22440_v53  ;;  %v22489_v51 = vld [vmem:[#allocation5 + $0x2048] ss:$40 sps:$4 sm:$0xff]   ;;  %v22494_v53 = vld [vmem:[#allocation5 + $0x2094] ss:$40 sps:$4 sm:$0xff]  }
 0x4fc   :  { %13448 = vmatprep.subr.bf16.mxu1 %v22443_v54  ;;  %v22497_v54 = vld [vmem:[#allocation5 + $0x209c] ss:$40 sps:$4 sm:$0xff]  }
 0x4fe   :  { %12957 = vmatpush1.bf16.msra.mxu0 %v22438_v55  ;;  %v22492_v55 = vld [vmem:[#allocation5 + $0x2090] ss:$40 sps:$4 sm:$0xff]  }
 0x4ff   :  { %13449 = vmatpush1.bf16.msra.mxu1 %v22441_v56  ;;  %12967 = vmatprep.subr.bf16.mxu0 %v22446_v57  ;;  %v22495_v56 = vld [vmem:[#allocation5 + $0x2098] ss:$40 sps:$4 sm:$0xff]   ;;  %v22500_v57 = vld [vmem:[#allocation5 + $0x20e4] ss:$40 sps:$4 sm:$0xff]  }
 0x500   :  { %13459 = vmatprep.subr.bf16.mxu1 %v22449_v58  ;;  %v22503_v58 = vld [vmem:[#allocation5 + $0x20ec] ss:$40 sps:$4 sm:$0xff]  }
 0x501   :  { %12959 = vmatmul.mubr.bf16.vlgmr.msra.gmra.mrb[4].mxu0 %v24567_v62 }
 0x502   :  { %13451 = vmatmul.mubr.bf16.vlgmr.msra.gmra.mrb[4].mxu1 %v24567_v62  ;;  %12968 = vmatpush1.bf16.msra.mxu0 %v22444_v59  ;;  %v22498_v59 = vld [vmem:[#allocation5 + $0x20e0] ss:$40 sps:$4 sm:$0xff]  }
 0x503   :  { %13460 = vmatpush1.bf16.msra.mxu1 %v22447_v60  ;;  %12969 = vmatprep.subr.bf16.mxu0 %v22452_v61  ;;  %v22501_v60 = vld [vmem:[#allocation5 + $0x20e8] ss:$40 sps:$4 sm:$0xff]   ;;  %v22506_v61 = vld [vmem:[#allocation5 + $0x2134] ss:$40 sps:$4 sm:$0xff]  }
 0x504   :  { %13461 = vmatprep.subr.bf16.mxu1 %v22455_v63  ;;  %12999 = vmatprep.mubr.bf16.mxu0 %v24569_v3  ;;  %v22509_v63 = vld [vmem:[#allocation5 + $0x213c] ss:$40 sps:$4 sm:$0xff]  }
 0x505   :  { %13491 = vmatprep.mubr.bf16.mxu1 %v24569_v3 }
 0x506   :  { %12970 = vmatpush1.bf16.msra.mxu0 %v22450_v0  ;;  %v22504_v0 = vld [vmem:[#allocation5 + $0x2130] ss:$40 sps:$4 sm:$0xff]  }
 0x507   :  { %13462 = vmatpush1.bf16.msra.mxu1 %v22453_v1  ;;  %12971 = vmatprep.subr.bf16.mxu0 %v22458_v2  ;;  %v22507_v1 = vld [vmem:[#allocation5 + $0x2138] ss:$40 sps:$4 sm:$0xff]   ;;  %v22512_v2 = vld [vmem:[#allocation5 + $0x2184] ss:$40 sps:$4 sm:$0xff]  }
 0x508   :  { %13463 = vmatprep.subr.bf16.mxu1 %v22461_v6  ;;  %v22515_v6 = vld [vmem:[#allocation5 + $0x218c] ss:$40 sps:$4 sm:$0xff]  }
 0x50a   :  { %12972 = vmatpush1.bf16.msra.mxu0 %v22456_v15  ;;  %v22510_v15 = vld [vmem:[#allocation5 + $0x2180] ss:$40 sps:$4 sm:$0xff]  }
 0x50b   :  { %13464 = vmatpush1.bf16.msra.mxu1 %v22459_v16  ;;  %12973 = vmatprep.subr.bf16.mxu0 %v22464_v19  ;;  %v22513_v16 = vld [vmem:[#allocation5 + $0x2188] ss:$40 sps:$4 sm:$0xff]   ;;  %v22518_v19 = vld [vmem:[#allocation5 + $0x21d4] ss:$40 sps:$4 sm:$0xff]  }
 0x50c   :  { %13465 = vmatprep.subr.bf16.mxu1 %v22467_v20  ;;  %v22521_v20 = vld [vmem:[#allocation5 + $0x21dc] ss:$40 sps:$4 sm:$0xff]  }
 0x50e   :  { %12974 = vmatpush1.bf16.msra.mxu0 %v22462_v21  ;;  %v22516_v21 = vld [vmem:[#allocation5 + $0x21d0] ss:$40 sps:$4 sm:$0xff]  }
 0x50f   :  { %13466 = vmatpush1.bf16.msra.mxu1 %v22465_v23  ;;  %12975 = vmatprep.subr.bf16.mxu0 %v22470_v25  ;;  %v22519_v23 = vld [vmem:[#allocation5 + $0x21d8] ss:$40 sps:$4 sm:$0xff]   ;;  %v22524_v25 = vld [vmem:[#allocation5 + $0x2224] ss:$40 sps:$4 sm:$0xff]  }
 0x510   :  { %13467 = vmatprep.subr.bf16.mxu1 %v22473_v27  ;;  %v22527_v27 = vld [vmem:[#allocation5 + $0x222c] ss:$40 sps:$4 sm:$0xff]  }
 0x512   :  { %12976 = vmatpush1.bf16.msra.mxu0 %v22468_v28  ;;  %v22522_v28 = vld [vmem:[#allocation5 + $0x2220] ss:$40 sps:$4 sm:$0xff]  }
 0x513   :  { %13468 = vmatpush1.bf16.msra.mxu1 %v22471_v29  ;;  %12977 = vmatprep.subr.bf16.mxu0 %v22476_v30  ;;  %v22525_v29 = vld [vmem:[#allocation5 + $0x2228] ss:$40 sps:$4 sm:$0xff]   ;;  %v22530_v30 = vld [vmem:[#allocation5 + $0x2274] ss:$40 sps:$4 sm:$0xff]  }
 0x514   :  { %13469 = vmatprep.subr.bf16.mxu1 %v22479_v33  ;;  %v22533_v33 = vld [vmem:[#allocation5 + $0x227c] ss:$40 sps:$4 sm:$0xff]  }
 0x516   :  { %12978 = vmatpush1.bf16.msra.mxu0 %v22474_v34  ;;  %v22528_v34 = vld [vmem:[#allocation5 + $0x2270] ss:$40 sps:$4 sm:$0xff]  }
 0x517   :  { %13470 = vmatpush1.bf16.msra.mxu1 %v22477_v35  ;;  %12979 = vmatprep.subr.bf16.mxu0 %v22482_v37  ;;  %v22531_v35 = vld [vmem:[#allocation5 + $0x2278] ss:$40 sps:$4 sm:$0xff]   ;;  %v22536_v37 = vld [vmem:[#allocation5 + $0x22c4] ss:$40 sps:$4 sm:$0xff]  }
 0x518   :  { %13471 = vmatprep.subr.bf16.mxu1 %v22485_v39  ;;  %v22539_v39 = vld [vmem:[#allocation5 + $0x22cc] ss:$40 sps:$4 sm:$0xff]  }
 0x51a   :  { %12980 = vmatpush1.bf16.msra.mxu0 %v22480_v40  ;;  %v22534_v40 = vld [vmem:[#allocation5 + $0x22c0] ss:$40 sps:$4 sm:$0xff]  }
 0x51b   :  { %13472 = vmatpush1.bf16.msra.mxu1 %v22483_v41  ;;  %12981 = vmatprep.subr.bf16.mxu0 %v22488_v44  ;;  %v22537_v41 = vld [vmem:[#allocation5 + $0x22c8] ss:$40 sps:$4 sm:$0xff]   ;;  %v22542_v44 = vld [vmem:[#allocation5 + $0x2314] ss:$40 sps:$4 sm:$0xff]  }
 0x51c   :  { %13473 = vmatprep.subr.bf16.mxu1 %v22491_v45  ;;  %v22545_v45 = vld [vmem:[#allocation5 + $0x231c] ss:$40 sps:$4 sm:$0xff]  }
 0x51e   :  { %12982 = vmatpush1.bf16.msra.mxu0 %v22486_v50  ;;  %v22540_v50 = vld [vmem:[#allocation5 + $0x2310] ss:$40 sps:$4 sm:$0xff]  }
 0x51f   :  { %13474 = vmatpush1.bf16.msra.mxu1 %v22489_v51  ;;  %12983 = vmatprep.subr.bf16.mxu0 %v22494_v53  ;;  %v22543_v51 = vld [vmem:[#allocation5 + $0x2318] ss:$40 sps:$4 sm:$0xff]   ;;  %v22548_v53 = vld [vmem:[#allocation5 + $0x2364] ss:$40 sps:$4 sm:$0xff]  }
 0x520   :  { %13475 = vmatprep.subr.bf16.mxu1 %v22497_v54  ;;  %v22551_v54 = vld [vmem:[#allocation5 + $0x236c] ss:$40 sps:$4 sm:$0xff]  }
 0x522   :  { %12984 = vmatpush1.bf16.msra.mxu0 %v22492_v55  ;;  %v22546_v55 = vld [vmem:[#allocation5 + $0x2360] ss:$40 sps:$4 sm:$0xff]  }
 0x523   :  { %13476 = vmatpush1.bf16.msra.mxu1 %v22495_v56  ;;  %12985 = vmatprep.subr.bf16.mxu0 %v22500_v57  ;;  %v22549_v56 = vld [vmem:[#allocation5 + $0x2368] ss:$40 sps:$4 sm:$0xff]   ;;  %v22554_v57 = vld [vmem:[#allocation5 + $0x23b4] ss:$40 sps:$4 sm:$0xff]  }
 0x524   :  { %13477 = vmatprep.subr.bf16.mxu1 %v22503_v58  ;;  %v22557_v58 = vld [vmem:[#allocation5 + $0x23bc] ss:$40 sps:$4 sm:$0xff]  }
 0x526   :  { %12986 = vmatpush1.bf16.msra.mxu0 %v22498_v59  ;;  %v22552_v59 = vld [vmem:[#allocation5 + $0x23b0] ss:$40 sps:$4 sm:$0xff]  }
 0x527   :  { %13478 = vmatpush1.bf16.msra.mxu1 %v22501_v60  ;;  %12987 = vmatprep.subr.bf16.mxu0 %v22506_v61  ;;  %v22555_v60 = vld [vmem:[#allocation5 + $0x23b8] ss:$40 sps:$4 sm:$0xff]   ;;  %v22560_v61 = vld [vmem:[#allocation5 + $0x2404] ss:$40 sps:$4 sm:$0xff]  }
 0x528   :  { %13479 = vmatprep.subr.bf16.mxu1 %v22509_v63  ;;  %v22563_v63 = vld [vmem:[#allocation5 + $0x240c] ss:$40 sps:$4 sm:$0xff]  }
 0x52a   :  { %12988 = vmatpush1.bf16.msra.mxu0 %v22504_v0  ;;  %v22558_v0 = vld [vmem:[#allocation5 + $0x2400] ss:$40 sps:$4 sm:$0xff]  }
 0x52b   :  { %13480 = vmatpush1.bf16.msra.mxu1 %v22507_v1  ;;  %12989 = vmatprep.subr.bf16.mxu0 %v22512_v2  ;;  %v22561_v1 = vld [vmem:[#allocation5 + $0x2408] ss:$40 sps:$4 sm:$0xff]   ;;  %v22566_v2 = vld [vmem:[#allocation5 + $0x2454] ss:$40 sps:$4 sm:$0xff]  }
 0x52c   :  { %13481 = vmatprep.subr.bf16.mxu1 %v22515_v6  ;;  %v22569_v6 = vld [vmem:[#allocation5 + $0x245c] ss:$40 sps:$4 sm:$0xff]  }
 0x52e   :  { %12990 = vmatpush1.bf16.msra.mxu0 %v22510_v15  ;;  %v22564_v15 = vld [vmem:[#allocation5 + $0x2450] ss:$40 sps:$4 sm:$0xff]  }
 0x52f   :  { %13482 = vmatpush1.bf16.msra.mxu1 %v22513_v16  ;;  %12991 = vmatprep.subr.bf16.mxu0 %v22518_v19  ;;  %v22567_v16 = vld [vmem:[#allocation5 + $0x2458] ss:$40 sps:$4 sm:$0xff]   ;;  %v22572_v19 = vld [vmem:[#allocation5 + $0x24a4] ss:$40 sps:$4 sm:$0xff]  }
 0x530   :  { %13483 = vmatprep.subr.bf16.mxu1 %v22521_v20  ;;  %v22575_v20 = vld [vmem:[#allocation5 + $0x24ac] ss:$40 sps:$4 sm:$0xff]  }
 0x532   :  { %12992 = vmatpush1.bf16.msra.mxu0 %v22516_v21  ;;  %v22570_v21 = vld [vmem:[#allocation5 + $0x24a0] ss:$40 sps:$4 sm:$0xff]  }
 0x533   :  { %13484 = vmatpush1.bf16.msra.mxu1 %v22519_v23  ;;  %12993 = vmatprep.subr.bf16.mxu0 %v22524_v25  ;;  %v22573_v23 = vld [vmem:[#allocation5 + $0x24a8] ss:$40 sps:$4 sm:$0xff]   ;;  %v22578_v25 = vld [vmem:[#allocation5 + $0x24f4] ss:$40 sps:$4 sm:$0xff]  }
 0x534   :  { %13485 = vmatprep.subr.bf16.mxu1 %v22527_v27  ;;  %v22581_v27 = vld [vmem:[#allocation5 + $0x24fc] ss:$40 sps:$4 sm:$0xff]  }
 0x536   :  { %12994 = vmatpush1.bf16.msra.mxu0 %v22522_v28  ;;  %v22576_v28 = vld [vmem:[#allocation5 + $0x24f0] ss:$40 sps:$4 sm:$0xff]  }
 0x537   :  { %13486 = vmatpush1.bf16.msra.mxu1 %v22525_v29  ;;  %12995 = vmatprep.subr.bf16.mxu0 %v22530_v30  ;;  %v22579_v29 = vld [vmem:[#allocation5 + $0x24f8] ss:$40 sps:$4 sm:$0xff]   ;;  %v22584_v30 = vld [vmem:[#allocation5 + $0x2544] ss:$40 sps:$4 sm:$0xff]  }
 0x538   :  { %13487 = vmatprep.subr.bf16.mxu1 %v22533_v33  ;;  %v22587_v33 = vld [vmem:[#allocation5 + $0x254c] ss:$40 sps:$4 sm:$0xff]  }
 0x53a   :  { %12996 = vmatpush1.bf16.msra.mxu0 %v22528_v34  ;;  %v22582_v34 = vld [vmem:[#allocation5 + $0x2540] ss:$40 sps:$4 sm:$0xff]  }
 0x53b   :  { %13488 = vmatpush1.bf16.msra.mxu1 %v22531_v35  ;;  %12997 = vmatprep.subr.bf16.mxu0 %v22536_v37  ;;  %v22585_v35 = vld [vmem:[#allocation5 + $0x2548] ss:$40 sps:$4 sm:$0xff]   ;;  %v22590_v37 = vld [vmem:[#allocation5 + $0x2594] ss:$40 sps:$4 sm:$0xff]  }
 0x53c   :  { %13489 = vmatprep.subr.bf16.mxu1 %v22539_v39  ;;  %v22593_v39 = vld [vmem:[#allocation5 + $0x259c] ss:$40 sps:$4 sm:$0xff]  }
 0x53e   :  { %12998 = vmatpush1.bf16.msra.mxu0 %v22534_v40  ;;  %v22588_v40 = vld [vmem:[#allocation5 + $0x2590] ss:$40 sps:$4 sm:$0xff]  }
 0x53f   :  { %13490 = vmatpush1.bf16.msra.mxu1 %v22537_v41  ;;  %13008 = vmatprep.subr.bf16.mxu0 %v22542_v44  ;;  %v22591_v41 = vld [vmem:[#allocation5 + $0x2598] ss:$40 sps:$4 sm:$0xff]   ;;  %v22596_v44 = vld [vmem:[#allocation5 + $0x25e4] ss:$40 sps:$4 sm:$0xff]  }
 0x540   :  { %13500 = vmatprep.subr.bf16.mxu1 %v22545_v45  ;;  %v22599_v45 = vld [vmem:[#allocation5 + $0x25ec] ss:$40 sps:$4 sm:$0xff]  }
 0x541   :  { %13000 = vmatmul.mubr.bf16.vlgmr.msra.gmra.mrb[4].mxu0 %v24575_v18 }
 0x542   :  { %13492 = vmatmul.mubr.bf16.vlgmr.msra.gmra.mrb[4].mxu1 %v24575_v18  ;;  %13009 = vmatpush1.bf16.msra.mxu0 %v22540_v50  ;;  %v22594_v50 = vld [vmem:[#allocation5 + $0x25e0] ss:$40 sps:$4 sm:$0xff]  }
 0x543   :  { %13501 = vmatpush1.bf16.msra.mxu1 %v22543_v51  ;;  %13010 = vmatprep.subr.bf16.mxu0 %v22548_v53  ;;  %v22597_v51 = vld [vmem:[#allocation5 + $0x25e8] ss:$40 sps:$4 sm:$0xff]   ;;  %v22602_v53 = vld [vmem:[#allocation5 + $0x2634] ss:$40 sps:$4 sm:$0xff]  }
 0x544   :  { %13502 = vmatprep.subr.bf16.mxu1 %v22551_v54  ;;  %13040 = vmatprep.mubr.bf16.mxu0 %v24577_v24  ;;  %v22605_v54 = vld [vmem:[#allocation5 + $0x263c] ss:$40 sps:$4 sm:$0xff]  }
 0x545   :  { %13532 = vmatprep.mubr.bf16.mxu1 %v24577_v24 }
 0x546   :  { %13011 = vmatpush1.bf16.msra.mxu0 %v22546_v55  ;;  %v22600_v55 = vld [vmem:[#allocation5 + $0x2630] ss:$40 sps:$4 sm:$0xff]  }
 0x547   :  { %13503 = vmatpush1.bf16.msra.mxu1 %v22549_v56  ;;  %13012 = vmatprep.subr.bf16.mxu0 %v22554_v57  ;;  %v22603_v56 = vld [vmem:[#allocation5 + $0x2638] ss:$40 sps:$4 sm:$0xff]   ;;  %v22608_v57 = vld [vmem:[#allocation5 + $0x2684] ss:$40 sps:$4 sm:$0xff]  }
 0x548   :  { %13504 = vmatprep.subr.bf16.mxu1 %v22557_v58  ;;  %v22611_v58 = vld [vmem:[#allocation5 + $0x268c] ss:$40 sps:$4 sm:$0xff]  }
 0x54a   :  { %13013 = vmatpush1.bf16.msra.mxu0 %v22552_v59  ;;  %v22606_v59 = vld [vmem:[#allocation5 + $0x2680] ss:$40 sps:$4 sm:$0xff]  }
 0x54b   :  { %13505 = vmatpush1.bf16.msra.mxu1 %v22555_v60  ;;  %13014 = vmatprep.subr.bf16.mxu0 %v22560_v61  ;;  %v22609_v60 = vld [vmem:[#allocation5 + $0x2688] ss:$40 sps:$4 sm:$0xff]   ;;  %v22614_v61 = vld [vmem:[#allocation5 + $0x26d4] ss:$40 sps:$4 sm:$0xff]  }
 0x54c   :  { %13506 = vmatprep.subr.bf16.mxu1 %v22563_v63  ;;  %v22617_v63 = vld [vmem:[#allocation5 + $0x26dc] ss:$40 sps:$4 sm:$0xff]  }
 0x54e   :  { %13015 = vmatpush1.bf16.msra.mxu0 %v22558_v0  ;;  %v22612_v0 = vld [vmem:[#allocation5 + $0x26d0] ss:$40 sps:$4 sm:$0xff]  }
 0x54f   :  { %13507 = vmatpush1.bf16.msra.mxu1 %v22561_v1  ;;  %13016 = vmatprep.subr.bf16.mxu0 %v22566_v2  ;;  %v22615_v1 = vld [vmem:[#allocation5 + $0x26d8] ss:$40 sps:$4 sm:$0xff]   ;;  %v22620_v2 = vld [vmem:[#allocation5 + $0x2724] ss:$40 sps:$4 sm:$0xff]  }
 0x550   :  { %13508 = vmatprep.subr.bf16.mxu1 %v22569_v6  ;;  %v22623_v6 = vld [vmem:[#allocation5 + $0x272c] ss:$40 sps:$4 sm:$0xff]  }
 0x552   :  { %13017 = vmatpush1.bf16.msra.mxu0 %v22564_v15  ;;  %v22618_v15 = vld [vmem:[#allocation5 + $0x2720] ss:$40 sps:$4 sm:$0xff]  }
 0x553   :  { %13509 = vmatpush1.bf16.msra.mxu1 %v22567_v16  ;;  %13018 = vmatprep.subr.bf16.mxu0 %v22572_v19  ;;  %v22621_v16 = vld [vmem:[#allocation5 + $0x2728] ss:$40 sps:$4 sm:$0xff]   ;;  %v22626_v19 = vld [vmem:[#allocation5 + $0x2774] ss:$40 sps:$4 sm:$0xff]  }
 0x554   :  { %13510 = vmatprep.subr.bf16.mxu1 %v22575_v20  ;;  %v22629_v20 = vld [vmem:[#allocation5 + $0x277c] ss:$40 sps:$4 sm:$0xff]  }
 0x556   :  { %13019 = vmatpush1.bf16.msra.mxu0 %v22570_v21  ;;  %v22624_v21 = vld [vmem:[#allocation5 + $0x2770] ss:$40 sps:$4 sm:$0xff]  }
 0x557   :  { %13511 = vmatpush1.bf16.msra.mxu1 %v22573_v23  ;;  %13020 = vmatprep.subr.bf16.mxu0 %v22578_v25  ;;  %v22627_v23 = vld [vmem:[#allocation5 + $0x2778] ss:$40 sps:$4 sm:$0xff]   ;;  %v22632_v25 = vld [vmem:[#allocation5 + $0x27c4] ss:$40 sps:$4 sm:$0xff]  }
 0x558   :  { %13512 = vmatprep.subr.bf16.mxu1 %v22581_v27  ;;  %v22635_v27 = vld [vmem:[#allocation5 + $0x27cc] ss:$40 sps:$4 sm:$0xff]  }
 0x55a   :  { %13021 = vmatpush1.bf16.msra.mxu0 %v22576_v28  ;;  %v22630_v28 = vld [vmem:[#allocation5 + $0x27c0] ss:$40 sps:$4 sm:$0xff]  }
 0x55b   :  { %13513 = vmatpush1.bf16.msra.mxu1 %v22579_v29  ;;  %13022 = vmatprep.subr.bf16.mxu0 %v22584_v30  ;;  %v22633_v29 = vld [vmem:[#allocation5 + $0x27c8] ss:$40 sps:$4 sm:$0xff]   ;;  %v22638_v30 = vld [vmem:[#allocation5 + $0x2814] ss:$40 sps:$4 sm:$0xff]  }
 0x55c   :  { %13514 = vmatprep.subr.bf16.mxu1 %v22587_v33  ;;  %v22641_v33 = vld [vmem:[#allocation5 + $0x281c] ss:$40 sps:$4 sm:$0xff]  }
 0x55e   :  { %13023 = vmatpush1.bf16.msra.mxu0 %v22582_v34  ;;  %v22636_v34 = vld [vmem:[#allocation5 + $0x2810] ss:$40 sps:$4 sm:$0xff]  }
 0x55f   :  { %13515 = vmatpush1.bf16.msra.mxu1 %v22585_v35  ;;  %13024 = vmatprep.subr.bf16.mxu0 %v22590_v37  ;;  %v22639_v35 = vld [vmem:[#allocation5 + $0x2818] ss:$40 sps:$4 sm:$0xff]   ;;  %v22644_v37 = vld [vmem:[#allocation5 + $0x2864] ss:$40 sps:$4 sm:$0xff]  }
 0x560   :  { %13516 = vmatprep.subr.bf16.mxu1 %v22593_v39  ;;  %v22647_v39 = vld [vmem:[#allocation5 + $0x286c] ss:$40 sps:$4 sm:$0xff]  }
 0x562   :  { %13025 = vmatpush1.bf16.msra.mxu0 %v22588_v40  ;;  %v22642_v40 = vld [vmem:[#allocation5 + $0x2860] ss:$40 sps:$4 sm:$0xff]  }
 0x563   :  { %13517 = vmatpush1.bf16.msra.mxu1 %v22591_v41  ;;  %13026 = vmatprep.subr.bf16.mxu0 %v22596_v44  ;;  %v22645_v41 = vld [vmem:[#allocation5 + $0x2868] ss:$40 sps:$4 sm:$0xff]   ;;  %v22650_v44 = vld [vmem:[#allocation5 + $0x28b4] ss:$40 sps:$4 sm:$0xff]  }
 0x564   :  { %13518 = vmatprep.subr.bf16.mxu1 %v22599_v45  ;;  %v22653_v45 = vld [vmem:[#allocation5 + $0x28bc] ss:$40 sps:$4 sm:$0xff]  }
 0x566   :  { %13027 = vmatpush1.bf16.msra.mxu0 %v22594_v50  ;;  %v22648_v50 = vld [vmem:[#allocation5 + $0x28b0] ss:$40 sps:$4 sm:$0xff]  }
 0x567   :  { %13519 = vmatpush1.bf16.msra.mxu1 %v22597_v51  ;;  %13028 = vmatprep.subr.bf16.mxu0 %v22602_v53  ;;  %v22651_v51 = vld [vmem:[#allocation5 + $0x28b8] ss:$40 sps:$4 sm:$0xff]   ;;  %v22656_v53 = vld [vmem:[#allocation5 + $0x2904] ss:$40 sps:$4 sm:$0xff]  }
 0x568   :  { %13520 = vmatprep.subr.bf16.mxu1 %v22605_v54  ;;  %v22659_v54 = vld [vmem:[#allocation5 + $0x290c] ss:$40 sps:$4 sm:$0xff]  }
 0x56a   :  { %13029 = vmatpush1.bf16.msra.mxu0 %v22600_v55  ;;  %v22654_v55 = vld [vmem:[#allocation5 + $0x2900] ss:$40 sps:$4 sm:$0xff]  }
 0x56b   :  { %13521 = vmatpush1.bf16.msra.mxu1 %v22603_v56  ;;  %13030 = vmatprep.subr.bf16.mxu0 %v22608_v57  ;;  %v22657_v56 = vld [vmem:[#allocation5 + $0x2908] ss:$40 sps:$4 sm:$0xff]   ;;  %v22662_v57 = vld [vmem:[#allocation5 + $0x2954] ss:$40 sps:$4 sm:$0xff]  }
 0x56c   :  { %13522 = vmatprep.subr.bf16.mxu1 %v22611_v58  ;;  %v22665_v58 = vld [vmem:[#allocation5 + $0x295c] ss:$40 sps:$4 sm:$0xff]  }
 0x56e   :  { %13031 = vmatpush1.bf16.msra.mxu0 %v22606_v59  ;;  %v22660_v59 = vld [vmem:[#allocation5 + $0x2950] ss:$40 sps:$4 sm:$0xff]  }
 0x56f   :  { %13523 = vmatpush1.bf16.msra.mxu1 %v22609_v60  ;;  %13032 = vmatprep.subr.bf16.mxu0 %v22614_v61  ;;  %v22663_v60 = vld [vmem:[#allocation5 + $0x2958] ss:$40 sps:$4 sm:$0xff]   ;;  %v22668_v61 = vld [vmem:[#allocation5 + $0x29a4] ss:$40 sps:$4 sm:$0xff]  }
 0x570   :  { %13524 = vmatprep.subr.bf16.mxu1 %v22617_v63  ;;  %v22671_v63 = vld [vmem:[#allocation5 + $0x29ac] ss:$40 sps:$4 sm:$0xff]  }
 0x572   :  { %13033 = vmatpush1.bf16.msra.mxu0 %v22612_v0  ;;  %v22666_v0 = vld [vmem:[#allocation5 + $0x29a0] ss:$40 sps:$4 sm:$0xff]  }
 0x573   :  { %13525 = vmatpush1.bf16.msra.mxu1 %v22615_v1  ;;  %13034 = vmatprep.subr.bf16.mxu0 %v22620_v2  ;;  %v22669_v1 = vld [vmem:[#allocation5 + $0x29a8] ss:$40 sps:$4 sm:$0xff]   ;;  %v22674_v2 = vld [vmem:[#allocation5 + $0x29f4] ss:$40 sps:$4 sm:$0xff]  }
 0x574   :  { %13526 = vmatprep.subr.bf16.mxu1 %v22623_v6  ;;  %v22677_v6 = vld [vmem:[#allocation5 + $0x29fc] ss:$40 sps:$4 sm:$0xff]  }
 0x576   :  { %13035 = vmatpush1.bf16.msra.mxu0 %v22618_v15  ;;  %v22672_v15 = vld [vmem:[#allocation5 + $0x29f0] ss:$40 sps:$4 sm:$0xff]  }
 0x577   :  { %13527 = vmatpush1.bf16.msra.mxu1 %v22621_v16  ;;  %13036 = vmatprep.subr.bf16.mxu0 %v22626_v19  ;;  %v22675_v16 = vld [vmem:[#allocation5 + $0x29f8] ss:$40 sps:$4 sm:$0xff]   ;;  %v22680_v19 = vld [vmem:[#allocation5 + $0x2a44] ss:$40 sps:$4 sm:$0xff]  }
 0x578   :  { %13528 = vmatprep.subr.bf16.mxu1 %v22629_v20  ;;  %v22683_v20 = vld [vmem:[#allocation5 + $0x2a4c] ss:$40 sps:$4 sm:$0xff]  }
 0x57a   :  { %13037 = vmatpush1.bf16.msra.mxu0 %v22624_v21  ;;  %v22678_v21 = vld [vmem:[#allocation5 + $0x2a40] ss:$40 sps:$4 sm:$0xff]  }
 0x57b   :  { %13529 = vmatpush1.bf16.msra.mxu1 %v22627_v23  ;;  %13038 = vmatprep.subr.bf16.mxu0 %v22632_v25  ;;  %v22681_v23 = vld [vmem:[#allocation5 + $0x2a48] ss:$40 sps:$4 sm:$0xff]   ;;  %v22686_v25 = vld [vmem:[#allocation5 + $0x2a94] ss:$40 sps:$4 sm:$0xff]  }
 0x57c   :  { %13530 = vmatprep.subr.bf16.mxu1 %v22635_v27  ;;  %v22689_v27 = vld [vmem:[#allocation5 + $0x2a9c] ss:$40 sps:$4 sm:$0xff]  }
 0x57e   :  { %13039 = vmatpush1.bf16.msra.mxu0 %v22630_v28  ;;  %v22684_v28 = vld [vmem:[#allocation5 + $0x2a90] ss:$40 sps:$4 sm:$0xff]  }
 0x57f   :  { %13531 = vmatpush1.bf16.msra.mxu1 %v22633_v29  ;;  %13049 = vmatprep.subr.bf16.mxu0 %v22638_v30  ;;  %v22687_v29 = vld [vmem:[#allocation5 + $0x2a98] ss:$40 sps:$4 sm:$0xff]   ;;  %v22692_v30 = vld [vmem:[#allocation5 + $0x2ae4] ss:$40 sps:$4 sm:$0xff]  }
 0x580   :  { %13541 = vmatprep.subr.bf16.mxu1 %v22641_v33  ;;  %v22695_v33 = vld [vmem:[#allocation5 + $0x2aec] ss:$40 sps:$4 sm:$0xff]  }
 0x581   :  { %13041 = vmatmul.mubr.bf16.vlgmr.msra.gmra.mrb[4].mxu0 %v24583_v42 }
 0x582   :  { %13533 = vmatmul.mubr.bf16.vlgmr.msra.gmra.mrb[4].mxu1 %v24583_v42  ;;  %13050 = vmatpush1.bf16.msra.mxu0 %v22636_v34  ;;  %v22690_v34 = vld [vmem:[#allocation5 + $0x2ae0] ss:$40 sps:$4 sm:$0xff]  }
 0x583   :  { %13542 = vmatpush1.bf16.msra.mxu1 %v22639_v35  ;;  %13051 = vmatprep.subr.bf16.mxu0 %v22644_v37  ;;  %v22693_v35 = vld [vmem:[#allocation5 + $0x2ae8] ss:$40 sps:$4 sm:$0xff]   ;;  %v22698_v37 = vld [vmem:[#allocation5 + $0x2b34] ss:$40 sps:$4 sm:$0xff]  }
 0x584   :  { %13543 = vmatprep.subr.bf16.mxu1 %v22647_v39  ;;  %13081 = vmatprep.mubr.bf16.mxu0 %v24585_v49  ;;  %v22701_v39 = vld [vmem:[#allocation5 + $0x2b3c] ss:$40 sps:$4 sm:$0xff]  }
 0x585   :  { %13573 = vmatprep.mubr.bf16.mxu1 %v24585_v49 }
 0x586   :  { %13052 = vmatpush1.bf16.msra.mxu0 %v22642_v40  ;;  %v22696_v40 = vld [vmem:[#allocation5 + $0x2b30] ss:$40 sps:$4 sm:$0xff]  }
 0x587   :  { %13544 = vmatpush1.bf16.msra.mxu1 %v22645_v41  ;;  %13053 = vmatprep.subr.bf16.mxu0 %v22650_v44  ;;  %v22699_v41 = vld [vmem:[#allocation5 + $0x2b38] ss:$40 sps:$4 sm:$0xff]   ;;  %v22704_v44 = vld [vmem:[#allocation5 + $0x2b84] ss:$40 sps:$4 sm:$0xff]  }
 0x588   :  { %13545 = vmatprep.subr.bf16.mxu1 %v22653_v45  ;;  %v22707_v45 = vld [vmem:[#allocation5 + $0x2b8c] ss:$40 sps:$4 sm:$0xff]  }
 0x58a   :  { %13054 = vmatpush1.bf16.msra.mxu0 %v22648_v50  ;;  %v22702_v50 = vld [vmem:[#allocation5 + $0x2b80] ss:$40 sps:$4 sm:$0xff]  }
 0x58b   :  { %13546 = vmatpush1.bf16.msra.mxu1 %v22651_v51  ;;  %13055 = vmatprep.subr.bf16.mxu0 %v22656_v53  ;;  %v22705_v51 = vld [vmem:[#allocation5 + $0x2b88] ss:$40 sps:$4 sm:$0xff]   ;;  %v22710_v53 = vld [vmem:[#allocation5 + $0x2bd4] ss:$40 sps:$4 sm:$0xff]  }
 0x58c   :  { %13547 = vmatprep.subr.bf16.mxu1 %v22659_v54  ;;  %v22713_v54 = vld [vmem:[#allocation5 + $0x2bdc] ss:$40 sps:$4 sm:$0xff]  }
 0x58e   :  { %13056 = vmatpush1.bf16.msra.mxu0 %v22654_v55  ;;  %v22708_v55 = vld [vmem:[#allocation5 + $0x2bd0] ss:$40 sps:$4 sm:$0xff]  }
 0x58f   :  { %13548 = vmatpush1.bf16.msra.mxu1 %v22657_v56  ;;  %13057 = vmatprep.subr.bf16.mxu0 %v22662_v57  ;;  %v22711_v56 = vld [vmem:[#allocation5 + $0x2bd8] ss:$40 sps:$4 sm:$0xff]   ;;  %v22716_v57 = vld [vmem:[#allocation5 + $0x2c24] ss:$40 sps:$4 sm:$0xff]  }
 0x590   :  { %13549 = vmatprep.subr.bf16.mxu1 %v22665_v58  ;;  %v22719_v58 = vld [vmem:[#allocation5 + $0x2c2c] ss:$40 sps:$4 sm:$0xff]  }
 0x592   :  { %13058 = vmatpush1.bf16.msra.mxu0 %v22660_v59  ;;  %v22714_v59 = vld [vmem:[#allocation5 + $0x2c20] ss:$40 sps:$4 sm:$0xff]  }
 0x593   :  { %13550 = vmatpush1.bf16.msra.mxu1 %v22663_v60  ;;  %13059 = vmatprep.subr.bf16.mxu0 %v22668_v61  ;;  %v22717_v60 = vld [vmem:[#allocation5 + $0x2c28] ss:$40 sps:$4 sm:$0xff]   ;;  %v22722_v61 = vld [vmem:[#allocation5 + $0x2c74] ss:$40 sps:$4 sm:$0xff]  }
 0x594   :  { %13551 = vmatprep.subr.bf16.mxu1 %v22671_v63  ;;  %v22725_v63 = vld [vmem:[#allocation5 + $0x2c7c] ss:$40 sps:$4 sm:$0xff]  }
 0x596   :  { %13060 = vmatpush1.bf16.msra.mxu0 %v22666_v0  ;;  %v22720_v0 = vld [vmem:[#allocation5 + $0x2c70] ss:$40 sps:$4 sm:$0xff]  }
 0x597   :  { %13552 = vmatpush1.bf16.msra.mxu1 %v22669_v1  ;;  %13061 = vmatprep.subr.bf16.mxu0 %v22674_v2  ;;  %v22723_v1 = vld [vmem:[#allocation5 + $0x2c78] ss:$40 sps:$4 sm:$0xff]   ;;  %v22728_v2 = vld [vmem:[#allocation5 + $0x2cc4] ss:$40 sps:$4 sm:$0xff]  }
 0x598   :  { %13553 = vmatprep.subr.bf16.mxu1 %v22677_v6  ;;  %v22731_v6 = vld [vmem:[#allocation5 + $0x2ccc] ss:$40 sps:$4 sm:$0xff]  }
 0x59a   :  { %13062 = vmatpush1.bf16.msra.mxu0 %v22672_v15  ;;  %v22726_v15 = vld [vmem:[#allocation5 + $0x2cc0] ss:$40 sps:$4 sm:$0xff]  }
 0x59b   :  { %13554 = vmatpush1.bf16.msra.mxu1 %v22675_v16  ;;  %13063 = vmatprep.subr.bf16.mxu0 %v22680_v19  ;;  %v22729_v16 = vld [vmem:[#allocation5 + $0x2cc8] ss:$40 sps:$4 sm:$0xff]   ;;  %v22734_v19 = vld [vmem:[#allocation5 + $0x2d14] ss:$40 sps:$4 sm:$0xff]  }
 0x59c   :  { %13555 = vmatprep.subr.bf16.mxu1 %v22683_v20  ;;  %v22737_v20 = vld [vmem:[#allocation5 + $0x2d1c] ss:$40 sps:$4 sm:$0xff]  }
 0x59e   :  { %13064 = vmatpush1.bf16.msra.mxu0 %v22678_v21  ;;  %v22732_v21 = vld [vmem:[#allocation5 + $0x2d10] ss:$40 sps:$4 sm:$0xff]  }
 0x59f   :  { %13556 = vmatpush1.bf16.msra.mxu1 %v22681_v23  ;;  %13065 = vmatprep.subr.bf16.mxu0 %v22686_v25  ;;  %v22735_v23 = vld [vmem:[#allocation5 + $0x2d18] ss:$40 sps:$4 sm:$0xff]   ;;  %v22740_v25 = vld [vmem:[#allocation5 + $0x2d64] ss:$40 sps:$4 sm:$0xff]  }
 0x5a0   :  { %13557 = vmatprep.subr.bf16.mxu1 %v22689_v27  ;;  %v22743_v27 = vld [vmem:[#allocation5 + $0x2d6c] ss:$40 sps:$4 sm:$0xff]  }
 0x5a2   :  { %13066 = vmatpush1.bf16.msra.mxu0 %v22684_v28  ;;  %v22738_v28 = vld [vmem:[#allocation5 + $0x2d60] ss:$40 sps:$4 sm:$0xff]  }
 0x5a3   :  { %13558 = vmatpush1.bf16.msra.mxu1 %v22687_v29  ;;  %13067 = vmatprep.subr.bf16.mxu0 %v22692_v30  ;;  %v22741_v29 = vld [vmem:[#allocation5 + $0x2d68] ss:$40 sps:$4 sm:$0xff]   ;;  %v22746_v30 = vld [vmem:[#allocation5 + $0x2db4] ss:$40 sps:$4 sm:$0xff]  }
 0x5a4   :  { %13559 = vmatprep.subr.bf16.mxu1 %v22695_v33  ;;  %v22749_v33 = vld [vmem:[#allocation5 + $0x2dbc] ss:$40 sps:$4 sm:$0xff]  }
 0x5a6   :  { %13068 = vmatpush1.bf16.msra.mxu0 %v22690_v34  ;;  %v22744_v34 = vld [vmem:[#allocation5 + $0x2db0] ss:$40 sps:$4 sm:$0xff]  }
 0x5a7   :  { %13560 = vmatpush1.bf16.msra.mxu1 %v22693_v35  ;;  %13069 = vmatprep.subr.bf16.mxu0 %v22698_v37  ;;  %v22747_v35 = vld [vmem:[#allocation5 + $0x2db8] ss:$40 sps:$4 sm:$0xff]   ;;  %v22752_v37 = vld [vmem:[#allocation5 + $0x2e04] ss:$40 sps:$4 sm:$0xff]  }
 0x5a8   :  { %13561 = vmatprep.subr.bf16.mxu1 %v22701_v39  ;;  %v22755_v39 = vld [vmem:[#allocation5 + $0x2e0c] ss:$40 sps:$4 sm:$0xff]  }
 0x5aa   :  { %13070 = vmatpush1.bf16.msra.mxu0 %v22696_v40  ;;  %v22750_v40 = vld [vmem:[#allocation5 + $0x2e00] ss:$40 sps:$4 sm:$0xff]  }
 0x5ab   :  { %13562 = vmatpush1.bf16.msra.mxu1 %v22699_v41  ;;  %13071 = vmatprep.subr.bf16.mxu0 %v22704_v44  ;;  %v22753_v41 = vld [vmem:[#allocation5 + $0x2e08] ss:$40 sps:$4 sm:$0xff]   ;;  %v22758_v44 = vld [vmem:[#allocation5 + $0x2e54] ss:$40 sps:$4 sm:$0xff]  }
 0x5ac   :  { %13563 = vmatprep.subr.bf16.mxu1 %v22707_v45  ;;  %v22761_v45 = vld [vmem:[#allocation5 + $0x2e5c] ss:$40 sps:$4 sm:$0xff]  }
 0x5ae   :  { %13072 = vmatpush1.bf16.msra.mxu0 %v22702_v50  ;;  %v22756_v50 = vld [vmem:[#allocation5 + $0x2e50] ss:$40 sps:$4 sm:$0xff]  }
 0x5af   :  { %13564 = vmatpush1.bf16.msra.mxu1 %v22705_v51  ;;  %13073 = vmatprep.subr.bf16.mxu0 %v22710_v53  ;;  %v22759_v51 = vld [vmem:[#allocation5 + $0x2e58] ss:$40 sps:$4 sm:$0xff]   ;;  %v22764_v53 = vld [vmem:[#allocation5 + $0x2ea4] ss:$40 sps:$4 sm:$0xff]  }
 0x5b0   :  { %13565 = vmatprep.subr.bf16.mxu1 %v22713_v54  ;;  %v22767_v54 = vld [vmem:[#allocation5 + $0x2eac] ss:$40 sps:$4 sm:$0xff]  }
 0x5b2   :  { %13074 = vmatpush1.bf16.msra.mxu0 %v22708_v55  ;;  %v22762_v55 = vld [vmem:[#allocation5 + $0x2ea0] ss:$40 sps:$4 sm:$0xff]  }
 0x5b3   :  { %13566 = vmatpush1.bf16.msra.mxu1 %v22711_v56  ;;  %13075 = vmatprep.subr.bf16.mxu0 %v22716_v57  ;;  %v22765_v56 = vld [vmem:[#allocation5 + $0x2ea8] ss:$40 sps:$4 sm:$0xff]   ;;  %v22770_v57 = vld [vmem:[#allocation5 + $0x2ef4] ss:$40 sps:$4 sm:$0xff]  }
 0x5b4   :  { %13567 = vmatprep.subr.bf16.mxu1 %v22719_v58  ;;  %v22773_v58 = vld [vmem:[#allocation5 + $0x2efc] ss:$40 sps:$4 sm:$0xff]  }
 0x5b6   :  { %13076 = vmatpush1.bf16.msra.mxu0 %v22714_v59  ;;  %v22768_v59 = vld [vmem:[#allocation5 + $0x2ef0] ss:$40 sps:$4 sm:$0xff]  }
 0x5b7   :  { %13568 = vmatpush1.bf16.msra.mxu1 %v22717_v60  ;;  %13077 = vmatprep.subr.bf16.mxu0 %v22722_v61  ;;  %v22771_v60 = vld [vmem:[#allocation5 + $0x2ef8] ss:$40 sps:$4 sm:$0xff]   ;;  %v22776_v61 = vld [vmem:[#allocation5 + $0x2f44] ss:$40 sps:$4 sm:$0xff]  }
 0x5b8   :  { %13569 = vmatprep.subr.bf16.mxu1 %v22725_v63  ;;  %v22779_v63 = vld [vmem:[#allocation5 + $0x2f4c] ss:$40 sps:$4 sm:$0xff]  }
 0x5ba   :  { %13078 = vmatpush1.bf16.msra.mxu0 %v22720_v0  ;;  %v22774_v0 = vld [vmem:[#allocation5 + $0x2f40] ss:$40 sps:$4 sm:$0xff]  }
 0x5bb   :  { %13570 = vmatpush1.bf16.msra.mxu1 %v22723_v1  ;;  %13079 = vmatprep.subr.bf16.mxu0 %v22728_v2  ;;  %v22777_v1 = vld [vmem:[#allocation5 + $0x2f48] ss:$40 sps:$4 sm:$0xff]   ;;  %v22782_v2 = vld [vmem:[#allocation5 + $0x2f94] ss:$40 sps:$4 sm:$0xff]  }
 0x5bc   :  { %13571 = vmatprep.subr.bf16.mxu1 %v22731_v6  ;;  %v22785_v6 = vld [vmem:[#allocation5 + $0x2f9c] ss:$40 sps:$4 sm:$0xff]  }
 0x5be   :  { %13080 = vmatpush1.bf16.msra.mxu0 %v22726_v15  ;;  %v22780_v15 = vld [vmem:[#allocation5 + $0x2f90] ss:$40 sps:$4 sm:$0xff]  }
 0x5bf   :  { %13572 = vmatpush1.bf16.msra.mxu1 %v22729_v16  ;;  %13090 = vmatprep.subr.bf16.mxu0 %v22734_v19  ;;  %v22783_v16 = vld [vmem:[#allocation5 + $0x2f98] ss:$40 sps:$4 sm:$0xff]   ;;  %v22788_v19 = vld [vmem:[#allocation5 + $0x2fe4] ss:$40 sps:$4 sm:$0xff]  }
 0x5c0   :  { %13582 = vmatprep.subr.bf16.mxu1 %v22737_v20  ;;  %v22791_v20 = vld [vmem:[#allocation5 + $0x2fec] ss:$40 sps:$4 sm:$0xff]  }
 0x5c1   :  { %13082 = vmatmul.mubr.bf16.vlgmr.msra.gmra.mrb[4].mxu0 %v24591_v4 }
 0x5c2   :  { %13574 = vmatmul.mubr.bf16.vlgmr.msra.gmra.mrb[4].mxu1 %v24591_v4  ;;  %13091 = vmatpush1.bf16.msra.mxu0 %v22732_v21  ;;  %v22786_v21 = vld [vmem:[#allocation5 + $0x2fe0] ss:$40 sps:$4 sm:$0xff]  }
 0x5c3   :  { %13583 = vmatpush1.bf16.msra.mxu1 %v22735_v23  ;;  %13092 = vmatprep.subr.bf16.mxu0 %v22740_v25  ;;  %v22789_v23 = vld [vmem:[#allocation5 + $0x2fe8] ss:$40 sps:$4 sm:$0xff]   ;;  %v22794_v25 = vld [vmem:[#allocation5 + $0x3034] ss:$40 sps:$4 sm:$0xff]  }
 0x5c4   :  { %13584 = vmatprep.subr.bf16.mxu1 %v22743_v27  ;;  %13122 = vmatprep.mubr.bf16.mxu0 %v24593_v10  ;;  %v22797_v27 = vld [vmem:[#allocation5 + $0x303c] ss:$40 sps:$4 sm:$0xff]  }
 0x5c5   :  { %13614 = vmatprep.mubr.bf16.mxu1 %v24593_v10 }
 0x5c6   :  { %13093 = vmatpush1.bf16.msra.mxu0 %v22738_v28  ;;  %v22792_v28 = vld [vmem:[#allocation5 + $0x3030] ss:$40 sps:$4 sm:$0xff]  }
 0x5c7   :  { %13585 = vmatpush1.bf16.msra.mxu1 %v22741_v29  ;;  %13094 = vmatprep.subr.bf16.mxu0 %v22746_v30  ;;  %v22795_v29 = vld [vmem:[#allocation5 + $0x3038] ss:$40 sps:$4 sm:$0xff]   ;;  %v22800_v30 = vld [vmem:[#allocation5 + $0x3084] ss:$40 sps:$4 sm:$0xff]  }
 0x5c8   :  { %13586 = vmatprep.subr.bf16.mxu1 %v22749_v33  ;;  %v22803_v33 = vld [vmem:[#allocation5 + $0x308c] ss:$40 sps:$4 sm:$0xff]  }
 0x5ca   :  { %13095 = vmatpush1.bf16.msra.mxu0 %v22744_v34  ;;  %v22798_v34 = vld [vmem:[#allocation5 + $0x3080] ss:$40 sps:$4 sm:$0xff]  }
 0x5cb   :  { %13587 = vmatpush1.bf16.msra.mxu1 %v22747_v35  ;;  %13096 = vmatprep.subr.bf16.mxu0 %v22752_v37  ;;  %v22801_v35 = vld [vmem:[#allocation5 + $0x3088] ss:$40 sps:$4 sm:$0xff]   ;;  %v22806_v37 = vld [vmem:[#allocation5 + $0x30d4] ss:$40 sps:$4 sm:$0xff]  }
 0x5cc   :  { %13588 = vmatprep.subr.bf16.mxu1 %v22755_v39  ;;  %v22809_v39 = vld [vmem:[#allocation5 + $0x30dc] ss:$40 sps:$4 sm:$0xff]  }
 0x5ce   :  { %13097 = vmatpush1.bf16.msra.mxu0 %v22750_v40  ;;  %v22804_v40 = vld [vmem:[#allocation5 + $0x30d0] ss:$40 sps:$4 sm:$0xff]  }
 0x5cf   :  { %13589 = vmatpush1.bf16.msra.mxu1 %v22753_v41  ;;  %13098 = vmatprep.subr.bf16.mxu0 %v22758_v44  ;;  %v22807_v41 = vld [vmem:[#allocation5 + $0x30d8] ss:$40 sps:$4 sm:$0xff]   ;;  %v22812_v44 = vld [vmem:[#allocation5 + $0x3124] ss:$40 sps:$4 sm:$0xff]  }
 0x5d0   :  { %13590 = vmatprep.subr.bf16.mxu1 %v22761_v45  ;;  %v22815_v45 = vld [vmem:[#allocation5 + $0x312c] ss:$40 sps:$4 sm:$0xff]  }
 0x5d2   :  { %13099 = vmatpush1.bf16.msra.mxu0 %v22756_v50  ;;  %v22810_v50 = vld [vmem:[#allocation5 + $0x3120] ss:$40 sps:$4 sm:$0xff]  }
 0x5d3   :  { %13591 = vmatpush1.bf16.msra.mxu1 %v22759_v51  ;;  %13100 = vmatprep.subr.bf16.mxu0 %v22764_v53  ;;  %v22813_v51 = vld [vmem:[#allocation5 + $0x3128] ss:$40 sps:$4 sm:$0xff]   ;;  %v22818_v53 = vld [vmem:[#allocation5 + $0x3174] ss:$40 sps:$4 sm:$0xff]  }
 0x5d4   :  { %13592 = vmatprep.subr.bf16.mxu1 %v22767_v54  ;;  %v22821_v54 = vld [vmem:[#allocation5 + $0x317c] ss:$40 sps:$4 sm:$0xff]  }
 0x5d6   :  { %13101 = vmatpush1.bf16.msra.mxu0 %v22762_v55  ;;  %v22816_v55 = vld [vmem:[#allocation5 + $0x3170] ss:$40 sps:$4 sm:$0xff]  }
 0x5d7   :  { %13593 = vmatpush1.bf16.msra.mxu1 %v22765_v56  ;;  %13102 = vmatprep.subr.bf16.mxu0 %v22770_v57  ;;  %v22819_v56 = vld [vmem:[#allocation5 + $0x3178] ss:$40 sps:$4 sm:$0xff]   ;;  %v22824_v57 = vld [vmem:[#allocation5 + $0x31c4] ss:$40 sps:$4 sm:$0xff]  }
 0x5d8   :  { %13594 = vmatprep.subr.bf16.mxu1 %v22773_v58  ;;  %v22827_v58 = vld [vmem:[#allocation5 + $0x31cc] ss:$40 sps:$4 sm:$0xff]  }
 0x5da   :  { %13103 = vmatpush1.bf16.msra.mxu0 %v22768_v59  ;;  %v22822_v59 = vld [vmem:[#allocation5 + $0x31c0] ss:$40 sps:$4 sm:$0xff]  }
 0x5db   :  { %13595 = vmatpush1.bf16.msra.mxu1 %v22771_v60  ;;  %13104 = vmatprep.subr.bf16.mxu0 %v22776_v61  ;;  %v22825_v60 = vld [vmem:[#allocation5 + $0x31c8] ss:$40 sps:$4 sm:$0xff]   ;;  %v22830_v61 = vld [vmem:[#allocation5 + $0x3214] ss:$40 sps:$4 sm:$0xff]  }
 0x5dc   :  { %13596 = vmatprep.subr.bf16.mxu1 %v22779_v63  ;;  %v22833_v63 = vld [vmem:[#allocation5 + $0x321c] ss:$40 sps:$4 sm:$0xff]  }
 0x5de   :  { %13105 = vmatpush1.bf16.msra.mxu0 %v22774_v0  ;;  %v22828_v0 = vld [vmem:[#allocation5 + $0x3210] ss:$40 sps:$4 sm:$0xff]  }
 0x5df   :  { %13597 = vmatpush1.bf16.msra.mxu1 %v22777_v1  ;;  %13106 = vmatprep.subr.bf16.mxu0 %v22782_v2  ;;  %v22831_v1 = vld [vmem:[#allocation5 + $0x3218] ss:$40 sps:$4 sm:$0xff]   ;;  %v22836_v2 = vld [vmem:[#allocation5 + $0x3264] ss:$40 sps:$4 sm:$0xff]  }
 0x5e0   :  { %13598 = vmatprep.subr.bf16.mxu1 %v22785_v6  ;;  %v22839_v6 = vld [vmem:[#allocation5 + $0x326c] ss:$40 sps:$4 sm:$0xff]  }
 0x5e2   :  { %13107 = vmatpush1.bf16.msra.mxu0 %v22780_v15  ;;  %v22834_v15 = vld [vmem:[#allocation5 + $0x3260] ss:$40 sps:$4 sm:$0xff]  }
 0x5e3   :  { %13599 = vmatpush1.bf16.msra.mxu1 %v22783_v16  ;;  %13108 = vmatprep.subr.bf16.mxu0 %v22788_v19  ;;  %v22837_v16 = vld [vmem:[#allocation5 + $0x3268] ss:$40 sps:$4 sm:$0xff]   ;;  %v22842_v19 = vld [vmem:[#allocation5 + $0x32b4] ss:$40 sps:$4 sm:$0xff]  }
 0x5e4   :  { %13600 = vmatprep.subr.bf16.mxu1 %v22791_v20  ;;  %v22845_v20 = vld [vmem:[#allocation5 + $0x32bc] ss:$40 sps:$4 sm:$0xff]  }
 0x5e6   :  { %13109 = vmatpush1.bf16.msra.mxu0 %v22786_v21  ;;  %v22840_v21 = vld [vmem:[#allocation5 + $0x32b0] ss:$40 sps:$4 sm:$0xff]  }
 0x5e7   :  { %13601 = vmatpush1.bf16.msra.mxu1 %v22789_v23  ;;  %13110 = vmatprep.subr.bf16.mxu0 %v22794_v25  ;;  %v22843_v23 = vld [vmem:[#allocation5 + $0x32b8] ss:$40 sps:$4 sm:$0xff]   ;;  %v22848_v25 = vld [vmem:[#allocation5 + $0x3304] ss:$40 sps:$4 sm:$0xff]  }
 0x5e8   :  { %13602 = vmatprep.subr.bf16.mxu1 %v22797_v27  ;;  %v22851_v27 = vld [vmem:[#allocation5 + $0x330c] ss:$40 sps:$4 sm:$0xff]  }
 0x5ea   :  { %13111 = vmatpush1.bf16.msra.mxu0 %v22792_v28  ;;  %v22846_v28 = vld [vmem:[#allocation5 + $0x3300] ss:$40 sps:$4 sm:$0xff]  }
 0x5eb   :  { %13603 = vmatpush1.bf16.msra.mxu1 %v22795_v29  ;;  %13112 = vmatprep.subr.bf16.mxu0 %v22800_v30  ;;  %v22849_v29 = vld [vmem:[#allocation5 + $0x3308] ss:$40 sps:$4 sm:$0xff]   ;;  %v22854_v30 = vld [vmem:[#allocation5 + $0x3354] ss:$40 sps:$4 sm:$0xff]  }
 0x5ec   :  { %13604 = vmatprep.subr.bf16.mxu1 %v22803_v33  ;;  %v22857_v33 = vld [vmem:[#allocation5 + $0x335c] ss:$40 sps:$4 sm:$0xff]  }
 0x5ee   :  { %13113 = vmatpush1.bf16.msra.mxu0 %v22798_v34  ;;  %v22852_v34 = vld [vmem:[#allocation5 + $0x3350] ss:$40 sps:$4 sm:$0xff]  }
 0x5ef   :  { %13605 = vmatpush1.bf16.msra.mxu1 %v22801_v35  ;;  %13114 = vmatprep.subr.bf16.mxu0 %v22806_v37  ;;  %v22855_v35 = vld [vmem:[#allocation5 + $0x3358] ss:$40 sps:$4 sm:$0xff]   ;;  %v22860_v37 = vld [vmem:[#allocation5 + $0x33a4] ss:$40 sps:$4 sm:$0xff]  }
 0x5f0   :  { %13606 = vmatprep.subr.bf16.mxu1 %v22809_v39  ;;  %v22863_v39 = vld [vmem:[#allocation5 + $0x33ac] ss:$40 sps:$4 sm:$0xff]  }
 0x5f2   :  { %13115 = vmatpush1.bf16.msra.mxu0 %v22804_v40  ;;  %v22858_v40 = vld [vmem:[#allocation5 + $0x33a0] ss:$40 sps:$4 sm:$0xff]  }
 0x5f3   :  { %13607 = vmatpush1.bf16.msra.mxu1 %v22807_v41  ;;  %13116 = vmatprep.subr.bf16.mxu0 %v22812_v44  ;;  %v22861_v41 = vld [vmem:[#allocation5 + $0x33a8] ss:$40 sps:$4 sm:$0xff]   ;;  %v22866_v44 = vld [vmem:[#allocation5 + $0x33f4] ss:$40 sps:$4 sm:$0xff]  }
 0x5f4   :  { %13608 = vmatprep.subr.bf16.mxu1 %v22815_v45  ;;  %v22869_v45 = vld [vmem:[#allocation5 + $0x33fc] ss:$40 sps:$4 sm:$0xff]  }
 0x5f6   :  { %13117 = vmatpush1.bf16.msra.mxu0 %v22810_v50  ;;  %v22864_v50 = vld [vmem:[#allocation5 + $0x33f0] ss:$40 sps:$4 sm:$0xff]  }
 0x5f7   :  { %13609 = vmatpush1.bf16.msra.mxu1 %v22813_v51  ;;  %13118 = vmatprep.subr.bf16.mxu0 %v22818_v53  ;;  %v22867_v51 = vld [vmem:[#allocation5 + $0x33f8] ss:$40 sps:$4 sm:$0xff]   ;;  %v22872_v53 = vld [vmem:[#allocation5 + $0x3444] ss:$40 sps:$4 sm:$0xff]  }
 0x5f8   :  { %13610 = vmatprep.subr.bf16.mxu1 %v22821_v54  ;;  %v22875_v54 = vld [vmem:[#allocation5 + $0x344c] ss:$40 sps:$4 sm:$0xff]  }
 0x5fa   :  { %13119 = vmatpush1.bf16.msra.mxu0 %v22816_v55  ;;  %v22870_v55 = vld [vmem:[#allocation5 + $0x3440] ss:$40 sps:$4 sm:$0xff]  }
 0x5fb   :  { %13611 = vmatpush1.bf16.msra.mxu1 %v22819_v56  ;;  %13120 = vmatprep.subr.bf16.mxu0 %v22824_v57  ;;  %v22873_v56 = vld [vmem:[#allocation5 + $0x3448] ss:$40 sps:$4 sm:$0xff]   ;;  %v22878_v57 = vld [vmem:[#allocation5 + $0x3494] ss:$40 sps:$4 sm:$0xff]  }
 0x5fc   :  { %13612 = vmatprep.subr.bf16.mxu1 %v22827_v58  ;;  %v22881_v58 = vld [vmem:[#allocation5 + $0x349c] ss:$40 sps:$4 sm:$0xff]  }
 0x5fe   :  { %13121 = vmatpush1.bf16.msra.mxu0 %v22822_v59  ;;  %v22876_v59 = vld [vmem:[#allocation5 + $0x3490] ss:$40 sps:$4 sm:$0xff]  }
 0x5ff   :  { %13613 = vmatpush1.bf16.msra.mxu1 %v22825_v60  ;;  %13131 = vmatprep.subr.bf16.mxu0 %v22830_v61  ;;  %v22879_v60 = vld [vmem:[#allocation5 + $0x3498] ss:$40 sps:$4 sm:$0xff]   ;;  %v22884_v61 = vld [vmem:[#allocation5 + $0x34e4] ss:$40 sps:$4 sm:$0xff]  }
 0x600   :  { %13623 = vmatprep.subr.bf16.mxu1 %v22833_v63  ;;  %v22887_v63 = vld [vmem:[#allocation5 + $0x34ec] ss:$40 sps:$4 sm:$0xff]  }
 0x601   :  { %13123 = vmatmul.mubr.bf16.vlgmr.msra.gmra.mrb[4].mxu0 %v24599_v36 }
 0x602   :  { %13615 = vmatmul.mubr.bf16.vlgmr.msra.gmra.mrb[4].mxu1 %v24599_v36  ;;  %13132 = vmatpush1.bf16.msra.mxu0 %v22828_v0  ;;  %v22882_v0 = vld [vmem:[#allocation5 + $0x34e0] ss:$40 sps:$4 sm:$0xff]  }
 0x603   :  { %13624 = vmatpush1.bf16.msra.mxu1 %v22831_v1  ;;  %13133 = vmatprep.subr.bf16.mxu0 %v22836_v2  ;;  %v22885_v1 = vld [vmem:[#allocation5 + $0x34e8] ss:$40 sps:$4 sm:$0xff]   ;;  %v22890_v2 = vld [vmem:[#allocation5 + $0x3534] ss:$40 sps:$4 sm:$0xff]  }
 0x604   :  { %13625 = vmatprep.subr.bf16.mxu1 %v22839_v6  ;;  %13163 = vmatprep.mubr.bf16.mxu0 %v24601_v43  ;;  %v22893_v6 = vld [vmem:[#allocation5 + $0x353c] ss:$40 sps:$4 sm:$0xff]  }
 0x605   :  { %13655 = vmatprep.mubr.bf16.mxu1 %v24601_v43 }
 0x606   :  { %13134 = vmatpush1.bf16.msra.mxu0 %v22834_v15  ;;  %v22888_v15 = vld [vmem:[#allocation5 + $0x3530] ss:$40 sps:$4 sm:$0xff]  }
 0x607   :  { %13626 = vmatpush1.bf16.msra.mxu1 %v22837_v16  ;;  %13135 = vmatprep.subr.bf16.mxu0 %v22842_v19  ;;  %v22891_v16 = vld [vmem:[#allocation5 + $0x3538] ss:$40 sps:$4 sm:$0xff]   ;;  %v22896_v19 = vld [vmem:[#allocation5 + $0x3584] ss:$40 sps:$4 sm:$0xff]  }
 0x608   :  { %13627 = vmatprep.subr.bf16.mxu1 %v22845_v20  ;;  %v22899_v20 = vld [vmem:[#allocation5 + $0x358c] ss:$40 sps:$4 sm:$0xff]  }
 0x60a   :  { %13136 = vmatpush1.bf16.msra.mxu0 %v22840_v21  ;;  %v22894_v21 = vld [vmem:[#allocation5 + $0x3580] ss:$40 sps:$4 sm:$0xff]  }
 0x60b   :  { %13628 = vmatpush1.bf16.msra.mxu1 %v22843_v23  ;;  %13137 = vmatprep.subr.bf16.mxu0 %v22848_v25  ;;  %v22897_v23 = vld [vmem:[#allocation5 + $0x3588] ss:$40 sps:$4 sm:$0xff]   ;;  %v22902_v25 = vld [vmem:[#allocation5 + $0x35d4] ss:$40 sps:$4 sm:$0xff]  }
 0x60c   :  { %13629 = vmatprep.subr.bf16.mxu1 %v22851_v27  ;;  %v22905_v27 = vld [vmem:[#allocation5 + $0x35dc] ss:$40 sps:$4 sm:$0xff]  }
 0x60e   :  { %13138 = vmatpush1.bf16.msra.mxu0 %v22846_v28  ;;  %v22900_v28 = vld [vmem:[#allocation5 + $0x35d0] ss:$40 sps:$4 sm:$0xff]  }
 0x60f   :  { %13630 = vmatpush1.bf16.msra.mxu1 %v22849_v29  ;;  %13139 = vmatprep.subr.bf16.mxu0 %v22854_v30  ;;  %v22903_v29 = vld [vmem:[#allocation5 + $0x35d8] ss:$40 sps:$4 sm:$0xff]   ;;  %v22908_v30 = vld [vmem:[#allocation5 + $0x3624] ss:$40 sps:$4 sm:$0xff]  }
 0x610   :  { %13631 = vmatprep.subr.bf16.mxu1 %v22857_v33  ;;  %v22911_v33 = vld [vmem:[#allocation5 + $0x362c] ss:$40 sps:$4 sm:$0xff]  }
 0x612   :  { %13140 = vmatpush1.bf16.msra.mxu0 %v22852_v34  ;;  %v22906_v34 = vld [vmem:[#allocation5 + $0x3620] ss:$40 sps:$4 sm:$0xff]  }
 0x613   :  { %13632 = vmatpush1.bf16.msra.mxu1 %v22855_v35  ;;  %13141 = vmatprep.subr.bf16.mxu0 %v22860_v37  ;;  %v22909_v35 = vld [vmem:[#allocation5 + $0x3628] ss:$40 sps:$4 sm:$0xff]   ;;  %v22914_v37 = vld [vmem:[#allocation5 + $0x3674] ss:$40 sps:$4 sm:$0xff]  }
 0x614   :  { %13633 = vmatprep.subr.bf16.mxu1 %v22863_v39  ;;  %v22917_v39 = vld [vmem:[#allocation5 + $0x367c] ss:$40 sps:$4 sm:$0xff]  }
 0x616   :  { %13142 = vmatpush1.bf16.msra.mxu0 %v22858_v40  ;;  %v22912_v40 = vld [vmem:[#allocation5 + $0x3670] ss:$40 sps:$4 sm:$0xff]  }
 0x617   :  { %13634 = vmatpush1.bf16.msra.mxu1 %v22861_v41  ;;  %13143 = vmatprep.subr.bf16.mxu0 %v22866_v44  ;;  %v22915_v41 = vld [vmem:[#allocation5 + $0x3678] ss:$40 sps:$4 sm:$0xff]   ;;  %v22920_v44 = vld [vmem:[#allocation5 + $0x36c4] ss:$40 sps:$4 sm:$0xff]  }
 0x618   :  { %13635 = vmatprep.subr.bf16.mxu1 %v22869_v45  ;;  %v22923_v45 = vld [vmem:[#allocation5 + $0x36cc] ss:$40 sps:$4 sm:$0xff]  }
 0x61a   :  { %13144 = vmatpush1.bf16.msra.mxu0 %v22864_v50  ;;  %v22918_v50 = vld [vmem:[#allocation5 + $0x36c0] ss:$40 sps:$4 sm:$0xff]  }
 0x61b   :  { %13636 = vmatpush1.bf16.msra.mxu1 %v22867_v51  ;;  %13145 = vmatprep.subr.bf16.mxu0 %v22872_v53  ;;  %v22921_v51 = vld [vmem:[#allocation5 + $0x36c8] ss:$40 sps:$4 sm:$0xff]   ;;  %v22926_v53 = vld [vmem:[#allocation5 + $0x3714] ss:$40 sps:$4 sm:$0xff]  }
 0x61c   :  { %13637 = vmatprep.subr.bf16.mxu1 %v22875_v54  ;;  %v22929_v54 = vld [vmem:[#allocation5 + $0x371c] ss:$40 sps:$4 sm:$0xff]  }
 0x61e   :  { %13146 = vmatpush1.bf16.msra.mxu0 %v22870_v55  ;;  %v22924_v55 = vld [vmem:[#allocation5 + $0x3710] ss:$40 sps:$4 sm:$0xff]  }
 0x61f   :  { %13638 = vmatpush1.bf16.msra.mxu1 %v22873_v56  ;;  %13147 = vmatprep.subr.bf16.mxu0 %v22878_v57  ;;  %v22927_v56 = vld [vmem:[#allocation5 + $0x3718] ss:$40 sps:$4 sm:$0xff]   ;;  %v22932_v57 = vld [vmem:[#allocation5 + $0x3764] ss:$40 sps:$4 sm:$0xff]  }
 0x620   :  { %13639 = vmatprep.subr.bf16.mxu1 %v22881_v58  ;;  %v22935_v58 = vld [vmem:[#allocation5 + $0x376c] ss:$40 sps:$4 sm:$0xff]  }
 0x622   :  { %13148 = vmatpush1.bf16.msra.mxu0 %v22876_v59  ;;  %v22930_v59 = vld [vmem:[#allocation5 + $0x3760] ss:$40 sps:$4 sm:$0xff]  }
 0x623   :  { %13640 = vmatpush1.bf16.msra.mxu1 %v22879_v60  ;;  %13149 = vmatprep.subr.bf16.mxu0 %v22884_v61  ;;  %v22933_v60 = vld [vmem:[#allocation5 + $0x3768] ss:$40 sps:$4 sm:$0xff]   ;;  %v22938_v61 = vld [vmem:[#allocation5 + $0x37b4] ss:$40 sps:$4 sm:$0xff]  }
 0x624   :  { %13641 = vmatprep.subr.bf16.mxu1 %v22887_v63  ;;  %v22941_v63 = vld [vmem:[#allocation5 + $0x37bc] ss:$40 sps:$4 sm:$0xff]  }
 0x626   :  { %13150 = vmatpush1.bf16.msra.mxu0 %v22882_v0  ;;  %v22936_v0 = vld [vmem:[#allocation5 + $0x37b0] ss:$40 sps:$4 sm:$0xff]  }
 0x627   :  { %13642 = vmatpush1.bf16.msra.mxu1 %v22885_v1  ;;  %13151 = vmatprep.subr.bf16.mxu0 %v22890_v2  ;;  %v22939_v1 = vld [vmem:[#allocation5 + $0x37b8] ss:$40 sps:$4 sm:$0xff]   ;;  %v22944_v2 = vld [vmem:[#allocation5 + $0x3804] ss:$40 sps:$4 sm:$0xff]  }
 0x628   :  { %13643 = vmatprep.subr.bf16.mxu1 %v22893_v6  ;;  %v22947_v6 = vld [vmem:[#allocation5 + $0x380c] ss:$40 sps:$4 sm:$0xff]  }
 0x62a   :  { %13152 = vmatpush1.bf16.msra.mxu0 %v22888_v15  ;;  %v22942_v15 = vld [vmem:[#allocation5 + $0x3800] ss:$40 sps:$4 sm:$0xff]  }
 0x62b   :  { %13644 = vmatpush1.bf16.msra.mxu1 %v22891_v16  ;;  %13153 = vmatprep.subr.bf16.mxu0 %v22896_v19  ;;  %v22945_v16 = vld [vmem:[#allocation5 + $0x3808] ss:$40 sps:$4 sm:$0xff]   ;;  %v22950_v19 = vld [vmem:[#allocation5 + $0x3854] ss:$40 sps:$4 sm:$0xff]  }
 0x62c   :  { %13645 = vmatprep.subr.bf16.mxu1 %v22899_v20  ;;  %v22953_v20 = vld [vmem:[#allocation5 + $0x385c] ss:$40 sps:$4 sm:$0xff]  }
 0x62e   :  { %13154 = vmatpush1.bf16.msra.mxu0 %v22894_v21  ;;  %v22948_v21 = vld [vmem:[#allocation5 + $0x3850] ss:$40 sps:$4 sm:$0xff]  }
 0x62f   :  { %13646 = vmatpush1.bf16.msra.mxu1 %v22897_v23  ;;  %13155 = vmatprep.subr.bf16.mxu0 %v22902_v25  ;;  %v22951_v23 = vld [vmem:[#allocation5 + $0x3858] ss:$40 sps:$4 sm:$0xff]   ;;  %v22956_v25 = vld [vmem:[#allocation5 + $0x38a4] ss:$40 sps:$4 sm:$0xff]  }
 0x630   :  { %13647 = vmatprep.subr.bf16.mxu1 %v22905_v27  ;;  %v22959_v27 = vld [vmem:[#allocation5 + $0x38ac] ss:$40 sps:$4 sm:$0xff]  }
 0x632   :  { %13156 = vmatpush1.bf16.msra.mxu0 %v22900_v28  ;;  %v22954_v28 = vld [vmem:[#allocation5 + $0x38a0] ss:$40 sps:$4 sm:$0xff]  }
 0x633   :  { %13648 = vmatpush1.bf16.msra.mxu1 %v22903_v29  ;;  %13157 = vmatprep.subr.bf16.mxu0 %v22908_v30  ;;  %v22957_v29 = vld [vmem:[#allocation5 + $0x38a8] ss:$40 sps:$4 sm:$0xff]   ;;  %v22962_v30 = vld [vmem:[#allocation5 + $0x38f4] ss:$40 sps:$4 sm:$0xff]  }
 0x634   :  { %13649 = vmatprep.subr.bf16.mxu1 %v22911_v33  ;;  %v22965_v33 = vld [vmem:[#allocation5 + $0x38fc] ss:$40 sps:$4 sm:$0xff]  }
 0x636   :  { %13158 = vmatpush1.bf16.msra.mxu0 %v22906_v34  ;;  %v22960_v34 = vld [vmem:[#allocation5 + $0x38f0] ss:$40 sps:$4 sm:$0xff]  }
 0x637   :  { %13650 = vmatpush1.bf16.msra.mxu1 %v22909_v35  ;;  %13159 = vmatprep.subr.bf16.mxu0 %v22914_v37  ;;  %v22963_v35 = vld [vmem:[#allocation5 + $0x38f8] ss:$40 sps:$4 sm:$0xff]   ;;  %v22968_v37 = vld [vmem:[#allocation5 + $0x3944] ss:$40 sps:$4 sm:$0xff]  }
 0x638   :  { %13651 = vmatprep.subr.bf16.mxu1 %v22917_v39  ;;  %v22971_v39 = vld [vmem:[#allocation5 + $0x394c] ss:$40 sps:$4 sm:$0xff]  }
 0x63a   :  { %13160 = vmatpush1.bf16.msra.mxu0 %v22912_v40  ;;  %v22966_v40 = vld [vmem:[#allocation5 + $0x3940] ss:$40 sps:$4 sm:$0xff]  }
 0x63b   :  { %13652 = vmatpush1.bf16.msra.mxu1 %v22915_v41  ;;  %13161 = vmatprep.subr.bf16.mxu0 %v22920_v44  ;;  %v22969_v41 = vld [vmem:[#allocation5 + $0x3948] ss:$40 sps:$4 sm:$0xff]   ;;  %v22974_v44 = vld [vmem:[#allocation5 + $0x3994] ss:$40 sps:$4 sm:$0xff]  }
 0x63c   :  { %13653 = vmatprep.subr.bf16.mxu1 %v22923_v45  ;;  %v22977_v45 = vld [vmem:[#allocation5 + $0x399c] ss:$40 sps:$4 sm:$0xff]  }
 0x63e   :  { %13162 = vmatpush1.bf16.msra.mxu0 %v22918_v50  ;;  %v22972_v50 = vld [vmem:[#allocation5 + $0x3990] ss:$40 sps:$4 sm:$0xff]  }
 0x63f   :  { %13654 = vmatpush1.bf16.msra.mxu1 %v22921_v51  ;;  %13172 = vmatprep.subr.bf16.mxu0 %v22926_v53  ;;  %v22975_v51 = vld [vmem:[#allocation5 + $0x3998] ss:$40 sps:$4 sm:$0xff]   ;;  %v22980_v53 = vld [vmem:[#allocation5 + $0x39e4] ss:$40 sps:$4 sm:$0xff]  }
 0x640   :  { %13664 = vmatprep.subr.bf16.mxu1 %v22929_v54  ;;  %v22983_v54 = vld [vmem:[#allocation5 + $0x39ec] ss:$40 sps:$4 sm:$0xff]  }
 0x641   :  { %13164 = vmatmul.mubr.bf16.vlgmr.msra.gmra.mrb[4].mxu0 %v24607_v7 }
 0x642   :  { %13656 = vmatmul.mubr.bf16.vlgmr.msra.gmra.mrb[4].mxu1 %v24607_v7  ;;  %13173 = vmatpush1.bf16.msra.mxu0 %v22924_v55  ;;  %v22978_v55 = vld [vmem:[#allocation5 + $0x39e0] ss:$40 sps:$4 sm:$0xff]  }
 0x643   :  { %13665 = vmatpush1.bf16.msra.mxu1 %v22927_v56  ;;  %13174 = vmatprep.subr.bf16.mxu0 %v22932_v57  ;;  %v22981_v56 = vld [vmem:[#allocation5 + $0x39e8] ss:$40 sps:$4 sm:$0xff]   ;;  %v22986_v57 = vld [vmem:[#allocation5 + $0x3a34] ss:$40 sps:$4 sm:$0xff]  }
 0x644   :  { %13666 = vmatprep.subr.bf16.mxu1 %v22935_v58  ;;  %13204 = vmatprep.mubr.bf16.mxu0 %v24609_v14  ;;  %v22989_v58 = vld [vmem:[#allocation5 + $0x3a3c] ss:$40 sps:$4 sm:$0xff]  }
 0x645   :  { %13696 = vmatprep.mubr.bf16.mxu1 %v24609_v14 }
 0x646   :  { %13175 = vmatpush1.bf16.msra.mxu0 %v22930_v59  ;;  %v22984_v59 = vld [vmem:[#allocation5 + $0x3a30] ss:$40 sps:$4 sm:$0xff]  }
 0x647   :  { %13667 = vmatpush1.bf16.msra.mxu1 %v22933_v60  ;;  %13176 = vmatprep.subr.bf16.mxu0 %v22938_v61  ;;  %v22987_v60 = vld [vmem:[#allocation5 + $0x3a38] ss:$40 sps:$4 sm:$0xff]   ;;  %v22992_v61 = vld [vmem:[#allocation5 + $0x3a84] ss:$40 sps:$4 sm:$0xff]  }
 0x648   :  { %13668 = vmatprep.subr.bf16.mxu1 %v22941_v63  ;;  %v22995_v63 = vld [vmem:[#allocation5 + $0x3a8c] ss:$40 sps:$4 sm:$0xff]  }
 0x64a   :  { %13177 = vmatpush1.bf16.msra.mxu0 %v22936_v0  ;;  %v2087_v0 = vlaneseq }
 0x64b   :  { %13669 = vmatpush1.bf16.msra.mxu1 %v22939_v1  ;;  %13178 = vmatprep.subr.bf16.mxu0 %v22944_v2  ;;  %v22990_v1 = vld [vmem:[#allocation5 + $0x3a80] ss:$40 sps:$4 sm:$0xff]  }
 0x64c   :  { %13670 = vmatprep.subr.bf16.mxu1 %v22947_v6  ;;  %v22993_v2 = vld [vmem:[#allocation5 + $0x3a88] ss:$40 sps:$4 sm:$0xff]   ;;  %v22998_v6 = vld [vmem:[#allocation5 + $0x3ad4] ss:$40 sps:$4 sm:$0xff]  }
 0x64e   :  { %13179 = vmatpush1.bf16.msra.mxu0 %v22942_v15  ;;  %v23001_v15 = vld [vmem:[#allocation5 + $0x3adc] ss:$40 sps:$4 sm:$0xff]  }
 0x64f   :  { %13671 = vmatpush1.bf16.msra.mxu1 %v22945_v16  ;;  %13180 = vmatprep.subr.bf16.mxu0 %v22950_v19  ;;  %v24673_v16 = vshrl.u32 %v2087_v0, 7  ;;  %v22996_v19 = vld [vmem:[#allocation5 + $0x3ad0] ss:$40 sps:$4 sm:$0xff]  }
 0x650   :  { %13672 = vmatprep.subr.bf16.mxu1 %v22953_v20  ;;  %v22999_v20 = vld [vmem:[#allocation5 + $0x3ad8] ss:$40 sps:$4 sm:$0xff]  }
 0x651   :  { %v23035_v0 = vld [vmem:[#allocation8 + $0x50] ss:$20 sps:$4 sm:$0xff]  }
 0x652   :  { %13181 = vmatpush1.bf16.msra.mxu0 %v22948_v21  ;;  %v23004_v21 = vld [vmem:[#allocation5 + $0x3b24] ss:$40 sps:$4 sm:$0xff]  }
 0x653   :  { %13673 = vmatpush1.bf16.msra.mxu1 %v22951_v23  ;;  %13182 = vmatprep.subr.bf16.mxu0 %v22956_v25  ;;  %v23007_v23 = vld [vmem:[#allocation5 + $0x3b2c] ss:$40 sps:$4 sm:$0xff]   ;;  %v24676_v25 = vsub.s32 1, %v24673_v16 }
 0x654   :  { %13674 = vmatprep.subr.bf16.mxu1 %v22959_v27  ;;  %v24678_v27 = vld [vmem:[#allocation7] sm:$0xff] }
 0x656   :  { %13183 = vmatpush1.bf16.msra.mxu0 %v22954_v28  ;;  %v23002_v28 = vld [vmem:[#allocation5 + $0x3b20] ss:$40 sps:$4 sm:$0xff]  }
 0x657   :  { %13675 = vmatpush1.bf16.msra.mxu1 %v22957_v29  ;;  %13184 = vmatprep.subr.bf16.mxu0 %v22962_v30  ;;  %v23005_v29 = vld [vmem:[#allocation5 + $0x3b28] ss:$40 sps:$4 sm:$0xff]   ;;  %v23010_v30 = vld [vmem:[#allocation5 + $0x3b74] ss:$40 sps:$4 sm:$0xff]  }
 0x658   :  { %13676 = vmatprep.subr.bf16.mxu1 %v22965_v33  ;;  %v23013_v33 = vld [vmem:[#allocation5 + $0x3b7c] ss:$40 sps:$4 sm:$0xff]  }
 0x65a   :  { %13185 = vmatpush1.bf16.msra.mxu0 %v22960_v34  ;;  %v2094_v34 = vrot.slane %v24678_v27, %v24676_v25 }
 0x65b   :  { %13677 = vmatpush1.bf16.msra.mxu1 %v22963_v35  ;;  %13186 = vmatprep.subr.bf16.mxu0 %v22968_v37  ;;  %v23008_v35 = vld [vmem:[#allocation5 + $0x3b70] ss:$40 sps:$4 sm:$0xff]  }
 0x65c   :  { %13678 = vmatprep.subr.bf16.mxu1 %v22971_v39  ;;  %v23011_v37 = vld [vmem:[#allocation5 + $0x3b78] ss:$40 sps:$4 sm:$0xff]   ;;  %v23016_v39 = vld [vmem:[#allocation5 + $0x3bc4] ss:$40 sps:$4 sm:$0xff]  }
 0x65e   :  { %13187 = vmatpush1.bf16.msra.mxu0 %v22966_v40  ;;  %v23019_v40 = vld [vmem:[#allocation5 + $0x3bcc] ss:$40 sps:$4 sm:$0xff]  }
 0x65f   :  { %13679 = vmatpush1.bf16.msra.mxu1 %v22969_v41  ;;  %13188 = vmatprep.subr.bf16.mxu0 %v22974_v44  ;;  %v20435_v41 = vadd.f32 %v24637_v11, %v2094_v34  ;;  %v23014_v44 = vld [vmem:[#allocation5 + $0x3bc0] ss:$40 sps:$4 sm:$0xff]   ;;  %v23026_v11 = vld [vmem:[#allocation5 + $0x70] ss:$40 sps:$4 sm:$0xff]  }
 0x660   :  { %13680 = vmatprep.subr.bf16.mxu1 %v22977_v45  ;;  %v23017_v45 = vld [vmem:[#allocation5 + $0x3bc8] ss:$40 sps:$4 sm:$0xff]  }
 0x661   :  { %v23061_v34 = vld [vmem:[#allocation8 + $0xf4] ss:$20 sps:$4 sm:$0xff]  }
 0x662   :  { %13189 = vmatpush1.bf16.msra.mxu0 %v22972_v50  ;;  %v23022_v50 = vld [vmem:[#allocation5 + $0x24] ss:$40 sps:$4 sm:$0xff]  }
 0x663   :  { %13681 = vmatpush1.bf16.msra.mxu1 %v22975_v51  ;;  %13190 = vmatprep.subr.bf16.mxu0 %v22980_v53  ;;  %v23025_v51 = vld [vmem:[#allocation8 + $0x4] ss:$20 sps:$4 sm:$0xff]   ;;  %v14198_v53 = vmax.f32 %v20435_v41, 0.0 }
 0x664   :  { %13682 = vmatprep.subr.bf16.mxu1 %v22983_v54  ;;  %v23020_v54 = vld [vmem:[#allocation5 + $0x20] ss:$40 sps:$4 sm:$0xff]   ;;  %v23062_v41 = vld [vmem:[#allocation5 + $0x250] ss:$40 sps:$4 sm:$0xff]  }
 0x666   :  { %13191 = vmatpush1.bf16.msra.mxu0 %v22978_v55  ;;  %v23023_v55 = vld [vmem:[#allocation8] ss:$20 sps:$4 sm:$0xff]  }
 0x667   :  { %13683 = vmatpush1.bf16.msra.mxu1 %v22981_v56  ;;  %13192 = vmatprep.subr.bf16.mxu0 %v22986_v57  ;;  %v23028_v56 = vld [vmem:[#allocation5 + $0x74] ss:$40 sps:$4 sm:$0xff]  }
 0x668   :  { %13684 = vmatprep.subr.bf16.mxu1 %v22989_v58  ;;  %v23031_v57 = vld [vmem:[#allocation8 + $0x2c] ss:$20 sps:$4 sm:$0xff]   ;;  %v24683_v58 = vpack.c.bf16 %v14198_v53, %v14198_v53 }
 0x669   :  { %v23071_v53 = vld [vmem:[#allocation8 + $0x140] ss:$20 sps:$4 sm:$0xff]  }
 0x66a   :  { %13193 = vmatpush1.bf16.msra.mxu0 %v22984_v59  ;;  %v23029_v59 = vld [vmem:[#allocation8 + $0x28] ss:$20 sps:$4 sm:$0xff]  }
 0x66b   :  { %13685 = vmatpush1.bf16.msra.mxu1 %v22987_v60  ;;  %13194 = vmatprep.subr.bf16.mxu0 %v22992_v61  ;;  %v23034_v60 = vld [vmem:[#allocation5 + $0xc4] ss:$40 sps:$4 sm:$0xff]   ;;  %v23037_v61 = vld [vmem:[#allocation8 + $0x54] ss:$20 sps:$4 sm:$0xff]  }
 0x66c   :  { %13686 = vmatprep.subr.bf16.mxu1 %v22995_v63  ;;  %v23032_v63 = vld [vmem:[#allocation5 + $0xc0] ss:$40 sps:$4 sm:$0xff]  }
 0x66e   :  { %13195 = vmatpush1.bf16.msra.mxu0 %v22990_v1  ;;  %v23040_v1 = vld [vmem:[#allocation5 + $0x114] ss:$40 sps:$4 sm:$0xff]  }
 0x66f   :  { %13687 = vmatpush1.bf16.msra.mxu1 %v22993_v2  ;;  %13196 = vmatprep.subr.bf16.mxu0 %v22998_v6  ;;  %v23043_v2 = vld [vmem:[#allocation8 + $0x7c] ss:$20 sps:$4 sm:$0xff]  }
 0x670   :  { %13688 = vmatprep.subr.bf16.mxu1 %v23001_v15  ;;  %v23038_v6 = vld [vmem:[#allocation5 + $0x110] ss:$40 sps:$4 sm:$0xff]  }
 0x671   :  { %v23041_v15 = vld [vmem:[#allocation8 + $0x78] ss:$20 sps:$4 sm:$0xff]  }
 0x672   :  { %13197 = vmatpush1.bf16.msra.mxu0 %v22996_v19  ;;  %v23046_v19 = vld [vmem:[#allocation5 + $0x164] ss:$40 sps:$4 sm:$0xff]  }
 0x673   :  { %13689 = vmatpush1.bf16.msra.mxu1 %v22999_v20  ;;  %13198 = vmatprep.subr.bf16.mxu0 %v23004_v21  ;;  %v23049_v20 = vld [vmem:[#allocation8 + $0xa4] ss:$20 sps:$4 sm:$0xff]  }
 0x674   :  { %13690 = vmatprep.subr.bf16.mxu1 %v23007_v23  ;;  %v23044_v21 = vld [vmem:[#allocation5 + $0x160] ss:$40 sps:$4 sm:$0xff]   ;;  %v23052_v23 = vld [vmem:[#allocation5 + $0x1b4] ss:$40 sps:$4 sm:$0xff]  }
 0x676   :  { %13199 = vmatpush1.bf16.msra.mxu0 %v23002_v28  ;;  %v23055_v28 = vld [vmem:[#allocation8 + $0xcc] ss:$20 sps:$4 sm:$0xff]  }
 0x677   :  { %13691 = vmatpush1.bf16.msra.mxu1 %v23005_v29  ;;  %13200 = vmatprep.subr.bf16.mxu0 %v23010_v30  ;;  %v23050_v29 = vld [vmem:[#allocation5 + $0x1b0] ss:$40 sps:$4 sm:$0xff]  }
 0x678   :  { %13692 = vmatprep.subr.bf16.mxu1 %v23013_v33  ;;  %v23053_v30 = vld [vmem:[#allocation8 + $0xc8] ss:$20 sps:$4 sm:$0xff]  }
 0x679   :  { %v23058_v33 = vld [vmem:[#allocation5 + $0x204] ss:$40 sps:$4 sm:$0xff]  }
 0x67a   :  { %13201 = vmatpush1.bf16.msra.mxu0 %v23008_v35  ;;  %v23056_v35 = vld [vmem:[#allocation5 + $0x200] ss:$40 sps:$4 sm:$0xff]  }
 0x67b   :  { %13693 = vmatpush1.bf16.msra.mxu1 %v23011_v37  ;;  %13202 = vmatprep.subr.bf16.mxu0 %v23016_v39  ;;  %v23059_v37 = vld [vmem:[#allocation8 + $0xf0] ss:$20 sps:$4 sm:$0xff]  }
 0x67c   :  { %13694 = vmatprep.subr.bf16.mxu1 %v23019_v40  ;;  %v23064_v39 = vld [vmem:[#allocation5 + $0x254] ss:$40 sps:$4 sm:$0xff]  }
 0x67d   :  { %v23067_v40 = vld [vmem:[#allocation8 + $0x11c] ss:$20 sps:$4 sm:$0xff]  }
 0x67e   :  { %13203 = vmatpush1.bf16.msra.mxu0 %v23014_v44  ;;  %v23065_v44 = vld [vmem:[#allocation8 + $0x118] ss:$20 sps:$4 sm:$0xff]  }
 0x67f   :  { %13695 = vmatpush1.bf16.msra.mxu1 %v23017_v45  ;;  %13705 = vmatprep.subr.bf16.mxu0 %v23022_v50  ;;  %v23070_v45 = vld [vmem:[#allocation5 + $0x2a4] ss:$40 sps:$4 sm:$0xff]  }
 0x680   :  { %16804 = vmatprep.subr.bf16.mxu1 %v23025_v51  ;;  %v23073_v50 = vld [vmem:[#allocation8 + $0x144] ss:$20 sps:$4 sm:$0xff]  }
 0x681   :  { %13205 = vmatmul.mubr.bf16.vlgmr.msra.gmra.mrb[4].mxu0 %v24615_v47  ;;  %v23068_v51 = vld [vmem:[#allocation5 + $0x2a0] ss:$40 sps:$4 sm:$0xff]  }
 0x682   :  { %13697 = vmatmul.mubr.bf16.vlgmr.msra.gmra.mrb[4].mxu1 %v24615_v47  ;;  %13706 = vmatpush1.bf16.msra.mxu0 %v23020_v54  ;;  %v23076_v54 = vld [vmem:[#allocation5 + $0x2f4] ss:$40 sps:$4 sm:$0xff]  }
 0x683   :  { %16805 = vmatpush1.bf16.msra.mxu1 %v23023_v55  ;;  %16836 = vmatprep.mubr.bf16.mxu1 %v24683_v58  ;;  %v23079_v55 = vld [vmem:[#allocation8 + $0x16c] ss:$20 sps:$4 sm:$0xff]  }
 0x684   :  { %13707 = vmatprep.subr.bf16.mxu0 %v23028_v56  ;;  %16806 = vmatprep.subr.bf16.mxu1 %v23031_v57  ;;  %v23074_v56 = vld [vmem:[#allocation5 + $0x2f0] ss:$40 sps:$4 sm:$0xff]  }
 0x685   :  { %13737 = vmatprep.mubr.bf16.mxu0 %v24523_v48  ;;  %v23047_v48 = vld [vmem:[#allocation8 + $0xa0] ss:$20 sps:$4 sm:$0xff]   ;;  %v23077_v57 = vld [vmem:[#allocation8 + $0x168] ss:$20 sps:$4 sm:$0xff]  }
 0x686   :  { %13708 = vmatpush1.bf16.msra.mxu0 %v23026_v11  ;;  %v23082_v11 = vld [vmem:[#allocation5 + $0x344] ss:$40 sps:$4 sm:$0xff]  }
 0x687   :  { %16807 = vmatpush1.bf16.msra.mxu1 %v23029_v59  ;;  %13709 = vmatprep.subr.bf16.mxu0 %v23034_v60  ;;  %v23085_v59 = vld [vmem:[#allocation8 + $0x194] ss:$20 sps:$4 sm:$0xff]  }
 0x688   :  { %16808 = vmatprep.subr.bf16.mxu1 %v23037_v61  ;;  %v23080_v60 = vld [vmem:[#allocation5 + $0x340] ss:$40 sps:$4 sm:$0xff]   ;;  %v23083_v61 = vld [vmem:[#allocation8 + $0x190] ss:$20 sps:$4 sm:$0xff]  }
 0x68a   :  { %13710 = vmatpush1.bf16.msra.mxu0 %v23032_v63  ;;  %v23088_v63 = vld [vmem:[#allocation5 + $0x394] ss:$40 sps:$4 sm:$0xff]  }
 0x68b   :  { %16809 = vmatpush1.bf16.msra.mxu1 %v23035_v0  ;;  %13711 = vmatprep.subr.bf16.mxu0 %v23040_v1  ;;  %v23091_v0 = vld [vmem:[#allocation8 + $0x1bc] ss:$20 sps:$4 sm:$0xff]  }
 0x68c   :  { %16810 = vmatprep.subr.bf16.mxu1 %v23043_v2  ;;  %v23086_v1 = vld [vmem:[#allocation5 + $0x390] ss:$40 sps:$4 sm:$0xff]  }
 0x68d   :  { %v23089_v2 = vld [vmem:[#allocation8 + $0x1b8] ss:$20 sps:$4 sm:$0xff]  }
 0x68e   :  { %13712 = vmatpush1.bf16.msra.mxu0 %v23038_v6  ;;  %v23094_v6 = vld [vmem:[#allocation5 + $0x3e4] ss:$40 sps:$4 sm:$0xff]  }
 0x68f   :  { %16811 = vmatpush1.bf16.msra.mxu1 %v23041_v15  ;;  %13713 = vmatprep.subr.bf16.mxu0 %v23046_v19  ;;  %v23097_v15 = vld [vmem:[#allocation8 + $0x1e4] ss:$20 sps:$4 sm:$0xff]  }
 0x690   :  { %16812 = vmatprep.subr.bf16.mxu1 %v23049_v20  ;;  %v23092_v19 = vld [vmem:[#allocation5 + $0x3e0] ss:$40 sps:$4 sm:$0xff]  }
 0x691   :  { %v23095_v20 = vld [vmem:[#allocation8 + $0x1e0] ss:$20 sps:$4 sm:$0xff]  }
 0x692   :  { %13714 = vmatpush1.bf16.msra.mxu0 %v23044_v21  ;;  %v24690_v21 = vsub.s32 0, %v24673_v16 }
 0x693   :  { %16813 = vmatpush1.bf16.msra.mxu1 %v23047_v48  ;;  %13715 = vmatprep.subr.bf16.mxu0 %v23052_v23  ;;  %v23100_v48 = vld [vmem:[#allocation5 + $0x434] ss:$40 sps:$4 sm:$0xff]  }
 0x694   :  { %16814 = vmatprep.subr.bf16.mxu1 %v23055_v28  ;;  %v23103_v23 = vld [vmem:[#allocation8 + $0x20c] ss:$20 sps:$4 sm:$0xff]   ;;  %v2101_v28 = vsub.s32 3, %v24673_v16 }
 0x696   :  { %13716 = vmatpush1.bf16.msra.mxu0 %v23050_v29  ;;  %v23098_v29 = vld [vmem:[#allocation5 + $0x430] ss:$40 sps:$4 sm:$0xff]  }
 0x697   :  { %16815 = vmatpush1.bf16.msra.mxu1 %v23053_v30  ;;  %13717 = vmatprep.subr.bf16.mxu0 %v23058_v33  ;;  %v23101_v30 = vld [vmem:[#allocation8 + $0x208] ss:$20 sps:$4 sm:$0xff]   ;;  %v2090_v33 = vrot.slane %v24678_v27, %v24690_v21 }
 0x698   :  { %16816 = vmatprep.subr.bf16.mxu1 %v23061_v34  ;;  %v23106_v34 = vld [vmem:[#allocation5 + $0x484] ss:$40 sps:$4 sm:$0xff]  }
 0x69a   :  { %13718 = vmatpush1.bf16.msra.mxu0 %v23056_v35  ;;  %v23109_v35 = vld [vmem:[#allocation8 + $0x234] ss:$20 sps:$4 sm:$0xff]  }
 0x69b   :  { %16817 = vmatpush1.bf16.msra.mxu1 %v23059_v37  ;;  %13719 = vmatprep.subr.bf16.mxu0 %v23064_v39  ;;  %v2102_v37 = vrot.slane %v24678_v27, %v2101_v28  ;;  %v23104_v39 = vld [vmem:[#allocation5 + $0x480] ss:$40 sps:$4 sm:$0xff]  }
 0x69c   :  { %16818 = vmatprep.subr.bf16.mxu1 %v23067_v40  ;;  %v23107_v40 = vld [vmem:[#allocation8 + $0x230] ss:$20 sps:$4 sm:$0xff]  }
 0x69e   :  { %13720 = vmatpush1.bf16.msra.mxu0 %v23062_v41  ;;  %v20434_v41 = vadd.f32 %v24633_v8, %v2090_v33  ;;  %v23119_v8 = vld [vmem:[#allocation8 + $0x280] ss:$20 sps:$4 sm:$0xff]  }
 0x69f   :  { %16819 = vmatpush1.bf16.msra.mxu1 %v23065_v44  ;;  %13721 = vmatprep.subr.bf16.mxu0 %v23070_v45  ;;  %v23112_v44 = vld [vmem:[#allocation5 + $0x4d4] ss:$40 sps:$4 sm:$0xff]  }
 0x6a0   :  { %16820 = vmatprep.subr.bf16.mxu1 %v23073_v50  ;;  %v23115_v45 = vld [vmem:[#allocation8 + $0x25c] ss:$20 sps:$4 sm:$0xff]   ;;  %v20437_v50 = vadd.f32 %v24639_v12, %v2102_v37  ;;  %v23127_v12 = vld [vmem:[#allocation8 + $0x2ac] ss:$20 sps:$4 sm:$0xff]  }
 0x6a1   :  { %v23148_v33 = vld [vmem:[#allocation5 + $0x6b4] ss:$40 sps:$4 sm:$0xff]  }
 0x6a2   :  { %13722 = vmatpush1.bf16.msra.mxu0 %v23068_v51  ;;  %v23110_v51 = vld [vmem:[#allocation5 + $0x4d0] ss:$40 sps:$4 sm:$0xff]  }
 0x6a3   :  { %16821 = vmatpush1.bf16.msra.mxu1 %v23071_v53  ;;  %13723 = vmatprep.subr.bf16.mxu0 %v23076_v54  ;;  %v23113_v53 = vld [vmem:[#allocation8 + $0x258] ss:$20 sps:$4 sm:$0xff]   ;;  %v14197_v54 = vmax.f32 %v20434_v41, 0.0  ;;  %v23149_v37 = vld [vmem:[#allocation8 + $0x348] ss:$20 sps:$4 sm:$0xff]  }
 0x6a4   :  { %16822 = vmatprep.subr.bf16.mxu1 %v23079_v55  ;;  %v23118_v55 = vld [vmem:[#allocation5 + $0x524] ss:$40 sps:$4 sm:$0xff]   ;;  %v23152_v41 = vld [vmem:[#allocation5 + $0x700] ss:$40 sps:$4 sm:$0xff]  }
 0x6a6   :  { %13724 = vmatpush1.bf16.msra.mxu0 %v23074_v56  ;;  %v23121_v56 = vld [vmem:[#allocation8 + $0x284] ss:$20 sps:$4 sm:$0xff]  }
 0x6a7   :  { %16823 = vmatpush1.bf16.msra.mxu1 %v23077_v57  ;;  %13725 = vmatprep.subr.bf16.mxu0 %v23082_v11  ;;  %v14200_v57 = vmax.f32 %v20437_v50, 0.0  ;;  %v23116_v11 = vld [vmem:[#allocation5 + $0x520] ss:$40 sps:$4 sm:$0xff]  }
 0x6a8   :  { %16824 = vmatprep.subr.bf16.mxu1 %v23085_v59  ;;  %v24700_v59 = vpack.c.bf16 %v14197_v54, %v14197_v54  ;;  %v23163_v50 = vld [vmem:[#allocation8 + $0x39c] ss:$20 sps:$4 sm:$0xff]  }
 0x6a9   :  { %v23166_v54 = vld [vmem:[#allocation5 + $0x7a4] ss:$40 sps:$4 sm:$0xff]  }
 0x6aa   :  { %13726 = vmatpush1.bf16.msra.mxu0 %v23080_v60  ;;  %v23124_v60 = vld [vmem:[#allocation5 + $0x574] ss:$40 sps:$4 sm:$0xff]  }
 0x6ab   :  { %16825 = vmatpush1.bf16.msra.mxu1 %v23083_v61  ;;  %13727 = vmatprep.subr.bf16.mxu0 %v23088_v63  ;;  %v24702_v61 = vpack.c.bf16 %v14200_v57, %v14200_v57  ;;  %v23122_v63 = vld [vmem:[#allocation5 + $0x570] ss:$40 sps:$4 sm:$0xff]   ;;  %v23167_v57 = vld [vmem:[#allocation8 + $0x3c0] ss:$20 sps:$4 sm:$0xff]  }
 0x6ac   :  { %16826 = vmatprep.subr.bf16.mxu1 %v23091_v0  ;;  %v23125_v0 = vld [vmem:[#allocation8 + $0x2a8] ss:$20 sps:$4 sm:$0xff]  }
 0x6ae   :  { %13728 = vmatpush1.bf16.msra.mxu0 %v23086_v1  ;;  %v23130_v1 = vld [vmem:[#allocation5 + $0x5c4] ss:$40 sps:$4 sm:$0xff]  }
 0x6af   :  { %16827 = vmatpush1.bf16.msra.mxu1 %v23089_v2  ;;  %13729 = vmatprep.subr.bf16.mxu0 %v23094_v6  ;;  %v23133_v2 = vld [vmem:[#allocation8 + $0x2d4] ss:$20 sps:$4 sm:$0xff]  }
 0x6b0   :  { %16828 = vmatprep.subr.bf16.mxu1 %v23097_v15  ;;  %v23128_v6 = vld [vmem:[#allocation5 + $0x5c0] ss:$40 sps:$4 sm:$0xff]   ;;  %v23131_v15 = vld [vmem:[#allocation8 + $0x2d0] ss:$20 sps:$4 sm:$0xff]  }
 0x6b2   :  { %13730 = vmatpush1.bf16.msra.mxu0 %v23092_v19  ;;  %v23136_v19 = vld [vmem:[#allocation5 + $0x614] ss:$40 sps:$4 sm:$0xff]  }
 0x6b3   :  { %16829 = vmatpush1.bf16.msra.mxu1 %v23095_v20  ;;  %13731 = vmatprep.subr.bf16.mxu0 %v23100_v48  ;;  %v23134_v20 = vld [vmem:[#allocation5 + $0x610] ss:$40 sps:$4 sm:$0xff]  }
 0x6b4   :  { %16830 = vmatprep.subr.bf16.mxu1 %v23103_v23  ;;  %v23137_v48 = vld [vmem:[#allocation8 + $0x2f8] ss:$20 sps:$4 sm:$0xff]  }
 0x6b5   :  { %v23142_v23 = vld [vmem:[#allocation5 + $0x664] ss:$40 sps:$4 sm:$0xff]  }
 0x6b6   :  { %13732 = vmatpush1.bf16.msra.mxu0 %v23098_v29  ;;  %v23145_v29 = vld [vmem:[#allocation8 + $0x324] ss:$20 sps:$4 sm:$0xff]  }
 0x6b7   :  { %16831 = vmatpush1.bf16.msra.mxu1 %v23101_v30  ;;  %13733 = vmatprep.subr.bf16.mxu0 %v23106_v34  ;;  %v23140_v30 = vld [vmem:[#allocation5 + $0x660] ss:$40 sps:$4 sm:$0xff]  }
 0x6b8   :  { %16832 = vmatprep.subr.bf16.mxu1 %v23109_v35  ;;  %v23151_v34 = vld [vmem:[#allocation8 + $0x34c] ss:$20 sps:$4 sm:$0xff]  }
 0x6b9   :  { %v23146_v35 = vld [vmem:[#allocation5 + $0x6b0] ss:$40 sps:$4 sm:$0xff]  }
 0x6ba   :  { %13734 = vmatpush1.bf16.msra.mxu0 %v23104_v39  ;;  %v23154_v39 = vld [vmem:[#allocation5 + $0x704] ss:$40 sps:$4 sm:$0xff]  }
 0x6bb   :  { %16833 = vmatpush1.bf16.msra.mxu1 %v23107_v40  ;;  %13735 = vmatprep.subr.bf16.mxu0 %v23112_v44  ;;  %v23157_v40 = vld [vmem:[#allocation8 + $0x374] ss:$20 sps:$4 sm:$0xff]   ;;  %v23155_v44 = vld [vmem:[#allocation8 + $0x370] ss:$20 sps:$4 sm:$0xff]  }
 0x6bc   :  { %16834 = vmatprep.subr.bf16.mxu1 %v23115_v45  ;;  %v23160_v45 = vld [vmem:[#allocation5 + $0x754] ss:$40 sps:$4 sm:$0xff]  }
 0x6be   :  { %13736 = vmatpush1.bf16.msra.mxu0 %v23110_v51  ;;  %v23158_v51 = vld [vmem:[#allocation5 + $0x750] ss:$40 sps:$4 sm:$0xff]  }
 0x6bf   :  { %16835 = vmatpush1.bf16.msra.mxu1 %v23113_v53  ;;  %13746 = vmatprep.subr.bf16.mxu0 %v23118_v55  ;;  %v23161_v53 = vld [vmem:[#allocation8 + $0x398] ss:$20 sps:$4 sm:$0xff]  }
 0x6c0   :  { %16845 = vmatprep.subr.bf16.mxu1 %v23121_v56  ;;  %v23169_v55 = vld [vmem:[#allocation8 + $0x3c4] ss:$20 sps:$4 sm:$0xff]  }
 0x6c1   :  { %13738 = vmatmul.mubr.bf16.vlgmr.msra.gmra.mrb[8].mxu0 %v24527_v5  ;;  %v23139_v5 = vld [vmem:[#allocation8 + $0x2fc] ss:$20 sps:$4 sm:$0xff]  }
 0x6c2   :  { %16837 = vmatmul.mubr.bf16.vlgmr.msra.gmra.mrb[8].mxu1 %v24700_v59  ;;  %13747 = vmatpush1.bf16.msra.mxu0 %v23116_v11  ;;  %v23164_v56 = vld [vmem:[#allocation5 + $0x7a0] ss:$40 sps:$4 sm:$0xff]   ;;  %v23172_v11 = vld [vmem:[#allocation5 + $0x7f4] ss:$40 sps:$4 sm:$0xff]  }
 0x6c3   :  { %16846 = vmatpush1.bf16.msra.mxu1 %v23119_v8  ;;  %16877 = vmatprep.mubr.bf16.mxu1 %v24702_v61  ;;  %v23175_v8 = vld [vmem:[#allocation8 + $0x3ec] ss:$20 sps:$4 sm:$0xff]  }
 0x6c4   :  { %13748 = vmatprep.subr.bf16.mxu0 %v23124_v60  ;;  %16847 = vmatprep.subr.bf16.mxu1 %v23127_v12  ;;  %v23170_v60 = vld [vmem:[#allocation5 + $0x7f0] ss:$40 sps:$4 sm:$0xff]  }
 0x6c5   :  { %13778 = vmatprep.mubr.bf16.mxu0 %v24531_v32  ;;  %v23143_v32 = vld [vmem:[#allocation8 + $0x320] ss:$20 sps:$4 sm:$0xff]   ;;  %v23173_v12 = vld [vmem:[#allocation8 + $0x3e8] ss:$20 sps:$4 sm:$0xff]  }
 0x6c6   :  { %13749 = vmatpush1.bf16.msra.mxu0 %v23122_v63  ;;  %v23178_v63 = vld [vmem:[#allocation5 + $0x844] ss:$40 sps:$4 sm:$0xff]  }
 0x6c7   :  { %16848 = vmatpush1.bf16.msra.mxu1 %v23125_v0  ;;  %13750 = vmatprep.subr.bf16.mxu0 %v23130_v1  ;;  %v23181_v0 = vld [vmem:[#allocation8 + $0x414] ss:$20 sps:$4 sm:$0xff]  }
 0x6c8   :  { %16849 = vmatprep.subr.bf16.mxu1 %v23133_v2  ;;  %v23176_v1 = vld [vmem:[#allocation5 + $0x840] ss:$40 sps:$4 sm:$0xff]   ;;  %v23179_v2 = vld [vmem:[#allocation8 + $0x410] ss:$20 sps:$4 sm:$0xff]  }
 0x6ca   :  { %13751 = vmatpush1.bf16.msra.mxu0 %v23128_v6  ;;  %v23184_v6 = vld [vmem:[#allocation5 + $0x894] ss:$40 sps:$4 sm:$0xff]  }
 0x6cb   :  { %16850 = vmatpush1.bf16.msra.mxu1 %v23131_v15  ;;  %13752 = vmatprep.subr.bf16.mxu0 %v23136_v19  ;;  %v23187_v15 = vld [vmem:[#allocation8 + $0x43c] ss:$20 sps:$4 sm:$0xff]  }
 0x6cc   :  { %16851 = vmatprep.subr.bf16.mxu1 %v23139_v5  ;;  %v23182_v19 = vld [vmem:[#allocation5 + $0x890] ss:$40 sps:$4 sm:$0xff]  }
 0x6cd   :  { %v23185_v5 = vld [vmem:[#allocation8 + $0x438] ss:$20 sps:$4 sm:$0xff]  }
 0x6ce   :  { %13753 = vmatpush1.bf16.msra.mxu0 %v23134_v20  ;;  %v23190_v20 = vld [vmem:[#allocation5 + $0x8e4] ss:$40 sps:$4 sm:$0xff]  }
 0x6cf   :  { %16852 = vmatpush1.bf16.msra.mxu1 %v23137_v48  ;;  %13754 = vmatprep.subr.bf16.mxu0 %v23142_v23  ;;  %v23193_v48 = vld [vmem:[#allocation8 + $0x464] ss:$20 sps:$4 sm:$0xff]  }
 0x6d0   :  { %16853 = vmatprep.subr.bf16.mxu1 %v23145_v29  ;;  %v23188_v23 = vld [vmem:[#allocation5 + $0x8e0] ss:$40 sps:$4 sm:$0xff]  }
 0x6d1   :  { %v23191_v29 = vld [vmem:[#allocation8 + $0x460] ss:$20 sps:$4 sm:$0xff]  }
 0x6d2   :  { %13755 = vmatpush1.bf16.msra.mxu0 %v23140_v30  ;;  %v2097_v30 = vsub.s32 2, %v24673_v16 }
 0x6d3   :  { %16854 = vmatpush1.bf16.msra.mxu1 %v23143_v32  ;;  %13756 = vmatprep.subr.bf16.mxu0 %v23148_v33  ;;  %v23196_v32 = vld [vmem:[#allocation5 + $0x934] ss:$40 sps:$4 sm:$0xff]  }
 0x6d4   :  { %16855 = vmatprep.subr.bf16.mxu1 %v23151_v34  ;;  %v23199_v33 = vld [vmem:[#allocation8 + $0x48c] ss:$20 sps:$4 sm:$0xff]  }
 0x6d5   :  { %v23194_v34 = vld [vmem:[#allocation5 + $0x930] ss:$40 sps:$4 sm:$0xff]  }
 0x6d6   :  { %13757 = vmatpush1.bf16.msra.mxu0 %v23146_v35  ;;  %v23197_v35 = vld [vmem:[#allocation8 + $0x488] ss:$20 sps:$4 sm:$0xff]  }
 0x6d7   :  { %16856 = vmatpush1.bf16.msra.mxu1 %v23149_v37  ;;  %13758 = vmatprep.subr.bf16.mxu0 %v23154_v39  ;;  %v2098_v37 = vrot.slane %v24678_v27, %v2097_v30  ;;  %v23202_v39 = vld [vmem:[#allocation5 + $0x984] ss:$40 sps:$4 sm:$0xff]  }
 0x6d8   :  { %16857 = vmatprep.subr.bf16.mxu1 %v23157_v40  ;;  %v23205_v40 = vld [vmem:[#allocation8 + $0x4b4] ss:$20 sps:$4 sm:$0xff]  }
 0x6da   :  { %13759 = vmatpush1.bf16.msra.mxu0 %v23152_v41  ;;  %v23200_v41 = vld [vmem:[#allocation5 + $0x980] ss:$40 sps:$4 sm:$0xff]  }
 0x6db   :  { %16858 = vmatpush1.bf16.msra.mxu1 %v23155_v44  ;;  %13760 = vmatprep.subr.bf16.mxu0 %v23160_v45  ;;  %v23203_v44 = vld [vmem:[#allocation8 + $0x4b0] ss:$20 sps:$4 sm:$0xff]   ;;  %v20436_v45 = vadd.f32 %v24635_v9, %v2098_v37 }
 0x6dc   :  { %16859 = vmatprep.subr.bf16.mxu1 %v23163_v50  ;;  %v23208_v50 = vld [vmem:[#allocation5 + $0x9d4] ss:$40 sps:$4 sm:$0xff]   ;;  %v23232_v37 = vld [vmem:[#allocation5 + $0xc04] ss:$40 sps:$4 sm:$0xff]  }
 0x6dd   :  { %v23217_v9 = vld [vmem:[#allocation5 + $0xa74] ss:$40 sps:$4 sm:$0xff]  }
 0x6de   :  { %13761 = vmatpush1.bf16.msra.mxu0 %v23158_v51  ;;  %v23211_v51 = vld [vmem:[#allocation8 + $0x4dc] ss:$20 sps:$4 sm:$0xff]  }
 0x6df   :  { %16860 = vmatpush1.bf16.msra.mxu1 %v23161_v53  ;;  %13762 = vmatprep.subr.bf16.mxu0 %v23166_v54  ;;  %v23206_v53 = vld [vmem:[#allocation5 + $0x9d0] ss:$40 sps:$4 sm:$0xff]  }
 0x6e0   :  { %16861 = vmatprep.subr.bf16.mxu1 %v23169_v55  ;;  %v23209_v54 = vld [vmem:[#allocation8 + $0x4d8] ss:$20 sps:$4 sm:$0xff]   ;;  %v14199_v55 = vmax.f32 %v20436_v45, 0.0  ;;  %v23277_v45 = vld [vmem:[#allocation8 + $0x61c] ss:$20 sps:$4 sm:$0xff]  }
 0x6e2   :  { %13763 = vmatpush1.bf16.msra.mxu0 %v23164_v56  ;;  %v23214_v56 = vld [vmem:[#allocation5 + $0xa24] ss:$40 sps:$4 sm:$0xff]  }
 0x6e3   :  { %16862 = vmatpush1.bf16.msra.mxu1 %v23167_v57  ;;  %13764 = vmatprep.subr.bf16.mxu0 %v23172_v11  ;;  %v23235_v57 = vld [vmem:[#allocation8 + $0x504] ss:$20 sps:$4 sm:$0xff]  }
 0x6e4   :  { %16863 = vmatprep.subr.bf16.mxu1 %v23175_v8  ;;  %v23212_v11 = vld [vmem:[#allocation5 + $0xa20] ss:$40 sps:$4 sm:$0xff]  }
 0x6e5   :  { %v23233_v8 = vld [vmem:[#allocation8 + $0x500] ss:$20 sps:$4 sm:$0xff]  }
 0x6e6   :  { %13765 = vmatpush1.bf16.msra.mxu0 %v23170_v60  ;;  %v24713_v60 = vpack.c.bf16 %v14199_v55, %v14199_v55  ;;  %v23242_v55 = vld [vmem:[#allocation5 + $0xca0] ss:$40 sps:$4 sm:$0xff]  }
 0x6e7   :  { %16864 = vmatpush1.bf16.msra.mxu1 %v23173_v12  ;;  %13766 = vmatprep.subr.bf16.mxu0 %v23178_v63  ;;  %v23241_v12 = vld [vmem:[#allocation8 + $0x52c] ss:$20 sps:$4 sm:$0xff]  }
 0x6e8   :  { %16865 = vmatprep.subr.bf16.mxu1 %v23181_v0  ;;  %v23215_v63 = vld [vmem:[#allocation5 + $0xa70] ss:$40 sps:$4 sm:$0xff]  }
 0x6e9   :  { %v23239_v0 = vld [vmem:[#allocation8 + $0x528] ss:$20 sps:$4 sm:$0xff]  }
 0x6ea   :  { %13767 = vmatpush1.bf16.msra.mxu0 %v23176_v1  ;;  %v23220_v1 = vld [vmem:[#allocation5 + $0xac4] ss:$40 sps:$4 sm:$0xff]  }
 0x6eb   :  { %16866 = vmatpush1.bf16.msra.mxu1 %v23179_v2  ;;  %13768 = vmatprep.subr.bf16.mxu0 %v23184_v6  ;;  %v23247_v2 = vld [vmem:[#allocation8 + $0x554] ss:$20 sps:$4 sm:$0xff]  }
 0x6ec   :  { %16867 = vmatprep.subr.bf16.mxu1 %v23187_v15  ;;  %v23218_v6 = vld [vmem:[#allocation5 + $0xac0] ss:$40 sps:$4 sm:$0xff]   ;;  %v23245_v15 = vld [vmem:[#allocation8 + $0x550] ss:$20 sps:$4 sm:$0xff]  }
 0x6ee   :  { %13769 = vmatpush1.bf16.msra.mxu0 %v23182_v19  ;;  %v23223_v19 = vld [vmem:[#allocation5 + $0xb14] ss:$40 sps:$4 sm:$0xff]  }
 0x6ef   :  { %16868 = vmatpush1.bf16.msra.mxu1 %v23185_v5  ;;  %13770 = vmatprep.subr.bf16.mxu0 %v23190_v20  ;;  %v23253_v5 = vld [vmem:[#allocation8 + $0x57c] ss:$20 sps:$4 sm:$0xff]   ;;  %v23251_v20 = vld [vmem:[#allocation8 + $0x578] ss:$20 sps:$4 sm:$0xff]  }
 0x6f0   :  { %16869 = vmatprep.subr.bf16.mxu1 %v23193_v48  ;;  %v23226_v48 = vld [vmem:[#allocation5 + $0xb64] ss:$40 sps:$4 sm:$0xff]  }
 0x6f2   :  { %13771 = vmatpush1.bf16.msra.mxu0 %v23188_v23  ;;  %v23259_v23 = vld [vmem:[#allocation8 + $0x5a4] ss:$20 sps:$4 sm:$0xff]  }
 0x6f3   :  { %16870 = vmatpush1.bf16.msra.mxu1 %v23191_v29  ;;  %13772 = vmatprep.subr.bf16.mxu0 %v23196_v32  ;;  %v23224_v29 = vld [vmem:[#allocation5 + $0xb60] ss:$40 sps:$4 sm:$0xff]   ;;  %v23229_v32 = vld [vmem:[#allocation5 + $0xbb4] ss:$40 sps:$4 sm:$0xff]  }
 0x6f4   :  { %16871 = vmatprep.subr.bf16.mxu1 %v23199_v33  ;;  %v23265_v33 = vld [vmem:[#allocation8 + $0x5cc] ss:$20 sps:$4 sm:$0xff]  }
 0x6f6   :  { %13773 = vmatpush1.bf16.msra.mxu0 %v23194_v34  ;;  %v23227_v34 = vld [vmem:[#allocation5 + $0xbb0] ss:$40 sps:$4 sm:$0xff]  }
 0x6f7   :  { %16872 = vmatpush1.bf16.msra.mxu1 %v23197_v35  ;;  %13774 = vmatprep.subr.bf16.mxu0 %v23202_v39  ;;  %v23263_v35 = vld [vmem:[#allocation8 + $0x5c8] ss:$20 sps:$4 sm:$0xff]  }
 0x6f8   :  { %16873 = vmatprep.subr.bf16.mxu1 %v23205_v40  ;;  %v23271_v39 = vld [vmem:[#allocation8 + $0x5f4] ss:$20 sps:$4 sm:$0xff]  }
 0x6f9   :  { %v23230_v40 = vld [vmem:[#allocation5 + $0xc00] ss:$40 sps:$4 sm:$0xff]  }
 0x6fa   :  { %13775 = vmatpush1.bf16.msra.mxu0 %v23200_v41  ;;  %v23269_v41 = vld [vmem:[#allocation8 + $0x5f0] ss:$20 sps:$4 sm:$0xff]  }
 0x6fb   :  { %16874 = vmatpush1.bf16.msra.mxu1 %v23203_v44  ;;  %13776 = vmatprep.subr.bf16.mxu0 %v23208_v50  ;;  %v23238_v44 = vld [vmem:[#allocation5 + $0xc54] ss:$40 sps:$4 sm:$0xff]   ;;  %v23236_v50 = vld [vmem:[#allocation5 + $0xc50] ss:$40 sps:$4 sm:$0xff]  }
 0x6fc   :  { %16875 = vmatprep.subr.bf16.mxu1 %v23211_v51  ;;  %v23275_v51 = vld [vmem:[#allocation8 + $0x618] ss:$20 sps:$4 sm:$0xff]  }
 0x6fe   :  { %13777 = vmatpush1.bf16.msra.mxu0 %v23206_v53  ;;  %v23244_v53 = vld [vmem:[#allocation5 + $0xca4] ss:$40 sps:$4 sm:$0xff]  }
 0x6ff   :  { %16876 = vmatpush1.bf16.msra.mxu1 %v23209_v54  ;;  %13787 = vmatprep.subr.bf16.mxu0 %v23214_v56  ;;  %v23283_v54 = vld [vmem:[#allocation8 + $0x644] ss:$20 sps:$4 sm:$0xff]   ;;  %v23281_v56 = vld [vmem:[#allocation8 + $0x640] ss:$20 sps:$4 sm:$0xff]  }
 0x700   :  { %16886 = vmatprep.subr.bf16.mxu1 %v23235_v57  ;;  %v23250_v57 = vld [vmem:[#allocation5 + $0xcf4] ss:$40 sps:$4 sm:$0xff]  }
 0x701   :  { %13779 = vmatmul.mubr.bf16.vlgmr.msra.gmra.mrb[8].mxu0 %v24535_v13  ;;  %v23221_v13 = vld [vmem:[#allocation5 + $0xb10] ss:$40 sps:$4 sm:$0xff]  }
 0x702   :  { %16878 = vmatmul.mubr.bf16.vlgmr.msra.gmra.mrb[8].mxu1 %v24713_v60  ;;  %13788 = vmatpush1.bf16.msra.mxu0 %v23212_v11  ;;  %v23289_v11 = vld [vmem:[#allocation8 + $0x66c] ss:$20 sps:$4 sm:$0xff]  }
 0x703   :  { %16887 = vmatpush1.bf16.msra.mxu1 %v23233_v8  ;;  %13789 = vmatprep.subr.bf16.mxu0 %v23217_v9  ;;  %v23248_v8 = vld [vmem:[#allocation5 + $0xcf0] ss:$40 sps:$4 sm:$0xff]  }
 0x704   :  { %16888 = vmatprep.subr.bf16.mxu1 %v23241_v12  ;;  %13819 = vmatprep.mubr.bf16.mxu0 %v24537_v17  ;;  %v23257_v17 = vld [vmem:[#allocation8 + $0x5a0] ss:$20 sps:$4 sm:$0xff]   ;;  %v23287_v9 = vld [vmem:[#allocation8 + $0x668] ss:$20 sps:$4 sm:$0xff]  }
 0x705   :  { %v23256_v12 = vld [vmem:[#allocation5 + $0xd44] ss:$40 sps:$4 sm:$0xff]  }
 0x706   :  { %13790 = vmatpush1.bf16.msra.mxu0 %v23215_v63  ;;  %v23295_v63 = vld [vmem:[#allocation8 + $0x694] ss:$20 sps:$4 sm:$0xff]  }
 0x707   :  { %16889 = vmatpush1.bf16.msra.mxu1 %v23239_v0  ;;  %13791 = vmatprep.subr.bf16.mxu0 %v23220_v1  ;;  %v23254_v0 = vld [vmem:[#allocation5 + $0xd40] ss:$40 sps:$4 sm:$0xff]   ;;  %v23293_v1 = vld [vmem:[#allocation8 + $0x690] ss:$20 sps:$4 sm:$0xff]  }
 0x708   :  { %16890 = vmatprep.subr.bf16.mxu1 %v23247_v2  ;;  %v23262_v2 = vld [vmem:[#allocation5 + $0xd94] ss:$40 sps:$4 sm:$0xff]  }
 0x70a   :  { %13792 = vmatpush1.bf16.msra.mxu0 %v23218_v6  ;;  %v23301_v6 = vld [vmem:[#allocation8 + $0x6bc] ss:$20 sps:$4 sm:$0xff]  }
 0x70b   :  { %16891 = vmatpush1.bf16.msra.mxu1 %v23245_v15  ;;  %13793 = vmatprep.subr.bf16.mxu0 %v23223_v19  ;;  %v23260_v15 = vld [vmem:[#allocation5 + $0xd90] ss:$40 sps:$4 sm:$0xff]  }
 0x70c   :  { %16892 = vmatprep.subr.bf16.mxu1 %v23253_v5  ;;  %v23299_v19 = vld [vmem:[#allocation8 + $0x6b8] ss:$20 sps:$4 sm:$0xff]  }
 0x70d   :  { %v23268_v5 = vld [vmem:[#allocation5 + $0xde4] ss:$40 sps:$4 sm:$0xff]  }
 0x70e   :  { %13794 = vmatpush1.bf16.msra.mxu0 %v23221_v13  ;;  %v23307_v13 = vld [vmem:[#allocation8 + $0x6e4] ss:$20 sps:$4 sm:$0xff]  }
 0x70f   :  { %16893 = vmatpush1.bf16.msra.mxu1 %v23251_v20  ;;  %13795 = vmatprep.subr.bf16.mxu0 %v23226_v48  ;;  %v23266_v20 = vld [vmem:[#allocation5 + $0xde0] ss:$40 sps:$4 sm:$0xff]  }
 0x710   :  { %16894 = vmatprep.subr.bf16.mxu1 %v23259_v23  ;;  %v23305_v48 = vld [vmem:[#allocation8 + $0x6e0] ss:$20 sps:$4 sm:$0xff]  }
 0x711   :  { %v23274_v23 = vld [vmem:[#allocation5 + $0xe34] ss:$40 sps:$4 sm:$0xff]  }
 0x712   :  { %13796 = vmatpush1.bf16.msra.mxu0 %v23224_v29  ;;  %v23313_v29 = vld [vmem:[#allocation8 + $0x70c] ss:$20 sps:$4 sm:$0xff]  }
 0x713   :  { %16895 = vmatpush1.bf16.msra.mxu1 %v23257_v17  ;;  %13797 = vmatprep.subr.bf16.mxu0 %v23229_v32  ;;  %v23272_v17 = vld [vmem:[#allocation5 + $0xe30] ss:$40 sps:$4 sm:$0xff]  }
 0x714   :  { %16896 = vmatprep.subr.bf16.mxu1 %v23265_v33  ;;  %v23311_v32 = vld [vmem:[#allocation8 + $0x708] ss:$20 sps:$4 sm:$0xff]  }
 0x715   :  { %v23280_v33 = vld [vmem:[#allocation5 + $0xe84] ss:$40 sps:$4 sm:$0xff]  }
 0x716   :  { %13798 = vmatpush1.bf16.msra.mxu0 %v23227_v34  ;;  %v23319_v34 = vld [vmem:[#allocation8 + $0x734] ss:$20 sps:$4 sm:$0xff]  }
 0x717   :  { %16897 = vmatpush1.bf16.msra.mxu1 %v23263_v35  ;;  %13799 = vmatprep.subr.bf16.mxu0 %v23232_v37  ;;  %v23278_v35 = vld [vmem:[#allocation5 + $0xe80] ss:$40 sps:$4 sm:$0xff]   ;;  %v23317_v37 = vld [vmem:[#allocation8 + $0x730] ss:$20 sps:$4 sm:$0xff]  }
 0x718   :  { %16898 = vmatprep.subr.bf16.mxu1 %v23271_v39  ;;  %v23286_v39 = vld [vmem:[#allocation5 + $0xed4] ss:$40 sps:$4 sm:$0xff]  }
 0x71a   :  { %13800 = vmatpush1.bf16.msra.mxu0 %v23230_v40  ;;  %v23325_v40 = vld [vmem:[#allocation8 + $0x75c] ss:$20 sps:$4 sm:$0xff]  }
 0x71b   :  { %16899 = vmatpush1.bf16.msra.mxu1 %v23269_v41  ;;  %13801 = vmatprep.subr.bf16.mxu0 %v23238_v44  ;;  %v23284_v41 = vld [vmem:[#allocation5 + $0xed0] ss:$40 sps:$4 sm:$0xff]  }
 0x71c   :  { %16900 = vmatprep.subr.bf16.mxu1 %v23277_v45  ;;  %v23323_v44 = vld [vmem:[#allocation8 + $0x758] ss:$20 sps:$4 sm:$0xff]  }
 0x71d   :  { %v23292_v45 = vld [vmem:[#allocation5 + $0xf24] ss:$40 sps:$4 sm:$0xff]  }
 0x71e   :  { %13802 = vmatpush1.bf16.msra.mxu0 %v23236_v50  ;;  %v23331_v50 = vld [vmem:[#allocation8 + $0x784] ss:$20 sps:$4 sm:$0xff]  }
 0x71f   :  { %16901 = vmatpush1.bf16.msra.mxu1 %v23275_v51  ;;  %13803 = vmatprep.subr.bf16.mxu0 %v23244_v53  ;;  %v23290_v51 = vld [vmem:[#allocation5 + $0xf20] ss:$40 sps:$4 sm:$0xff]   ;;  %v23298_v53 = vld [vmem:[#allocation5 + $0xf74] ss:$40 sps:$4 sm:$0xff]  }
 0x720   :  { %16902 = vmatprep.subr.bf16.mxu1 %v23283_v54  ;;  %v23296_v54 = vld [vmem:[#allocation5 + $0xf70] ss:$40 sps:$4 sm:$0xff]  }
 0x722   :  { %13804 = vmatpush1.bf16.msra.mxu0 %v23242_v55  ;;  %v23304_v55 = vld [vmem:[#allocation5 + $0xfc4] ss:$40 sps:$4 sm:$0xff]  }
 0x723   :  { %16903 = vmatpush1.bf16.msra.mxu1 %v23281_v56  ;;  %13805 = vmatprep.subr.bf16.mxu0 %v23250_v57  ;;  %v23302_v56 = vld [vmem:[#allocation5 + $0xfc0] ss:$40 sps:$4 sm:$0xff]   ;;  %v23310_v57 = vld [vmem:[#allocation5 + $0x1014] ss:$40 sps:$4 sm:$0xff]  }
 0x724   :  { %16904 = vmatprep.subr.bf16.mxu1 %v23289_v11  ;;  %v23308_v11 = vld [vmem:[#allocation5 + $0x1010] ss:$40 sps:$4 sm:$0xff]  }
 0x726   :  { %13806 = vmatpush1.bf16.msra.mxu0 %v23248_v8  ;;  %v23316_v8 = vld [vmem:[#allocation5 + $0x1064] ss:$40 sps:$4 sm:$0xff]  }
 0x727   :  { %16905 = vmatpush1.bf16.msra.mxu1 %v23287_v9  ;;  %13807 = vmatprep.subr.bf16.mxu0 %v23256_v12  ;;  %v2105_v9 = vsub.s32 4, %v24673_v16  ;;  %v23314_v12 = vld [vmem:[#allocation5 + $0x1060] ss:$40 sps:$4 sm:$0xff]  }
 0x728   :  { %16906 = vmatprep.subr.bf16.mxu1 %v23295_v63  ;;  %v2117_v63 = vsub.s32 7, %v24673_v16 }
 0x72a   :  { %13808 = vmatpush1.bf16.msra.mxu0 %v23254_v0  ;;  %v2106_v0 = vrot.slane %v24678_v27, %v2105_v9 }
 0x72b   :  { %16907 = vmatpush1.bf16.msra.mxu1 %v23293_v1  ;;  %13809 = vmatprep.subr.bf16.mxu0 %v23262_v2  ;;  %v2118_v2 = vrot.slane %v24678_v27, %v2117_v63  ;;  %v23352_v63 = vld [vmem:[#allocation5 + $0x1244] ss:$40 sps:$4 sm:$0xff]  }
 0x72c   :  { %16908 = vmatprep.subr.bf16.mxu1 %v23301_v6  ;;  %v23320_v6 = vld [vmem:[#allocation5 + $0x10b0] ss:$40 sps:$4 sm:$0xff]  }
 0x72e   :  { %13810 = vmatpush1.bf16.msra.mxu0 %v23260_v15  ;;  %v23328_v15 = vld [vmem:[#allocation5 + $0x1104] ss:$40 sps:$4 sm:$0xff]  }
 0x72f   :  { %16909 = vmatpush1.bf16.msra.mxu1 %v23299_v19  ;;  %13811 = vmatprep.subr.bf16.mxu0 %v23268_v5 }
 0x730   :  { %16910 = vmatprep.subr.bf16.mxu1 %v23307_v13 }
 0x732   :  { %13812 = vmatpush1.bf16.msra.mxu0 %v23266_v20 }
 0x733   :  { %16911 = vmatpush1.bf16.msra.mxu1 %v23305_v48  ;;  %13813 = vmatprep.subr.bf16.mxu0 %v23274_v23 }
 0x734   :  { %16912 = vmatprep.subr.bf16.mxu1 %v23313_v29 }
 0x736   :  { %13814 = vmatpush1.bf16.msra.mxu0 %v23272_v17 }
 0x737   :  { %16913 = vmatpush1.bf16.msra.mxu1 %v23311_v32  ;;  %13815 = vmatprep.subr.bf16.mxu0 %v23280_v33  ;;  %v23326_v33 = vld [vmem:[#allocation5 + $0x1100] ss:$40 sps:$4 sm:$0xff]  }
 0x738   :  { %16914 = vmatprep.subr.bf16.mxu1 %v23319_v34 }
 0x73a   :  { %13816 = vmatpush1.bf16.msra.mxu0 %v23278_v35 }
 0x73b   :  { %16915 = vmatpush1.bf16.msra.mxu1 %v23317_v37  ;;  %13817 = vmatprep.subr.bf16.mxu0 %v23286_v39 }
 0x73c   :  { %16916 = vmatprep.subr.bf16.mxu1 %v23325_v40 }
 0x73e   :  { %13818 = vmatpush1.bf16.msra.mxu0 %v23284_v41 }
 0x73f   :  { %16917 = vmatpush1.bf16.msra.mxu1 %v23323_v44  ;;  %13828 = vmatprep.subr.bf16.mxu0 %v23292_v45  ;;  %v23329_v44 = vld [vmem:[#allocation8 + $0x780] ss:$20 sps:$4 sm:$0xff]   ;;  %v23332_v45 = vld [vmem:[#allocation5 + $0x1150] ss:$40 sps:$4 sm:$0xff]  }
 0x740   :  { %16927 = vmatprep.subr.bf16.mxu1 %v23331_v50 }
 0x741   :  { %13820 = vmatmul.mubr.bf16.vlgmr.msra.gmra.mrb[8].mxu0 %v24543_v22  ;;  %v2109_v22 = vsub.s32 5, %v24673_v16 }
 0x742   :  { %13829 = vmatpush1.bf16.msra.mxu0 %v23290_v51  ;;  %13860 = vmatprep.mubr.bf16.mxu0 %v24545_v26  ;;  %v23322_v26 = vld [vmem:[#allocation5 + $0x10b4] ss:$40 sps:$4 sm:$0xff]  }
 0x743   :  { %13830 = vmatprep.subr.bf16.mxu0 %v23298_v53  ;;  %v2110_v1 = vrot.slane %v24678_v27, %v2109_v22  ;;  %v23334_v27 = vld [vmem:[#allocation5 + $0x1154] ss:$40 sps:$4 sm:$0xff]   ;;  %v23340_v53 = vld [vmem:[#allocation5 + $0x11a4] ss:$40 sps:$4 sm:$0xff]  }
 0x744   :  { %v23337_v51 = vld [vmem:[#allocation8 + $0x7ac] ss:$20 sps:$4 sm:$0xff]   ;;  %v23349_v22 = vld [vmem:[#allocation8 + $0x7fc] ss:$20 sps:$4 sm:$0xff]  }
 0x746   :  { %13831 = vmatpush1.bf16.msra.mxu0 %v23296_v54 }
 0x747   :  { %13832 = vmatprep.subr.bf16.mxu0 %v23304_v55  ;;  %v23335_v55 = vld [vmem:[#allocation8 + $0x7a8] ss:$20 sps:$4 sm:$0xff]  }
 0x74a   :  { %13833 = vmatpush1.bf16.msra.mxu0 %v23302_v56  ;;  %v23338_v56 = vld [vmem:[#allocation5 + $0x11a0] ss:$40 sps:$4 sm:$0xff]  }
 0x74b   :  { %13834 = vmatprep.subr.bf16.mxu0 %v23310_v57  ;;  %v23343_v57 = vld [vmem:[#allocation8 + $0x7d4] ss:$20 sps:$4 sm:$0xff]  }
 0x74e   :  { %13835 = vmatpush1.bf16.msra.mxu0 %v23308_v11  ;;  %v23346_v11 = vld [vmem:[#allocation5 + $0x11f4] ss:$40 sps:$4 sm:$0xff]  }
 0x74f   :  { %13836 = vmatprep.subr.bf16.mxu0 %v23316_v8  ;;  %v23341_v8 = vld [vmem:[#allocation8 + $0x7d0] ss:$20 sps:$4 sm:$0xff]  }
 0x752   :  { %13837 = vmatpush1.bf16.msra.mxu0 %v23314_v12  ;;  %v23344_v12 = vld [vmem:[#allocation5 + $0x11f0] ss:$40 sps:$4 sm:$0xff]  }
 0x753   :  { %13838 = vmatprep.subr.bf16.mxu0 %v23322_v26  ;;  %v23347_v26 = vld [vmem:[#allocation8 + $0x7f8] ss:$20 sps:$4 sm:$0xff]  }
 0x754   :  { %v13206_v19 = vpop.f32.mrb[4].mxu0 }
 0x755   :  { %v24728_v5 = vpop.f32.mrb[4].mxu1  ;;  %v20438_v13 = vadd.f32 %v13206_v19, %v2106_v0  ;;  %v13208_v20 = vpop.f32.mrb[5].mxu0  ;;  %v23350_v0 = vld [vmem:[#allocation5 + $0x1240] ss:$40 sps:$4 sm:$0xff]  }
 0x756   :  { %v13700_v48 = vpop.f32.mrb[5].mxu1  ;;  %v20439_v23 = vadd.f32 %v13208_v20, %v2110_v1  ;;  %v13210_v17 = vpop.f32.mrb[6].mxu0  ;;  %13839 = vmatpush1.bf16.msra.mxu0 %v23320_v6  ;;  %v23355_v1 = vld [vmem:[#allocation8 + $0x824] ss:$20 sps:$4 sm:$0xff]   ;;  %v23353_v6 = vld [vmem:[#allocation8 + $0x820] ss:$20 sps:$4 sm:$0xff]  }
 0x757   :  { %v20441_v29 = vadd.f32 %v13700_v48, %v2118_v2  ;;  %v13702_v32 = vpop.f32.mrb[6].mxu1  ;;  %v14201_v34 = vmax.f32 %v20438_v13, 0.0  ;;  %v13211_v35 = vpop.f32.mrb[7].mxu0  ;;  %13840 = vmatprep.subr.bf16.mxu0 %v23328_v15  ;;  %v23358_v2 = vld [vmem:[#allocation5 + $0x1294] ss:$40 sps:$4 sm:$0xff]  }
 0x758   :  { %v13703_v37 = vpop.f32.mrb[7].mxu1  ;;  %v14202_v39 = vmax.f32 %v20439_v23, 0.0  ;;  %v23356_v15 = vld [vmem:[#allocation5 + $0x1290] ss:$40 sps:$4 sm:$0xff]   ;;  %v23364_v13 = vld [vmem:[#allocation5 + $0x12e4] ss:$40 sps:$4 sm:$0xff]  }
 0x759   :  { %v14204_v40 = vmax.f32 %v20441_v29, 0.0  ;;  %v24732_v50 = vpack.c.bf16 %v14201_v34, %v14201_v34  ;;  %v23361_v19 = vld [vmem:[#allocation8 + $0x84c] ss:$20 sps:$4 sm:$0xff]   ;;  %v23359_v20 = vld [vmem:[#allocation8 + $0x848] ss:$20 sps:$4 sm:$0xff]  }
 0x75a   :  { %v24730_v41 = vpack.c.bf16 %v14202_v39, %v14202_v39  ;;  %13841 = vmatpush1.bf16.msra.mxu0 %v23326_v33  ;;  %v23362_v48 = vld [vmem:[#allocation5 + $0x12e0] ss:$40 sps:$4 sm:$0xff]   ;;  %v23370_v29 = vld [vmem:[#allocation5 + $0x1334] ss:$40 sps:$4 sm:$0xff]   ;;  %v23368_v32 = vld [vmem:[#allocation5 + $0x1330] ss:$40 sps:$4 sm:$0xff]  }
 0x75b   :  { %13842 = vmatprep.subr.bf16.mxu0 %v23334_v27  ;;  %v24735_v54 = vpack.c.bf16 %v14204_v40, %v14204_v40  ;;  %v23367_v23 = vld [vmem:[#allocation8 + $0x874] ss:$20 sps:$4 sm:$0xff]   ;;  %v23365_v17 = vld [vmem:[#allocation8 + $0x870] ss:$20 sps:$4 sm:$0xff]   ;;  %v23371_v35 = vld [vmem:[#allocation8 + $0x898] ss:$20 sps:$4 sm:$0xff]  }
 0x75c   :  { %16918 = vmatprep.mubr.bf16.mxu1 %v24730_v41  ;;  %v23373_v33 = vld [vmem:[#allocation8 + $0x89c] ss:$20 sps:$4 sm:$0xff]   ;;  %v23379_v27 = vld [vmem:[#allocation8 + $0x8c4] ss:$20 sps:$4 sm:$0xff]   ;;  %v23377_v40 = vld [vmem:[#allocation8 + $0x8c0] ss:$20 sps:$4 sm:$0xff]  }
 0x75d   :  { %16919 = vmatmul.mubr.bf16.vlgmr.msra.gmra.mrb[8].mxu1 %v24732_v50  ;;  %v23376_v34 = vld [vmem:[#allocation5 + $0x1384] ss:$40 sps:$4 sm:$0xff]   ;;  %v23374_v37 = vld [vmem:[#allocation5 + $0x1380] ss:$40 sps:$4 sm:$0xff]   ;;  %v23382_v39 = vld [vmem:[#allocation5 + $0x13d4] ss:$40 sps:$4 sm:$0xff]  }
 0x75e   :  { %16928 = vmatpush1.bf16.msra.mxu1 %v23329_v44  ;;  %13843 = vmatpush1.bf16.msra.mxu0 %v23332_v45  ;;  %v23380_v44 = vld [vmem:[#allocation5 + $0x13d0] ss:$40 sps:$4 sm:$0xff]  }
 0x75f   :  { %16959 = vmatprep.mubr.bf16.mxu1 %v24735_v54  ;;  %16929 = vmatprep.subr.bf16.mxu1 %v23337_v51  ;;  %v23385_v45 = vld [vmem:[#allocation8 + $0x8ec] ss:$20 sps:$4 sm:$0xff]  }
 0x760   :  { %13844 = vmatprep.subr.bf16.mxu0 %v23340_v53  ;;  %v23388_v51 = vld [vmem:[#allocation5 + $0x1424] ss:$40 sps:$4 sm:$0xff]  }
 0x761   :  { %v23383_v53 = vld [vmem:[#allocation8 + $0x8e8] ss:$20 sps:$4 sm:$0xff]  }
 0x762   :  { %16930 = vmatpush1.bf16.msra.mxu1 %v23335_v55  ;;  %13845 = vmatpush1.bf16.msra.mxu0 %v23338_v56  ;;  %v23386_v55 = vld [vmem:[#allocation5 + $0x1420] ss:$40 sps:$4 sm:$0xff]  }
 0x763   :  { %16931 = vmatprep.subr.bf16.mxu1 %v23343_v57  ;;  %13846 = vmatprep.subr.bf16.mxu0 %v23346_v11  ;;  %v23391_v56 = vld [vmem:[#allocation8 + $0x914] ss:$20 sps:$4 sm:$0xff]   ;;  %v23389_v11 = vld [vmem:[#allocation8 + $0x910] ss:$20 sps:$4 sm:$0xff]  }
 0x764   :  { %v23394_v57 = vld [vmem:[#allocation5 + $0x1474] ss:$40 sps:$4 sm:$0xff]  }
 0x766   :  { %16932 = vmatpush1.bf16.msra.mxu1 %v23341_v8  ;;  %13847 = vmatpush1.bf16.msra.mxu0 %v23344_v12  ;;  %v23392_v8 = vld [vmem:[#allocation5 + $0x1470] ss:$40 sps:$4 sm:$0xff]  }
 0x767   :  { %16933 = vmatprep.subr.bf16.mxu1 %v23349_v22  ;;  %13848 = vmatprep.subr.bf16.mxu0 %v23352_v63  ;;  %v23397_v12 = vld [vmem:[#allocation8 + $0x93c] ss:$20 sps:$4 sm:$0xff]   ;;  %v23395_v63 = vld [vmem:[#allocation8 + $0x938] ss:$20 sps:$4 sm:$0xff]  }
 0x768   :  { %v23400_v22 = vld [vmem:[#allocation5 + $0x14c4] ss:$40 sps:$4 sm:$0xff]  }
 0x76a   :  { %16934 = vmatpush1.bf16.msra.mxu1 %v23347_v26  ;;  %13849 = vmatpush1.bf16.msra.mxu0 %v23350_v0  ;;  %v23398_v26 = vld [vmem:[#allocation5 + $0x14c0] ss:$40 sps:$4 sm:$0xff]  }
 0x76b   :  { %16935 = vmatprep.subr.bf16.mxu1 %v23355_v1  ;;  %13850 = vmatprep.subr.bf16.mxu0 %v23358_v2  ;;  %v23403_v0 = vld [vmem:[#allocation8 + $0x964] ss:$20 sps:$4 sm:$0xff]   ;;  %v23406_v1 = vld [vmem:[#allocation5 + $0x1514] ss:$40 sps:$4 sm:$0xff]  }
 0x76c   :  { %v23404_v2 = vld [vmem:[#allocation5 + $0x1510] ss:$40 sps:$4 sm:$0xff]  }
 0x76e   :  { %16936 = vmatpush1.bf16.msra.mxu1 %v23353_v6  ;;  %13851 = vmatpush1.bf16.msra.mxu0 %v23356_v15  ;;  %v2113_v6 = vsub.s32 6, %v24673_v16  ;;  %v23409_v15 = vld [vmem:[#allocation8 + $0x98c] ss:$20 sps:$4 sm:$0xff]  }
 0x76f   :  { %16937 = vmatprep.subr.bf16.mxu1 %v23361_v19  ;;  %13852 = vmatprep.subr.bf16.mxu0 %v23364_v13  ;;  %v23412_v19 = vld [vmem:[#allocation5 + $0x1564] ss:$40 sps:$4 sm:$0xff]   ;;  %v23410_v13 = vld [vmem:[#allocation5 + $0x1560] ss:$40 sps:$4 sm:$0xff]  }
 0x772   :  { %16938 = vmatpush1.bf16.msra.mxu1 %v23359_v20  ;;  %13853 = vmatpush1.bf16.msra.mxu0 %v23362_v48  ;;  %v24196_v20 = vld [vmem:[#allocation7] sm:$0xff] }
 0x773   :  { %16939 = vmatprep.subr.bf16.mxu1 %v23367_v23  ;;  %13854 = vmatprep.subr.bf16.mxu0 %v23370_v29  ;;  %v2114_v48 = vrot.slane %v24196_v20, %v2113_v6  ;;  %v23415_v23 = vld [vmem:[#allocation8 + $0x9b4] ss:$20 sps:$4 sm:$0xff]   ;;  %v23454_v6 = vld [vmem:[#allocation5 + $0x1924] ss:$40 sps:$4 sm:$0xff]  }
 0x774   :  { %v23418_v29 = vld [vmem:[#allocation5 + $0x15b4] ss:$40 sps:$4 sm:$0xff]   ;;  %v23458_v20 = vld [vmem:[#allocation5 + $0x19c0] ss:$40 sps:$4 sm:$0xff]  }
 0x776   :  { %16940 = vmatpush1.bf16.msra.mxu1 %v23365_v17  ;;  %13855 = vmatpush1.bf16.msra.mxu0 %v23368_v32  ;;  %v23413_v17 = vld [vmem:[#allocation8 + $0x9b0] ss:$20 sps:$4 sm:$0xff]  }
 0x777   :  { %16941 = vmatprep.subr.bf16.mxu1 %v23373_v33  ;;  %13856 = vmatprep.subr.bf16.mxu0 %v23376_v34  ;;  %v23416_v32 = vld [vmem:[#allocation5 + $0x15b0] ss:$40 sps:$4 sm:$0xff]   ;;  %v20440_v33 = vadd.f32 %v24728_v5, %v2114_v48  ;;  %v23428_v5 = vld [vmem:[#allocation5 + $0x16a0] ss:$40 sps:$4 sm:$0xff]   ;;  %v23463_v48 = vld [vmem:[#allocation5 + $0x1a14] ss:$40 sps:$4 sm:$0xff]  }
 0x778   :  { %v23421_v34 = vld [vmem:[#allocation8 + $0x9dc] ss:$20 sps:$4 sm:$0xff]  }
 0x77a   :  { %16942 = vmatpush1.bf16.msra.mxu1 %v23371_v35  ;;  %13857 = vmatpush1.bf16.msra.mxu0 %v23374_v37  ;;  %v23424_v35 = vld [vmem:[#allocation5 + $0x1604] ss:$40 sps:$4 sm:$0xff]  }
 0x77b   :  { %16943 = vmatprep.subr.bf16.mxu1 %v23379_v27  ;;  %13858 = vmatprep.subr.bf16.mxu0 %v23382_v39  ;;  %v23419_v37 = vld [vmem:[#allocation8 + $0x9d8] ss:$20 sps:$4 sm:$0xff]   ;;  %v14203_v39 = vmax.f32 %v20440_v33, 0.0 }
 0x77c   :  { %v23422_v27 = vld [vmem:[#allocation5 + $0x1600] ss:$40 sps:$4 sm:$0xff]   ;;  %v23472_v33 = vld [vmem:[#allocation5 + $0x1b04] ss:$40 sps:$4 sm:$0xff]  }
 0x77e   :  { %16944 = vmatpush1.bf16.msra.mxu1 %v23377_v40  ;;  %13859 = vmatpush1.bf16.msra.mxu0 %v23380_v44  ;;  %v23427_v40 = vld [vmem:[#allocation5 + $0x1654] ss:$40 sps:$4 sm:$0xff]   ;;  %v23425_v44 = vld [vmem:[#allocation5 + $0x1650] ss:$40 sps:$4 sm:$0xff]  }
 0x77f   :  { %16945 = vmatprep.subr.bf16.mxu1 %v23385_v45  ;;  %13869 = vmatprep.subr.bf16.mxu0 %v23388_v51  ;;  %v24743_v45 = vpack.c.bf16 %v14203_v39, %v14203_v39  ;;  %v23430_v51 = vld [vmem:[#allocation5 + $0x16a4] ss:$40 sps:$4 sm:$0xff]   ;;  %v23481_v39 = vld [vmem:[#allocation5 + $0x1bf4] ss:$40 sps:$4 sm:$0xff]  }
 0x781   :  { %13861 = vmatmul.mubr.bf16.vlgmr.msra.gmra.mrb[8].mxu0 %v24551_v31  ;;  %v23401_v31 = vld [vmem:[#allocation8 + $0x960] ss:$20 sps:$4 sm:$0xff]  }
 0x782   :  { %16946 = vmatpush1.bf16.msra.mxu1 %v23383_v53  ;;  %13870 = vmatpush1.bf16.msra.mxu0 %v23386_v55  ;;  %v23433_v53 = vld [vmem:[#allocation5 + $0x16f4] ss:$40 sps:$4 sm:$0xff]   ;;  %v23431_v55 = vld [vmem:[#allocation5 + $0x16f0] ss:$40 sps:$4 sm:$0xff]  }
 0x783   :  { %16947 = vmatprep.subr.bf16.mxu1 %v23391_v56  ;;  %13871 = vmatprep.subr.bf16.mxu0 %v23394_v57  ;;  %v23436_v56 = vld [vmem:[#allocation5 + $0x1744] ss:$40 sps:$4 sm:$0xff]   ;;  %v23434_v57 = vld [vmem:[#allocation5 + $0x1740] ss:$40 sps:$4 sm:$0xff]  }
 0x784   :  { %13901 = vmatprep.mubr.bf16.mxu0 %v24553_v38  ;;  %v23407_v38 = vld [vmem:[#allocation8 + $0x988] ss:$20 sps:$4 sm:$0xff]  }
 0x786   :  { %16948 = vmatpush1.bf16.msra.mxu1 %v23389_v11  ;;  %13872 = vmatpush1.bf16.msra.mxu0 %v23392_v8  ;;  %v23439_v11 = vld [vmem:[#allocation5 + $0x1794] ss:$40 sps:$4 sm:$0xff]   ;;  %v23437_v8 = vld [vmem:[#allocation5 + $0x1790] ss:$40 sps:$4 sm:$0xff]  }
 0x787   :  { %16949 = vmatprep.subr.bf16.mxu1 %v23397_v12  ;;  %13873 = vmatprep.subr.bf16.mxu0 %v23400_v22  ;;  %v23442_v12 = vld [vmem:[#allocation5 + $0x17e4] ss:$40 sps:$4 sm:$0xff]   ;;  %v23440_v22 = vld [vmem:[#allocation5 + $0x17e0] ss:$40 sps:$4 sm:$0xff]  }
 0x78a   :  { %16950 = vmatpush1.bf16.msra.mxu1 %v23395_v63  ;;  %13874 = vmatpush1.bf16.msra.mxu0 %v23398_v26  ;;  %v23445_v63 = vld [vmem:[#allocation5 + $0x1834] ss:$40 sps:$4 sm:$0xff]   ;;  %v23443_v26 = vld [vmem:[#allocation5 + $0x1830] ss:$40 sps:$4 sm:$0xff]  }
 0x78b   :  { %16951 = vmatprep.subr.bf16.mxu1 %v23403_v0  ;;  %13875 = vmatprep.subr.bf16.mxu0 %v23406_v1  ;;  %v23448_v0 = vld [vmem:[#allocation5 + $0x1884] ss:$40 sps:$4 sm:$0xff]   ;;  %v23446_v1 = vld [vmem:[#allocation5 + $0x1880] ss:$40 sps:$4 sm:$0xff]  }
 0x78e   :  { %16952 = vmatpush1.bf16.msra.mxu1 %v23401_v31  ;;  %13876 = vmatpush1.bf16.msra.mxu0 %v23404_v2  ;;  %v23451_v31 = vld [vmem:[#allocation5 + $0x18d4] ss:$40 sps:$4 sm:$0xff]   ;;  %v23449_v2 = vld [vmem:[#allocation5 + $0x18d0] ss:$40 sps:$4 sm:$0xff]  }
 0x78f   :  { %16953 = vmatprep.subr.bf16.mxu1 %v23409_v15  ;;  %13877 = vmatprep.subr.bf16.mxu0 %v23412_v19  ;;  %v23452_v15 = vld [vmem:[#allocation5 + $0x1920] ss:$40 sps:$4 sm:$0xff]   ;;  %v23457_v19 = vld [vmem:[#allocation5 + $0x1974] ss:$40 sps:$4 sm:$0xff]  }
 0x792   :  { %16954 = vmatpush1.bf16.msra.mxu1 %v23407_v38  ;;  %13878 = vmatpush1.bf16.msra.mxu0 %v23410_v13  ;;  %v23455_v38 = vld [vmem:[#allocation5 + $0x1970] ss:$40 sps:$4 sm:$0xff]   ;;  %v23460_v13 = vld [vmem:[#allocation5 + $0x19c4] ss:$40 sps:$4 sm:$0xff]  }
 0x793   :  { %16955 = vmatprep.subr.bf16.mxu1 %v23415_v23  ;;  %13879 = vmatprep.subr.bf16.mxu0 %v23418_v29  ;;  %v23461_v23 = vld [vmem:[#allocation5 + $0x1a10] ss:$40 sps:$4 sm:$0xff]   ;;  %v23466_v29 = vld [vmem:[#allocation5 + $0x1a64] ss:$40 sps:$4 sm:$0xff]  }
 0x796   :  { %16956 = vmatpush1.bf16.msra.mxu1 %v23413_v17  ;;  %13880 = vmatpush1.bf16.msra.mxu0 %v23416_v32  ;;  %v23464_v17 = vld [vmem:[#allocation5 + $0x1a60] ss:$40 sps:$4 sm:$0xff]   ;;  %v23469_v32 = vld [vmem:[#allocation5 + $0x1ab4] ss:$40 sps:$4 sm:$0xff]  }
 0x797   :  { %16957 = vmatprep.subr.bf16.mxu1 %v23421_v34  ;;  %13881 = vmatprep.subr.bf16.mxu0 %v23424_v35  ;;  %v23475_v34 = vld [vmem:[#allocation5 + $0x1b54] ss:$40 sps:$4 sm:$0xff]   ;;  %v23473_v35 = vld [vmem:[#allocation5 + $0x1b50] ss:$40 sps:$4 sm:$0xff]  }
 0x79a   :  { %16958 = vmatpush1.bf16.msra.mxu1 %v23419_v37  ;;  %13882 = vmatpush1.bf16.msra.mxu0 %v23422_v27  ;;  %v23478_v37 = vld [vmem:[#allocation5 + $0x1ba4] ss:$40 sps:$4 sm:$0xff]   ;;  %v23476_v27 = vld [vmem:[#allocation5 + $0x1ba0] ss:$40 sps:$4 sm:$0xff]  }
 0x79b   :  { %13883 = vmatprep.subr.bf16.mxu0 %v23427_v40  ;;  %v23479_v40 = vld [vmem:[#allocation5 + $0x1bf0] ss:$40 sps:$4 sm:$0xff]  }
 0x79d   :  { %16960 = vmatmul.mubr.bf16.vlgmr.msra.gmra.mrb[8].mxu1 %v24743_v45 }
 0x79e   :  { %13884 = vmatpush1.bf16.msra.mxu0 %v23425_v44  ;;  %v23484_v44 = vld [vmem:[#allocation5 + $0x1c44] ss:$40 sps:$4 sm:$0xff]  }
 0x79f   :  { %13885 = vmatprep.subr.bf16.mxu0 %v23430_v51  ;;  %v23482_v51 = vld [vmem:[#allocation5 + $0x1c40] ss:$40 sps:$4 sm:$0xff]  }
 0x7a2   :  { %13886 = vmatpush1.bf16.msra.mxu0 %v23428_v5  ;;  %v23487_v5 = vld [vmem:[#allocation5 + $0x1c94] ss:$40 sps:$4 sm:$0xff]  }
 0x7a3   :  { %13887 = vmatprep.subr.bf16.mxu0 %v23433_v53  ;;  %v23485_v53 = vld [vmem:[#allocation5 + $0x1c90] ss:$40 sps:$4 sm:$0xff]  }
 0x7a6   :  { %13888 = vmatpush1.bf16.msra.mxu0 %v23431_v55  ;;  %v23490_v55 = vld [vmem:[#allocation5 + $0x1ce4] ss:$40 sps:$4 sm:$0xff]  }
 0x7a7   :  { %13889 = vmatprep.subr.bf16.mxu0 %v23436_v56  ;;  %v23488_v56 = vld [vmem:[#allocation5 + $0x1ce0] ss:$40 sps:$4 sm:$0xff]  }
 0x7aa   :  { %13890 = vmatpush1.bf16.msra.mxu0 %v23434_v57  ;;  %v23493_v57 = vld [vmem:[#allocation5 + $0x1d34] ss:$40 sps:$4 sm:$0xff]  }
 0x7ab   :  { %13891 = vmatprep.subr.bf16.mxu0 %v23439_v11  ;;  %v23491_v11 = vld [vmem:[#allocation5 + $0x1d30] ss:$40 sps:$4 sm:$0xff]  }
 0x7ae   :  { %13892 = vmatpush1.bf16.msra.mxu0 %v23437_v8  ;;  %v23496_v8 = vld [vmem:[#allocation5 + $0x1d84] ss:$40 sps:$4 sm:$0xff]  }
 0x7af   :  { %13893 = vmatprep.subr.bf16.mxu0 %v23442_v12  ;;  %v23494_v12 = vld [vmem:[#allocation5 + $0x1d80] ss:$40 sps:$4 sm:$0xff]  }
 0x7b2   :  { %13894 = vmatpush1.bf16.msra.mxu0 %v23440_v22  ;;  %v23499_v22 = vld [vmem:[#allocation5 + $0x1dd4] ss:$40 sps:$4 sm:$0xff]  }
 0x7b3   :  { %13895 = vmatprep.subr.bf16.mxu0 %v23445_v63  ;;  %v23497_v63 = vld [vmem:[#allocation5 + $0x1dd0] ss:$40 sps:$4 sm:$0xff]  }
 0x7b6   :  { %13896 = vmatpush1.bf16.msra.mxu0 %v23443_v26  ;;  %v23502_v26 = vld [vmem:[#allocation5 + $0x1e24] ss:$40 sps:$4 sm:$0xff]  }
 0x7b7   :  { %13897 = vmatprep.subr.bf16.mxu0 %v23448_v0  ;;  %v23500_v0 = vld [vmem:[#allocation5 + $0x1e20] ss:$40 sps:$4 sm:$0xff]  }
 0x7ba   :  { %13898 = vmatpush1.bf16.msra.mxu0 %v23446_v1  ;;  %v23505_v1 = vld [vmem:[#allocation5 + $0x1e74] ss:$40 sps:$4 sm:$0xff]  }
 0x7bb   :  { %13899 = vmatprep.subr.bf16.mxu0 %v23451_v31  ;;  %v23503_v31 = vld [vmem:[#allocation5 + $0x1e70] ss:$40 sps:$4 sm:$0xff]  }
 0x7be   :  { %13900 = vmatpush1.bf16.msra.mxu0 %v23449_v2  ;;  %v23508_v2 = vld [vmem:[#allocation5 + $0x1ec4] ss:$40 sps:$4 sm:$0xff]  }
 0x7bf   :  { %13910 = vmatprep.subr.bf16.mxu0 %v23454_v6  ;;  %v23506_v6 = vld [vmem:[#allocation5 + $0x1ec0] ss:$40 sps:$4 sm:$0xff]  }
 0x7c1   :  { %13902 = vmatmul.mubr.bf16.vlgmr.msra.gmra.mrb[8].mxu0 %v24559_v46  ;;  %v23467_v46 = vld [vmem:[#allocation5 + $0x1ab0] ss:$40 sps:$4 sm:$0xff]  }
 0x7c2   :  { %13911 = vmatpush1.bf16.msra.mxu0 %v23452_v15  ;;  %13942 = vmatprep.mubr.bf16.mxu0 %v24561_v52  ;;  %v23470_v52 = vld [vmem:[#allocation5 + $0x1b00] ss:$40 sps:$4 sm:$0xff]   ;;  %v23511_v15 = vld [vmem:[#allocation5 + $0x1f14] ss:$40 sps:$4 sm:$0xff]  }
 0x7c3   :  { %13912 = vmatprep.subr.bf16.mxu0 %v23457_v19  ;;  %v23509_v19 = vld [vmem:[#allocation5 + $0x1f10] ss:$40 sps:$4 sm:$0xff]  }
 0x7c6   :  { %13913 = vmatpush1.bf16.msra.mxu0 %v23455_v38  ;;  %v23514_v38 = vld [vmem:[#allocation5 + $0x1f64] ss:$40 sps:$4 sm:$0xff]  }
 0x7c7   :  { %13914 = vmatprep.subr.bf16.mxu0 %v23460_v13  ;;  %v23512_v13 = vld [vmem:[#allocation5 + $0x1f60] ss:$40 sps:$4 sm:$0xff]  }
 0x7ca   :  { %13915 = vmatpush1.bf16.msra.mxu0 %v23458_v20  ;;  %v23517_v20 = vld [vmem:[#allocation5 + $0x1fb4] ss:$40 sps:$4 sm:$0xff]  }
 0x7cb   :  { %13916 = vmatprep.subr.bf16.mxu0 %v23463_v48  ;;  %v23520_v48 = vld [vmem:[#allocation5 + $0x2004] ss:$40 sps:$4 sm:$0xff]  }
 0x7ce   :  { %13917 = vmatpush1.bf16.msra.mxu0 %v23461_v23  ;;  %v23523_v23 = vld [vmem:[#allocation5 + $0x2054] ss:$40 sps:$4 sm:$0xff]  }
 0x7cf   :  { %13918 = vmatprep.subr.bf16.mxu0 %v23466_v29  ;;  %v23521_v29 = vld [vmem:[#allocation5 + $0x2050] ss:$40 sps:$4 sm:$0xff]  }
 0x7d2   :  { %13919 = vmatpush1.bf16.msra.mxu0 %v23464_v17  ;;  %v23526_v17 = vld [vmem:[#allocation5 + $0x20a4] ss:$40 sps:$4 sm:$0xff]  }
 0x7d3   :  { %13920 = vmatprep.subr.bf16.mxu0 %v23469_v32  ;;  %v23524_v32 = vld [vmem:[#allocation5 + $0x20a0] ss:$40 sps:$4 sm:$0xff]  }
 0x7d6   :  { %13921 = vmatpush1.bf16.msra.mxu0 %v23467_v46  ;;  %v23529_v46 = vld [vmem:[#allocation5 + $0x20f4] ss:$40 sps:$4 sm:$0xff]  }
 0x7d7   :  { %13922 = vmatprep.subr.bf16.mxu0 %v23472_v33  ;;  %v23527_v33 = vld [vmem:[#allocation5 + $0x20f0] ss:$40 sps:$4 sm:$0xff]  }
 0x7da   :  { %13923 = vmatpush1.bf16.msra.mxu0 %v23470_v52  ;;  %v23532_v52 = vld [vmem:[#allocation5 + $0x2144] ss:$40 sps:$4 sm:$0xff]  }
 0x7db   :  { %13924 = vmatprep.subr.bf16.mxu0 %v23475_v34  ;;  %v23530_v34 = vld [vmem:[#allocation5 + $0x2140] ss:$40 sps:$4 sm:$0xff]  }
 0x7de   :  { %13925 = vmatpush1.bf16.msra.mxu0 %v23473_v35  ;;  %v23535_v35 = vld [vmem:[#allocation5 + $0x2194] ss:$40 sps:$4 sm:$0xff]  }
 0x7df   :  { %13926 = vmatprep.subr.bf16.mxu0 %v23478_v37  ;;  %v23533_v37 = vld [vmem:[#allocation5 + $0x2190] ss:$40 sps:$4 sm:$0xff]  }
 0x7e2   :  { %13927 = vmatpush1.bf16.msra.mxu0 %v23476_v27  ;;  %v23538_v27 = vld [vmem:[#allocation5 + $0x21e4] ss:$40 sps:$4 sm:$0xff]  }
 0x7e3   :  { %13928 = vmatprep.subr.bf16.mxu0 %v23481_v39  ;;  %v23536_v39 = vld [vmem:[#allocation5 + $0x21e0] ss:$40 sps:$4 sm:$0xff]  }
 0x7e6   :  { %13929 = vmatpush1.bf16.msra.mxu0 %v23479_v40  ;;  %v23541_v40 = vld [vmem:[#allocation5 + $0x2234] ss:$40 sps:$4 sm:$0xff]  }
 0x7e7   :  { %13930 = vmatprep.subr.bf16.mxu0 %v23484_v44  ;;  %v23539_v44 = vld [vmem:[#allocation5 + $0x2230] ss:$40 sps:$4 sm:$0xff]  }
 0x7ea   :  { %13931 = vmatpush1.bf16.msra.mxu0 %v23482_v51  ;;  %v23544_v51 = vld [vmem:[#allocation5 + $0x2284] ss:$40 sps:$4 sm:$0xff]  }
 0x7eb   :  { %13932 = vmatprep.subr.bf16.mxu0 %v23487_v5  ;;  %v23542_v5 = vld [vmem:[#allocation5 + $0x2280] ss:$40 sps:$4 sm:$0xff]  }
 0x7ee   :  { %13933 = vmatpush1.bf16.msra.mxu0 %v23485_v53  ;;  %v23547_v53 = vld [vmem:[#allocation5 + $0x22d4] ss:$40 sps:$4 sm:$0xff]  }
 0x7ef   :  { %13934 = vmatprep.subr.bf16.mxu0 %v23490_v55  ;;  %v23545_v55 = vld [vmem:[#allocation5 + $0x22d0] ss:$40 sps:$4 sm:$0xff]  }
 0x7f2   :  { %13935 = vmatpush1.bf16.msra.mxu0 %v23488_v56  ;;  %v23550_v56 = vld [vmem:[#allocation5 + $0x2324] ss:$40 sps:$4 sm:$0xff]  }
 0x7f3   :  { %13936 = vmatprep.subr.bf16.mxu0 %v23493_v57  ;;  %v23548_v57 = vld [vmem:[#allocation5 + $0x2320] ss:$40 sps:$4 sm:$0xff]  }
 0x7f6   :  { %13937 = vmatpush1.bf16.msra.mxu0 %v23491_v11  ;;  %v23553_v11 = vld [vmem:[#allocation5 + $0x2374] ss:$40 sps:$4 sm:$0xff]  }
 0x7f7   :  { %13938 = vmatprep.subr.bf16.mxu0 %v23496_v8  ;;  %v23551_v8 = vld [vmem:[#allocation5 + $0x2370] ss:$40 sps:$4 sm:$0xff]  }
 0x7fa   :  { %13939 = vmatpush1.bf16.msra.mxu0 %v23494_v12  ;;  %v23556_v12 = vld [vmem:[#allocation5 + $0x23c4] ss:$40 sps:$4 sm:$0xff]  }
 0x7fb   :  { %13940 = vmatprep.subr.bf16.mxu0 %v23499_v22  ;;  %v23554_v22 = vld [vmem:[#allocation5 + $0x23c0] ss:$40 sps:$4 sm:$0xff]  }
 0x7fe   :  { %13941 = vmatpush1.bf16.msra.mxu0 %v23497_v63  ;;  %v23559_v63 = vld [vmem:[#allocation5 + $0x2414] ss:$40 sps:$4 sm:$0xff]  }
 0x7ff   :  { %13951 = vmatprep.subr.bf16.mxu0 %v23502_v26  ;;  %v23557_v26 = vld [vmem:[#allocation5 + $0x2410] ss:$40 sps:$4 sm:$0xff]  }
 0x801   :  { %13943 = vmatmul.mubr.bf16.vlgmr.msra.gmra.mrb[8].mxu0 %v24567_v62  ;;  %v23515_v62 = vld [vmem:[#allocation5 + $0x1fb0] ss:$40 sps:$4 sm:$0xff]  }
 0x802   :  { %13952 = vmatpush1.bf16.msra.mxu0 %v23500_v0  ;;  %13983 = vmatprep.mubr.bf16.mxu0 %v24569_v3  ;;  %v23518_v3 = vld [vmem:[#allocation5 + $0x2000] ss:$40 sps:$4 sm:$0xff]   ;;  %v23562_v0 = vld [vmem:[#allocation5 + $0x2464] ss:$40 sps:$4 sm:$0xff]  }
 0x803   :  { %13953 = vmatprep.subr.bf16.mxu0 %v23505_v1  ;;  %v23560_v1 = vld [vmem:[#allocation5 + $0x2460] ss:$40 sps:$4 sm:$0xff]  }
 0x806   :  { %13954 = vmatpush1.bf16.msra.mxu0 %v23503_v31  ;;  %v23565_v31 = vld [vmem:[#allocation5 + $0x24b4] ss:$40 sps:$4 sm:$0xff]  }
 0x807   :  { %13955 = vmatprep.subr.bf16.mxu0 %v23508_v2  ;;  %v23568_v2 = vld [vmem:[#allocation5 + $0x2504] ss:$40 sps:$4 sm:$0xff]  }
 0x80a   :  { %13956 = vmatpush1.bf16.msra.mxu0 %v23506_v6  ;;  %v23571_v6 = vld [vmem:[#allocation5 + $0x2554] ss:$40 sps:$4 sm:$0xff]  }
 0x80b   :  { %13957 = vmatprep.subr.bf16.mxu0 %v23511_v15  ;;  %v23569_v15 = vld [vmem:[#allocation5 + $0x2550] ss:$40 sps:$4 sm:$0xff]  }
 0x80e   :  { %13958 = vmatpush1.bf16.msra.mxu0 %v23509_v19  ;;  %v23574_v19 = vld [vmem:[#allocation5 + $0x25a4] ss:$40 sps:$4 sm:$0xff]  }
 0x80f   :  { %13959 = vmatprep.subr.bf16.mxu0 %v23514_v38  ;;  %v23572_v38 = vld [vmem:[#allocation5 + $0x25a0] ss:$40 sps:$4 sm:$0xff]  }
 0x812   :  { %13960 = vmatpush1.bf16.msra.mxu0 %v23512_v13  ;;  %v23577_v13 = vld [vmem:[#allocation5 + $0x25f4] ss:$40 sps:$4 sm:$0xff]  }
 0x813   :  { %13961 = vmatprep.subr.bf16.mxu0 %v23517_v20  ;;  %v23575_v20 = vld [vmem:[#allocation5 + $0x25f0] ss:$40 sps:$4 sm:$0xff]  }
 0x816   :  { %13962 = vmatpush1.bf16.msra.mxu0 %v23515_v62  ;;  %v23580_v62 = vld [vmem:[#allocation5 + $0x2644] ss:$40 sps:$4 sm:$0xff]  }
 0x817   :  { %13963 = vmatprep.subr.bf16.mxu0 %v23520_v48  ;;  %v23578_v48 = vld [vmem:[#allocation5 + $0x2640] ss:$40 sps:$4 sm:$0xff]  }
 0x81a   :  { %13964 = vmatpush1.bf16.msra.mxu0 %v23518_v3  ;;  %v23583_v3 = vld [vmem:[#allocation5 + $0x2694] ss:$40 sps:$4 sm:$0xff]  }
 0x81b   :  { %13965 = vmatprep.subr.bf16.mxu0 %v23523_v23  ;;  %v23581_v23 = vld [vmem:[#allocation5 + $0x2690] ss:$40 sps:$4 sm:$0xff]  }
 0x81e   :  { %13966 = vmatpush1.bf16.msra.mxu0 %v23521_v29  ;;  %v23586_v29 = vld [vmem:[#allocation5 + $0x26e4] ss:$40 sps:$4 sm:$0xff]  }
 0x81f   :  { %13967 = vmatprep.subr.bf16.mxu0 %v23526_v17  ;;  %v23584_v17 = vld [vmem:[#allocation5 + $0x26e0] ss:$40 sps:$4 sm:$0xff]  }
 0x822   :  { %13968 = vmatpush1.bf16.msra.mxu0 %v23524_v32  ;;  %v23589_v32 = vld [vmem:[#allocation5 + $0x2734] ss:$40 sps:$4 sm:$0xff]  }
 0x823   :  { %13969 = vmatprep.subr.bf16.mxu0 %v23529_v46  ;;  %v23587_v46 = vld [vmem:[#allocation5 + $0x2730] ss:$40 sps:$4 sm:$0xff]  }
 0x826   :  { %13970 = vmatpush1.bf16.msra.mxu0 %v23527_v33  ;;  %v23592_v33 = vld [vmem:[#allocation5 + $0x2784] ss:$40 sps:$4 sm:$0xff]  }
 0x827   :  { %13971 = vmatprep.subr.bf16.mxu0 %v23532_v52  ;;  %v23590_v52 = vld [vmem:[#allocation5 + $0x2780] ss:$40 sps:$4 sm:$0xff]  }
 0x82a   :  { %13972 = vmatpush1.bf16.msra.mxu0 %v23530_v34  ;;  %v23595_v34 = vld [vmem:[#allocation5 + $0x27d4] ss:$40 sps:$4 sm:$0xff]  }
 0x82b   :  { %13973 = vmatprep.subr.bf16.mxu0 %v23535_v35  ;;  %v23593_v35 = vld [vmem:[#allocation5 + $0x27d0] ss:$40 sps:$4 sm:$0xff]  }
 0x82e   :  { %13974 = vmatpush1.bf16.msra.mxu0 %v23533_v37  ;;  %v23598_v37 = vld [vmem:[#allocation5 + $0x2824] ss:$40 sps:$4 sm:$0xff]  }
 0x82f   :  { %13975 = vmatprep.subr.bf16.mxu0 %v23538_v27  ;;  %v23596_v27 = vld [vmem:[#allocation5 + $0x2820] ss:$40 sps:$4 sm:$0xff]  }
 0x832   :  { %13976 = vmatpush1.bf16.msra.mxu0 %v23536_v39  ;;  %v23601_v39 = vld [vmem:[#allocation5 + $0x2874] ss:$40 sps:$4 sm:$0xff]  }
 0x833   :  { %13977 = vmatprep.subr.bf16.mxu0 %v23541_v40  ;;  %v23599_v40 = vld [vmem:[#allocation5 + $0x2870] ss:$40 sps:$4 sm:$0xff]  }
 0x836   :  { %13978 = vmatpush1.bf16.msra.mxu0 %v23539_v44  ;;  %v23604_v44 = vld [vmem:[#allocation5 + $0x28c4] ss:$40 sps:$4 sm:$0xff]  }
 0x837   :  { %13979 = vmatprep.subr.bf16.mxu0 %v23544_v51  ;;  %v23602_v51 = vld [vmem:[#allocation5 + $0x28c0] ss:$40 sps:$4 sm:$0xff]  }
 0x83a   :  { %13980 = vmatpush1.bf16.msra.mxu0 %v23542_v5  ;;  %v23607_v5 = vld [vmem:[#allocation5 + $0x2914] ss:$40 sps:$4 sm:$0xff]  }
 0x83b   :  { %13981 = vmatprep.subr.bf16.mxu0 %v23547_v53  ;;  %v23605_v53 = vld [vmem:[#allocation5 + $0x2910] ss:$40 sps:$4 sm:$0xff]  }
 0x83e   :  { %13982 = vmatpush1.bf16.msra.mxu0 %v23545_v55  ;;  %v23610_v55 = vld [vmem:[#allocation5 + $0x2964] ss:$40 sps:$4 sm:$0xff]  }
 0x83f   :  { %13992 = vmatprep.subr.bf16.mxu0 %v23550_v56  ;;  %v23608_v56 = vld [vmem:[#allocation5 + $0x2960] ss:$40 sps:$4 sm:$0xff]  }
 0x841   :  { %13984 = vmatmul.mubr.bf16.vlgmr.msra.gmra.mrb[8].mxu0 %v24575_v18  ;;  %v23563_v18 = vld [vmem:[#allocation5 + $0x24b0] ss:$40 sps:$4 sm:$0xff]  }
 0x842   :  { %13993 = vmatpush1.bf16.msra.mxu0 %v23548_v57  ;;  %14024 = vmatprep.mubr.bf16.mxu0 %v24577_v24  ;;  %v23566_v24 = vld [vmem:[#allocation5 + $0x2500] ss:$40 sps:$4 sm:$0xff]   ;;  %v23613_v57 = vld [vmem:[#allocation5 + $0x29b4] ss:$40 sps:$4 sm:$0xff]  }
 0x843   :  { %13994 = vmatprep.subr.bf16.mxu0 %v23553_v11  ;;  %v23616_v11 = vld [vmem:[#allocation5 + $0x2a04] ss:$40 sps:$4 sm:$0xff]  }
 0x846   :  { %13995 = vmatpush1.bf16.msra.mxu0 %v23551_v8  ;;  %v23619_v8 = vld [vmem:[#allocation5 + $0x2a54] ss:$40 sps:$4 sm:$0xff]  }
 0x847   :  { %13996 = vmatprep.subr.bf16.mxu0 %v23556_v12  ;;  %v23617_v12 = vld [vmem:[#allocation5 + $0x2a50] ss:$40 sps:$4 sm:$0xff]  }
 0x84a   :  { %13997 = vmatpush1.bf16.msra.mxu0 %v23554_v22  ;;  %v23622_v22 = vld [vmem:[#allocation5 + $0x2aa4] ss:$40 sps:$4 sm:$0xff]  }
 0x84b   :  { %13998 = vmatprep.subr.bf16.mxu0 %v23559_v63  ;;  %v23620_v63 = vld [vmem:[#allocation5 + $0x2aa0] ss:$40 sps:$4 sm:$0xff]  }
 0x84e   :  { %13999 = vmatpush1.bf16.msra.mxu0 %v23557_v26  ;;  %v23625_v26 = vld [vmem:[#allocation5 + $0x2af4] ss:$40 sps:$4 sm:$0xff]  }
 0x84f   :  { %14000 = vmatprep.subr.bf16.mxu0 %v23562_v0  ;;  %v23623_v0 = vld [vmem:[#allocation5 + $0x2af0] ss:$40 sps:$4 sm:$0xff]  }
 0x852   :  { %14001 = vmatpush1.bf16.msra.mxu0 %v23560_v1  ;;  %v23628_v1 = vld [vmem:[#allocation5 + $0x2b44] ss:$40 sps:$4 sm:$0xff]  }
 0x853   :  { %14002 = vmatprep.subr.bf16.mxu0 %v23565_v31  ;;  %v23626_v31 = vld [vmem:[#allocation5 + $0x2b40] ss:$40 sps:$4 sm:$0xff]  }
 0x856   :  { %14003 = vmatpush1.bf16.msra.mxu0 %v23563_v18  ;;  %v23631_v18 = vld [vmem:[#allocation5 + $0x2b94] ss:$40 sps:$4 sm:$0xff]  }
 0x857   :  { %14004 = vmatprep.subr.bf16.mxu0 %v23568_v2  ;;  %v23629_v2 = vld [vmem:[#allocation5 + $0x2b90] ss:$40 sps:$4 sm:$0xff]  }
 0x85a   :  { %14005 = vmatpush1.bf16.msra.mxu0 %v23566_v24  ;;  %v23634_v24 = vld [vmem:[#allocation5 + $0x2be4] ss:$40 sps:$4 sm:$0xff]  }
 0x85b   :  { %14006 = vmatprep.subr.bf16.mxu0 %v23571_v6  ;;  %v23632_v6 = vld [vmem:[#allocation5 + $0x2be0] ss:$40 sps:$4 sm:$0xff]  }
 0x85e   :  { %14007 = vmatpush1.bf16.msra.mxu0 %v23569_v15  ;;  %v23637_v15 = vld [vmem:[#allocation5 + $0x2c34] ss:$40 sps:$4 sm:$0xff]  }
 0x85f   :  { %14008 = vmatprep.subr.bf16.mxu0 %v23574_v19  ;;  %v23635_v19 = vld [vmem:[#allocation5 + $0x2c30] ss:$40 sps:$4 sm:$0xff]  }
 0x862   :  { %14009 = vmatpush1.bf16.msra.mxu0 %v23572_v38  ;;  %v23640_v38 = vld [vmem:[#allocation5 + $0x2c84] ss:$40 sps:$4 sm:$0xff]  }
 0x863   :  { %14010 = vmatprep.subr.bf16.mxu0 %v23577_v13  ;;  %v23638_v13 = vld [vmem:[#allocation5 + $0x2c80] ss:$40 sps:$4 sm:$0xff]  }
 0x866   :  { %14011 = vmatpush1.bf16.msra.mxu0 %v23575_v20  ;;  %v23643_v20 = vld [vmem:[#allocation5 + $0x2cd4] ss:$40 sps:$4 sm:$0xff]  }
 0x867   :  { %14012 = vmatprep.subr.bf16.mxu0 %v23580_v62  ;;  %v23641_v62 = vld [vmem:[#allocation5 + $0x2cd0] ss:$40 sps:$4 sm:$0xff]  }
 0x86a   :  { %14013 = vmatpush1.bf16.msra.mxu0 %v23578_v48  ;;  %v23646_v48 = vld [vmem:[#allocation5 + $0x2d24] ss:$40 sps:$4 sm:$0xff]  }
 0x86b   :  { %14014 = vmatprep.subr.bf16.mxu0 %v23583_v3  ;;  %v23644_v3 = vld [vmem:[#allocation5 + $0x2d20] ss:$40 sps:$4 sm:$0xff]  }
 0x86e   :  { %14015 = vmatpush1.bf16.msra.mxu0 %v23581_v23  ;;  %v23649_v23 = vld [vmem:[#allocation5 + $0x2d74] ss:$40 sps:$4 sm:$0xff]  }
 0x86f   :  { %14016 = vmatprep.subr.bf16.mxu0 %v23586_v29  ;;  %v23647_v29 = vld [vmem:[#allocation5 + $0x2d70] ss:$40 sps:$4 sm:$0xff]  }
 0x872   :  { %14017 = vmatpush1.bf16.msra.mxu0 %v23584_v17  ;;  %v23652_v17 = vld [vmem:[#allocation5 + $0x2dc4] ss:$40 sps:$4 sm:$0xff]  }
 0x873   :  { %14018 = vmatprep.subr.bf16.mxu0 %v23589_v32  ;;  %v23650_v32 = vld [vmem:[#allocation5 + $0x2dc0] ss:$40 sps:$4 sm:$0xff]  }
 0x876   :  { %14019 = vmatpush1.bf16.msra.mxu0 %v23587_v46  ;;  %v23655_v46 = vld [vmem:[#allocation5 + $0x2e14] ss:$40 sps:$4 sm:$0xff]  }
 0x877   :  { %14020 = vmatprep.subr.bf16.mxu0 %v23592_v33  ;;  %v23653_v33 = vld [vmem:[#allocation5 + $0x2e10] ss:$40 sps:$4 sm:$0xff]  }
 0x87a   :  { %14021 = vmatpush1.bf16.msra.mxu0 %v23590_v52  ;;  %v23658_v52 = vld [vmem:[#allocation5 + $0x2e64] ss:$40 sps:$4 sm:$0xff]  }
 0x87b   :  { %14022 = vmatprep.subr.bf16.mxu0 %v23595_v34  ;;  %v23656_v34 = vld [vmem:[#allocation5 + $0x2e60] ss:$40 sps:$4 sm:$0xff]  }
 0x87e   :  { %14023 = vmatpush1.bf16.msra.mxu0 %v23593_v35  ;;  %v23661_v35 = vld [vmem:[#allocation5 + $0x2eb4] ss:$40 sps:$4 sm:$0xff]  }
 0x87f   :  { %14033 = vmatprep.subr.bf16.mxu0 %v23598_v37  ;;  %v23664_v37 = vld [vmem:[#allocation5 + $0x2f04] ss:$40 sps:$4 sm:$0xff]  }
 0x881   :  { %14025 = vmatmul.mubr.bf16.vlgmr.msra.gmra.mrb[8].mxu0 %v24583_v42  ;;  %v23611_v42 = vld [vmem:[#allocation5 + $0x29b0] ss:$40 sps:$4 sm:$0xff]  }
 0x882   :  { %14034 = vmatpush1.bf16.msra.mxu0 %v23596_v27  ;;  %14065 = vmatprep.mubr.bf16.mxu0 %v24585_v49  ;;  %v23614_v49 = vld [vmem:[#allocation5 + $0x2a00] ss:$40 sps:$4 sm:$0xff]   ;;  %v23667_v27 = vld [vmem:[#allocation5 + $0x2f54] ss:$40 sps:$4 sm:$0xff]  }
 0x883   :  { %14035 = vmatprep.subr.bf16.mxu0 %v23601_v39  ;;  %v23665_v39 = vld [vmem:[#allocation5 + $0x2f50] ss:$40 sps:$4 sm:$0xff]  }
 0x886   :  { %14036 = vmatpush1.bf16.msra.mxu0 %v23599_v40  ;;  %v23670_v40 = vld [vmem:[#allocation5 + $0x2fa4] ss:$40 sps:$4 sm:$0xff]  }
 0x887   :  { %14037 = vmatprep.subr.bf16.mxu0 %v23604_v44  ;;  %v23668_v44 = vld [vmem:[#allocation5 + $0x2fa0] ss:$40 sps:$4 sm:$0xff]  }
 0x88a   :  { %14038 = vmatpush1.bf16.msra.mxu0 %v23602_v51  ;;  %v23673_v51 = vld [vmem:[#allocation5 + $0x2ff4] ss:$40 sps:$4 sm:$0xff]  }
 0x88b   :  { %14039 = vmatprep.subr.bf16.mxu0 %v23607_v5  ;;  %v23671_v5 = vld [vmem:[#allocation5 + $0x2ff0] ss:$40 sps:$4 sm:$0xff]  }
 0x88e   :  { %14040 = vmatpush1.bf16.msra.mxu0 %v23605_v53  ;;  %v23676_v53 = vld [vmem:[#allocation5 + $0x3044] ss:$40 sps:$4 sm:$0xff]  }
 0x88f   :  { %14041 = vmatprep.subr.bf16.mxu0 %v23610_v55  ;;  %v23674_v55 = vld [vmem:[#allocation5 + $0x3040] ss:$40 sps:$4 sm:$0xff]  }
 0x892   :  { %14042 = vmatpush1.bf16.msra.mxu0 %v23608_v56  ;;  %v23679_v56 = vld [vmem:[#allocation5 + $0x3094] ss:$40 sps:$4 sm:$0xff]  }
 0x893   :  { %14043 = vmatprep.subr.bf16.mxu0 %v23613_v57  ;;  %v23677_v57 = vld [vmem:[#allocation5 + $0x3090] ss:$40 sps:$4 sm:$0xff]  }
 0x896   :  { %14044 = vmatpush1.bf16.msra.mxu0 %v23611_v42  ;;  %v23682_v42 = vld [vmem:[#allocation5 + $0x30e4] ss:$40 sps:$4 sm:$0xff]  }
 0x897   :  { %14045 = vmatprep.subr.bf16.mxu0 %v23616_v11  ;;  %v23680_v11 = vld [vmem:[#allocation5 + $0x30e0] ss:$40 sps:$4 sm:$0xff]  }
 0x89a   :  { %14046 = vmatpush1.bf16.msra.mxu0 %v23614_v49  ;;  %v23685_v49 = vld [vmem:[#allocation5 + $0x3134] ss:$40 sps:$4 sm:$0xff]  }
 0x89b   :  { %14047 = vmatprep.subr.bf16.mxu0 %v23619_v8  ;;  %v23683_v8 = vld [vmem:[#allocation5 + $0x3130] ss:$40 sps:$4 sm:$0xff]  }
 0x89e   :  { %14048 = vmatpush1.bf16.msra.mxu0 %v23617_v12  ;;  %v23688_v12 = vld [vmem:[#allocation5 + $0x3184] ss:$40 sps:$4 sm:$0xff]  }
 0x89f   :  { %14049 = vmatprep.subr.bf16.mxu0 %v23622_v22  ;;  %v23686_v22 = vld [vmem:[#allocation5 + $0x3180] ss:$40 sps:$4 sm:$0xff]  }
 0x8a2   :  { %14050 = vmatpush1.bf16.msra.mxu0 %v23620_v63  ;;  %v23691_v63 = vld [vmem:[#allocation5 + $0x31d4] ss:$40 sps:$4 sm:$0xff]  }
 0x8a3   :  { %14051 = vmatprep.subr.bf16.mxu0 %v23625_v26  ;;  %v23689_v26 = vld [vmem:[#allocation5 + $0x31d0] ss:$40 sps:$4 sm:$0xff]  }
 0x8a6   :  { %14052 = vmatpush1.bf16.msra.mxu0 %v23623_v0  ;;  %v23694_v0 = vld [vmem:[#allocation5 + $0x3224] ss:$40 sps:$4 sm:$0xff]  }
 0x8a7   :  { %14053 = vmatprep.subr.bf16.mxu0 %v23628_v1  ;;  %v23692_v1 = vld [vmem:[#allocation5 + $0x3220] ss:$40 sps:$4 sm:$0xff]  }
 0x8aa   :  { %14054 = vmatpush1.bf16.msra.mxu0 %v23626_v31  ;;  %v23697_v31 = vld [vmem:[#allocation5 + $0x3274] ss:$40 sps:$4 sm:$0xff]  }
 0x8ab   :  { %14055 = vmatprep.subr.bf16.mxu0 %v23631_v18  ;;  %v23788_v18 = vld [vmem:[#allocation8 + $0xa00] ss:$20 sps:$4 sm:$0xff]  }
 0x8ae   :  { %14056 = vmatpush1.bf16.msra.mxu0 %v23629_v2  ;;  %v23790_v2 = vld [vmem:[#allocation8 + $0xa04] ss:$20 sps:$4 sm:$0xff]  }
 0x8af   :  { %14057 = vmatprep.subr.bf16.mxu0 %v23634_v24  ;;  %v23695_v24 = vld [vmem:[#allocation5 + $0x3270] ss:$40 sps:$4 sm:$0xff]   ;;  %16968 = vmatprep.subr.bf16.mxu1 %v23790_v2  ;;  %v23733_v2 = vld [vmem:[#allocation5 + $0x3634] ss:$40 sps:$4 sm:$0xff]  }
 0x8b0   :  { %16969 = vmatpush1.bf16.msra.mxu1 %v23788_v18  ;;  %v23728_v18 = vld [vmem:[#allocation5 + $0x35e0] ss:$40 sps:$4 sm:$0xff]  }
 0x8b2   :  { %14058 = vmatpush1.bf16.msra.mxu0 %v23632_v6  ;;  %v23793_v6 = vld [vmem:[#allocation8 + $0xa2c] ss:$20 sps:$4 sm:$0xff]  }
 0x8b3   :  { %14059 = vmatprep.subr.bf16.mxu0 %v23637_v15  ;;  %v23700_v15 = vld [vmem:[#allocation5 + $0x32c4] ss:$40 sps:$4 sm:$0xff]   ;;  %16970 = vmatprep.subr.bf16.mxu1 %v23793_v6 }
 0x8b4   :  { %v23839_v6 = vld [vmem:[#allocation8 + $0xc0c] ss:$20 sps:$4 sm:$0xff]  }
 0x8b6   :  { %14060 = vmatpush1.bf16.msra.mxu0 %v23635_v19  ;;  %v23791_v19 = vld [vmem:[#allocation8 + $0xa28] ss:$20 sps:$4 sm:$0xff]  }
 0x8b7   :  { %14061 = vmatprep.subr.bf16.mxu0 %v23640_v38  ;;  %v23796_v38 = vld [vmem:[#allocation8 + $0xa54] ss:$20 sps:$4 sm:$0xff]   ;;  %16971 = vmatpush1.bf16.msra.mxu1 %v23791_v19  ;;  %v23736_v19 = vld [vmem:[#allocation5 + $0x3684] ss:$40 sps:$4 sm:$0xff]  }
 0x8b8   :  { %16972 = vmatprep.subr.bf16.mxu1 %v23796_v38  ;;  %v23837_v38 = vld [vmem:[#allocation8 + $0xc08] ss:$20 sps:$4 sm:$0xff]  }
 0x8ba   :  { %14062 = vmatpush1.bf16.msra.mxu0 %v23638_v13  ;;  %v23698_v13 = vld [vmem:[#allocation5 + $0x32c0] ss:$40 sps:$4 sm:$0xff]  }
 0x8bb   :  { %14063 = vmatprep.subr.bf16.mxu0 %v23643_v20  ;;  %v23703_v20 = vld [vmem:[#allocation5 + $0x3314] ss:$40 sps:$4 sm:$0xff]  }
 0x8be   :  { %14064 = vmatpush1.bf16.msra.mxu0 %v23641_v62  ;;  %v23799_v62 = vld [vmem:[#allocation8 + $0xa7c] ss:$20 sps:$4 sm:$0xff]  }
 0x8bf   :  { %14074 = vmatprep.subr.bf16.mxu0 %v23646_v48  ;;  %v23701_v48 = vld [vmem:[#allocation5 + $0x3310] ss:$40 sps:$4 sm:$0xff]  }
 0x8c1   :  { %14066 = vmatmul.mubr.bf16.vlgmr.msra.gmra.mrb[8].mxu0 %v24591_v4  ;;  %v23659_v4 = vld [vmem:[#allocation5 + $0x2eb0] ss:$40 sps:$4 sm:$0xff]  }
 0x8c2   :  { %14075 = vmatpush1.bf16.msra.mxu0 %v23644_v3  ;;  %14106 = vmatprep.mubr.bf16.mxu0 %v24593_v10  ;;  %v23662_v10 = vld [vmem:[#allocation5 + $0x2f00] ss:$40 sps:$4 sm:$0xff]  }
 0x8c3   :  { %14076 = vmatprep.subr.bf16.mxu0 %v23649_v23  ;;  %v23797_v3 = vld [vmem:[#allocation8 + $0xa78] ss:$20 sps:$4 sm:$0xff]  }
 0x8c4   :  { %v23802_v23 = vld [vmem:[#allocation8 + $0xaa4] ss:$20 sps:$4 sm:$0xff]  }
 0x8c6   :  { %14077 = vmatpush1.bf16.msra.mxu0 %v23647_v29  ;;  %v23704_v29 = vld [vmem:[#allocation5 + $0x3360] ss:$40 sps:$4 sm:$0xff]  }
 0x8c7   :  { %14078 = vmatprep.subr.bf16.mxu0 %v23652_v17  ;;  %v23709_v17 = vld [vmem:[#allocation5 + $0x33b4] ss:$40 sps:$4 sm:$0xff]  }
 0x8ca   :  { %14079 = vmatpush1.bf16.msra.mxu0 %v23650_v32  ;;  %v23800_v32 = vld [vmem:[#allocation8 + $0xaa0] ss:$20 sps:$4 sm:$0xff]  }
 0x8cb   :  { %14080 = vmatprep.subr.bf16.mxu0 %v23655_v46  ;;  %v23805_v46 = vld [vmem:[#allocation8 + $0xacc] ss:$20 sps:$4 sm:$0xff]  }
 0x8ce   :  { %14081 = vmatpush1.bf16.msra.mxu0 %v23653_v33  ;;  %v23707_v33 = vld [vmem:[#allocation5 + $0x33b0] ss:$40 sps:$4 sm:$0xff]  }
 0x8cf   :  { %14082 = vmatprep.subr.bf16.mxu0 %v23658_v52  ;;  %v23712_v52 = vld [vmem:[#allocation5 + $0x3404] ss:$40 sps:$4 sm:$0xff]  }
 0x8d2   :  { %14083 = vmatpush1.bf16.msra.mxu0 %v23656_v34  ;;  %v23803_v34 = vld [vmem:[#allocation8 + $0xac8] ss:$20 sps:$4 sm:$0xff]  }
 0x8d3   :  { %14084 = vmatprep.subr.bf16.mxu0 %v23661_v35  ;;  %v23808_v35 = vld [vmem:[#allocation8 + $0xaf4] ss:$20 sps:$4 sm:$0xff]  }
 0x8d6   :  { %14085 = vmatpush1.bf16.msra.mxu0 %v23659_v4  ;;  %v23710_v4 = vld [vmem:[#allocation5 + $0x3400] ss:$40 sps:$4 sm:$0xff]  }
 0x8d7   :  { %14086 = vmatprep.subr.bf16.mxu0 %v23664_v37  ;;  %v23715_v37 = vld [vmem:[#allocation5 + $0x3454] ss:$40 sps:$4 sm:$0xff]  }
 0x8da   :  { %14087 = vmatpush1.bf16.msra.mxu0 %v23662_v10  ;;  %v23806_v10 = vld [vmem:[#allocation8 + $0xaf0] ss:$20 sps:$4 sm:$0xff]  }
 0x8db   :  { %14088 = vmatprep.subr.bf16.mxu0 %v23667_v27  ;;  %v23811_v27 = vld [vmem:[#allocation8 + $0xb1c] ss:$20 sps:$4 sm:$0xff]  }
 0x8de   :  { %14089 = vmatpush1.bf16.msra.mxu0 %v23665_v39  ;;  %v23713_v39 = vld [vmem:[#allocation5 + $0x3450] ss:$40 sps:$4 sm:$0xff]  }
 0x8df   :  { %14090 = vmatprep.subr.bf16.mxu0 %v23670_v40  ;;  %v23718_v40 = vld [vmem:[#allocation5 + $0x34a4] ss:$40 sps:$4 sm:$0xff]  }
 0x8e2   :  { %14091 = vmatpush1.bf16.msra.mxu0 %v23668_v44  ;;  %v23809_v44 = vld [vmem:[#allocation8 + $0xb18] ss:$20 sps:$4 sm:$0xff]  }
 0x8e3   :  { %14092 = vmatprep.subr.bf16.mxu0 %v23673_v51  ;;  %v23814_v51 = vld [vmem:[#allocation8 + $0xb44] ss:$20 sps:$4 sm:$0xff]  }
 0x8e6   :  { %14093 = vmatpush1.bf16.msra.mxu0 %v23671_v5  ;;  %v23716_v5 = vld [vmem:[#allocation5 + $0x34a0] ss:$40 sps:$4 sm:$0xff]  }
 0x8e7   :  { %14094 = vmatprep.subr.bf16.mxu0 %v23676_v53  ;;  %v23721_v53 = vld [vmem:[#allocation5 + $0x34f4] ss:$40 sps:$4 sm:$0xff]  }
 0x8ea   :  { %14095 = vmatpush1.bf16.msra.mxu0 %v23674_v55  ;;  %v23812_v55 = vld [vmem:[#allocation8 + $0xb40] ss:$20 sps:$4 sm:$0xff]  }
 0x8eb   :  { %14096 = vmatprep.subr.bf16.mxu0 %v23679_v56  ;;  %v23819_v56 = vld [vmem:[#allocation8 + $0xb6c] ss:$20 sps:$4 sm:$0xff]  }
 0x8ee   :  { %14097 = vmatpush1.bf16.msra.mxu0 %v23677_v57  ;;  %v23719_v57 = vld [vmem:[#allocation5 + $0x34f0] ss:$40 sps:$4 sm:$0xff]  }
 0x8ef   :  { %14098 = vmatprep.subr.bf16.mxu0 %v23682_v42  ;;  %v23724_v42 = vld [vmem:[#allocation5 + $0x3544] ss:$40 sps:$4 sm:$0xff]  }
 0x8f2   :  { %14099 = vmatpush1.bf16.msra.mxu0 %v23680_v11  ;;  %v23817_v11 = vld [vmem:[#allocation8 + $0xb68] ss:$20 sps:$4 sm:$0xff]  }
 0x8f3   :  { %14100 = vmatprep.subr.bf16.mxu0 %v23685_v49  ;;  %v23824_v49 = vld [vmem:[#allocation8 + $0xb94] ss:$20 sps:$4 sm:$0xff]  }
 0x8f6   :  { %14101 = vmatpush1.bf16.msra.mxu0 %v23683_v8  ;;  %v23722_v8 = vld [vmem:[#allocation5 + $0x3540] ss:$40 sps:$4 sm:$0xff]  }
 0x8f7   :  { %14102 = vmatprep.subr.bf16.mxu0 %v23688_v12  ;;  %v23727_v12 = vld [vmem:[#allocation5 + $0x3594] ss:$40 sps:$4 sm:$0xff]  }
 0x8fa   :  { %14103 = vmatpush1.bf16.msra.mxu0 %v23686_v22  ;;  %v23822_v22 = vld [vmem:[#allocation8 + $0xb90] ss:$20 sps:$4 sm:$0xff]  }
 0x8fb   :  { %14104 = vmatprep.subr.bf16.mxu0 %v23691_v63  ;;  %v23829_v63 = vld [vmem:[#allocation8 + $0xbbc] ss:$20 sps:$4 sm:$0xff]  }
 0x8fe   :  { %14105 = vmatpush1.bf16.msra.mxu0 %v23689_v26  ;;  %v23725_v26 = vld [vmem:[#allocation5 + $0x3590] ss:$40 sps:$4 sm:$0xff]  }
 0x8ff   :  { %14115 = vmatprep.subr.bf16.mxu0 %v23694_v0  ;;  %v23730_v0 = vld [vmem:[#allocation5 + $0x35e4] ss:$40 sps:$4 sm:$0xff]  }
 0x901   :  { %14107 = vmatmul.mubr.bf16.vlgmr.msra.gmra.mrb[8].mxu0 %v24599_v36  ;;  %v23794_v36 = vld [vmem:[#allocation8 + $0xa50] ss:$20 sps:$4 sm:$0xff]  }
 0x902   :  { %14116 = vmatpush1.bf16.msra.mxu0 %v23692_v1  ;;  %14147 = vmatprep.mubr.bf16.mxu0 %v24601_v43  ;;  %v23706_v43 = vld [vmem:[#allocation5 + $0x3364] ss:$40 sps:$4 sm:$0xff]  }
 0x903   :  { %14117 = vmatprep.subr.bf16.mxu0 %v23697_v31  ;;  %16973 = vmatpush1.bf16.msra.mxu1 %v23794_v36  ;;  %v23827_v1 = vld [vmem:[#allocation8 + $0xbb8] ss:$20 sps:$4 sm:$0xff]  }
 0x904   :  { %16974 = vmatprep.subr.bf16.mxu1 %v23799_v62  ;;  %v23834_v31 = vld [vmem:[#allocation8 + $0xbe4] ss:$20 sps:$4 sm:$0xff]  }
 0x905   :  { %v23737_v36 = vld [vmem:[#allocation5 + $0x36d0] ss:$40 sps:$4 sm:$0xff]   ;;  %v23742_v62 = vld [vmem:[#allocation5 + $0x3724] ss:$40 sps:$4 sm:$0xff]  }
 0x906   :  { %14118 = vmatpush1.bf16.msra.mxu0 %v23695_v24  ;;  %v23832_v24 = vld [vmem:[#allocation8 + $0xbe0] ss:$20 sps:$4 sm:$0xff]  }
 0x907   :  { %14119 = vmatprep.subr.bf16.mxu0 %v23700_v15  ;;  %16975 = vmatpush1.bf16.msra.mxu1 %v23797_v3  ;;  %v23731_v15 = vld [vmem:[#allocation5 + $0x3630] ss:$40 sps:$4 sm:$0xff]  }
 0x908   :  { %16976 = vmatprep.subr.bf16.mxu1 %v23802_v23  ;;  %v23743_v3 = vld [vmem:[#allocation5 + $0x3770] ss:$40 sps:$4 sm:$0xff]   ;;  %v23748_v23 = vld [vmem:[#allocation5 + $0x37c4] ss:$40 sps:$4 sm:$0xff]  }
 0x90a   :  { %14120 = vmatpush1.bf16.msra.mxu0 %v23698_v13  ;;  %v23734_v13 = vld [vmem:[#allocation5 + $0x3680] ss:$40 sps:$4 sm:$0xff]  }
 0x90b   :  { %14121 = vmatprep.subr.bf16.mxu0 %v23703_v20  ;;  %16977 = vmatpush1.bf16.msra.mxu1 %v23800_v32  ;;  %v23739_v20 = vld [vmem:[#allocation5 + $0x36d4] ss:$40 sps:$4 sm:$0xff]   ;;  %v23749_v32 = vld [vmem:[#allocation5 + $0x3810] ss:$40 sps:$4 sm:$0xff]  }
 0x90c   :  { %16978 = vmatprep.subr.bf16.mxu1 %v23805_v46  ;;  %v23754_v46 = vld [vmem:[#allocation5 + $0x3864] ss:$40 sps:$4 sm:$0xff]  }
 0x90e   :  { %14122 = vmatpush1.bf16.msra.mxu0 %v23701_v48  ;;  %v23740_v48 = vld [vmem:[#allocation5 + $0x3720] ss:$40 sps:$4 sm:$0xff]  }
 0x90f   :  { %14123 = vmatprep.subr.bf16.mxu0 %v23706_v43  ;;  %16979 = vmatpush1.bf16.msra.mxu1 %v23803_v34  ;;  %v23745_v43 = vld [vmem:[#allocation5 + $0x3774] ss:$40 sps:$4 sm:$0xff]   ;;  %v23760_v34 = vld [vmem:[#allocation5 + $0x3904] ss:$40 sps:$4 sm:$0xff]  }
 0x910   :  { %16980 = vmatprep.subr.bf16.mxu1 %v23808_v35  ;;  %v23763_v35 = vld [vmem:[#allocation5 + $0x3954] ss:$40 sps:$4 sm:$0xff]  }
 0x912   :  { %14124 = vmatpush1.bf16.msra.mxu0 %v23704_v29  ;;  %v23746_v29 = vld [vmem:[#allocation5 + $0x37c0] ss:$40 sps:$4 sm:$0xff]  }
 0x913   :  { %14125 = vmatprep.subr.bf16.mxu0 %v23709_v17  ;;  %16981 = vmatpush1.bf16.msra.mxu1 %v23806_v10  ;;  %v23751_v17 = vld [vmem:[#allocation5 + $0x3814] ss:$40 sps:$4 sm:$0xff]   ;;  %v23764_v10 = vld [vmem:[#allocation5 + $0x39a0] ss:$40 sps:$4 sm:$0xff]  }
 0x914   :  { %16982 = vmatprep.subr.bf16.mxu1 %v23811_v27  ;;  %v23769_v27 = vld [vmem:[#allocation5 + $0x39f4] ss:$40 sps:$4 sm:$0xff]  }
 0x916   :  { %14126 = vmatpush1.bf16.msra.mxu0 %v23707_v33  ;;  %v23752_v33 = vld [vmem:[#allocation5 + $0x3860] ss:$40 sps:$4 sm:$0xff]  }
 0x917   :  { %14127 = vmatprep.subr.bf16.mxu0 %v23712_v52  ;;  %16983 = vmatpush1.bf16.msra.mxu1 %v23809_v44  ;;  %v23757_v52 = vld [vmem:[#allocation5 + $0x38b4] ss:$40 sps:$4 sm:$0xff]   ;;  %v23770_v44 = vld [vmem:[#allocation5 + $0x3a40] ss:$40 sps:$4 sm:$0xff]  }
 0x918   :  { %16984 = vmatprep.subr.bf16.mxu1 %v23814_v51  ;;  %v23775_v51 = vld [vmem:[#allocation5 + $0x3a94] ss:$40 sps:$4 sm:$0xff]  }
 0x91a   :  { %14128 = vmatpush1.bf16.msra.mxu0 %v23710_v4  ;;  %v23761_v4 = vld [vmem:[#allocation5 + $0x3950] ss:$40 sps:$4 sm:$0xff]  }
 0x91b   :  { %14129 = vmatprep.subr.bf16.mxu0 %v23715_v37  ;;  %16985 = vmatpush1.bf16.msra.mxu1 %v23812_v55  ;;  %v23766_v37 = vld [vmem:[#allocation5 + $0x39a4] ss:$40 sps:$4 sm:$0xff]   ;;  %v23776_v55 = vld [vmem:[#allocation5 + $0x3ae0] ss:$40 sps:$4 sm:$0xff]  }
 0x91c   :  { %16986 = vmatprep.subr.bf16.mxu1 %v23819_v56  ;;  %v23781_v56 = vld [vmem:[#allocation5 + $0x3b34] ss:$40 sps:$4 sm:$0xff]  }
 0x91e   :  { %14130 = vmatpush1.bf16.msra.mxu0 %v23713_v39  ;;  %v23767_v39 = vld [vmem:[#allocation5 + $0x39f0] ss:$40 sps:$4 sm:$0xff]  }
 0x91f   :  { %14131 = vmatprep.subr.bf16.mxu0 %v23718_v40  ;;  %16987 = vmatpush1.bf16.msra.mxu1 %v23817_v11  ;;  %v23772_v40 = vld [vmem:[#allocation5 + $0x3a44] ss:$40 sps:$4 sm:$0xff]   ;;  %v23782_v11 = vld [vmem:[#allocation5 + $0x3b80] ss:$40 sps:$4 sm:$0xff]  }
 0x920   :  { %16988 = vmatprep.subr.bf16.mxu1 %v23824_v49  ;;  %v23787_v49 = vld [vmem:[#allocation5 + $0x3bd4] ss:$40 sps:$4 sm:$0xff]  }
 0x922   :  { %14132 = vmatpush1.bf16.msra.mxu0 %v23716_v5  ;;  %v23773_v5 = vld [vmem:[#allocation5 + $0x3a90] ss:$40 sps:$4 sm:$0xff]  }
 0x923   :  { %14133 = vmatprep.subr.bf16.mxu0 %v23721_v53  ;;  %16989 = vmatpush1.bf16.msra.mxu1 %v23822_v22  ;;  %v23778_v53 = vld [vmem:[#allocation5 + $0x3ae4] ss:$40 sps:$4 sm:$0xff]  }
 0x924   :  { %16990 = vmatprep.subr.bf16.mxu1 %v23829_v63  ;;  %v23816_v22 = vld [vmem:[#allocation8 + $0xa10] ss:$20 sps:$4 sm:$0xff]   ;;  %v23820_v63 = vld [vmem:[#allocation8 + $0xb78] ss:$20 sps:$4 sm:$0xff]  }
 0x926   :  { %14134 = vmatpush1.bf16.msra.mxu0 %v23719_v57  ;;  %v23779_v57 = vld [vmem:[#allocation5 + $0x3b30] ss:$40 sps:$4 sm:$0xff]  }
 0x927   :  { %14135 = vmatprep.subr.bf16.mxu0 %v23724_v42  ;;  %16991 = vmatpush1.bf16.msra.mxu1 %v23827_v1  ;;  %v23784_v42 = vld [vmem:[#allocation5 + $0x3b84] ss:$40 sps:$4 sm:$0xff]  }
 0x928   :  { %16992 = vmatprep.subr.bf16.mxu1 %v23834_v31  ;;  %v23826_v1 = vld [vmem:[#allocation8 + $0xa60] ss:$20 sps:$4 sm:$0xff]   ;;  %v23830_v31 = vld [vmem:[#allocation8 + $0xbc8] ss:$20 sps:$4 sm:$0xff]  }
 0x92a   :  { %14136 = vmatpush1.bf16.msra.mxu0 %v23722_v8  ;;  %v23785_v8 = vld [vmem:[#allocation5 + $0x3bd0] ss:$40 sps:$4 sm:$0xff]  }
 0x92b   :  { %14137 = vmatprep.subr.bf16.mxu0 %v23727_v12  ;;  %16993 = vmatpush1.bf16.msra.mxu1 %v23832_v24  ;;  %v23815_v12 = vld [vmem:[#allocation8 + $0xb50] ss:$20 sps:$4 sm:$0xff]  }
 0x92c   :  { %16994 = vmatprep.subr.bf16.mxu1 %v23839_v6  ;;  %v23836_v24 = vld [vmem:[#allocation8 + $0xab0] ss:$20 sps:$4 sm:$0xff]   ;;  %v23840_v6 = vld [vmem:[#allocation8 + $0xc18] ss:$20 sps:$4 sm:$0xff]  }
 0x92e   :  { %14138 = vmatpush1.bf16.msra.mxu0 %v23725_v26  ;;  %v23821_v26 = vld [vmem:[#allocation8 + $0xa38] ss:$20 sps:$4 sm:$0xff]  }
 0x92f   :  { %14139 = vmatprep.subr.bf16.mxu0 %v23730_v0  ;;  %16995 = vmatpush1.bf16.msra.mxu1 %v23837_v38  ;;  %v23825_v0 = vld [vmem:[#allocation8 + $0xba0] ss:$20 sps:$4 sm:$0xff]  }
 0x930   :  { %v23845_v38 = vld [vmem:[#allocation8 + $0xc40] ss:$20 sps:$4 sm:$0xff]  }
 0x932   :  { %14140 = vmatpush1.bf16.msra.mxu0 %v23728_v18  ;;  %v23831_v18 = vld [vmem:[#allocation8 + $0xa88] ss:$20 sps:$4 sm:$0xff]  }
 0x933   :  { %14141 = vmatprep.subr.bf16.mxu0 %v23733_v2  ;;  %v23835_v2 = vld [vmem:[#allocation8 + $0xbf0] ss:$20 sps:$4 sm:$0xff]  }
 0x936   :  { %14142 = vmatpush1.bf16.msra.mxu0 %v23731_v15  ;;  %v23841_v15 = vld [vmem:[#allocation8 + $0xad8] ss:$20 sps:$4 sm:$0xff]  }
 0x937   :  { %14143 = vmatprep.subr.bf16.mxu0 %v23736_v19  ;;  %v23842_v19 = vld [vmem:[#allocation8 + $0xc30] ss:$20 sps:$4 sm:$0xff]  }
 0x93a   :  { %14144 = vmatpush1.bf16.msra.mxu0 %v23734_v13  ;;  %v23846_v13 = vld [vmem:[#allocation8 + $0xb00] ss:$20 sps:$4 sm:$0xff]  }
 0x93b   :  { %14145 = vmatprep.subr.bf16.mxu0 %v23739_v20  ;;  %v23849_v20 = vld [vmem:[#allocation8 + $0xc5c] ss:$20 sps:$4 sm:$0xff]  }
 0x93e   :  { %14146 = vmatpush1.bf16.msra.mxu0 %v23737_v36  ;;  %v23847_v36 = vld [vmem:[#allocation8 + $0xc58] ss:$20 sps:$4 sm:$0xff]  }
 0x93f   :  { %14156 = vmatprep.subr.bf16.mxu0 %v23742_v62  ;;  %v23850_v62 = vld [vmem:[#allocation8 + $0xc68] ss:$20 sps:$4 sm:$0xff]  }
 0x941   :  { %14148 = vmatmul.mubr.bf16.vlgmr.msra.gmra.mrb[8].mxu0 %v24607_v7  ;;  %v23755_v7 = vld [vmem:[#allocation5 + $0x38b0] ss:$40 sps:$4 sm:$0xff]  }
 0x942   :  { %14157 = vmatpush1.bf16.msra.mxu0 %v23740_v48  ;;  %14188 = vmatprep.mubr.bf16.mxu0 %v24609_v14  ;;  %v23758_v14 = vld [vmem:[#allocation5 + $0x3900] ss:$40 sps:$4 sm:$0xff]  }
 0x943   :  { %14158 = vmatprep.subr.bf16.mxu0 %v23745_v43  ;;  %v23851_v48 = vld [vmem:[#allocation8 + $0xb28] ss:$20 sps:$4 sm:$0xff]   ;;  %v23854_v43 = vld [vmem:[#allocation8 + $0xc] ss:$20 sps:$4 sm:$0xff]  }
 0x946   :  { %14159 = vmatpush1.bf16.msra.mxu0 %v23743_v3  ;;  %v2084_v3 = vld [vmem:[#allocation7 + $0x8] sm:$0x3] }
 0x947   :  { %14160 = vmatprep.subr.bf16.mxu0 %v23748_v23  ;;  %v2122_v23 = vrot.slane %v2084_v3, %v24690_v21 }
 0x94a   :  { %14161 = vmatpush1.bf16.msra.mxu0 %v23746_v29  ;;  %v2126_v29 = vrot.slane %v2084_v3, %v24676_v25  ;;  %v23911_v3 = vld [vmem:[#allocation8 + $0x304] ss:$20 sps:$4 sm:$0xff]  }
 0x94b   :  { %14162 = vmatprep.subr.bf16.mxu0 %v23751_v17 }
 0x94e   :  { %14163 = vmatpush1.bf16.msra.mxu0 %v23749_v32 }
 0x94f   :  { %14164 = vmatprep.subr.bf16.mxu0 %v23754_v46 }
 0x952   :  { %14165 = vmatpush1.bf16.msra.mxu0 %v23752_v33 }
 0x953   :  { %14166 = vmatprep.subr.bf16.mxu0 %v23757_v52 }
 0x956   :  { %14167 = vmatpush1.bf16.msra.mxu0 %v23755_v7 }
 0x957   :  { %14168 = vmatprep.subr.bf16.mxu0 %v23760_v34 }
 0x95a   :  { %14169 = vmatpush1.bf16.msra.mxu0 %v23758_v14 }
 0x95b   :  { %14170 = vmatprep.subr.bf16.mxu0 %v23763_v35 }
 0x95e   :  { %14171 = vmatpush1.bf16.msra.mxu0 %v23761_v4  ;;  %v23852_v4 = vld [vmem:[#allocation8 + $0x8] ss:$20 sps:$4 sm:$0xff]  }
 0x95f   :  { %14172 = vmatprep.subr.bf16.mxu0 %v23766_v37 }
 0x962   :  { %14173 = vmatpush1.bf16.msra.mxu0 %v23764_v10  ;;  %v23857_v10 = vld [vmem:[#allocation8 + $0x34] ss:$20 sps:$4 sm:$0xff]  }
 0x963   :  { %14174 = vmatprep.subr.bf16.mxu0 %v23769_v27  ;;  %v23855_v27 = vld [vmem:[#allocation8 + $0x30] ss:$20 sps:$4 sm:$0xff]  }
 0x966   :  { %14175 = vmatpush1.bf16.msra.mxu0 %v23767_v39  ;;  %v23860_v39 = vld [vmem:[#allocation8 + $0x5c] ss:$20 sps:$4 sm:$0xff]  }
 0x967   :  { %14176 = vmatprep.subr.bf16.mxu0 %v23772_v40  ;;  %v23858_v40 = vld [vmem:[#allocation8 + $0x58] ss:$20 sps:$4 sm:$0xff]  }
 0x96a   :  { %14177 = vmatpush1.bf16.msra.mxu0 %v23770_v44  ;;  %v23863_v44 = vld [vmem:[#allocation8 + $0x84] ss:$20 sps:$4 sm:$0xff]  }
 0x96b   :  { %14178 = vmatprep.subr.bf16.mxu0 %v23775_v51  ;;  %v23861_v51 = vld [vmem:[#allocation8 + $0x80] ss:$20 sps:$4 sm:$0xff]  }
 0x96e   :  { %14179 = vmatpush1.bf16.msra.mxu0 %v23773_v5  ;;  %v23866_v5 = vld [vmem:[#allocation8 + $0xac] ss:$20 sps:$4 sm:$0xff]  }
 0x96f   :  { %14180 = vmatprep.subr.bf16.mxu0 %v23778_v53  ;;  %v23864_v53 = vld [vmem:[#allocation8 + $0xa8] ss:$20 sps:$4 sm:$0xff]  }
 0x972   :  { %14181 = vmatpush1.bf16.msra.mxu0 %v23776_v55  ;;  %v23869_v55 = vld [vmem:[#allocation8 + $0xd4] ss:$20 sps:$4 sm:$0xff]  }
 0x973   :  { %14182 = vmatprep.subr.bf16.mxu0 %v23781_v56  ;;  %v23867_v56 = vld [vmem:[#allocation8 + $0xd0] ss:$20 sps:$4 sm:$0xff]  }
 0x976   :  { %14183 = vmatpush1.bf16.msra.mxu0 %v23779_v57  ;;  %v23872_v57 = vld [vmem:[#allocation8 + $0xfc] ss:$20 sps:$4 sm:$0xff]  }
 0x977   :  { %14184 = vmatprep.subr.bf16.mxu0 %v23784_v42  ;;  %v23870_v42 = vld [vmem:[#allocation8 + $0xf8] ss:$20 sps:$4 sm:$0xff]  }
 0x97a   :  { %14185 = vmatpush1.bf16.msra.mxu0 %v23782_v11  ;;  %v23875_v11 = vld [vmem:[#allocation8 + $0x124] ss:$20 sps:$4 sm:$0xff]  }
 0x97b   :  { %14186 = vmatprep.subr.bf16.mxu0 %v23787_v49  ;;  %v23873_v49 = vld [vmem:[#allocation8 + $0x120] ss:$20 sps:$4 sm:$0xff]  }
 0x97e   :  { %14187 = vmatpush1.bf16.msra.mxu0 %v23785_v8  ;;  %v23878_v8 = vld [vmem:[#allocation8 + $0x14c] ss:$20 sps:$4 sm:$0xff]  }
 0x97f   :  { %20339 = vmatprep.subr.bf16.mxu0 %v23815_v12  ;;  %v23876_v12 = vld [vmem:[#allocation8 + $0x148] ss:$20 sps:$4 sm:$0xff]  }
 0x981   :  { %14189 = vmatmul.mubr.bf16.vlgmr.msra.gmra.mrb[8].mxu0 %v24615_v47  ;;  %v23844_v47 = vld [vmem:[#allocation8 + $0xc34] ss:$20 sps:$4 sm:$0xff]  }
 0x982   :  { %20340 = vmatpush3.bf16.msra.mxu0 %v23816_v22  ;;  %16996 = vmatprep.subr.bf16.mxu1 %v23844_v47  ;;  %v23881_v22 = vld [vmem:[#allocation8 + $0x174] ss:$20 sps:$4 sm:$0xff]   ;;  %v23894_v47 = vld [vmem:[#allocation8 + $0x238] ss:$20 sps:$4 sm:$0xff]  }
 0x983   :  { %20341 = vmatprep.subr.bf16.mxu0 %v23820_v63  ;;  %16997 = vmatpush1.bf16.msra.mxu1 %v23842_v19  ;;  %v23879_v63 = vld [vmem:[#allocation8 + $0x170] ss:$20 sps:$4 sm:$0xff]  }
 0x984   :  { %16998 = vmatprep.subr.bf16.mxu1 %v23849_v20  ;;  %v23899_v19 = vld [vmem:[#allocation8 + $0x264] ss:$20 sps:$4 sm:$0xff]   ;;  %v23900_v20 = vld [vmem:[#allocation8 + $0x288] ss:$20 sps:$4 sm:$0xff]  }
 0x986   :  { %20342 = vmatpush3.bf16.msra.mxu0 %v23821_v26  ;;  %v23884_v26 = vld [vmem:[#allocation8 + $0x19c] ss:$20 sps:$4 sm:$0xff]  }
 0x987   :  { %20343 = vmatprep.subr.bf16.mxu0 %v23825_v0  ;;  %16999 = vmatpush1.bf16.msra.mxu1 %v23847_v36  ;;  %v23882_v0 = vld [vmem:[#allocation8 + $0x198] ss:$20 sps:$4 sm:$0xff]   ;;  %v23905_v36 = vld [vmem:[#allocation8 + $0x2b4] ss:$20 sps:$4 sm:$0xff]  }
 0x988   :  { %17009 = vmatprep.subr.bf16.mxu1 %v23854_v43  ;;  %v23906_v43 = vld [vmem:[#allocation8 + $0x2d8] ss:$20 sps:$4 sm:$0xff]  }
 0x98a   :  { %20344 = vmatpush3.bf16.msra.mxu0 %v23826_v1  ;;  %v23887_v1 = vld [vmem:[#allocation8 + $0x1c4] ss:$20 sps:$4 sm:$0xff]  }
 0x98b   :  { %20345 = vmatprep.subr.bf16.mxu0 %v23830_v31  ;;  %v23885_v31 = vld [vmem:[#allocation8 + $0x1c0] ss:$20 sps:$4 sm:$0xff]  }
 0x98e   :  { %20346 = vmatpush3.bf16.msra.mxu0 %v23831_v18  ;;  %v23890_v18 = vld [vmem:[#allocation8 + $0x1ec] ss:$20 sps:$4 sm:$0xff]  }
 0x98f   :  { %20347 = vmatprep.subr.bf16.mxu0 %v23835_v2  ;;  %v23888_v2 = vld [vmem:[#allocation8 + $0x1e8] ss:$20 sps:$4 sm:$0xff]  }
 0x992   :  { %20348 = vmatpush3.bf16.msra.mxu0 %v23836_v24  ;;  %v23893_v24 = vld [vmem:[#allocation8 + $0x214] ss:$20 sps:$4 sm:$0xff]  }
 0x993   :  { %20349 = vmatprep.subr.bf16.mxu0 %v23840_v6  ;;  %v23891_v6 = vld [vmem:[#allocation8 + $0x210] ss:$20 sps:$4 sm:$0xff]  }
 0x996   :  { %20350 = vmatpush3.bf16.msra.mxu0 %v23841_v15  ;;  %v23896_v15 = vld [vmem:[#allocation8 + $0x23c] ss:$20 sps:$4 sm:$0xff]  }
 0x997   :  { %20351 = vmatprep.subr.bf16.mxu0 %v23845_v38  ;;  %v23897_v38 = vld [vmem:[#allocation8 + $0x260] ss:$20 sps:$4 sm:$0xff]  }
 0x99a   :  { %20352 = vmatpush3.bf16.msra.mxu0 %v23846_v13  ;;  %v23902_v13 = vld [vmem:[#allocation8 + $0x28c] ss:$20 sps:$4 sm:$0xff]  }
 0x99b   :  { %20353 = vmatprep.subr.bf16.mxu0 %v23850_v62  ;;  %v23903_v62 = vld [vmem:[#allocation8 + $0x2b0] ss:$20 sps:$4 sm:$0xff]  }
 0x99e   :  { %20354 = vmatpush3.bf16.msra.mxu0 %v23851_v48  ;;  %v23908_v48 = vld [vmem:[#allocation8 + $0x2dc] ss:$20 sps:$4 sm:$0xff]  }
 0xa54   :  { %v14190_v17 = vpop.f32.mrb[8].mxu0 }
 0xa55   :  { %v20442_v32 = vadd.f32 %v14190_v17, %v2122_v23  ;;  %v14192_v46 = vpop.f32.mrb[9].mxu0  ;;  %v23909_v23 = vld [vmem:[#allocation8 + $0x300] ss:$20 sps:$4 sm:$0xff]   ;;  %v23912_v17 = vld [vmem:[#allocation8 + $0x328] ss:$20 sps:$4 sm:$0xff]  }
 0xa56   :  { %v20443_v33 = vadd.f32 %v14192_v46, %v2126_v29  ;;  %v14194_v52 = vpop.f32.mrb[10].mxu0  ;;  %v23914_v29 = vld [vmem:[#allocation8 + $0x32c] ss:$20 sps:$4 sm:$0xff]   ;;  %v23915_v46 = vld [vmem:[#allocation8 + $0x350] ss:$20 sps:$4 sm:$0xff]  }
 0xa57   :  { %v14205_v7 = vmax.f32 %v20442_v32, 0.0  ;;  %v14195_v34 = vpop.f32.mrb[11].mxu0  ;;  %v23917_v32 = vld [vmem:[#allocation8 + $0x354] ss:$20 sps:$4 sm:$0xff]   ;;  %v23918_v52 = vld [vmem:[#allocation8 + $0x378] ss:$20 sps:$4 sm:$0xff]  }
 0xa58   :  { %v14206_v14 = vmax.f32 %v20443_v33, 0.0  ;;  %v23920_v33 = vld [vmem:[#allocation8 + $0x37c] ss:$20 sps:$4 sm:$0xff]   ;;  %v23921_v34 = vld [vmem:[#allocation8 + $0x3a0] ss:$20 sps:$4 sm:$0xff]  }
 0xa59   :  { %v24765_v37 = vpack.c.bf16 %v14205_v7, %v14205_v7  ;;  %v23923_v7 = vld [vmem:[#allocation8 + $0x3a4] ss:$20 sps:$4 sm:$0xff]  }
 0xa5a   :  { %v24763_v35 = vpack.c.bf16 %v14206_v14, %v14206_v14  ;;  %v23926_v14 = vld [vmem:[#allocation8 + $0x3cc] ss:$20 sps:$4 sm:$0xff]  }
 0xa5c   :  { %17000 = vmatprep.mubr.bf16.mxu1 %v24763_v35  ;;  %17406 = vmatprep.mubr.bf16.mxu0 %v24763_v35 }
 0xa5d   :  { %17001 = vmatmul.mubr.bf16.vlgmr.msra.gmra.mrb[8].mxu1 %v24765_v37  ;;  %17407 = vmatmul.mubr.bf16.vlgmr.msra.gmra.mrb[12].mxu0 %v24765_v37 }
 0xa5e   :  { %17010 = vmatpush1.bf16.msra.mxu1 %v23852_v4  ;;  %17041 = vmatprep.mubr.bf16.mxu1 %v24683_v58  ;;  %v23924_v4 = vld [vmem:[#allocation8 + $0x3c8] ss:$20 sps:$4 sm:$0xff]  }
 0xa5f   :  { %17011 = vmatprep.subr.bf16.mxu1 %v23857_v10  ;;  %v23929_v10 = vld [vmem:[#allocation8 + $0x3f4] ss:$20 sps:$4 sm:$0xff]  }
 0xa62   :  { %17012 = vmatpush1.bf16.msra.mxu1 %v23855_v27  ;;  %v23927_v27 = vld [vmem:[#allocation8 + $0x3f0] ss:$20 sps:$4 sm:$0xff]  }
 0xa63   :  { %17013 = vmatprep.subr.bf16.mxu1 %v23860_v39  ;;  %v23932_v39 = vld [vmem:[#allocation8 + $0x41c] ss:$20 sps:$4 sm:$0xff]  }
 0xa66   :  { %17014 = vmatpush1.bf16.msra.mxu1 %v23858_v40  ;;  %v23930_v40 = vld [vmem:[#allocation8 + $0x418] ss:$20 sps:$4 sm:$0xff]  }
 0xa67   :  { %17015 = vmatprep.subr.bf16.mxu1 %v23863_v44  ;;  %v23935_v44 = vld [vmem:[#allocation8 + $0x444] ss:$20 sps:$4 sm:$0xff]  }
 0xa6a   :  { %17016 = vmatpush1.bf16.msra.mxu1 %v23861_v51  ;;  %v23933_v51 = vld [vmem:[#allocation8 + $0x440] ss:$20 sps:$4 sm:$0xff]  }
 0xa6b   :  { %17017 = vmatprep.subr.bf16.mxu1 %v23866_v5  ;;  %v23938_v5 = vld [vmem:[#allocation8 + $0x46c] ss:$20 sps:$4 sm:$0xff]  }
 0xa6e   :  { %17018 = vmatpush1.bf16.msra.mxu1 %v23864_v53  ;;  %v23936_v53 = vld [vmem:[#allocation8 + $0x468] ss:$20 sps:$4 sm:$0xff]  }
 0xa6f   :  { %17019 = vmatprep.subr.bf16.mxu1 %v23869_v55  ;;  %v23941_v55 = vld [vmem:[#allocation8 + $0x494] ss:$20 sps:$4 sm:$0xff]  }
 0xa72   :  { %17020 = vmatpush1.bf16.msra.mxu1 %v23867_v56  ;;  %v23939_v56 = vld [vmem:[#allocation8 + $0x490] ss:$20 sps:$4 sm:$0xff]  }
 0xa73   :  { %17021 = vmatprep.subr.bf16.mxu1 %v23872_v57  ;;  %v23944_v57 = vld [vmem:[#allocation8 + $0x4bc] ss:$20 sps:$4 sm:$0xff]  }
 0xa76   :  { %17022 = vmatpush1.bf16.msra.mxu1 %v23870_v42  ;;  %v23942_v42 = vld [vmem:[#allocation8 + $0x4b8] ss:$20 sps:$4 sm:$0xff]  }
 0xa77   :  { %17023 = vmatprep.subr.bf16.mxu1 %v23875_v11  ;;  %v23947_v11 = vld [vmem:[#allocation8 + $0x4e4] ss:$20 sps:$4 sm:$0xff]  }
 0xa7a   :  { %17024 = vmatpush1.bf16.msra.mxu1 %v23873_v49  ;;  %v23945_v49 = vld [vmem:[#allocation8 + $0x4e0] ss:$20 sps:$4 sm:$0xff]  }
 0xa7b   :  { %17025 = vmatprep.subr.bf16.mxu1 %v23878_v8  ;;  %v23950_v8 = vld [vmem:[#allocation8 + $0x50c] ss:$20 sps:$4 sm:$0xff]  }
 0xa7e   :  { %17026 = vmatpush1.bf16.msra.mxu1 %v23876_v12  ;;  %v23948_v12 = vld [vmem:[#allocation8 + $0x508] ss:$20 sps:$4 sm:$0xff]  }
 0xa7f   :  { %17027 = vmatprep.subr.bf16.mxu1 %v23881_v22  ;;  %v23953_v22 = vld [vmem:[#allocation8 + $0x534] ss:$20 sps:$4 sm:$0xff]  }
 0xa82   :  { %17028 = vmatpush1.bf16.msra.mxu1 %v23879_v63  ;;  %v23951_v63 = vld [vmem:[#allocation8 + $0x530] ss:$20 sps:$4 sm:$0xff]  }
 0xa83   :  { %17029 = vmatprep.subr.bf16.mxu1 %v23884_v26  ;;  %v23956_v26 = vld [vmem:[#allocation8 + $0x55c] ss:$20 sps:$4 sm:$0xff]  }
 0xa86   :  { %17030 = vmatpush1.bf16.msra.mxu1 %v23882_v0  ;;  %v23954_v0 = vld [vmem:[#allocation8 + $0x558] ss:$20 sps:$4 sm:$0xff]  }
 0xa87   :  { %17031 = vmatprep.subr.bf16.mxu1 %v23887_v1  ;;  %v23959_v1 = vld [vmem:[#allocation8 + $0x584] ss:$20 sps:$4 sm:$0xff]  }
 0xa8a   :  { %17032 = vmatpush1.bf16.msra.mxu1 %v23885_v31  ;;  %v23957_v31 = vld [vmem:[#allocation8 + $0x580] ss:$20 sps:$4 sm:$0xff]  }
 0xa8b   :  { %17033 = vmatprep.subr.bf16.mxu1 %v23890_v18  ;;  %v23962_v18 = vld [vmem:[#allocation8 + $0x5ac] ss:$20 sps:$4 sm:$0xff]  }
 0xa8e   :  { %17034 = vmatpush1.bf16.msra.mxu1 %v23888_v2  ;;  %v23960_v2 = vld [vmem:[#allocation8 + $0x5a8] ss:$20 sps:$4 sm:$0xff]  }
 0xa8f   :  { %17035 = vmatprep.subr.bf16.mxu1 %v23893_v24  ;;  %v23965_v24 = vld [vmem:[#allocation8 + $0x5d4] ss:$20 sps:$4 sm:$0xff]  }
 0xa92   :  { %17036 = vmatpush1.bf16.msra.mxu1 %v23891_v6  ;;  %v23963_v6 = vld [vmem:[#allocation8 + $0x5d0] ss:$20 sps:$4 sm:$0xff]  }
 0xa93   :  { %17037 = vmatprep.subr.bf16.mxu1 %v23896_v15  ;;  %v23968_v15 = vld [vmem:[#allocation8 + $0x5fc] ss:$20 sps:$4 sm:$0xff]  }
 0xa96   :  { %17038 = vmatpush1.bf16.msra.mxu1 %v23894_v47  ;;  %v23966_v47 = vld [vmem:[#allocation8 + $0x5f8] ss:$20 sps:$4 sm:$0xff]  }
 0xa97   :  { %17039 = vmatprep.subr.bf16.mxu1 %v23899_v19  ;;  %v23971_v19 = vld [vmem:[#allocation8 + $0x624] ss:$20 sps:$4 sm:$0xff]  }
 0xa9a   :  { %17040 = vmatpush1.bf16.msra.mxu1 %v23897_v38  ;;  %v23969_v38 = vld [vmem:[#allocation8 + $0x620] ss:$20 sps:$4 sm:$0xff]  }
 0xa9b   :  { %17050 = vmatprep.subr.bf16.mxu1 %v23902_v13  ;;  %v23974_v13 = vld [vmem:[#allocation8 + $0x64c] ss:$20 sps:$4 sm:$0xff]  }
 0xa9d   :  { %17042 = vmatmul.mubr.bf16.vlgmr.msra.gmra.mrb[12].mxu1 %v24700_v59 }
 0xa9e   :  { %17051 = vmatpush1.bf16.msra.mxu1 %v23900_v20  ;;  %17082 = vmatprep.mubr.bf16.mxu1 %v24702_v61  ;;  %v23972_v20 = vld [vmem:[#allocation8 + $0x648] ss:$20 sps:$4 sm:$0xff]  }
 0xa9f   :  { %17052 = vmatprep.subr.bf16.mxu1 %v23905_v36  ;;  %v23977_v36 = vld [vmem:[#allocation8 + $0x674] ss:$20 sps:$4 sm:$0xff]  }
 0xaa2   :  { %17053 = vmatpush1.bf16.msra.mxu1 %v23903_v62  ;;  %v23975_v62 = vld [vmem:[#allocation8 + $0x670] ss:$20 sps:$4 sm:$0xff]  }
 0xaa3   :  { %17054 = vmatprep.subr.bf16.mxu1 %v23908_v48  ;;  %v23980_v48 = vld [vmem:[#allocation8 + $0x69c] ss:$20 sps:$4 sm:$0xff]  }
 0xaa6   :  { %17055 = vmatpush1.bf16.msra.mxu1 %v23906_v43  ;;  %v23978_v43 = vld [vmem:[#allocation8 + $0x698] ss:$20 sps:$4 sm:$0xff]  }
 0xaa7   :  { %17056 = vmatprep.subr.bf16.mxu1 %v23911_v3  ;;  %v23983_v3 = vld [vmem:[#allocation8 + $0x6c4] ss:$20 sps:$4 sm:$0xff]  }
 0xaaa   :  { %17057 = vmatpush1.bf16.msra.mxu1 %v23909_v23  ;;  %v23981_v23 = vld [vmem:[#allocation8 + $0x6c0] ss:$20 sps:$4 sm:$0xff]  }
 0xaab   :  { %17058 = vmatprep.subr.bf16.mxu1 %v23914_v29  ;;  %v23986_v29 = vld [vmem:[#allocation8 + $0x6ec] ss:$20 sps:$4 sm:$0xff]  }
 0xaae   :  { %17059 = vmatpush1.bf16.msra.mxu1 %v23912_v17  ;;  %v23984_v17 = vld [vmem:[#allocation8 + $0x6e8] ss:$20 sps:$4 sm:$0xff]  }
 0xaaf   :  { %17060 = vmatprep.subr.bf16.mxu1 %v23917_v32  ;;  %v23989_v32 = vld [vmem:[#allocation8 + $0x714] ss:$20 sps:$4 sm:$0xff]  }
 0xab2   :  { %17061 = vmatpush1.bf16.msra.mxu1 %v23915_v46  ;;  %v23987_v46 = vld [vmem:[#allocation8 + $0x710] ss:$20 sps:$4 sm:$0xff]  }
 0xab3   :  { %17062 = vmatprep.subr.bf16.mxu1 %v23920_v33  ;;  %v23992_v33 = vld [vmem:[#allocation8 + $0x73c] ss:$20 sps:$4 sm:$0xff]  }
 0xab6   :  { %17063 = vmatpush1.bf16.msra.mxu1 %v23918_v52  ;;  %v23990_v52 = vld [vmem:[#allocation8 + $0x738] ss:$20 sps:$4 sm:$0xff]  }
 0xab7   :  { %17064 = vmatprep.subr.bf16.mxu1 %v23923_v7  ;;  %v23995_v7 = vld [vmem:[#allocation8 + $0x764] ss:$20 sps:$4 sm:$0xff]  }
 0xaba   :  { %17065 = vmatpush1.bf16.msra.mxu1 %v23921_v34  ;;  %v23993_v34 = vld [vmem:[#allocation8 + $0x760] ss:$20 sps:$4 sm:$0xff]  }
 0xabb   :  { %17066 = vmatprep.subr.bf16.mxu1 %v23926_v14  ;;  %v23998_v14 = vld [vmem:[#allocation8 + $0x78c] ss:$20 sps:$4 sm:$0xff]  }
 0xabe   :  { %17067 = vmatpush1.bf16.msra.mxu1 %v23924_v4  ;;  %v23996_v4 = vld [vmem:[#allocation8 + $0x788] ss:$20 sps:$4 sm:$0xff]  }
 0xabf   :  { %17068 = vmatprep.subr.bf16.mxu1 %v23929_v10  ;;  %v24001_v10 = vld [vmem:[#allocation8 + $0x7b4] ss:$20 sps:$4 sm:$0xff]  }
 0xac2   :  { %17069 = vmatpush1.bf16.msra.mxu1 %v23927_v27  ;;  %v23999_v27 = vld [vmem:[#allocation8 + $0x7b0] ss:$20 sps:$4 sm:$0xff]  }
 0xac3   :  { %17070 = vmatprep.subr.bf16.mxu1 %v23932_v39  ;;  %v24004_v39 = vld [vmem:[#allocation8 + $0x7dc] ss:$20 sps:$4 sm:$0xff]  }
 0xac6   :  { %17071 = vmatpush1.bf16.msra.mxu1 %v23930_v40  ;;  %v24002_v40 = vld [vmem:[#allocation8 + $0x7d8] ss:$20 sps:$4 sm:$0xff]  }
 0xac7   :  { %17072 = vmatprep.subr.bf16.mxu1 %v23935_v44  ;;  %v24007_v44 = vld [vmem:[#allocation8 + $0x804] ss:$20 sps:$4 sm:$0xff]  }
 0xaca   :  { %17073 = vmatpush1.bf16.msra.mxu1 %v23933_v51  ;;  %v24005_v51 = vld [vmem:[#allocation8 + $0x800] ss:$20 sps:$4 sm:$0xff]  }
 0xacb   :  { %17074 = vmatprep.subr.bf16.mxu1 %v23938_v5  ;;  %v24010_v5 = vld [vmem:[#allocation8 + $0x82c] ss:$20 sps:$4 sm:$0xff]  }
 0xace   :  { %17075 = vmatpush1.bf16.msra.mxu1 %v23936_v53  ;;  %v24008_v53 = vld [vmem:[#allocation8 + $0x828] ss:$20 sps:$4 sm:$0xff]  }
 0xacf   :  { %17076 = vmatprep.subr.bf16.mxu1 %v23941_v55  ;;  %v24013_v55 = vld [vmem:[#allocation8 + $0x854] ss:$20 sps:$4 sm:$0xff]  }
 0xad2   :  { %17077 = vmatpush1.bf16.msra.mxu1 %v23939_v56  ;;  %v24011_v56 = vld [vmem:[#allocation8 + $0x850] ss:$20 sps:$4 sm:$0xff]  }
 0xad3   :  { %17078 = vmatprep.subr.bf16.mxu1 %v23944_v57  ;;  %v24016_v57 = vld [vmem:[#allocation8 + $0x87c] ss:$20 sps:$4 sm:$0xff]  }
 0xad6   :  { %17079 = vmatpush1.bf16.msra.mxu1 %v23942_v42 }
 0xad7   :  { %17080 = vmatprep.subr.bf16.mxu1 %v23947_v11 }
 0xada   :  { %17081 = vmatpush1.bf16.msra.mxu1 %v23945_v49 }
 0xadb   :  { %17091 = vmatprep.subr.bf16.mxu1 %v23950_v8 }
 0xadd   :  { %17083 = vmatmul.mubr.bf16.vlgmr.msra.gmra.mrb[12].mxu1 %v24713_v60 }
 0xade   :  { %17092 = vmatpush1.bf16.msra.mxu1 %v23948_v12  ;;  %17123 = vmatprep.mubr.bf16.mxu1 %v24730_v41 }
 0xadf   :  { %17093 = vmatprep.subr.bf16.mxu1 %v23953_v22 }
 0xae2   :  { %17094 = vmatpush1.bf16.msra.mxu1 %v23951_v63 }
 0xae3   :  { %17095 = vmatprep.subr.bf16.mxu1 %v23956_v26  ;;  %v24014_v26 = vld [vmem:[#allocation8 + $0x878] ss:$20 sps:$4 sm:$0xff]  }
 0xae6   :  { %17096 = vmatpush1.bf16.msra.mxu1 %v23954_v0 }
 0xae7   :  { %17097 = vmatprep.subr.bf16.mxu1 %v23959_v1 }
 0xaea   :  { %17098 = vmatpush1.bf16.msra.mxu1 %v23957_v31  ;;  %v24019_v31 = vld [vmem:[#allocation8 + $0x8a4] ss:$20 sps:$4 sm:$0xff]  }
 0xaeb   :  { %17099 = vmatprep.subr.bf16.mxu1 %v23962_v18  ;;  %v24017_v18 = vld [vmem:[#allocation8 + $0x8a0] ss:$20 sps:$4 sm:$0xff]  }
 0xaee   :  { %17100 = vmatpush1.bf16.msra.mxu1 %v23960_v2  ;;  %v24022_v2 = vld [vmem:[#allocation8 + $0x8cc] ss:$20 sps:$4 sm:$0xff]  }
 0xaef   :  { %17101 = vmatprep.subr.bf16.mxu1 %v23965_v24  ;;  %v24020_v24 = vld [vmem:[#allocation8 + $0x8c8] ss:$20 sps:$4 sm:$0xff]  }
 0xaf2   :  { %17102 = vmatpush1.bf16.msra.mxu1 %v23963_v6  ;;  %v24025_v6 = vld [vmem:[#allocation8 + $0x8f4] ss:$20 sps:$4 sm:$0xff]  }
 0xaf3   :  { %17103 = vmatprep.subr.bf16.mxu1 %v23968_v15  ;;  %v24023_v15 = vld [vmem:[#allocation8 + $0x8f0] ss:$20 sps:$4 sm:$0xff]  }
 0xaf6   :  { %17104 = vmatpush1.bf16.msra.mxu1 %v23966_v47  ;;  %v24028_v47 = vld [vmem:[#allocation8 + $0x91c] ss:$20 sps:$4 sm:$0xff]  }
 0xaf7   :  { %17105 = vmatprep.subr.bf16.mxu1 %v23971_v19  ;;  %v24026_v19 = vld [vmem:[#allocation8 + $0x918] ss:$20 sps:$4 sm:$0xff]  }
 0xafa   :  { %17106 = vmatpush1.bf16.msra.mxu1 %v23969_v38  ;;  %v24031_v38 = vld [vmem:[#allocation8 + $0x944] ss:$20 sps:$4 sm:$0xff]  }
 0xafb   :  { %17107 = vmatprep.subr.bf16.mxu1 %v23974_v13  ;;  %v24029_v13 = vld [vmem:[#allocation8 + $0x940] ss:$20 sps:$4 sm:$0xff]  }
 0xafe   :  { %17108 = vmatpush1.bf16.msra.mxu1 %v23972_v20  ;;  %v24034_v20 = vld [vmem:[#allocation8 + $0x96c] ss:$20 sps:$4 sm:$0xff]  }
 0xaff   :  { %17109 = vmatprep.subr.bf16.mxu1 %v23977_v36  ;;  %v24032_v36 = vld [vmem:[#allocation8 + $0x968] ss:$20 sps:$4 sm:$0xff]  }
 0xb02   :  { %17110 = vmatpush1.bf16.msra.mxu1 %v23975_v62  ;;  %v24037_v62 = vld [vmem:[#allocation8 + $0x994] ss:$20 sps:$4 sm:$0xff]  }
 0xb03   :  { %17111 = vmatprep.subr.bf16.mxu1 %v23980_v48  ;;  %v24035_v48 = vld [vmem:[#allocation8 + $0x990] ss:$20 sps:$4 sm:$0xff]  }
 0xb06   :  { %17112 = vmatpush1.bf16.msra.mxu1 %v23978_v43  ;;  %v24040_v43 = vld [vmem:[#allocation8 + $0x9bc] ss:$20 sps:$4 sm:$0xff]  }
 0xb07   :  { %17113 = vmatprep.subr.bf16.mxu1 %v23983_v3  ;;  %v24038_v3 = vld [vmem:[#allocation8 + $0x9b8] ss:$20 sps:$4 sm:$0xff]  }
 0xb0a   :  { %17114 = vmatpush1.bf16.msra.mxu1 %v23981_v23  ;;  %v24043_v23 = vld [vmem:[#allocation8 + $0x9e4] ss:$20 sps:$4 sm:$0xff]  }
 0xb0b   :  { %17115 = vmatprep.subr.bf16.mxu1 %v23986_v29  ;;  %v24041_v29 = vld [vmem:[#allocation8 + $0x9e0] ss:$20 sps:$4 sm:$0xff]  }
 0xb0e   :  { %17116 = vmatpush1.bf16.msra.mxu1 %v23984_v17  ;;  %v24046_v17 = vld [vmem:[#allocation8 + $0xa0c] ss:$20 sps:$4 sm:$0xff]  }
 0xb0f   :  { %17117 = vmatprep.subr.bf16.mxu1 %v23989_v32  ;;  %v24044_v32 = vld [vmem:[#allocation8 + $0xa08] ss:$20 sps:$4 sm:$0xff]  }
 0xb12   :  { %17118 = vmatpush1.bf16.msra.mxu1 %v23987_v46  ;;  %v24049_v46 = vld [vmem:[#allocation8 + $0xa34] ss:$20 sps:$4 sm:$0xff]  }
 0xb13   :  { %17119 = vmatprep.subr.bf16.mxu1 %v23992_v33  ;;  %v24047_v33 = vld [vmem:[#allocation8 + $0xa30] ss:$20 sps:$4 sm:$0xff]  }
 0xb16   :  { %17120 = vmatpush1.bf16.msra.mxu1 %v23990_v52  ;;  %v24052_v52 = vld [vmem:[#allocation8 + $0xa5c] ss:$20 sps:$4 sm:$0xff]  }
 0xb17   :  { %17121 = vmatprep.subr.bf16.mxu1 %v23995_v7  ;;  %v24050_v7 = vld [vmem:[#allocation8 + $0xa58] ss:$20 sps:$4 sm:$0xff]  }
 0xb1a   :  { %17122 = vmatpush1.bf16.msra.mxu1 %v23993_v34  ;;  %v24055_v34 = vld [vmem:[#allocation8 + $0xa84] ss:$20 sps:$4 sm:$0xff]  }
 0xb1b   :  { %17132 = vmatprep.subr.bf16.mxu1 %v23998_v14  ;;  %v24053_v14 = vld [vmem:[#allocation8 + $0xa80] ss:$20 sps:$4 sm:$0xff]  }
 0xb1d   :  { %17124 = vmatmul.mubr.bf16.vlgmr.msra.gmra.mrb[12].mxu1 %v24732_v50 }
 0xb1e   :  { %17133 = vmatpush1.bf16.msra.mxu1 %v23996_v4  ;;  %17164 = vmatprep.mubr.bf16.mxu1 %v24735_v54  ;;  %v24058_v4 = vld [vmem:[#allocation8 + $0xaac] ss:$20 sps:$4 sm:$0xff]  }
 0xb1f   :  { %17134 = vmatprep.subr.bf16.mxu1 %v24001_v10  ;;  %v24056_v10 = vld [vmem:[#allocation8 + $0xaa8] ss:$20 sps:$4 sm:$0xff]  }
 0xb22   :  { %17135 = vmatpush1.bf16.msra.mxu1 %v23999_v27  ;;  %v24061_v27 = vld [vmem:[#allocation8 + $0xad4] ss:$20 sps:$4 sm:$0xff]  }
 0xb23   :  { %17136 = vmatprep.subr.bf16.mxu1 %v24004_v39  ;;  %v24059_v39 = vld [vmem:[#allocation8 + $0xad0] ss:$20 sps:$4 sm:$0xff]  }
 0xb26   :  { %17137 = vmatpush1.bf16.msra.mxu1 %v24002_v40  ;;  %v24064_v40 = vld [vmem:[#allocation8 + $0xafc] ss:$20 sps:$4 sm:$0xff]  }
 0xb27   :  { %17138 = vmatprep.subr.bf16.mxu1 %v24007_v44  ;;  %v24067_v44 = vld [vmem:[#allocation8 + $0xb24] ss:$20 sps:$4 sm:$0xff]  }
 0xb2a   :  { %17139 = vmatpush1.bf16.msra.mxu1 %v24005_v51  ;;  %v24065_v51 = vld [vmem:[#allocation8 + $0xb20] ss:$20 sps:$4 sm:$0xff]  }
 0xb2b   :  { %17140 = vmatprep.subr.bf16.mxu1 %v24010_v5  ;;  %v24070_v5 = vld [vmem:[#allocation8 + $0xb4c] ss:$20 sps:$4 sm:$0xff]  }
 0xb2e   :  { %17141 = vmatpush1.bf16.msra.mxu1 %v24008_v53  ;;  %v24068_v53 = vld [vmem:[#allocation8 + $0xb48] ss:$20 sps:$4 sm:$0xff]  }
 0xb2f   :  { %17142 = vmatprep.subr.bf16.mxu1 %v24013_v55  ;;  %v24073_v55 = vld [vmem:[#allocation8 + $0xb74] ss:$20 sps:$4 sm:$0xff]  }
 0xb30   :  { %v24778_v42 = vpop.f32.mrb[8].mxu1  ;;  %v20355_v11 = vpop.f32.mrb[12].mxu0 }
 0xb31   :  { %v24780_v49 = vpop.f32.mrb[9].mxu1  ;;  %v20356_v8 = vpop.f32.mrb[13].mxu0 }
 0xb32   :  { %17143 = vmatpush1.bf16.msra.mxu1 %v24011_v56  ;;  %v24782_v12 = vadd.f32 %v20356_v8, %v20355_v11  ;;  %v17006_v22 = vpop.f32.mrb[10].mxu1  ;;  %v20358_v63 = vpop.f32.mrb[14].mxu0  ;;  %v24071_v56 = vld [vmem:[#allocation8 + $0xb70] ss:$20 sps:$4 sm:$0xff]   ;;  %v24074_v11 = vld [vmem:[#allocation8 + $0xb98] ss:$20 sps:$4 sm:$0xff]  }
 0xb33   :  { %v17007_v0 = vpop.f32.mrb[11].mxu1  ;;  %v20359_v1 = vpop.f32.mrb[15].mxu0  ;;  %17144 = vmatprep.subr.bf16.mxu1 %v24016_v57  ;;  %v24076_v57 = vld [vmem:[#allocation8 + $0xb9c] ss:$20 sps:$4 sm:$0xff]   ;;  %v24079_v8 = vld [vmem:[#allocation8 + $0xbc4] ss:$20 sps:$4 sm:$0xff]  }
 0xb34   :  { %v24077_v22 = vld [vmem:[#allocation8 + $0xbc0] ss:$20 sps:$4 sm:$0xff]   ;;  %v24083_v1 = vld [vmem:[#allocation8 + $0xc10] ss:$20 sps:$4 sm:$0xff]  }
 0xb35   :  { %v24082_v63 = vld [vmem:[#allocation8 + $0xbec] ss:$20 sps:$4 sm:$0xff]   ;;  %v24085_v0 = vld [vmem:[#allocation8 + $0xc14] ss:$20 sps:$4 sm:$0xff]  }
 0xb36   :  { %17145 = vmatpush1.bf16.msra.mxu1 %v24014_v26  ;;  %v24080_v26 = vld [vmem:[#allocation8 + $0xbe8] ss:$20 sps:$4 sm:$0xff]  }
 0xb37   :  { %17146 = vmatprep.subr.bf16.mxu1 %v24019_v31  ;;  %v24088_v31 = vld [vmem:[#allocation8 + $0xc3c] ss:$20 sps:$4 sm:$0xff]  }
 0xb3a   :  { %17147 = vmatpush1.bf16.msra.mxu1 %v24017_v18  ;;  %v24086_v18 = vld [vmem:[#allocation8 + $0xc38] ss:$20 sps:$4 sm:$0xff]  }
 0xb3b   :  { %17148 = vmatprep.subr.bf16.mxu1 %v24022_v2  ;;  %v24091_v2 = vld [vmem:[#allocation8 + $0xc64] ss:$20 sps:$4 sm:$0xff]  }
 0xb3e   :  { %17149 = vmatpush1.bf16.msra.mxu1 %v24020_v24  ;;  %v24089_v24 = vld [vmem:[#allocation8 + $0xc60] ss:$20 sps:$4 sm:$0xff]  }
 0xb3f   :  { %17150 = vmatprep.subr.bf16.mxu1 %v24025_v6  ;;  %v24092_v6 = vld [vmem:[#allocation8 + $0x150] ss:$20 sps:$4 sm:$0xff]  }
 0xb42   :  { %17151 = vmatpush1.bf16.msra.mxu1 %v24023_v15  ;;  %v24093_v15 = vld [vmem:[#allocation8 + $0x10] ss:$20 sps:$4 sm:$0xff]  }
 0xb43   :  { %17152 = vmatprep.subr.bf16.mxu1 %v24028_v47  ;;  %v24094_v47 = vld [vmem:[#allocation8 + $0x178] ss:$20 sps:$4 sm:$0xff]  }
 0xb46   :  { %17153 = vmatpush1.bf16.msra.mxu1 %v24026_v19  ;;  %v24095_v19 = vld [vmem:[#allocation8 + $0x38] ss:$20 sps:$4 sm:$0xff]  }
 0xb47   :  { %17154 = vmatprep.subr.bf16.mxu1 %v24031_v38  ;;  %v24096_v38 = vld [vmem:[#allocation8 + $0x1a0] ss:$20 sps:$4 sm:$0xff]  }
 0xb4a   :  { %17155 = vmatpush1.bf16.msra.mxu1 %v24029_v13  ;;  %v24097_v13 = vld [vmem:[#allocation8 + $0x60] ss:$20 sps:$4 sm:$0xff]  }
 0xb4b   :  { %17156 = vmatprep.subr.bf16.mxu1 %v24034_v20  ;;  %v24098_v20 = vld [vmem:[#allocation8 + $0x1c8] ss:$20 sps:$4 sm:$0xff]  }
 0xb4e   :  { %17157 = vmatpush1.bf16.msra.mxu1 %v24032_v36  ;;  %v24099_v36 = vld [vmem:[#allocation8 + $0x88] ss:$20 sps:$4 sm:$0xff]  }
 0xb4f   :  { %17158 = vmatprep.subr.bf16.mxu1 %v24037_v62  ;;  %v24100_v62 = vld [vmem:[#allocation8 + $0x1f0] ss:$20 sps:$4 sm:$0xff]  }
 0xb52   :  { %17159 = vmatpush1.bf16.msra.mxu1 %v24035_v48  ;;  %v24101_v48 = vld [vmem:[#allocation8 + $0xb0] ss:$20 sps:$4 sm:$0xff]  }
 0xb53   :  { %17160 = vmatprep.subr.bf16.mxu1 %v24040_v43  ;;  %v24102_v43 = vld [vmem:[#allocation8 + $0x218] ss:$20 sps:$4 sm:$0xff]  }
 0xb56   :  { %17161 = vmatpush1.bf16.msra.mxu1 %v24038_v3  ;;  %v24104_v3 = vld [vmem:[#allocation8 + $0x240] ss:$20 sps:$4 sm:$0xff]  }
 0xb57   :  { %17162 = vmatprep.subr.bf16.mxu1 %v24043_v23  ;;  %v24106_v23 = vld [vmem:[#allocation8 + $0x268] ss:$20 sps:$4 sm:$0xff]  }
 0xb5a   :  { %17163 = vmatpush1.bf16.msra.mxu1 %v24041_v29  ;;  %v24107_v29 = vld [vmem:[#allocation8 + $0x128] ss:$20 sps:$4 sm:$0xff]  }
 0xb5b   :  { %17173 = vmatprep.subr.bf16.mxu1 %v24046_v17  ;;  %v24108_v17 = vld [vmem:[#allocation8 + $0x3d0] ss:$20 sps:$4 sm:$0xff]  }
 0xb5d   :  { %17165 = vmatmul.mubr.bf16.vlgmr.msra.gmra.mrb[12].mxu1 %v24743_v45 }
 0xb5e   :  { %17174 = vmatpush1.bf16.msra.mxu1 %v24044_v32  ;;  %17205 = vmatprep.mubr.bf16.mxu1 %v24763_v35  ;;  %v24062_v35 = vld [vmem:[#allocation8 + $0xaf8] ss:$20 sps:$4 sm:$0xff]   ;;  %v24109_v32 = vld [vmem:[#allocation8 + $0x290] ss:$20 sps:$4 sm:$0xff]  }
 0xb5f   :  { %17175 = vmatprep.subr.bf16.mxu1 %v24049_v46  ;;  %v24110_v46 = vld [vmem:[#allocation8 + $0x3f8] ss:$20 sps:$4 sm:$0xff]  }
 0xb62   :  { %17176 = vmatpush1.bf16.msra.mxu1 %v24047_v33  ;;  %v24172_v33 = vld [vmem:[#allocation11 + $0xc0] sm:$0xff]  }
 0xb63   :  { %17177 = vmatprep.subr.bf16.mxu1 %v24052_v52  ;;  %v24173_v52 = vld [vmem:[#allocation11 + $0x80] sm:$0xff]   ;;  %20383 = vmatprep.subr.bf16.mxu0 %v24172_v33 }
 0xb64   :  { %20384 = vmatpush3.bf16.msra.mxu0 %v24173_v52  ;;  %v24147_v33 = vld [vmem:[#allocation8 + $0x808] ss:$20 sps:$4 sm:$0xff]   ;;  %v24148_v52 = vld [vmem:[#allocation8 + $0x970] ss:$20 sps:$4 sm:$0xff]  }
 0xb66   :  { %17178 = vmatpush1.bf16.msra.mxu1 %v24050_v7  ;;  %v24174_v7 = vld [vmem:[#allocation11 + $0xc8] sm:$0xff]  }
 0xb67   :  { %17179 = vmatprep.subr.bf16.mxu1 %v24055_v34  ;;  %v24111_v34 = vld [vmem:[#allocation8 + $0x2b8] ss:$20 sps:$4 sm:$0xff]   ;;  %20385 = vmatprep.subr.bf16.mxu0 %v24174_v7  ;;  %v24149_v7 = vld [vmem:[#allocation8 + $0x830] ss:$20 sps:$4 sm:$0xff]  }
 0xb6a   :  { %17180 = vmatpush1.bf16.msra.mxu1 %v24053_v14  ;;  %v24112_v14 = vld [vmem:[#allocation8 + $0x420] ss:$20 sps:$4 sm:$0xff]  }
 0xb6b   :  { %17181 = vmatprep.subr.bf16.mxu1 %v24058_v4  ;;  %v24175_v4 = vld [vmem:[#allocation11 + $0x88] sm:$0xff]  }
 0xb6c   :  { %20386 = vmatpush3.bf16.msra.mxu0 %v24175_v4 }
 0xb6e   :  { %17182 = vmatpush1.bf16.msra.mxu1 %v24056_v10  ;;  %v24176_v10 = vld [vmem:[#allocation11 + $0xd0] sm:$0xff]  }
 0xb6f   :  { %17183 = vmatprep.subr.bf16.mxu1 %v24061_v27  ;;  %v24113_v27 = vld [vmem:[#allocation8 + $0x2e0] ss:$20 sps:$4 sm:$0xff]   ;;  %20387 = vmatprep.subr.bf16.mxu0 %v24176_v10 }
 0xb70   :  { %v24153_v10 = vld [vmem:[#allocation8 + $0x880] ss:$20 sps:$4 sm:$0xff]  }
 0xb72   :  { %17184 = vmatpush1.bf16.msra.mxu1 %v24059_v39  ;;  %v24114_v39 = vld [vmem:[#allocation8 + $0x448] ss:$20 sps:$4 sm:$0xff]  }
 0xb73   :  { %17185 = vmatprep.subr.bf16.mxu1 %v24064_v40  ;;  %v24178_v40 = vld [vmem:[#allocation11 + $0xd8] sm:$0xff]  }
 0xb76   :  { %17186 = vmatpush1.bf16.msra.mxu1 %v24062_v35  ;;  %v24115_v35 = vld [vmem:[#allocation8 + $0x308] ss:$20 sps:$4 sm:$0xff]  }
 0xb77   :  { %17187 = vmatprep.subr.bf16.mxu1 %v24067_v44  ;;  %v24179_v44 = vld [vmem:[#allocation11 + $0x98] sm:$0xff]  }
 0xb7a   :  { %17188 = vmatpush1.bf16.msra.mxu1 %v24065_v51  ;;  %v24180_v51 = vld [vmem:[#allocation11 + $0xe0] sm:$0xff]  }
 0xb7b   :  { %17189 = vmatprep.subr.bf16.mxu1 %v24070_v5  ;;  %v24117_v5 = vld [vmem:[#allocation8 + $0x330] ss:$20 sps:$4 sm:$0xff]  }
 0xb7e   :  { %17190 = vmatpush1.bf16.msra.mxu1 %v24068_v53  ;;  %v24118_v53 = vld [vmem:[#allocation8 + $0x498] ss:$20 sps:$4 sm:$0xff]  }
 0xb7f   :  { %17191 = vmatprep.subr.bf16.mxu1 %v24073_v55  ;;  %v24181_v55 = vld [vmem:[#allocation11 + $0xa0] sm:$0xff]  }
 0xb82   :  { %17192 = vmatpush1.bf16.msra.mxu1 %v24071_v56  ;;  %v24182_v56 = vld [vmem:[#allocation11 + $0xe8] sm:$0xff]  }
 0xb83   :  { %17193 = vmatprep.subr.bf16.mxu1 %v24076_v57  ;;  %v24119_v57 = vld [vmem:[#allocation8 + $0x358] ss:$20 sps:$4 sm:$0xff]  }
 0xb86   :  { %17194 = vmatpush1.bf16.msra.mxu1 %v24074_v11  ;;  %v24120_v11 = vld [vmem:[#allocation8 + $0x4c0] ss:$20 sps:$4 sm:$0xff]  }
 0xb87   :  { %17195 = vmatprep.subr.bf16.mxu1 %v24079_v8  ;;  %v24183_v8 = vld [vmem:[#allocation11 + $0xa8] sm:$0xff]  }
 0xb8a   :  { %17196 = vmatpush1.bf16.msra.mxu1 %v24077_v22  ;;  %v24121_v22 = vld [vmem:[#allocation8 + $0x380] ss:$20 sps:$4 sm:$0xff]  }
 0xb8b   :  { %17197 = vmatprep.subr.bf16.mxu1 %v24082_v63  ;;  %v24122_v63 = vld [vmem:[#allocation8 + $0x4e8] ss:$20 sps:$4 sm:$0xff]  }
 0xb8e   :  { %17198 = vmatpush1.bf16.msra.mxu1 %v24080_v26  ;;  %v24123_v26 = vld [vmem:[#allocation8 + $0x3a8] ss:$20 sps:$4 sm:$0xff]  }
 0xb8f   :  { %17199 = vmatprep.subr.bf16.mxu1 %v24085_v0  ;;  %v24124_v0 = vld [vmem:[#allocation8 + $0x650] ss:$20 sps:$4 sm:$0xff]  }
 0xb92   :  { %17200 = vmatpush1.bf16.msra.mxu1 %v24083_v1  ;;  %v24125_v1 = vld [vmem:[#allocation8 + $0x510] ss:$20 sps:$4 sm:$0xff]  }
 0xb93   :  { %17201 = vmatprep.subr.bf16.mxu1 %v24088_v31  ;;  %v24126_v31 = vld [vmem:[#allocation8 + $0x678] ss:$20 sps:$4 sm:$0xff]  }
 0xb96   :  { %17202 = vmatpush1.bf16.msra.mxu1 %v24086_v18  ;;  %v24127_v18 = vld [vmem:[#allocation8 + $0x538] ss:$20 sps:$4 sm:$0xff]  }
 0xb97   :  { %17203 = vmatprep.subr.bf16.mxu1 %v24091_v2  ;;  %v24128_v2 = vld [vmem:[#allocation8 + $0x6a0] ss:$20 sps:$4 sm:$0xff]  }
 0xb9a   :  { %17204 = vmatpush1.bf16.msra.mxu1 %v24089_v24  ;;  %v24129_v24 = vld [vmem:[#allocation8 + $0x560] ss:$20 sps:$4 sm:$0xff]  }
 0xb9b   :  { %20251 = vmatprep.subr.bf16.mxu1 %v24092_v6  ;;  %v24130_v6 = vld [vmem:[#allocation8 + $0x6c8] ss:$20 sps:$4 sm:$0xff]  }
 0xb9d   :  { %17206 = vmatmul.mubr.bf16.vlgmr.msra.gmra.mrb[12].mxu1 %v24765_v37  ;;  %v24103_v37 = vld [vmem:[#allocation8 + $0xd8] ss:$20 sps:$4 sm:$0xff]  }
 0xb9e   :  { %20252 = vmatpush3.bf16.msra.mxu1 %v24093_v15  ;;  %17246 = vmatprep.mubr.bf16.mxu1 %v24683_v58  ;;  %v24105_v58 = vld [vmem:[#allocation8 + $0x100] ss:$20 sps:$4 sm:$0xff]   ;;  %v24131_v15 = vld [vmem:[#allocation8 + $0x588] ss:$20 sps:$4 sm:$0xff]  }
 0xb9f   :  { %20253 = vmatprep.subr.bf16.mxu1 %v24094_v47  ;;  %v24132_v47 = vld [vmem:[#allocation8 + $0x6f0] ss:$20 sps:$4 sm:$0xff]  }
 0xba2   :  { %20254 = vmatpush3.bf16.msra.mxu1 %v24095_v19  ;;  %v24133_v19 = vld [vmem:[#allocation8 + $0x5b0] ss:$20 sps:$4 sm:$0xff]  }
 0xba3   :  { %20255 = vmatprep.subr.bf16.mxu1 %v24096_v38  ;;  %v24134_v38 = vld [vmem:[#allocation8 + $0x718] ss:$20 sps:$4 sm:$0xff]  }
 0xba6   :  { %20256 = vmatpush3.bf16.msra.mxu1 %v24097_v13  ;;  %v24136_v13 = vld [vmem:[#allocation8 + $0x740] ss:$20 sps:$4 sm:$0xff]  }
 0xba7   :  { %20257 = vmatprep.subr.bf16.mxu1 %v24098_v20  ;;  %v24185_v20 = vld [vmem:[#allocation11 + $0xb0] sm:$0xff]  }
 0xbaa   :  { %20258 = vmatpush3.bf16.msra.mxu1 %v24099_v36  ;;  %v24137_v36 = vld [vmem:[#allocation8 + $0x600] ss:$20 sps:$4 sm:$0xff]  }
 0xbab   :  { %20259 = vmatprep.subr.bf16.mxu1 %v24100_v62  ;;  %v24138_v62 = vld [vmem:[#allocation8 + $0x768] ss:$20 sps:$4 sm:$0xff]  }
 0xbae   :  { %20260 = vmatpush3.bf16.msra.mxu1 %v24101_v48  ;;  %v24186_v48 = vld [vmem:[#allocation11 + $0xf8] sm:$0xff]  }
 0xbaf   :  { %20261 = vmatprep.subr.bf16.mxu1 %v24102_v43  ;;  %v24187_v43 = vld [vmem:[#allocation11 + $0xb8] sm:$0xff]  }
 0xbb2   :  { %20262 = vmatpush3.bf16.msra.mxu1 %v24103_v37  ;;  %v24139_v37 = vld [vmem:[#allocation8 + $0x628] ss:$20 sps:$4 sm:$0xff]  }
 0xbb3   :  { %20263 = vmatprep.subr.bf16.mxu1 %v24104_v3  ;;  %v24140_v3 = vld [vmem:[#allocation8 + $0x8d0] ss:$20 sps:$4 sm:$0xff]  }
 0xbb6   :  { %20264 = vmatpush3.bf16.msra.mxu1 %v24105_v58  ;;  %v24141_v58 = vld [vmem:[#allocation8 + $0x790] ss:$20 sps:$4 sm:$0xff]  }
 0xbb7   :  { %20265 = vmatprep.subr.bf16.mxu1 %v24106_v23  ;;  %v24142_v23 = vld [vmem:[#allocation8 + $0x8f8] ss:$20 sps:$4 sm:$0xff]  }
 0xbba   :  { %20266 = vmatpush3.bf16.msra.mxu1 %v24107_v29  ;;  %v24143_v29 = vld [vmem:[#allocation8 + $0x7b8] ss:$20 sps:$4 sm:$0xff]  }
 0xbbb   :  { %20273 = vmatprep.subr.bf16.mxu1 %v24108_v17  ;;  %v24144_v17 = vld [vmem:[#allocation8 + $0x920] ss:$20 sps:$4 sm:$0xff]  }
 0xbbd   :  { %17247 = vmatmul.mubr.bf16.vlgmr.msra.gmra.mrb[16].mxu1 %v24700_v59  ;;  %v24177_v59 = vld [vmem:[#allocation11 + $0x90] sm:$0xff]  }
 0xbbe   :  { %20274 = vmatpush3.bf16.msra.mxu1 %v24109_v32  ;;  %17286 = vmatprep.mubr.bf16.mxu1 %v24702_v61  ;;  %v24116_v61 = vld [vmem:[#allocation8 + $0x470] ss:$20 sps:$4 sm:$0xff]   ;;  %v24145_v32 = vld [vmem:[#allocation8 + $0x7e0] ss:$20 sps:$4 sm:$0xff]  }
 0xbbf   :  { %20275 = vmatprep.subr.bf16.mxu1 %v24110_v46  ;;  %20388 = vmatpush3.bf16.msra.mxu0 %v24177_v59  ;;  %v24146_v46 = vld [vmem:[#allocation8 + $0x948] ss:$20 sps:$4 sm:$0xff]  }
 0xbc0   :  { %20389 = vmatprep.subr.bf16.mxu0 %v24178_v40  ;;  %v24155_v59 = vld [vmem:[#allocation8 + $0x8a8] ss:$20 sps:$4 sm:$0xff]  }
 0xbc1   :  { %v24156_v40 = vld [vmem:[#allocation11 + $0x40] sm:$0xff]  }
 0xbc2   :  { %20276 = vmatpush3.bf16.msra.mxu1 %v24111_v34  ;;  %v24150_v34 = vld [vmem:[#allocation8 + $0x998] ss:$20 sps:$4 sm:$0xff]  }
 0xbc3   :  { %20277 = vmatprep.subr.bf16.mxu1 %v24112_v14  ;;  %20390 = vmatpush3.bf16.msra.mxu0 %v24179_v44  ;;  %v24794_v14 = vld [vmem:[#allocation10] sm:$0x1f]  ;;  %v24158_v44 = vld [vmem:[#allocation11 + $0x48] sm:$0xff]  }
 0xbc4   :  { %20391 = vmatprep.subr.bf16.mxu0 %v24180_v51  ;;  %v14706_v4 = vrot.slane %v24794_v14, %v24676_v25  ;;  %v24159_v25 = vld [vmem:[#allocation11 + $0x8] sm:$0xff]  }
 0xbc6   :  { %20278 = vmatpush3.bf16.msra.mxu1 %v24113_v27  ;;  %v24154_v27 = vld [vmem:[#allocation8 + $0x9e8] ss:$20 sps:$4 sm:$0xff]  }
 0xbc7   :  { %20279 = vmatprep.subr.bf16.mxu1 %v24114_v39  ;;  %20392 = vmatpush3.bf16.msra.mxu0 %v24181_v55  ;;  %v20445_v39 = vadd.f32 %v24780_v49, %v14706_v4  ;;  %v24162_v49 = vld [vmem:[#allocation11 + $0x58] sm:$0xff]  }
 0xbc8   :  { %20393 = vmatprep.subr.bf16.mxu0 %v24182_v56  ;;  %v24163_v55 = vld [vmem:[#allocation11 + $0x18] sm:$0xff]   ;;  %v24164_v56 = vld [vmem:[#allocation11 + $0x60] sm:$0xff]  }
 0xbca   :  { %20280 = vmatpush3.bf16.msra.mxu1 %v24115_v35  ;;  %v17415_v35 = vmax.f32 %v20445_v39, 0.0 }
 0xbcb   :  { %20281 = vmatprep.subr.bf16.mxu1 %v24116_v61  ;;  %20394 = vmatpush3.bf16.msra.mxu0 %v24183_v8  ;;  %v24157_v61 = vld [vmem:[#allocation11] sm:$0xff]   ;;  %v24167_v8 = vld [vmem:[#allocation11 + $0x28] sm:$0xff]  }
 0xbcc   :  { %v17420_v51 = vpack.c.bf16 %v17415_v35, %v17415_v35 }
 0xbce   :  { %20282 = vmatpush3.bf16.msra.mxu1 %v24117_v5  ;;  %v24160_v5 = vld [vmem:[#allocation11 + $0x50] sm:$0xff]  }
 0xbcf   :  { %20283 = vmatprep.subr.bf16.mxu1 %v24118_v53  ;;  %v24161_v53 = vld [vmem:[#allocation11 + $0x10] sm:$0xff]  }
 0xbd2   :  { %20284 = vmatpush3.bf16.msra.mxu1 %v24119_v57  ;;  %v24165_v57 = vld [vmem:[#allocation11 + $0x20] sm:$0xff]  }
 0xbd3   :  { %20285 = vmatprep.subr.bf16.mxu1 %v24120_v11  ;;  %v24166_v11 = vld [vmem:[#allocation11 + $0x68] sm:$0xff]  }
 0xbd6   :  { %20286 = vmatpush3.bf16.msra.mxu1 %v24121_v22  ;;  %v24168_v22 = vld [vmem:[#allocation11 + $0x70] sm:$0xff]  }
 0xbd7   :  { %20287 = vmatprep.subr.bf16.mxu1 %v24122_v63  ;;  %v24169_v63 = vld [vmem:[#allocation11 + $0x30] sm:$0xff]  }
 0xbda   :  { %20288 = vmatpush3.bf16.msra.mxu1 %v24123_v26 }
 0xbdb   :  { %20295 = vmatprep.subr.bf16.mxu1 %v24124_v0  ;;  %v24170_v0 = vld [vmem:[#allocation11 + $0x78] sm:$0xff]  }
 0xbdd   :  { %17287 = vmatmul.mubr.bf16.vlgmr.msra.gmra.mrb[20].mxu1 %v24713_v60  ;;  %v24135_v60 = vld [vmem:[#allocation8 + $0x5d8] ss:$20 sps:$4 sm:$0xff]  }
 0xbde   :  { %20296 = vmatpush3.bf16.msra.mxu1 %v24125_v1  ;;  %17326 = vmatprep.mubr.bf16.mxu1 %v24730_v41  ;;  %v24184_v41 = vld [vmem:[#allocation11 + $0xf0] sm:$0xff]   ;;  %v24171_v1 = vld [vmem:[#allocation11 + $0x38] sm:$0xff]  }
 0xbdf   :  { %20297 = vmatprep.subr.bf16.mxu1 %v24126_v31  ;;  %20395 = vmatprep.subr.bf16.mxu0 %v24184_v41 }
 0xbe0   :  { %20396 = vmatpush3.bf16.msra.mxu0 %v24185_v20 }
 0xbe1   :  { %20397 = vmatprep.subr.bf16.mxu0 %v24186_v48 }
 0xbe2   :  { %20298 = vmatpush3.bf16.msra.mxu1 %v24127_v18 }
 0xbe3   :  { %20299 = vmatprep.subr.bf16.mxu1 %v24128_v2  ;;  %v24188_v2 = vld [vmem:[#allocation11 + $0x100] sm:$0xff]  }
 0xbe4   :  { %20398 = vmatpush3.bf16.msra.mxu0 %v24187_v43  ;;  %v24194_v43 = vld [vmem:[#allocation11 + $0x130] sm:$0xff]  }
 0xbe6   :  { %20300 = vmatpush3.bf16.msra.mxu1 %v24129_v24  ;;  %v24396_v24 = vmov 0.0  }
 0xbe7   :  { %20301 = vmatprep.subr.bf16.mxu1 %v24130_v6  ;;  %v24190_v6 = vld [vmem:[#allocation11 + $0x110] sm:$0xff]  }
 0xbea   :  { %20302 = vmatpush3.bf16.msra.mxu1 %v24131_v15  ;;  %v24192_v15 = vld [vmem:[#allocation11 + $0x120] sm:$0xff]  }
 0xbeb   :  { %20303 = vmatprep.subr.bf16.mxu1 %v24132_v47  ;;  %v14710_v47 = vrot.slane %v24794_v14, %v2097_v30 }
 0xbee   :  { %20304 = vmatpush3.bf16.msra.mxu1 %v24133_v19  ;;  %v14714_v19 = vrot.slane %v24794_v14, %v2101_v28 }
 0xbef   :  { %20305 = vmatprep.subr.bf16.mxu1 %v24134_v38  ;;  %v24193_v38 = vld [vmem:[#allocation11 + $0x128] sm:$0xff]  }
 0xbf2   :  { %20306 = vmatpush3.bf16.msra.mxu1 %v24135_v60 }
 0xbf3   :  { %20307 = vmatprep.subr.bf16.mxu1 %v24136_v13 }
 0xbf6   :  { %20308 = vmatpush3.bf16.msra.mxu1 %v24137_v36 }
 0xbf7   :  { %20309 = vmatprep.subr.bf16.mxu1 %v24138_v62 }
 0xbfa   :  { %20310 = vmatpush3.bf16.msra.mxu1 %v24139_v37 }
 0xbfb   :  { %20317 = vmatprep.subr.bf16.mxu1 %v24140_v3 }
 0xbfd   :  { %17327 = vmatmul.mubr.bf16.vlgmr.msra.gmra.mrb[24].mxu1 %v24732_v50  ;;  %v24151_v50 = vld [vmem:[#allocation8 + $0x858] ss:$20 sps:$4 sm:$0xff]  }
 0xbfe   :  { %20318 = vmatpush3.bf16.msra.mxu1 %v24141_v58  ;;  %17366 = vmatprep.mubr.bf16.mxu1 %v24735_v54  ;;  %v24152_v54 = vld [vmem:[#allocation8 + $0x9c0] ss:$20 sps:$4 sm:$0xff]  }
 0xbff   :  { %20319 = vmatprep.subr.bf16.mxu1 %v24142_v23  ;;  %v24195_v58 = vld [vmem:[#allocation11 + $0x138] sm:$0xff]  }
 0xc02   :  { %20320 = vmatpush3.bf16.msra.mxu1 %v24143_v29 }
 0xc03   :  { %20321 = vmatprep.subr.bf16.mxu1 %v24144_v17 }
 0xc06   :  { %20322 = vmatpush3.bf16.msra.mxu1 %v24145_v32 }
 0xc07   :  { %20323 = vmatprep.subr.bf16.mxu1 %v24146_v46  ;;  %v14718_v46 = vrot.slane %v24794_v14, %v2105_v9 }
 0xc0a   :  { %20324 = vmatpush3.bf16.msra.mxu1 %v24147_v33 }
 0xc0b   :  { %20325 = vmatprep.subr.bf16.mxu1 %v24148_v52 }
 0xc0e   :  { %20326 = vmatpush3.bf16.msra.mxu1 %v24149_v7 }
 0xc0f   :  { %20327 = vmatprep.subr.bf16.mxu1 %v24150_v34 }
 0xc12   :  { %20328 = vmatpush3.bf16.msra.mxu1 %v24151_v50 }
 0xc13   :  { %20329 = vmatprep.subr.bf16.mxu1 %v24152_v54 }
 0xc16   :  { %20330 = vmatpush3.bf16.msra.mxu1 %v24153_v10 }
 0xc17   :  { %20331 = vmatprep.subr.bf16.mxu1 %v24154_v27 }
 0xc1a   :  { %20332 = vmatpush3.bf16.msra.mxu1 %v24155_v59 }
 0xc1b   :  { %20361 = vmatprep.subr.bf16.mxu1 %v24156_v40 }
 0xc1d   :  { %17367 = vmatmul.mubr.bf16.vlgmr.msra.gmra.mrb[28].mxu1 %v24743_v45  ;;  %v14702_v45 = vrot.slane %v24794_v14, %v24690_v21  ;;  %v24189_v21 = vld [vmem:[#allocation11 + $0x108] sm:$0xff]  }
 0xc1e   :  { %20362 = vmatpush3.bf16.msra.mxu1 %v24157_v61  ;;  %17783 = vmatprep.mubr.bf16.mxu1 %v17420_v51 }
 0xc1f   :  { %20363 = vmatprep.subr.bf16.mxu1 %v24158_v44  ;;  %v20444_v26 = vadd.f32 %v24778_v42, %v14702_v45  ;;  %v24191_v42 = vld [vmem:[#allocation11 + $0x118] sm:$0xff]  }
 0xc21   :  { %v17414_v31 = vmax.f32 %v20444_v26, 0.0 }
 0xc22   :  { %20364 = vmatpush3.bf16.msra.mxu1 %v24159_v25 }
 0xc23   :  { %20365 = vmatprep.subr.bf16.mxu1 %v24160_v5  ;;  %v17419_v18 = vpack.c.bf16 %v17414_v31, %v17414_v31 }
 0xc26   :  { %20366 = vmatpush3.bf16.msra.mxu1 %v24161_v53 }
 0xc27   :  { %20367 = vmatprep.subr.bf16.mxu1 %v24162_v49 }
 0xc2a   :  { %20368 = vmatpush3.bf16.msra.mxu1 %v24163_v55 }
 0xc2b   :  { %20369 = vmatprep.subr.bf16.mxu1 %v24164_v56 }
 0xc2e   :  { %20370 = vmatpush3.bf16.msra.mxu1 %v24165_v57 }
 0xc2f   :  { %20371 = vmatprep.subr.bf16.mxu1 %v24166_v11 }
 0xc32   :  { %20372 = vmatpush3.bf16.msra.mxu1 %v24167_v8  ;;  %v20210_v8 = vld [vmem:[#allocation13] ss:$0 sm:$0xff] }
 0xc33   :  { %20373 = vmatprep.subr.bf16.mxu1 %v24168_v22 }
 0xc36   :  { %20374 = vmatpush3.bf16.msra.mxu1 %v24169_v63 }
 0xc37   :  { %20375 = vmatprep.subr.bf16.mxu1 %v24170_v0 }
 0xc3a   :  { %20376 = vmatpush3.bf16.msra.mxu1 %v24171_v1 }
 0xc3b   :  { %20414 = vmatprep.subr.bf16.mxu1 %v24396_v24 }
 0xc3d   :  { %17784 = vmatmul.mubr.bf16.vlgmr.msra.gmra.mrb[32].mxu1 %v17419_v18 }
 0xc3e   :  { %20415 = vmatpush3.bf16.msra.mxu1 %v24188_v2  ;;  %20430 = vmatprep.mubr.msk.bf16.mxu1 %vm24397_vm0, %v24396_v24 }
 0xc3f   :  { %20416 = vmatprep.subr.bf16.mxu1 %v24396_v24 }
 0xc42   :  { %20417 = vmatpush3.bf16.msra.mxu1 %v24189_v21 }
 0xc43   :  { %20418 = vmatprep.subr.bf16.mxu1 %v24396_v24 }
 0xc46   :  { %20419 = vmatpush3.bf16.msra.mxu1 %v24190_v6 }
 0xc47   :  { %20420 = vmatprep.subr.bf16.mxu1 %v24396_v24 }
 0xc4a   :  { %20421 = vmatpush3.bf16.msra.mxu1 %v24191_v42 }
 0xc4b   :  { %20422 = vmatprep.subr.bf16.mxu1 %v24396_v24 }
 0xc4e   :  { %20423 = vmatpush3.bf16.msra.mxu1 %v24192_v15 }
 0xc4f   :  { %20424 = vmatprep.subr.bf16.mxu1 %v24396_v24 }
 0xc52   :  { %20425 = vmatpush3.bf16.msra.mxu1 %v24193_v38 }
 0xc53   :  { %20426 = vmatprep.subr.bf16.mxu1 %v24396_v24 }
 0xc56   :  { %20427 = vmatpush3.bf16.msra.mxu1 %v24194_v43 }
 0xc57   :  { %20428 = vmatprep.subr.bf16.mxu1 %v24396_v24 }
 0xc5a   :  { %20429 = vmatpush3.bf16.msra.mxu1 %v24195_v58 }
 0xc70   :  { %v17207_v60 = vpop.f32.mrb[12].mxu1 }
 0xc71   :  { %v20446_v13 = vadd.f32 %v17207_v60, %v14710_v47  ;;  %v17209_v41 = vpop.f32.mrb[13].mxu1 }
 0xc72   :  { %v20447_v20 = vadd.f32 %v17209_v41, %v14714_v19  ;;  %v17211_v36 = vpop.f32.mrb[14].mxu1 }
 0xc73   :  { %v17416_v62 = vmax.f32 %v20446_v13, 0.0  ;;  %v17212_v48 = vpop.f32.mrb[15].mxu1 }
 0xc74   :  { %v17417_v37 = vmax.f32 %v20447_v20, 0.0 }
 0xc75   :  { %v17421_v30 = vpack.c.bf16 %v17416_v62, %v17416_v62 }
 0xc76   :  { %v17422_v3 = vpack.c.bf16 %v17417_v37, %v17417_v37 }
 0xc78   :  { %17823 = vmatprep.mubr.bf16.mxu0 %v17422_v3 }
 0xc79   :  { %17824 = vmatmul.mubr.bf16.vlgmr.msra.gmra.mrb[16].mxu0 %v17421_v30 }
 0xc90   :  { %v20267_v28 = vpop.f32.mrb[16].mxu1 }
 0xc91   :  { %v20268_v23 = vpop.f32.mrb[17].mxu1 }
 0xc92   :  { %v20269_v29 = vadd.f32 %v20268_v23, %v20267_v28  ;;  %v20270_v17 = vpop.f32.mrb[18].mxu1 }
 0xc93   :  { %v20271_v32 = vpop.f32.mrb[19].mxu1 }
 0xc94   :  { %v17249_v7 = vadd.f32 %v20269_v29, %v14718_v46 }
 0xcb0   :  { %v20289_v33 = vpop.f32.mrb[20].mxu1 }
 0xcb1   :  { %v20290_v52 = vpop.f32.mrb[21].mxu1 }
 0xcb2   :  { %v20291_v34 = vadd.f32 %v20290_v52, %v20289_v33  ;;  %v20292_v50 = vpop.f32.mrb[22].mxu1 }
 0xcb3   :  { %v20293_v54 = vpop.f32.mrb[23].mxu1 }
 0xcb4   :  { %v17289_v4 = vadd.f32 %v20291_v34, %v17249_v7 }
 0xcd0   :  { %v20311_v10 = vpop.f32.mrb[24].mxu1 }
 0xcd1   :  { %v20312_v27 = vpop.f32.mrb[25].mxu1 }
 0xcd2   :  { %v20313_v39 = vadd.f32 %v20312_v27, %v20311_v10  ;;  %v20314_v59 = vpop.f32.mrb[26].mxu1 }
 0xcd3   :  { %v20315_v40 = vpop.f32.mrb[27].mxu1 }
 0xcd4   :  { %v17329_v35 = vadd.f32 %v20313_v39, %v17289_v4 }
 0xcf0   :  { %v20333_v61 = vpop.f32.mrb[28].mxu1 }
 0xcf1   :  { %v20334_v44 = vpop.f32.mrb[29].mxu1 }
 0xcf2   :  { %v20335_v51 = vadd.f32 %v20334_v44, %v20333_v61  ;;  %v20336_v25 = vpop.f32.mrb[30].mxu1 }
 0xcf3   :  { %v20337_v16 = vpop.f32.mrb[31].mxu1 }
 0xcf4   :  { %v17369_v5 = vadd.f32 %v20335_v51, %v17329_v35 }
 0xcf6   :  { %v17409_v9 = vadd.f32 %v24782_v12, %v17369_v5 }
 0xcf8   :  { %v17418_v14 = vmax.f32 %v17409_v9, 0.0 }
 0xcfa   :  { %v17423_v53 = vpack.c.bf16 %v17418_v14, %v17418_v14 }
 0xcfc   :  { %20431 = vmatmul.mubr.bf16.vlgmr.msra.gmra.mrb[36].mxu1 %v17423_v53 }
 0xd10   :  { %v20377_v49 = vpop.f32.mrb[32].mxu1 }
 0xd11   :  { %v20378_v55 = vpop.f32.mrb[33].mxu1 }
 0xd12   :  { %v20379_v56 = vadd.f32 %v20378_v55, %v20377_v49  ;;  %v20380_v57 = vpop.f32.mrb[34].mxu1 }
 0xd13   :  { %v20381_v11 = vpop.f32.mrb[35].mxu1 }
 0xd14   :  { %v17786_v63 = vadd.f32 %v20379_v56, %v20210_v8 }
 0xd4c   :  { %v20399_v45 = vpop.f32.mrb[16].mxu0 }
 0xd4d   :  { %v20400_v22 = vpop.f32.mrb[17].mxu0 }
 0xd4e   :  { %v20401_v26 = vadd.f32 %v20400_v22, %v20399_v45  ;;  %v20402_v0 = vpop.f32.mrb[18].mxu0 }
 0xd4f   :  { %v20403_v1 = vpop.f32.mrb[19].mxu0 }
 0xd50   :  { %v17826_v31 = vadd.f32 %v20401_v26, %v17786_v63 }
 0xdcf   :  { %v17865_v18 = vpop.f32.mrb[36].mxu1 }
 0xdd0   :  { %v17866_v12 = vadd.f32 %v17865_v18, %v17826_v31  ;;  %v20432_v2 = vpop.f32.mrb[37].mxu1 }
 0xdd1   :  { %v17868_v24 = vpop.f32.mrb[38].mxu1 }
 0xdd2   :  { %17871 = vst [vmem:[#allocation14] sm:$0xff] %v17866_v12  ;;  %v20433_v21 = vpop.f32.mrb[39].mxu1 }
 0xdd3   :  { %24362 = shalt.err (!%p24359_p4)
}
 0xdd4   :  { %s24363_s16 = scalar_lea.hbm %s24832_s7, 128 }
 0xdd5   :  { %p24364_p5 = scmp.ne.s32.totalorder %s24832_s7, %s24363_s16  ;;  %p24367_p6 = scmp.lt.u32.totalorder %s24363_s16, %s24832_s7 }
 0xdd7   :  { %p24369_p7 = pnand %p24367_p6, %p24364_p5 }
 0xdd9   :  { %24372 = shalt.err (!%p24369_p7)
}
 0xdda   :  { %17881 = dma.vmem_to_hbm [thread:$0]  %s17879_s14, 128, %s24832_s7, [#allocation4]  }
 0xddb   :  { %24381 = dma.done.wait [#allocation4], 128  }
 0xddc   :  { %24382 = vsyncadd [#allocation4], 4294967168 }
 0xddd   :  { %17885 = vsyncpa [#allocation3], 1 }
 0xdde   :  { %17886 = vsyncpa [#allocation6], 1 }
 0xddf   :  { %17887 = vsyncpa [#allocation9], 1 }
 0xde0   :  { %17888 = vsyncpa [#allocation12], 1 }
 0xde1   :  { %17889 = vsyncpa [#allocation4], 1 }

</bundles_post_ra>
